<compile_context>
chip_gen: v7x
topology: tpu7x:2x2x1
jax: 0.10.0
libtpu: 0.0.40
codegen_flags: <defaults>
</compile_context>

<pallas_src>
import functools

import jax
import jax.numpy as jnp
from jax.experimental import pallas as pl
from jax.experimental.pallas import tpu as pltpu


# ----------------------------------------------------------------------------
# helpers
# ----------------------------------------------------------------------------
def _round_up(x, m):
    return (x + m - 1) // m * m


def _choose_tile(dim, align, candidates):
    """Pad `dim` to `align`, then pick the largest candidate tile that divides it."""
    padded = _round_up(dim, align)
    for c in candidates:
        if padded >= c and padded % c == 0:
            return c, padded
    return padded, padded     # whole (aligned) dim as a single tile


# ----------------------------------------------------------------------------
# Pallas kernel 1: tiled matmul + bias (+ optional ReLU), bf16 MXU / f32 accum.
# Used for every conv layer (via im2col), LSTM input projections, embeddings.
# ----------------------------------------------------------------------------
def _matmul_bias_kernel(a_ref, b_ref, bias_ref, o_ref, acc_ref, *, relu, nk):
    @pl.when(pl.program_id(2) == 0)
    def _():
        acc_ref[...] = jnp.zeros_like(acc_ref)

    acc_ref[...] += jnp.dot(a_ref[...], b_ref[...],
                            preferred_element_type=jnp.float32)

    @pl.when(pl.program_id(2) == nk - 1)
    def _():
        out = acc_ref[...] + bias_ref[...]          # bias is (1, tn), broadcasts
        if relu:
            out = jnp.maximum(out, 0.0)
        o_ref[...] = out.astype(o_ref.dtype)


def matmul_bias(a, b, bias, relu=False, out_dtype=jnp.float32):
    """a: (M, K) @ b: (K, N) + bias (N,) [+ ReLU].  bf16 operands, f32 accumulation."""
    M, K = a.shape
    K2, N = b.shape
    assert K == K2
    tm, Mp = _choose_tile(M, 8, (512, 256, 128))
    tk, Kp = _choose_tile(K, 128, (512, 256, 128))
    tn, Np = _choose_tile(N, 128, (256, 128))

    a_p = jnp.pad(a.astype(jnp.bfloat16), ((0, Mp - M), (0, Kp - K)))
    b_p = jnp.pad(b.astype(jnp.bfloat16), ((0, Kp - K), (0, Np - N)))
    bias_p = jnp.pad(bias.astype(jnp.float32), (0, Np - N)).reshape(1, Np)

    nk = Kp // tk
    out = pl.pallas_call(
        functools.partial(_matmul_bias_kernel, relu=relu, nk=nk),
        out_shape=jax.ShapeDtypeStruct((Mp, Np), out_dtype),
        grid=(Mp // tm, Np // tn, nk),
        in_specs=[pl.BlockSpec((tm, tk), lambda i, j, k: (i, k)),
                  pl.BlockSpec((tk, tn), lambda i, j, k: (k, j)),
                  pl.BlockSpec((1, tn), lambda i, j, k: (0, j))],
        out_specs=pl.BlockSpec((tm, tn), lambda i, j, k: (i, j)),
        scratch_shapes=[pltpu.VMEM((tm, tn), jnp.float32)],
        compiler_params=pltpu.CompilerParams(
            dimension_semantics=("parallel", "parallel", "arbitrary")),
    )(a_p, b_p, bias_p)
    return out[:M, :N]


# ----------------------------------------------------------------------------
# Pallas kernel 2: bidirectional LSTM recurrence.  grid=(2,) = the two
# independent directions ("parallel" -> megacore on v7x).  The whole time loop
# runs inside the kernel; h/c carries live in VMEM scratch; gates are padded to
# 128-lane blocks so all slices/stores are lane-aligned.
# ----------------------------------------------------------------------------
def _bilstm_kernel(xp_ref, whh_ref, out_ref, h_scr, c_scr, *, seq_len, hp):
    h_scr[...] = jnp.zeros_like(h_scr)
    c_scr[...] = jnp.zeros_like(c_scr)
    whh = whh_ref[...]                               # (Hp, 4*Hp) bf16, loop-invariant

    def step(t, carry):
        # gates = x_t @ W_ih^T + b_ih + b_hh (precomputed)  +  h_{t-1} @ W_hh^T
        gates = xp_ref[t] + jnp.dot(h_scr[...].astype(whh.dtype), whh,
                                    preferred_element_type=jnp.float32)
        i = jax.nn.sigmoid(gates[:, 0 * hp:1 * hp])   # PyTorch gate order i,f,g,o
        f = jax.nn.sigmoid(gates[:, 1 * hp:2 * hp])
        g = jnp.tanh(gates[:, 2 * hp:3 * hp])
        o = jax.nn.sigmoid(gates[:, 3 * hp:4 * hp])
        c = f * c_scr[...] + i * g
        h = o * jnp.tanh(c)
        c_scr[...] = c
        h_scr[...] = h
        out_ref[t] = h                                # VMEM-resident; HBM write once
        return carry

    jax.lax.fori_loop(0, seq_len, step, 0, unroll=(seq_len <= 32))


def bidirectional_lstm_block(x, p):
    """x: (T, B, nIn).  nn.LSTM(nIn, H, bidirectional=True) + nn.Linear(2H, nOut)."""
    T, B, nIn = x.shape
    H = p['w_hh_f'].shape[1]
    Hp = _round_up(H, 128)                            # lane-aligned gate blocks

    def pad_gates_ih(w):                              # (4H, nIn) -> (4Hp, nIn)
        return jnp.pad(w.reshape(4, H, nIn), ((0, 0), (0, Hp - H), (0, 0))
                       ).reshape(4 * Hp, nIn)

    def pad_gates_hh(w):                              # (4H, H) -> (4Hp, Hp)
        return jnp.pad(w.reshape(4, H, H), ((0, 0), (0, Hp - H), (0, Hp - H))
                       ).reshape(4 * Hp, Hp)

    def pad_gates_b(b):                               # (4H,) -> (4Hp,)
        return jnp.pad(b.reshape(4, H), ((0, 0), (0, Hp - H))).reshape(4 * Hp)

    xps, whhs = [], []
    for tag, xseq in (('f', x), ('b', x[::-1])):
        w_ih = pad_gates_ih(p[f'w_ih_{tag}'])
        bias = pad_gates_b(p[f'b_ih_{tag}'] + p[f'b_hh_{tag}'])
        xp = matmul_bias(xseq.reshape(T * B, nIn), w_ih.T, bias)      # (T*B, 4Hp) f32
        xps.append(xp.reshape(T, B, 4 * Hp))
        whhs.append(pad_gates_hh(p[f'w_hh_{tag}']).T)                 # (Hp, 4Hp)
    xp_both = jnp.stack(xps, axis=0)                                  # (2, T, B, 4Hp)
    whh_both = jnp.stack(whhs, axis=0).astype(jnp.bfloat16)           # (2, Hp, 4Hp)

    hs = pl.pallas_call(
        functools.partial(_bilstm_kernel, seq_len=T, hp=Hp),
        out_shape=jax.ShapeDtypeStruct((2, T, B, Hp), jnp.float32),
        grid=(2,),
        in_specs=[pl.BlockSpec((pl.Squeezed(), T, B, 4 * Hp),
                               lambda d: (d, 0, 0, 0)),
                  pl.BlockSpec((pl.Squeezed(), Hp, 4 * Hp),
                               lambda d: (d, 0, 0))],
        out_specs=pl.BlockSpec((pl.Squeezed(), T, B, Hp),
                               lambda d: (d, 0, 0, 0)),
        scratch_shapes=[pltpu.VMEM((B, Hp), jnp.float32),
                        pltpu.VMEM((B, Hp), jnp.float32)],
        compiler_params=pltpu.CompilerParams(
            dimension_semantics=("parallel",)),       # two independent directions
    )(xp_both.astype(jnp.float32), whh_both)

    out_f = hs[0, :, :, :H]
    out_b = hs[1, ::-1, :, :H]                        # un-reverse backward direction
    rec = jnp.concatenate([out_f, out_b], axis=-1)    # (T, B, 2H)
    nOut = p['emb_w'].shape[0]
    y = matmul_bias(rec.reshape(T * B, 2 * H), p['emb_w'].T, p['emb_b'])
    return y.reshape(T, B, nOut)


# ----------------------------------------------------------------------------
# CNN glue: NHWC im2col conv (Pallas matmul), maxpool, fused BN+ReLU.
# ----------------------------------------------------------------------------
def conv2d_nhwc(x, w, b, pad, relu, out_dtype=jnp.bfloat16):
    """x: (B, H, W, C) NHWC; w: (Cout, Cin, kh, kw) (PyTorch layout); stride 1."""
    B, H, W, C = x.shape
    Cout, Cin, kh, kw = w.shape
    xp = jnp.pad(x, ((0, 0), (pad, pad), (pad, pad), (0, 0)))
    oh = H + 2 * pad - kh + 1
    ow = W + 2 * pad - kw + 1
    # im2col in NHWC: last-axis order is [(i, j) over kernel window, then Cin].
    patches = jnp.concatenate(
        [xp[:, i:i + oh, j:j + ow, :] for i in range(kh) for j in range(kw)],
        axis=-1)                                          # (B, oh, ow, kh*kw*C)
    wmat = w.transpose(2, 3, 1, 0).reshape(kh * kw * Cin, Cout)
    y = matmul_bias(patches.reshape(B * oh * ow, kh * kw * C), wmat, b,
                    relu=relu, out_dtype=out_dtype)
    return y.reshape(B, oh, ow, Cout)                     # no layout transpose


def maxpool2d_nhwc(x, kernel, stride, pad):
    return jax.lax.reduce_window(
        x, jnp.array(-jnp.inf, x.dtype), jax.lax.max,
        window_dimensions=(1, kernel[0], kernel[1], 1),
        window_strides=(1, stride[0], stride[1], 1),
        padding=((0, 0), (pad[0], pad[0]), (pad[1], pad[1]), (0, 0)))


def bn_relu(x, eps=1e-5):
    # Freshly-initialised BatchNorm2d in train mode: batch stats, gamma=1, beta=0.
    # Normalize + ReLU written as one expression so XLA fuses it into a single pass.
    x32 = x.astype(jnp.float32)
    mean = jnp.mean(x32, axis=(0, 1, 2), keepdims=True)
    var = jnp.mean(jnp.square(x32 - mean), axis=(0, 1, 2), keepdims=True)
    y = jnp.maximum((x32 - mean) * jax.lax.rsqrt(var + eps), 0.0)
    return y.astype(x.dtype)


def conv_block(x, p):
    if p['bn']:
        y = conv2d_nhwc(x, p['w'], p['b'], p['p'], relu=False)
        return bn_relu(y)
    return conv2d_nhwc(x, p['w'], p['b'], p['p'], relu=True)


def cnn_forward(x_nchw, convs):
    x = x_nchw.transpose(0, 2, 3, 1).astype(jnp.bfloat16)     # one-time NCHW -> NHWC
    x = conv_block(x, convs[0]); x = maxpool2d_nhwc(x, (2, 2), (2, 2), (0, 0))
    x = conv_block(x, convs[1]); x = maxpool2d_nhwc(x, (2, 2), (2, 2), (0, 0))
    x = conv_block(x, convs[2])
    x = conv_block(x, convs[3]); x = maxpool2d_nhwc(x, (2, 2), (2, 1), (0, 1))
    x = conv_block(x, convs[4])
    x = conv_block(x, convs[5]); x = maxpool2d_nhwc(x, (2, 2), (2, 1), (0, 1))
    x = conv_block(x, convs[6])
    return x                                                  # NHWC (b, 1, W', 512)


# ----------------------------------------------------------------------------
# Full CRNN forward
# ----------------------------------------------------------------------------
def crnn_forward(x, params):
    conv = cnn_forward(x, params['convs'])                    # (b, h, w, c) NHWC
    b, h, w, c = conv.shape
    assert h == 1, 'the height of conv must be 1'
    seq = conv[:, 0].transpose(1, 0, 2).astype(jnp.float32)   # (T=w, b, 512)
    y = bidirectional_lstm_block(seq, params['rnn1'])         # (T, b, nh)
    y = bidirectional_lstm_block(y, params['rnn2'])           # (T, b, nclass)
    return y


# ----------------------------------------------------------------------------
# Deterministic parameter initialisation
# ----------------------------------------------------------------------------
def _normal(key, shape, std):
    return std * jax.random.normal(key, shape, jnp.float32)


def init_crnn_params(key, nc, nh, nclass):
    keys = iter(jax.random.split(key, 64))
    conv_cfg = [(nc, 64, 3, 1, False), (64, 128, 3, 1, False),
                (128, 256, 3, 1, True), (256, 256, 3, 1, False),
                (256, 512, 3, 1, True), (512, 512, 3, 1, False),
                (512, 512, 2, 0, True)]
    convs = []
    for (cin, cout, k, p, bn) in conv_cfg:
        fan_in = cin * k * k
        convs.append({'w': _normal(next(keys), (cout, cin, k, k), 1.0 / (fan_in ** 0.5)),
                      'b': jnp.zeros((cout,), jnp.float32),
                      'k': k, 'p': p, 'bn': bn})

    def lstm_params(n_in, hidden, n_out):
        d = {}
        for tag in ('f', 'b'):
            d[f'w_ih_{tag}'] = _normal(next(keys), (4 * hidden, n_in), 1.0 / (n_in ** 0.5))
            d[f'w_hh_{tag}'] = _normal(next(keys), (4 * hidden, hidden), 1.0 / (hidden ** 0.5))
            d[f'b_ih_{tag}'] = _normal(next(keys), (4 * hidden,), 0.05)
            d[f'b_hh_{tag}'] = _normal(next(keys), (4 * hidden,), 0.05)
        d['emb_w'] = _normal(next(keys), (n_out, 2 * hidden), 1.0 / ((2 * hidden) ** 0.5))
        d['emb_b'] = jnp.zeros((n_out,), jnp.float32)
        return d

    return {'convs': convs,
            'rnn1': lstm_params(512, nh, nh),
            'rnn2': lstm_params(nh, nh, nclass)}


if __name__ == "__main__":
    B, nc, imgH, imgW = 2, 1, 32, 32      # imgH % 16 == 0
    nh, nclass = 32, 11

    params = init_crnn_params(jax.random.PRNGKey(0), nc, nh, nclass)
    x = jax.random.normal(jax.random.PRNGKey(0), (B, nc, imgH, imgW), jnp.float32)

    forward = jax.jit(lambda inp: crnn_forward(inp, params))
    out = forward(x)
    out = jax.block_until_ready(out)

    # CNN collapses 32x32 -> (1, 9), so the sequence length T is 9.
    assert out.shape == (9, B, nclass), out.shape
    assert bool(jnp.all(jnp.isfinite(out)))
    print("KERNEL_OK")
</pallas_src>

<mosaic_0001>
module attributes {stable_mosaic.version = 11 : i64} {
  func.func @_matmul_bias_kernel(%arg0: i32, %arg1: i32, %arg2: i32, %arg3: memref<512x128xbf16, #tpu.memory_space<vmem>>, %arg4: memref<128x128xbf16, #tpu.memory_space<vmem>>, %arg5: memref<1x128xf32, #tpu.memory_space<vmem>>, %arg6: memref<512x128xbf16, #tpu.memory_space<vmem>>, %arg7: memref<512x128xf32, #tpu.memory_space<vmem>>) attributes {dimension_semantics = [#tpu.dimension_semantics<parallel>, #tpu.dimension_semantics<parallel>, #tpu.dimension_semantics<arbitrary>], iteration_bounds = array<i64: 4, 1, 1>, scalar_prefetch = 0 : i64, scratch_operands = 1 : i64, tpu.core_type = #tpu.core_type<tc>, window_params = [{transform_indices = @transform_0, window_bounds = array<i64: 512, 128>}, {transform_indices = @transform_1, window_bounds = array<i64: 128, 128>}, {transform_indices = @transform_2, window_bounds = array<i64: 1, 128>}, {transform_indices = @transform_3, window_bounds = array<i64: 512, 128>}]} {
    %c0_i32 = arith.constant 0 : i32
    %0 = arith.cmpi eq, %arg2, %c0_i32 : i32
    %1 = arith.extui %0 : i1 to i32
    %c0_i32_0 = arith.constant 0 : i32
    %2 = arith.cmpi ne, %1, %c0_i32_0 : i32
    scf.if %2 {
      %cst_10 = arith.constant 0.000000e+00 : f32
      %12 = vector.broadcast %cst_10 : f32 to vector<512x128xf32>
      %c0_11 = arith.constant 0 : index
      %c0_12 = arith.constant 0 : index
      %13 = vector.load %arg7[%c0_11, %c0_12] : memref<512x128xf32, #tpu.memory_space<vmem>>, vector<512x128xf32>
      tpu.vector_store %arg7[%c0_11, %c0_12], %12 {strides = array<i32>} : memref<512x128xf32, #tpu.memory_space<vmem>>, vector<512x128xf32>,
    } else {
    }
    %c0 = arith.constant 0 : index
    %c0_1 = arith.constant 0 : index
    %3 = vector.load %arg7[%c0, %c0_1] : memref<512x128xf32, #tpu.memory_space<vmem>>, vector<512x128xf32>
    %c0_2 = arith.constant 0 : index
    %c0_3 = arith.constant 0 : index
    %4 = vector.load %arg3[%c0_2, %c0_3] : memref<512x128xbf16, #tpu.memory_space<vmem>>, vector<512x128xbf16>
    %c0_4 = arith.constant 0 : index
    %c0_5 = arith.constant 0 : index
    %5 = vector.load %arg4[%c0_4, %c0_5] : memref<128x128xbf16, #tpu.memory_space<vmem>>, vector<128x128xbf16>
    %cst = arith.constant dense<0.000000e+00> : vector<512x128xf32>
    %6 = tpu.matmul %4, %5, %cst {dimension_numbers = #tpu.dot_dimension_numbers<[1], [0], [0], [1], [0, 0, 1, 1], [], []>} : vector<512x128xbf16>, vector<128x128xbf16>, vector<512x128xf32> -> vector<512x128xf32>
    %7 = arith.addf %3, %6 : vector<512x128xf32>
    %c0_6 = arith.constant 0 : index
    %c0_7 = arith.constant 0 : index
    %8 = vector.load %arg7[%c0_6, %c0_7] : memref<512x128xf32, #tpu.memory_space<vmem>>, vector<512x128xf32>
    tpu.vector_store %arg7[%c0_6, %c0_7], %7 {strides = array<i32>} : memref<512x128xf32, #tpu.memory_space<vmem>>, vector<512x128xf32>,
    %c0_i32_8 = arith.constant 0 : i32
    %9 = arith.cmpi eq, %arg2, %c0_i32_8 : i32
    %10 = arith.extui %9 : i1 to i32
    %c0_i32_9 = arith.constant 0 : i32
    %11 = arith.cmpi ne, %10, %c0_i32_9 : i32
    scf.if %11 {
      %c0_10 = arith.constant 0 : index
      %c0_11 = arith.constant 0 : index
      %12 = vector.load %arg7[%c0_10, %c0_11] : memref<512x128xf32, #tpu.memory_space<vmem>>, vector<512x128xf32>
      %c0_12 = arith.constant 0 : index
      %c0_13 = arith.constant 0 : index
      %13 = vector.load %arg5[%c0_12, %c0_13] : memref<1x128xf32, #tpu.memory_space<vmem>>, vector<1x128xf32>
      %14 = vector.broadcast %13 : vector<1x128xf32> to vector<512x128xf32>
      %15 = arith.addf %12, %14 : vector<512x128xf32>
      %cst_14 = arith.constant 0.000000e+00 : f32
      %16 = vector.broadcast %cst_14 : f32 to vector<512x128xf32>
      %17 = arith.maximumf %15, %16 : vector<512x128xf32>
      %18 = arith.truncf %17 : vector<512x128xf32> to vector<512x128xbf16>
      %c0_15 = arith.constant 0 : index
      %c0_16 = arith.constant 0 : index
      %19 = vector.load %arg6[%c0_15, %c0_16] : memref<512x128xbf16, #tpu.memory_space<vmem>>, vector<512x128xbf16>
      tpu.vector_store %arg6[%c0_15, %c0_16], %18 {strides = array<i32>} : memref<512x128xbf16, #tpu.memory_space<vmem>>, vector<512x128xbf16>,
    } else {
    }
    return
  }
  func.func @transform_0(%arg0: i32, %arg1: i32, %arg2: i32) -> (i32, i32) {
    %c0_i32 = arith.constant 0 : i32
    return %arg0, %arg2 : i32, i32
  }
  func.func @transform_1(%arg0: i32, %arg1: i32, %arg2: i32) -> (i32, i32) {
    %c0_i32 = arith.constant 0 : i32
    return %arg2, %arg1 : i32, i32
  }
  func.func @transform_2(%arg0: i32, %arg1: i32, %arg2: i32) -> (i32, i32) {
    %c0_i32 = arith.constant 0 : i32
    %c0_i32_0 = arith.constant 0 : i32
    return %c0_i32, %arg1 : i32, i32
  }
  func.func @transform_3(%arg0: i32, %arg1: i32, %arg2: i32) -> (i32, i32) {
    %c0_i32 = arith.constant 0 : i32
    return %arg0, %arg1 : i32, i32
  }
}

module attributes {stable_mosaic.version = 11 : i64} {
  func.func @_matmul_bias_kernel(%arg0: i32, %arg1: i32, %arg2: i32, %arg3: memref<512x128xbf16, #tpu.memory_space<vmem>>, %arg4: memref<128x128xbf16, #tpu.memory_space<vmem>>, %arg5: memref<1x128xf32, #tpu.memory_space<vmem>>, %arg6: memref<512x128xbf16, #tpu.memory_space<vmem>>, %arg7: memref<512x128xf32, #tpu.memory_space<vmem>>) attributes {dimension_semantics = [#tpu.dimension_semantics<parallel>, #tpu.dimension_semantics<parallel>, #tpu.dimension_semantics<arbitrary>], iteration_bounds = array<i64: 1, 1, 5>, scalar_prefetch = 0 : i64, scratch_operands = 1 : i64, tpu.core_type = #tpu.core_type<tc>, window_params = [{transform_indices = @transform_0, window_bounds = array<i64: 512, 128>}, {transform_indices = @transform_1, window_bounds = array<i64: 128, 128>}, {transform_indices = @transform_2, window_bounds = array<i64: 1, 128>}, {transform_indices = @transform_3, window_bounds = array<i64: 512, 128>}]} {
    %c0_i32 = arith.constant 0 : i32
    %0 = arith.cmpi eq, %arg2, %c0_i32 : i32
    %1 = arith.extui %0 : i1 to i32
    %c0_i32_0 = arith.constant 0 : i32
    %2 = arith.cmpi ne, %1, %c0_i32_0 : i32
    scf.if %2 {
      %cst_9 = arith.constant 0.000000e+00 : f32
      %12 = vector.broadcast %cst_9 : f32 to vector<512x128xf32>
      %c0_10 = arith.constant 0 : index
      %c0_11 = arith.constant 0 : index
      %13 = vector.load %arg7[%c0_10, %c0_11] : memref<512x128xf32, #tpu.memory_space<vmem>>, vector<512x128xf32>
      tpu.vector_store %arg7[%c0_10, %c0_11], %12 {strides = array<i32>} : memref<512x128xf32, #tpu.memory_space<vmem>>, vector<512x128xf32>,
    } else {
    }
    %c0 = arith.constant 0 : index
    %c0_1 = arith.constant 0 : index
    %3 = vector.load %arg7[%c0, %c0_1] : memref<512x128xf32, #tpu.memory_space<vmem>>, vector<512x128xf32>
    %c0_2 = arith.constant 0 : index
    %c0_3 = arith.constant 0 : index
    %4 = vector.load %arg3[%c0_2, %c0_3] : memref<512x128xbf16, #tpu.memory_space<vmem>>, vector<512x128xbf16>
    %c0_4 = arith.constant 0 : index
    %c0_5 = arith.constant 0 : index
    %5 = vector.load %arg4[%c0_4, %c0_5] : memref<128x128xbf16, #tpu.memory_space<vmem>>, vector<128x128xbf16>
    %cst = arith.constant dense<0.000000e+00> : vector<512x128xf32>
    %6 = tpu.matmul %4, %5, %cst {dimension_numbers = #tpu.dot_dimension_numbers<[1], [0], [0], [1], [0, 0, 1, 1], [], []>} : vector<512x128xbf16>, vector<128x128xbf16>, vector<512x128xf32> -> vector<512x128xf32>
    %7 = arith.addf %3, %6 : vector<512x128xf32>
    %c0_6 = arith.constant 0 : index
    %c0_7 = arith.constant 0 : index
    %8 = vector.load %arg7[%c0_6, %c0_7] : memref<512x128xf32, #tpu.memory_space<vmem>>, vector<512x128xf32>
    tpu.vector_store %arg7[%c0_6, %c0_7], %7 {strides = array<i32>} : memref<512x128xf32, #tpu.memory_space<vmem>>, vector<512x128xf32>,
    %c4_i32 = arith.constant 4 : i32
    %9 = arith.cmpi eq, %arg2, %c4_i32 : i32
    %10 = arith.extui %9 : i1 to i32
    %c0_i32_8 = arith.constant 0 : i32
    %11 = arith.cmpi ne, %10, %c0_i32_8 : i32
    scf.if %11 {
      %c0_9 = arith.constant 0 : index
      %c0_10 = arith.constant 0 : index
      %12 = vector.load %arg7[%c0_9, %c0_10] : memref<512x128xf32, #tpu.memory_space<vmem>>, vector<512x128xf32>
      %c0_11 = arith.constant 0 : index
      %c0_12 = arith.constant 0 : index
      %13 = vector.load %arg5[%c0_11, %c0_12] : memref<1x128xf32, #tpu.memory_space<vmem>>, vector<1x128xf32>
      %14 = vector.broadcast %13 : vector<1x128xf32> to vector<512x128xf32>
      %15 = arith.addf %12, %14 : vector<512x128xf32>
      %cst_13 = arith.constant 0.000000e+00 : f32
      %16 = vector.broadcast %cst_13 : f32 to vector<512x128xf32>
      %17 = arith.maximumf %15, %16 : vector<512x128xf32>
      %18 = arith.truncf %17 : vector<512x128xf32> to vector<512x128xbf16>
      %c0_14 = arith.constant 0 : index
      %c0_15 = arith.constant 0 : index
      %19 = vector.load %arg6[%c0_14, %c0_15] : memref<512x128xbf16, #tpu.memory_space<vmem>>, vector<512x128xbf16>
      tpu.vector_store %arg6[%c0_14, %c0_15], %18 {strides = array<i32>} : memref<512x128xbf16, #tpu.memory_space<vmem>>, vector<512x128xbf16>,
    } else {
    }
    return
  }
  func.func @transform_0(%arg0: i32, %arg1: i32, %arg2: i32) -> (i32, i32) {
    %c0_i32 = arith.constant 0 : i32
    return %arg0, %arg2 : i32, i32
  }
  func.func @transform_1(%arg0: i32, %arg1: i32, %arg2: i32) -> (i32, i32) {
    %c0_i32 = arith.constant 0 : i32
    return %arg2, %arg1 : i32, i32
  }
  func.func @transform_2(%arg0: i32, %arg1: i32, %arg2: i32) -> (i32, i32) {
    %c0_i32 = arith.constant 0 : i32
    %c0_i32_0 = arith.constant 0 : i32
    return %c0_i32, %arg1 : i32, i32
  }
  func.func @transform_3(%arg0: i32, %arg1: i32, %arg2: i32) -> (i32, i32) {
    %c0_i32 = arith.constant 0 : i32
    return %arg0, %arg1 : i32, i32
  }
}

module attributes {stable_mosaic.version = 11 : i64} {
  func.func @_matmul_bias_kernel(%arg0: i32, %arg1: i32, %arg2: i32, %arg3: memref<128x128xbf16, #tpu.memory_space<vmem>>, %arg4: memref<128x256xbf16, #tpu.memory_space<vmem>>, %arg5: memref<1x256xf32, #tpu.memory_space<vmem>>, %arg6: memref<128x256xbf16, #tpu.memory_space<vmem>>, %arg7: memref<128x256xf32, #tpu.memory_space<vmem>>) attributes {dimension_semantics = [#tpu.dimension_semantics<parallel>, #tpu.dimension_semantics<parallel>, #tpu.dimension_semantics<arbitrary>], iteration_bounds = array<i64: 1, 1, 9>, scalar_prefetch = 0 : i64, scratch_operands = 1 : i64, tpu.core_type = #tpu.core_type<tc>, window_params = [{transform_indices = @transform_0, window_bounds = array<i64: 128, 128>}, {transform_indices = @transform_1, window_bounds = array<i64: 128, 256>}, {transform_indices = @transform_2, window_bounds = array<i64: 1, 256>}, {transform_indices = @transform_3, window_bounds = array<i64: 128, 256>}]} {
    %c0_i32 = arith.constant 0 : i32
    %0 = arith.cmpi eq, %arg2, %c0_i32 : i32
    %1 = arith.extui %0 : i1 to i32
    %c0_i32_0 = arith.constant 0 : i32
    %2 = arith.cmpi ne, %1, %c0_i32_0 : i32
    scf.if %2 {
      %cst_9 = arith.constant 0.000000e+00 : f32
      %12 = vector.broadcast %cst_9 : f32 to vector<128x256xf32>
      %c0_10 = arith.constant 0 : index
      %c0_11 = arith.constant 0 : index
      %13 = vector.load %arg7[%c0_10, %c0_11] : memref<128x256xf32, #tpu.memory_space<vmem>>, vector<128x256xf32>
      tpu.vector_store %arg7[%c0_10, %c0_11], %12 {strides = array<i32>} : memref<128x256xf32, #tpu.memory_space<vmem>>, vector<128x256xf32>,
    } else {
    }
    %c0 = arith.constant 0 : index
    %c0_1 = arith.constant 0 : index
    %3 = vector.load %arg7[%c0, %c0_1] : memref<128x256xf32, #tpu.memory_space<vmem>>, vector<128x256xf32>
    %c0_2 = arith.constant 0 : index
    %c0_3 = arith.constant 0 : index
    %4 = vector.load %arg3[%c0_2, %c0_3] : memref<128x128xbf16, #tpu.memory_space<vmem>>, vector<128x128xbf16>
    %c0_4 = arith.constant 0 : index
    %c0_5 = arith.constant 0 : index
    %5 = vector.load %arg4[%c0_4, %c0_5] : memref<128x256xbf16, #tpu.memory_space<vmem>>, vector<128x256xbf16>
    %cst = arith.constant dense<0.000000e+00> : vector<128x256xf32>
    %6 = tpu.matmul %4, %5, %cst {dimension_numbers = #tpu.dot_dimension_numbers<[1], [0], [0], [1], [0, 0, 1, 1], [], []>} : vector<128x128xbf16>, vector<128x256xbf16>, vector<128x256xf32> -> vector<128x256xf32>
    %7 = arith.addf %3, %6 : vector<128x256xf32>
    %c0_6 = arith.constant 0 : index
    %c0_7 = arith.constant 0 : index
    %8 = vector.load %arg7[%c0_6, %c0_7] : memref<128x256xf32, #tpu.memory_space<vmem>>, vector<128x256xf32>
    tpu.vector_store %arg7[%c0_6, %c0_7], %7 {strides = array<i32>} : memref<128x256xf32, #tpu.memory_space<vmem>>, vector<128x256xf32>,
    %c8_i32 = arith.constant 8 : i32
    %9 = arith.cmpi eq, %arg2, %c8_i32 : i32
    %10 = arith.extui %9 : i1 to i32
    %c0_i32_8 = arith.constant 0 : i32
    %11 = arith.cmpi ne, %10, %c0_i32_8 : i32
    scf.if %11 {
      %c0_9 = arith.constant 0 : index
      %c0_10 = arith.constant 0 : index
      %12 = vector.load %arg7[%c0_9, %c0_10] : memref<128x256xf32, #tpu.memory_space<vmem>>, vector<128x256xf32>
      %c0_11 = arith.constant 0 : index
      %c0_12 = arith.constant 0 : index
      %13 = vector.load %arg5[%c0_11, %c0_12] : memref<1x256xf32, #tpu.memory_space<vmem>>, vector<1x256xf32>
      %14 = vector.broadcast %13 : vector<1x256xf32> to vector<128x256xf32>
      %15 = arith.addf %12, %14 : vector<128x256xf32>
      %16 = arith.truncf %15 : vector<128x256xf32> to vector<128x256xbf16>
      %c0_13 = arith.constant 0 : index
      %c0_14 = arith.constant 0 : index
      %17 = vector.load %arg6[%c0_13, %c0_14] : memref<128x256xbf16, #tpu.memory_space<vmem>>, vector<128x256xbf16>
      tpu.vector_store %arg6[%c0_13, %c0_14], %16 {strides = array<i32>} : memref<128x256xbf16, #tpu.memory_space<vmem>>, vector<128x256xbf16>,
    } else {
    }
    return
  }
  func.func @transform_0(%arg0: i32, %arg1: i32, %arg2: i32) -> (i32, i32) {
    %c0_i32 = arith.constant 0 : i32
    return %arg0, %arg2 : i32, i32
  }
  func.func @transform_1(%arg0: i32, %arg1: i32, %arg2: i32) -> (i32, i32) {
    %c0_i32 = arith.constant 0 : i32
    return %arg2, %arg1 : i32, i32
  }
  func.func @transform_2(%arg0: i32, %arg1: i32, %arg2: i32) -> (i32, i32) {
    %c0_i32 = arith.constant 0 : i32
    %c0_i32_0 = arith.constant 0 : i32
    return %c0_i32, %arg1 : i32, i32
  }
  func.func @transform_3(%arg0: i32, %arg1: i32, %arg2: i32) -> (i32, i32) {
    %c0_i32 = arith.constant 0 : i32
    return %arg0, %arg1 : i32, i32
  }
}

module attributes {stable_mosaic.version = 11 : i64} {
  func.func @_matmul_bias_kernel(%arg0: i32, %arg1: i32, %arg2: i32, %arg3: memref<128x256xbf16, #tpu.memory_space<vmem>>, %arg4: memref<256x256xbf16, #tpu.memory_space<vmem>>, %arg5: memref<1x256xf32, #tpu.memory_space<vmem>>, %arg6: memref<128x256xbf16, #tpu.memory_space<vmem>>, %arg7: memref<128x256xf32, #tpu.memory_space<vmem>>) attributes {dimension_semantics = [#tpu.dimension_semantics<parallel>, #tpu.dimension_semantics<parallel>, #tpu.dimension_semantics<arbitrary>], iteration_bounds = array<i64: 1, 1, 9>, scalar_prefetch = 0 : i64, scratch_operands = 1 : i64, tpu.core_type = #tpu.core_type<tc>, window_params = [{transform_indices = @transform_0, window_bounds = array<i64: 128, 256>}, {transform_indices = @transform_1, window_bounds = array<i64: 256, 256>}, {transform_indices = @transform_2, window_bounds = array<i64: 1, 256>}, {transform_indices = @transform_3, window_bounds = array<i64: 128, 256>}]} {
    %c0_i32 = arith.constant 0 : i32
    %0 = arith.cmpi eq, %arg2, %c0_i32 : i32
    %1 = arith.extui %0 : i1 to i32
    %c0_i32_0 = arith.constant 0 : i32
    %2 = arith.cmpi ne, %1, %c0_i32_0 : i32
    scf.if %2 {
      %cst_9 = arith.constant 0.000000e+00 : f32
      %12 = vector.broadcast %cst_9 : f32 to vector<128x256xf32>
      %c0_10 = arith.constant 0 : index
      %c0_11 = arith.constant 0 : index
      %13 = vector.load %arg7[%c0_10, %c0_11] : memref<128x256xf32, #tpu.memory_space<vmem>>, vector<128x256xf32>
      tpu.vector_store %arg7[%c0_10, %c0_11], %12 {strides = array<i32>} : memref<128x256xf32, #tpu.memory_space<vmem>>, vector<128x256xf32>,
    } else {
    }
    %c0 = arith.constant 0 : index
    %c0_1 = arith.constant 0 : index
    %3 = vector.load %arg7[%c0, %c0_1] : memref<128x256xf32, #tpu.memory_space<vmem>>, vector<128x256xf32>
    %c0_2 = arith.constant 0 : index
    %c0_3 = arith.constant 0 : index
    %4 = vector.load %arg3[%c0_2, %c0_3] : memref<128x256xbf16, #tpu.memory_space<vmem>>, vector<128x256xbf16>
    %c0_4 = arith.constant 0 : index
    %c0_5 = arith.constant 0 : index
    %5 = vector.load %arg4[%c0_4, %c0_5] : memref<256x256xbf16, #tpu.memory_space<vmem>>, vector<256x256xbf16>
    %cst = arith.constant dense<0.000000e+00> : vector<128x256xf32>
    %6 = tpu.matmul %4, %5, %cst {dimension_numbers = #tpu.dot_dimension_numbers<[1], [0], [0], [1], [0, 0, 1, 1], [], []>} : vector<128x256xbf16>, vector<256x256xbf16>, vector<128x256xf32> -> vector<128x256xf32>
    %7 = arith.addf %3, %6 : vector<128x256xf32>
    %c0_6 = arith.constant 0 : index
    %c0_7 = arith.constant 0 : index
    %8 = vector.load %arg7[%c0_6, %c0_7] : memref<128x256xf32, #tpu.memory_space<vmem>>, vector<128x256xf32>
    tpu.vector_store %arg7[%c0_6, %c0_7], %7 {strides = array<i32>} : memref<128x256xf32, #tpu.memory_space<vmem>>, vector<128x256xf32>,
    %c8_i32 = arith.constant 8 : i32
    %9 = arith.cmpi eq, %arg2, %c8_i32 : i32
    %10 = arith.extui %9 : i1 to i32
    %c0_i32_8 = arith.constant 0 : i32
    %11 = arith.cmpi ne, %10, %c0_i32_8 : i32
    scf.if %11 {
      %c0_9 = arith.constant 0 : index
      %c0_10 = arith.constant 0 : index
      %12 = vector.load %arg7[%c0_9, %c0_10] : memref<128x256xf32, #tpu.memory_space<vmem>>, vector<128x256xf32>
      %c0_11 = arith.constant 0 : index
      %c0_12 = arith.constant 0 : index
      %13 = vector.load %arg5[%c0_11, %c0_12] : memref<1x256xf32, #tpu.memory_space<vmem>>, vector<1x256xf32>
      %14 = vector.broadcast %13 : vector<1x256xf32> to vector<128x256xf32>
      %15 = arith.addf %12, %14 : vector<128x256xf32>
      %cst_13 = arith.constant 0.000000e+00 : f32
      %16 = vector.broadcast %cst_13 : f32 to vector<128x256xf32>
      %17 = arith.maximumf %15, %16 : vector<128x256xf32>
      %18 = arith.truncf %17 : vector<128x256xf32> to vector<128x256xbf16>
      %c0_14 = arith.constant 0 : index
      %c0_15 = arith.constant 0 : index
      %19 = vector.load %arg6[%c0_14, %c0_15] : memref<128x256xbf16, #tpu.memory_space<vmem>>, vector<128x256xbf16>
      tpu.vector_store %arg6[%c0_14, %c0_15], %18 {strides = array<i32>} : memref<128x256xbf16, #tpu.memory_space<vmem>>, vector<128x256xbf16>,
    } else {
    }
    return
  }
  func.func @transform_0(%arg0: i32, %arg1: i32, %arg2: i32) -> (i32, i32) {
    %c0_i32 = arith.constant 0 : i32
    return %arg0, %arg2 : i32, i32
  }
  func.func @transform_1(%arg0: i32, %arg1: i32, %arg2: i32) -> (i32, i32) {
    %c0_i32 = arith.constant 0 : i32
    return %arg2, %arg1 : i32, i32
  }
  func.func @transform_2(%arg0: i32, %arg1: i32, %arg2: i32) -> (i32, i32) {
    %c0_i32 = arith.constant 0 : i32
    %c0_i32_0 = arith.constant 0 : i32
    return %c0_i32, %arg1 : i32, i32
  }
  func.func @transform_3(%arg0: i32, %arg1: i32, %arg2: i32) -> (i32, i32) {
    %c0_i32 = arith.constant 0 : i32
    return %arg0, %arg1 : i32, i32
  }
}

module attributes {stable_mosaic.version = 11 : i64} {
  func.func @_matmul_bias_kernel(%arg0: i32, %arg1: i32, %arg2: i32, %arg3: memref<72x256xbf16, #tpu.memory_space<vmem>>, %arg4: memref<256x256xbf16, #tpu.memory_space<vmem>>, %arg5: memref<1x256xf32, #tpu.memory_space<vmem>>, %arg6: memref<72x256xbf16, #tpu.memory_space<vmem>>, %arg7: memref<72x256xf32, #tpu.memory_space<vmem>>) attributes {dimension_semantics = [#tpu.dimension_semantics<parallel>, #tpu.dimension_semantics<parallel>, #tpu.dimension_semantics<arbitrary>], iteration_bounds = array<i64: 1, 2, 9>, scalar_prefetch = 0 : i64, scratch_operands = 1 : i64, tpu.core_type = #tpu.core_type<tc>, window_params = [{transform_indices = @transform_0, window_bounds = array<i64: 72, 256>}, {transform_indices = @transform_1, window_bounds = array<i64: 256, 256>}, {transform_indices = @transform_2, window_bounds = array<i64: 1, 256>}, {transform_indices = @transform_3, window_bounds = array<i64: 72, 256>}]} {
    %c0_i32 = arith.constant 0 : i32
    %0 = arith.cmpi eq, %arg2, %c0_i32 : i32
    %1 = arith.extui %0 : i1 to i32
    %c0_i32_0 = arith.constant 0 : i32
    %2 = arith.cmpi ne, %1, %c0_i32_0 : i32
    scf.if %2 {
      %cst_9 = arith.constant 0.000000e+00 : f32
      %12 = vector.broadcast %cst_9 : f32 to vector<72x256xf32>
      %c0_10 = arith.constant 0 : index
      %c0_11 = arith.constant 0 : index
      %13 = vector.load %arg7[%c0_10, %c0_11] : memref<72x256xf32, #tpu.memory_space<vmem>>, vector<72x256xf32>
      tpu.vector_store %arg7[%c0_10, %c0_11], %12 {strides = array<i32>} : memref<72x256xf32, #tpu.memory_space<vmem>>, vector<72x256xf32>,
    } else {
    }
    %c0 = arith.constant 0 : index
    %c0_1 = arith.constant 0 : index
    %3 = vector.load %arg7[%c0, %c0_1] : memref<72x256xf32, #tpu.memory_space<vmem>>, vector<72x256xf32>
    %c0_2 = arith.constant 0 : index
    %c0_3 = arith.constant 0 : index
    %4 = vector.load %arg3[%c0_2, %c0_3] : memref<72x256xbf16, #tpu.memory_space<vmem>>, vector<72x256xbf16>
    %c0_4 = arith.constant 0 : index
    %c0_5 = arith.constant 0 : index
    %5 = vector.load %arg4[%c0_4, %c0_5] : memref<256x256xbf16, #tpu.memory_space<vmem>>, vector<256x256xbf16>
    %cst = arith.constant dense<0.000000e+00> : vector<72x256xf32>
    %6 = tpu.matmul %4, %5, %cst {dimension_numbers = #tpu.dot_dimension_numbers<[1], [0], [0], [1], [0, 0, 1, 1], [], []>} : vector<72x256xbf16>, vector<256x256xbf16>, vector<72x256xf32> -> vector<72x256xf32>
    %7 = arith.addf %3, %6 : vector<72x256xf32>
    %c0_6 = arith.constant 0 : index
    %c0_7 = arith.constant 0 : index
    %8 = vector.load %arg7[%c0_6, %c0_7] : memref<72x256xf32, #tpu.memory_space<vmem>>, vector<72x256xf32>
    tpu.vector_store %arg7[%c0_6, %c0_7], %7 {strides = array<i32>} : memref<72x256xf32, #tpu.memory_space<vmem>>, vector<72x256xf32>,
    %c8_i32 = arith.constant 8 : i32
    %9 = arith.cmpi eq, %arg2, %c8_i32 : i32
    %10 = arith.extui %9 : i1 to i32
    %c0_i32_8 = arith.constant 0 : i32
    %11 = arith.cmpi ne, %10, %c0_i32_8 : i32
    scf.if %11 {
      %c0_9 = arith.constant 0 : index
      %c0_10 = arith.constant 0 : index
      %12 = vector.load %arg7[%c0_9, %c0_10] : memref<72x256xf32, #tpu.memory_space<vmem>>, vector<72x256xf32>
      %c0_11 = arith.constant 0 : index
      %c0_12 = arith.constant 0 : index
      %13 = vector.load %arg5[%c0_11, %c0_12] : memref<1x256xf32, #tpu.memory_space<vmem>>, vector<1x256xf32>
      %14 = vector.broadcast %13 : vector<1x256xf32> to vector<72x256xf32>
      %15 = arith.addf %12, %14 : vector<72x256xf32>
      %16 = arith.truncf %15 : vector<72x256xf32> to vector<72x256xbf16>
      %c0_13 = arith.constant 0 : index
      %c0_14 = arith.constant 0 : index
      %17 = vector.load %arg6[%c0_13, %c0_14] : memref<72x256xbf16, #tpu.memory_space<vmem>>, vector<72x256xbf16>
      tpu.vector_store %arg6[%c0_13, %c0_14], %16 {strides = array<i32>} : memref<72x256xbf16, #tpu.memory_space<vmem>>, vector<72x256xbf16>,
    } else {
    }
    return
  }
  func.func @transform_0(%arg0: i32, %arg1: i32, %arg2: i32) -> (i32, i32) {
    %c0_i32 = arith.constant 0 : i32
    return %arg0, %arg2 : i32, i32
  }
  func.func @transform_1(%arg0: i32, %arg1: i32, %arg2: i32) -> (i32, i32) {
    %c0_i32 = arith.constant 0 : i32
    return %arg2, %arg1 : i32, i32
  }
  func.func @transform_2(%arg0: i32, %arg1: i32, %arg2: i32) -> (i32, i32) {
    %c0_i32 = arith.constant 0 : i32
    %c0_i32_0 = arith.constant 0 : i32
    return %c0_i32, %arg1 : i32, i32
  }
  func.func @transform_3(%arg0: i32, %arg1: i32, %arg2: i32) -> (i32, i32) {
    %c0_i32 = arith.constant 0 : i32
    return %arg0, %arg1 : i32, i32
  }
}

module attributes {stable_mosaic.version = 11 : i64} {
  func.func @_matmul_bias_kernel(%arg0: i32, %arg1: i32, %arg2: i32, %arg3: memref<72x512xbf16, #tpu.memory_space<vmem>>, %arg4: memref<512x256xbf16, #tpu.memory_space<vmem>>, %arg5: memref<1x256xf32, #tpu.memory_space<vmem>>, %arg6: memref<72x256xbf16, #tpu.memory_space<vmem>>, %arg7: memref<72x256xf32, #tpu.memory_space<vmem>>) attributes {dimension_semantics = [#tpu.dimension_semantics<parallel>, #tpu.dimension_semantics<parallel>, #tpu.dimension_semantics<arbitrary>], iteration_bounds = array<i64: 1, 2, 9>, scalar_prefetch = 0 : i64, scratch_operands = 1 : i64, tpu.core_type = #tpu.core_type<tc>, window_params = [{transform_indices = @transform_0, window_bounds = array<i64: 72, 512>}, {transform_indices = @transform_1, window_bounds = array<i64: 512, 256>}, {transform_indices = @transform_2, window_bounds = array<i64: 1, 256>}, {transform_indices = @transform_3, window_bounds = array<i64: 72, 256>}]} {
    %c0_i32 = arith.constant 0 : i32
    %0 = arith.cmpi eq, %arg2, %c0_i32 : i32
    %1 = arith.extui %0 : i1 to i32
    %c0_i32_0 = arith.constant 0 : i32
    %2 = arith.cmpi ne, %1, %c0_i32_0 : i32
    scf.if %2 {
      %cst_9 = arith.constant 0.000000e+00 : f32
      %12 = vector.broadcast %cst_9 : f32 to vector<72x256xf32>
      %c0_10 = arith.constant 0 : index
      %c0_11 = arith.constant 0 : index
      %13 = vector.load %arg7[%c0_10, %c0_11] : memref<72x256xf32, #tpu.memory_space<vmem>>, vector<72x256xf32>
      tpu.vector_store %arg7[%c0_10, %c0_11], %12 {strides = array<i32>} : memref<72x256xf32, #tpu.memory_space<vmem>>, vector<72x256xf32>,
    } else {
    }
    %c0 = arith.constant 0 : index
    %c0_1 = arith.constant 0 : index
    %3 = vector.load %arg7[%c0, %c0_1] : memref<72x256xf32, #tpu.memory_space<vmem>>, vector<72x256xf32>
    %c0_2 = arith.constant 0 : index
    %c0_3 = arith.constant 0 : index
    %4 = vector.load %arg3[%c0_2, %c0_3] : memref<72x512xbf16, #tpu.memory_space<vmem>>, vector<72x512xbf16>
    %c0_4 = arith.constant 0 : index
    %c0_5 = arith.constant 0 : index
    %5 = vector.load %arg4[%c0_4, %c0_5] : memref<512x256xbf16, #tpu.memory_space<vmem>>, vector<512x256xbf16>
    %cst = arith.constant dense<0.000000e+00> : vector<72x256xf32>
    %6 = tpu.matmul %4, %5, %cst {dimension_numbers = #tpu.dot_dimension_numbers<[1], [0], [0], [1], [0, 0, 1, 1], [], []>} : vector<72x512xbf16>, vector<512x256xbf16>, vector<72x256xf32> -> vector<72x256xf32>
    %7 = arith.addf %3, %6 : vector<72x256xf32>
    %c0_6 = arith.constant 0 : index
    %c0_7 = arith.constant 0 : index
    %8 = vector.load %arg7[%c0_6, %c0_7] : memref<72x256xf32, #tpu.memory_space<vmem>>, vector<72x256xf32>
    tpu.vector_store %arg7[%c0_6, %c0_7], %7 {strides = array<i32>} : memref<72x256xf32, #tpu.memory_space<vmem>>, vector<72x256xf32>,
    %c8_i32 = arith.constant 8 : i32
    %9 = arith.cmpi eq, %arg2, %c8_i32 : i32
    %10 = arith.extui %9 : i1 to i32
    %c0_i32_8 = arith.constant 0 : i32
    %11 = arith.cmpi ne, %10, %c0_i32_8 : i32
    scf.if %11 {
      %c0_9 = arith.constant 0 : index
      %c0_10 = arith.constant 0 : index
      %12 = vector.load %arg7[%c0_9, %c0_10] : memref<72x256xf32, #tpu.memory_space<vmem>>, vector<72x256xf32>
      %c0_11 = arith.constant 0 : index
      %c0_12 = arith.constant 0 : index
      %13 = vector.load %arg5[%c0_11, %c0_12] : memref<1x256xf32, #tpu.memory_space<vmem>>, vector<1x256xf32>
      %14 = vector.broadcast %13 : vector<1x256xf32> to vector<72x256xf32>
      %15 = arith.addf %12, %14 : vector<72x256xf32>
      %cst_13 = arith.constant 0.000000e+00 : f32
      %16 = vector.broadcast %cst_13 : f32 to vector<72x256xf32>
      %17 = arith.maximumf %15, %16 : vector<72x256xf32>
      %18 = arith.truncf %17 : vector<72x256xf32> to vector<72x256xbf16>
      %c0_14 = arith.constant 0 : index
      %c0_15 = arith.constant 0 : index
      %19 = vector.load %arg6[%c0_14, %c0_15] : memref<72x256xbf16, #tpu.memory_space<vmem>>, vector<72x256xbf16>
      tpu.vector_store %arg6[%c0_14, %c0_15], %18 {strides = array<i32>} : memref<72x256xbf16, #tpu.memory_space<vmem>>, vector<72x256xbf16>,
    } else {
    }
    return
  }
  func.func @transform_0(%arg0: i32, %arg1: i32, %arg2: i32) -> (i32, i32) {
    %c0_i32 = arith.constant 0 : i32
    return %arg0, %arg2 : i32, i32
  }
  func.func @transform_1(%arg0: i32, %arg1: i32, %arg2: i32) -> (i32, i32) {
    %c0_i32 = arith.constant 0 : i32
    return %arg2, %arg1 : i32, i32
  }
  func.func @transform_2(%arg0: i32, %arg1: i32, %arg2: i32) -> (i32, i32) {
    %c0_i32 = arith.constant 0 : i32
    %c0_i32_0 = arith.constant 0 : i32
    return %c0_i32, %arg1 : i32, i32
  }
  func.func @transform_3(%arg0: i32, %arg1: i32, %arg2: i32) -> (i32, i32) {
    %c0_i32 = arith.constant 0 : i32
    return %arg0, %arg1 : i32, i32
  }
}

module attributes {stable_mosaic.version = 11 : i64} {
  func.func @_matmul_bias_kernel(%arg0: i32, %arg1: i32, %arg2: i32, %arg3: memref<24x512xbf16, #tpu.memory_space<vmem>>, %arg4: memref<512x256xbf16, #tpu.memory_space<vmem>>, %arg5: memref<1x256xf32, #tpu.memory_space<vmem>>, %arg6: memref<24x256xbf16, #tpu.memory_space<vmem>>, %arg7: memref<24x256xf32, #tpu.memory_space<vmem>>) attributes {dimension_semantics = [#tpu.dimension_semantics<parallel>, #tpu.dimension_semantics<parallel>, #tpu.dimension_semantics<arbitrary>], iteration_bounds = array<i64: 1, 2, 4>, scalar_prefetch = 0 : i64, scratch_operands = 1 : i64, tpu.core_type = #tpu.core_type<tc>, window_params = [{transform_indices = @transform_0, window_bounds = array<i64: 24, 512>}, {transform_indices = @transform_1, window_bounds = array<i64: 512, 256>}, {transform_indices = @transform_2, window_bounds = array<i64: 1, 256>}, {transform_indices = @transform_3, window_bounds = array<i64: 24, 256>}]} {
    %c0_i32 = arith.constant 0 : i32
    %0 = arith.cmpi eq, %arg2, %c0_i32 : i32
    %1 = arith.extui %0 : i1 to i32
    %c0_i32_0 = arith.constant 0 : i32
    %2 = arith.cmpi ne, %1, %c0_i32_0 : i32
    scf.if %2 {
      %cst_9 = arith.constant 0.000000e+00 : f32
      %12 = vector.broadcast %cst_9 : f32 to vector<24x256xf32>
      %c0_10 = arith.constant 0 : index
      %c0_11 = arith.constant 0 : index
      %13 = vector.load %arg7[%c0_10, %c0_11] : memref<24x256xf32, #tpu.memory_space<vmem>>, vector<24x256xf32>
      tpu.vector_store %arg7[%c0_10, %c0_11], %12 {strides = array<i32>} : memref<24x256xf32, #tpu.memory_space<vmem>>, vector<24x256xf32>,
    } else {
    }
    %c0 = arith.constant 0 : index
    %c0_1 = arith.constant 0 : index
    %3 = vector.load %arg7[%c0, %c0_1] : memref<24x256xf32, #tpu.memory_space<vmem>>, vector<24x256xf32>
    %c0_2 = arith.constant 0 : index
    %c0_3 = arith.constant 0 : index
    %4 = vector.load %arg3[%c0_2, %c0_3] : memref<24x512xbf16, #tpu.memory_space<vmem>>, vector<24x512xbf16>
    %c0_4 = arith.constant 0 : index
    %c0_5 = arith.constant 0 : index
    %5 = vector.load %arg4[%c0_4, %c0_5] : memref<512x256xbf16, #tpu.memory_space<vmem>>, vector<512x256xbf16>
    %cst = arith.constant dense<0.000000e+00> : vector<24x256xf32>
    %6 = tpu.matmul %4, %5, %cst {dimension_numbers = #tpu.dot_dimension_numbers<[1], [0], [0], [1], [0, 0, 1, 1], [], []>} : vector<24x512xbf16>, vector<512x256xbf16>, vector<24x256xf32> -> vector<24x256xf32>
    %7 = arith.addf %3, %6 : vector<24x256xf32>
    %c0_6 = arith.constant 0 : index
    %c0_7 = arith.constant 0 : index
    %8 = vector.load %arg7[%c0_6, %c0_7] : memref<24x256xf32, #tpu.memory_space<vmem>>, vector<24x256xf32>
    tpu.vector_store %arg7[%c0_6, %c0_7], %7 {strides = array<i32>} : memref<24x256xf32, #tpu.memory_space<vmem>>, vector<24x256xf32>,
    %c3_i32 = arith.constant 3 : i32
    %9 = arith.cmpi eq, %arg2, %c3_i32 : i32
    %10 = arith.extui %9 : i1 to i32
    %c0_i32_8 = arith.constant 0 : i32
    %11 = arith.cmpi ne, %10, %c0_i32_8 : i32
    scf.if %11 {
      %c0_9 = arith.constant 0 : index
      %c0_10 = arith.constant 0 : index
      %12 = vector.load %arg7[%c0_9, %c0_10] : memref<24x256xf32, #tpu.memory_space<vmem>>, vector<24x256xf32>
      %c0_11 = arith.constant 0 : index
      %c0_12 = arith.constant 0 : index
      %13 = vector.load %arg5[%c0_11, %c0_12] : memref<1x256xf32, #tpu.memory_space<vmem>>, vector<1x256xf32>
      %14 = vector.broadcast %13 : vector<1x256xf32> to vector<24x256xf32>
      %15 = arith.addf %12, %14 : vector<24x256xf32>
      %16 = arith.truncf %15 : vector<24x256xf32> to vector<24x256xbf16>
      %c0_13 = arith.constant 0 : index
      %c0_14 = arith.constant 0 : index
      %17 = vector.load %arg6[%c0_13, %c0_14] : memref<24x256xbf16, #tpu.memory_space<vmem>>, vector<24x256xbf16>
      tpu.vector_store %arg6[%c0_13, %c0_14], %16 {strides = array<i32>} : memref<24x256xbf16, #tpu.memory_space<vmem>>, vector<24x256xbf16>,
    } else {
    }
    return
  }
  func.func @transform_0(%arg0: i32, %arg1: i32, %arg2: i32) -> (i32, i32) {
    %c0_i32 = arith.constant 0 : i32
    return %arg0, %arg2 : i32, i32
  }
  func.func @transform_1(%arg0: i32, %arg1: i32, %arg2: i32) -> (i32, i32) {
    %c0_i32 = arith.constant 0 : i32
    return %arg2, %arg1 : i32, i32
  }
  func.func @transform_2(%arg0: i32, %arg1: i32, %arg2: i32) -> (i32, i32) {
    %c0_i32 = arith.constant 0 : i32
    %c0_i32_0 = arith.constant 0 : i32
    return %c0_i32, %arg1 : i32, i32
  }
  func.func @transform_3(%arg0: i32, %arg1: i32, %arg2: i32) -> (i32, i32) {
    %c0_i32 = arith.constant 0 : i32
    return %arg0, %arg1 : i32, i32
  }
}

module attributes {stable_mosaic.version = 11 : i64} {
  func.func @_matmul_bias_kernel(%arg0: i32, %arg1: i32, %arg2: i32, %arg3: memref<24x512xbf16, #tpu.memory_space<vmem>>, %arg4: memref<512x256xbf16, #tpu.memory_space<vmem>>, %arg5: memref<1x256xf32, #tpu.memory_space<vmem>>, %arg6: memref<24x256xf32, #tpu.memory_space<vmem>>, %arg7: memref<24x256xf32, #tpu.memory_space<vmem>>) attributes {dimension_semantics = [#tpu.dimension_semantics<parallel>, #tpu.dimension_semantics<parallel>, #tpu.dimension_semantics<arbitrary>], iteration_bounds = array<i64: 1, 2, 1>, scalar_prefetch = 0 : i64, scratch_operands = 1 : i64, tpu.core_type = #tpu.core_type<tc>, window_params = [{transform_indices = @transform_0, window_bounds = array<i64: 24, 512>}, {transform_indices = @transform_1, window_bounds = array<i64: 512, 256>}, {transform_indices = @transform_2, window_bounds = array<i64: 1, 256>}, {transform_indices = @transform_3, window_bounds = array<i64: 24, 256>}]} {
    %c0_i32 = arith.constant 0 : i32
    %0 = arith.cmpi eq, %arg2, %c0_i32 : i32
    %1 = arith.extui %0 : i1 to i32
    %c0_i32_0 = arith.constant 0 : i32
    %2 = arith.cmpi ne, %1, %c0_i32_0 : i32
    scf.if %2 {
      %cst_10 = arith.constant 0.000000e+00 : f32
      %12 = vector.broadcast %cst_10 : f32 to vector<24x256xf32>
      %c0_11 = arith.constant 0 : index
      %c0_12 = arith.constant 0 : index
      %13 = vector.load %arg7[%c0_11, %c0_12] : memref<24x256xf32, #tpu.memory_space<vmem>>, vector<24x256xf32>
      tpu.vector_store %arg7[%c0_11, %c0_12], %12 {strides = array<i32>} : memref<24x256xf32, #tpu.memory_space<vmem>>, vector<24x256xf32>,
    } else {
    }
    %c0 = arith.constant 0 : index
    %c0_1 = arith.constant 0 : index
    %3 = vector.load %arg7[%c0, %c0_1] : memref<24x256xf32, #tpu.memory_space<vmem>>, vector<24x256xf32>
    %c0_2 = arith.constant 0 : index
    %c0_3 = arith.constant 0 : index
    %4 = vector.load %arg3[%c0_2, %c0_3] : memref<24x512xbf16, #tpu.memory_space<vmem>>, vector<24x512xbf16>
    %c0_4 = arith.constant 0 : index
    %c0_5 = arith.constant 0 : index
    %5 = vector.load %arg4[%c0_4, %c0_5] : memref<512x256xbf16, #tpu.memory_space<vmem>>, vector<512x256xbf16>
    %cst = arith.constant dense<0.000000e+00> : vector<24x256xf32>
    %6 = tpu.matmul %4, %5, %cst {dimension_numbers = #tpu.dot_dimension_numbers<[1], [0], [0], [1], [0, 0, 1, 1], [], []>} : vector<24x512xbf16>, vector<512x256xbf16>, vector<24x256xf32> -> vector<24x256xf32>
    %7 = arith.addf %3, %6 : vector<24x256xf32>
    %c0_6 = arith.constant 0 : index
    %c0_7 = arith.constant 0 : index
    %8 = vector.load %arg7[%c0_6, %c0_7] : memref<24x256xf32, #tpu.memory_space<vmem>>, vector<24x256xf32>
    tpu.vector_store %arg7[%c0_6, %c0_7], %7 {strides = array<i32>} : memref<24x256xf32, #tpu.memory_space<vmem>>, vector<24x256xf32>,
    %c0_i32_8 = arith.constant 0 : i32
    %9 = arith.cmpi eq, %arg2, %c0_i32_8 : i32
    %10 = arith.extui %9 : i1 to i32
    %c0_i32_9 = arith.constant 0 : i32
    %11 = arith.cmpi ne, %10, %c0_i32_9 : i32
    scf.if %11 {
      %c0_10 = arith.constant 0 : index
      %c0_11 = arith.constant 0 : index
      %12 = vector.load %arg7[%c0_10, %c0_11] : memref<24x256xf32, #tpu.memory_space<vmem>>, vector<24x256xf32>
      %c0_12 = arith.constant 0 : index
      %c0_13 = arith.constant 0 : index
      %13 = vector.load %arg5[%c0_12, %c0_13] : memref<1x256xf32, #tpu.memory_space<vmem>>, vector<1x256xf32>
      %14 = vector.broadcast %13 : vector<1x256xf32> to vector<24x256xf32>
      %15 = arith.addf %12, %14 : vector<24x256xf32>
      %c0_14 = arith.constant 0 : index
      %c0_15 = arith.constant 0 : index
      %16 = vector.load %arg6[%c0_14, %c0_15] : memref<24x256xf32, #tpu.memory_space<vmem>>, vector<24x256xf32>
      tpu.vector_store %arg6[%c0_14, %c0_15], %15 {strides = array<i32>} : memref<24x256xf32, #tpu.memory_space<vmem>>, vector<24x256xf32>,
    } else {
    }
    return
  }
  func.func @transform_0(%arg0: i32, %arg1: i32, %arg2: i32) -> (i32, i32) {
    %c0_i32 = arith.constant 0 : i32
    return %arg0, %arg2 : i32, i32
  }
  func.func @transform_1(%arg0: i32, %arg1: i32, %arg2: i32) -> (i32, i32) {
    %c0_i32 = arith.constant 0 : i32
    return %arg2, %arg1 : i32, i32
  }
  func.func @transform_2(%arg0: i32, %arg1: i32, %arg2: i32) -> (i32, i32) {
    %c0_i32 = arith.constant 0 : i32
    %c0_i32_0 = arith.constant 0 : i32
    return %c0_i32, %arg1 : i32, i32
  }
  func.func @transform_3(%arg0: i32, %arg1: i32, %arg2: i32) -> (i32, i32) {
    %c0_i32 = arith.constant 0 : i32
    return %arg0, %arg1 : i32, i32
  }
}

module attributes {stable_mosaic.version = 11 : i64} {
  func.func @_bilstm_kernel(%arg0: i32, %arg1: memref<1x9x2x512xf32, #tpu.memory_space<vmem>>, %arg2: memref<1x128x512xbf16, #tpu.memory_space<vmem>>, %arg3: memref<1x9x2x128xf32, #tpu.memory_space<vmem>>, %arg4: memref<2x128xf32, #tpu.memory_space<vmem>>, %arg5: memref<2x128xf32, #tpu.memory_space<vmem>>) attributes {dimension_semantics = [#tpu.dimension_semantics<parallel>], iteration_bounds = array<i64: 2>, scalar_prefetch = 0 : i64, scratch_operands = 2 : i64, tpu.core_type = #tpu.core_type<tc>, window_params = [{transform_indices = @transform_0, window_bounds = array<i64: 1, 9, 2, 512>}, {transform_indices = @transform_1, window_bounds = array<i64: 1, 128, 512>}, {transform_indices = @transform_2, window_bounds = array<i64: 1, 9, 2, 128>}]} {
    %cst = arith.constant 0.000000e+00 : f32
    %0 = vector.broadcast %cst : f32 to vector<2x128xf32>
    %c0 = arith.constant 0 : index
    %c0_0 = arith.constant 0 : index
    %1 = vector.load %arg4[%c0, %c0_0] : memref<2x128xf32, #tpu.memory_space<vmem>>, vector<2x128xf32>
    tpu.vector_store %arg4[%c0, %c0_0], %0 {strides = array<i32>} : memref<2x128xf32, #tpu.memory_space<vmem>>, vector<2x128xf32>,
    %cst_1 = arith.constant 0.000000e+00 : f32
    %2 = vector.broadcast %cst_1 : f32 to vector<2x128xf32>
    %c0_2 = arith.constant 0 : index
    %c0_3 = arith.constant 0 : index
    %3 = vector.load %arg5[%c0_2, %c0_3] : memref<2x128xf32, #tpu.memory_space<vmem>>, vector<2x128xf32>
    tpu.vector_store %arg5[%c0_2, %c0_3], %2 {strides = array<i32>} : memref<2x128xf32, #tpu.memory_space<vmem>>, vector<2x128xf32>,
    %c0_4 = arith.constant 0 : index
    %c0_5 = arith.constant 0 : index
    %c0_6 = arith.constant 0 : index
    %4 = vector.load %arg2[%c0_4, %c0_5, %c0_6] : memref<1x128x512xbf16, #tpu.memory_space<vmem>>, vector<1x128x512xbf16>
    %5 = vector.shape_cast %4 : vector<1x128x512xbf16> to vector<128x512xbf16>
    %c0_i32 = arith.constant 0 : i32
    %c0_7 = arith.constant 0 : index
    %6 = arith.index_cast %c0_i32 : i32 to index
    %c0_8 = arith.constant 0 : index
    %c0_9 = arith.constant 0 : index
    %7 = vector.load %arg1[%c0_7, %6, %c0_8, %c0_9] : memref<1x9x2x512xf32, #tpu.memory_space<vmem>>, vector<1x1x2x512xf32>
    %8 = vector.shape_cast %7 : vector<1x1x2x512xf32> to vector<2x512xf32>
    %c0_10 = arith.constant 0 : index
    %c0_11 = arith.constant 0 : index
    %9 = vector.load %arg4[%c0_10, %c0_11] : memref<2x128xf32, #tpu.memory_space<vmem>>, vector<2x128xf32>
    %10 = arith.truncf %9 : vector<2x128xf32> to vector<2x128xbf16>
    %cst_12 = arith.constant dense<0.000000e+00> : vector<2x512xf32>
    %11 = tpu.matmul %10, %5, %cst_12 {dimension_numbers = #tpu.dot_dimension_numbers<[1], [0], [0], [1], [0, 0, 1, 1], [], []>} : vector<2x128xbf16>, vector<128x512xbf16>, vector<2x512xf32> -> vector<2x512xf32>
    %12 = arith.addf %8, %11 : vector<2x512xf32>
    %13 = vector.extract_strided_slice %12 {offsets = [0, 0], sizes = [2, 128], strides = [1, 1]} : vector<2x512xf32> to vector<2x128xf32>
    %14 = arith.negf %13 : vector<2x128xf32>
    %15 = math.exp %14 : vector<2x128xf32>
    %cst_13 = arith.constant 1.000000e+00 : f32
    %16 = vector.broadcast %cst_13 : f32 to vector<2x128xf32>
    %17 = arith.addf %16, %15 : vector<2x128xf32>
    %18 = arith.divf %16, %17 : vector<2x128xf32>
    %19 = vector.extract_strided_slice %12 {offsets = [0, 128], sizes = [2, 128], strides = [1, 1]} : vector<2x512xf32> to vector<2x128xf32>
    %20 = arith.negf %19 : vector<2x128xf32>
    %21 = math.exp %20 : vector<2x128xf32>
    %cst_14 = arith.constant 1.000000e+00 : f32
    %22 = vector.broadcast %cst_14 : f32 to vector<2x128xf32>
    %23 = arith.addf %22, %21 : vector<2x128xf32>
    %24 = arith.divf %22, %23 : vector<2x128xf32>
    %25 = vector.extract_strided_slice %12 {offsets = [0, 256], sizes = [2, 128], strides = [1, 1]} : vector<2x512xf32> to vector<2x128xf32>
    %26 = math.tanh %25 : vector<2x128xf32>
    %27 = vector.extract_strided_slice %12 {offsets = [0, 384], sizes = [2, 128], strides = [1, 1]} : vector<2x512xf32> to vector<2x128xf32>
    %28 = arith.negf %27 : vector<2x128xf32>
    %29 = math.exp %28 : vector<2x128xf32>
    %cst_15 = arith.constant 1.000000e+00 : f32
    %30 = vector.broadcast %cst_15 : f32 to vector<2x128xf32>
    %31 = arith.addf %30, %29 : vector<2x128xf32>
    %32 = arith.divf %30, %31 : vector<2x128xf32>
    %c0_16 = arith.constant 0 : index
    %c0_17 = arith.constant 0 : index
    %33 = vector.load %arg5[%c0_16, %c0_17] : memref<2x128xf32, #tpu.memory_space<vmem>>, vector<2x128xf32>
    %34 = arith.mulf %24, %33 : vector<2x128xf32>
    %35 = arith.mulf %18, %26 : vector<2x128xf32>
    %36 = arith.addf %34, %35 : vector<2x128xf32>
    %37 = math.tanh %36 : vector<2x128xf32>
    %38 = arith.mulf %32, %37 : vector<2x128xf32>
    %c0_18 = arith.constant 0 : index
    %c0_19 = arith.constant 0 : index
    %39 = vector.load %arg5[%c0_18, %c0_19] : memref<2x128xf32, #tpu.memory_space<vmem>>, vector<2x128xf32>
    tpu.vector_store %arg5[%c0_18, %c0_19], %36 {strides = array<i32>} : memref<2x128xf32, #tpu.memory_space<vmem>>, vector<2x128xf32>,
    %c0_20 = arith.constant 0 : index
    %c0_21 = arith.constant 0 : index
    %40 = vector.load %arg4[%c0_20, %c0_21] : memref<2x128xf32, #tpu.memory_space<vmem>>, vector<2x128xf32>
    tpu.vector_store %arg4[%c0_20, %c0_21], %38 {strides = array<i32>} : memref<2x128xf32, #tpu.memory_space<vmem>>, vector<2x128xf32>,
    %c0_22 = arith.constant 0 : index
    %41 = arith.index_cast %c0_i32 : i32 to index
    %c0_23 = arith.constant 0 : index
    %c0_24 = arith.constant 0 : index
    %42 = vector.load %arg3[%c0_22, %41, %c0_23, %c0_24] : memref<1x9x2x128xf32, #tpu.memory_space<vmem>>, vector<1x1x2x128xf32>
    %43 = vector.shape_cast %42 : vector<1x1x2x128xf32> to vector<2x128xf32>
    %44 = vector.shape_cast %38 : vector<2x128xf32> to vector<1x1x2x128xf32>
    tpu.vector_store %arg3[%c0_22, %41, %c0_23, %c0_24], %44 {strides = array<i32>} : memref<1x9x2x128xf32, #tpu.memory_space<vmem>>, vector<1x1x2x128xf32>,
    %c1_i32 = arith.constant 1 : i32
    %c0_25 = arith.constant 0 : index
    %45 = arith.index_cast %c1_i32 : i32 to index
    %c0_26 = arith.constant 0 : index
    %c0_27 = arith.constant 0 : index
    %46 = vector.load %arg1[%c0_25, %45, %c0_26, %c0_27] : memref<1x9x2x512xf32, #tpu.memory_space<vmem>>, vector<1x1x2x512xf32>
    %47 = vector.shape_cast %46 : vector<1x1x2x512xf32> to vector<2x512xf32>
    %c0_28 = arith.constant 0 : index
    %c0_29 = arith.constant 0 : index
    %48 = vector.load %arg4[%c0_28, %c0_29] : memref<2x128xf32, #tpu.memory_space<vmem>>, vector<2x128xf32>
    %49 = arith.truncf %48 : vector<2x128xf32> to vector<2x128xbf16>
    %cst_30 = arith.constant dense<0.000000e+00> : vector<2x512xf32>
    %50 = tpu.matmul %49, %5, %cst_30 {dimension_numbers = #tpu.dot_dimension_numbers<[1], [0], [0], [1], [0, 0, 1, 1], [], []>} : vector<2x128xbf16>, vector<128x512xbf16>, vector<2x512xf32> -> vector<2x512xf32>
    %51 = arith.addf %47, %50 : vector<2x512xf32>
    %52 = vector.extract_strided_slice %51 {offsets = [0, 0], sizes = [2, 128], strides = [1, 1]} : vector<2x512xf32> to vector<2x128xf32>
    %53 = arith.negf %52 : vector<2x128xf32>
    %54 = math.exp %53 : vector<2x128xf32>
    %cst_31 = arith.constant 1.000000e+00 : f32
    %55 = vector.broadcast %cst_31 : f32 to vector<2x128xf32>
    %56 = arith.addf %55, %54 : vector<2x128xf32>
    %57 = arith.divf %55, %56 : vector<2x128xf32>
    %58 = vector.extract_strided_slice %51 {offsets = [0, 128], sizes = [2, 128], strides = [1, 1]} : vector<2x512xf32> to vector<2x128xf32>
    %59 = arith.negf %58 : vector<2x128xf32>
    %60 = math.exp %59 : vector<2x128xf32>
    %cst_32 = arith.constant 1.000000e+00 : f32
    %61 = vector.broadcast %cst_32 : f32 to vector<2x128xf32>
    %62 = arith.addf %61, %60 : vector<2x128xf32>
    %63 = arith.divf %61, %62 : vector<2x128xf32>
    %64 = vector.extract_strided_slice %51 {offsets = [0, 256], sizes = [2, 128], strides = [1, 1]} : vector<2x512xf32> to vector<2x128xf32>
    %65 = math.tanh %64 : vector<2x128xf32>
    %66 = vector.extract_strided_slice %51 {offsets = [0, 384], sizes = [2, 128], strides = [1, 1]} : vector<2x512xf32> to vector<2x128xf32>
    %67 = arith.negf %66 : vector<2x128xf32>
    %68 = math.exp %67 : vector<2x128xf32>
    %cst_33 = arith.constant 1.000000e+00 : f32
    %69 = vector.broadcast %cst_33 : f32 to vector<2x128xf32>
    %70 = arith.addf %69, %68 : vector<2x128xf32>
    %71 = arith.divf %69, %70 : vector<2x128xf32>
    %c0_34 = arith.constant 0 : index
    %c0_35 = arith.constant 0 : index
    %72 = vector.load %arg5[%c0_34, %c0_35] : memref<2x128xf32, #tpu.memory_space<vmem>>, vector<2x128xf32>
    %73 = arith.mulf %63, %72 : vector<2x128xf32>
    %74 = arith.mulf %57, %65 : vector<2x128xf32>
    %75 = arith.addf %73, %74 : vector<2x128xf32>
    %76 = math.tanh %75 : vector<2x128xf32>
    %77 = arith.mulf %71, %76 : vector<2x128xf32>
    %c0_36 = arith.constant 0 : index
    %c0_37 = arith.constant 0 : index
    %78 = vector.load %arg5[%c0_36, %c0_37] : memref<2x128xf32, #tpu.memory_space<vmem>>, vector<2x128xf32>
    tpu.vector_store %arg5[%c0_36, %c0_37], %75 {strides = array<i32>} : memref<2x128xf32, #tpu.memory_space<vmem>>, vector<2x128xf32>,
    %c0_38 = arith.constant 0 : index
    %c0_39 = arith.constant 0 : index
    %79 = vector.load %arg4[%c0_38, %c0_39] : memref<2x128xf32, #tpu.memory_space<vmem>>, vector<2x128xf32>
    tpu.vector_store %arg4[%c0_38, %c0_39], %77 {strides = array<i32>} : memref<2x128xf32, #tpu.memory_space<vmem>>, vector<2x128xf32>,
    %c0_40 = arith.constant 0 : index
    %80 = arith.index_cast %c1_i32 : i32 to index
    %c0_41 = arith.constant 0 : index
    %c0_42 = arith.constant 0 : index
    %81 = vector.load %arg3[%c0_40, %80, %c0_41, %c0_42] : memref<1x9x2x128xf32, #tpu.memory_space<vmem>>, vector<1x1x2x128xf32>
    %82 = vector.shape_cast %81 : vector<1x1x2x128xf32> to vector<2x128xf32>
    %83 = vector.shape_cast %77 : vector<2x128xf32> to vector<1x1x2x128xf32>
    tpu.vector_store %arg3[%c0_40, %80, %c0_41, %c0_42], %83 {strides = array<i32>} : memref<1x9x2x128xf32, #tpu.memory_space<vmem>>, vector<1x1x2x128xf32>,
    %c2_i32 = arith.constant 2 : i32
    %c0_43 = arith.constant 0 : index
    %84 = arith.index_cast %c2_i32 : i32 to index
    %c0_44 = arith.constant 0 : index
    %c0_45 = arith.constant 0 : index
    %85 = vector.load %arg1[%c0_43, %84, %c0_44, %c0_45] : memref<1x9x2x512xf32, #tpu.memory_space<vmem>>, vector<1x1x2x512xf32>
    %86 = vector.shape_cast %85 : vector<1x1x2x512xf32> to vector<2x512xf32>
    %c0_46 = arith.constant 0 : index
    %c0_47 = arith.constant 0 : index
    %87 = vector.load %arg4[%c0_46, %c0_47] : memref<2x128xf32, #tpu.memory_space<vmem>>, vector<2x128xf32>
    %88 = arith.truncf %87 : vector<2x128xf32> to vector<2x128xbf16>
    %cst_48 = arith.constant dense<0.000000e+00> : vector<2x512xf32>
    %89 = tpu.matmul %88, %5, %cst_48 {dimension_numbers = #tpu.dot_dimension_numbers<[1], [0], [0], [1], [0, 0, 1, 1], [], []>} : vector<2x128xbf16>, vector<128x512xbf16>, vector<2x512xf32> -> vector<2x512xf32>
    %90 = arith.addf %86, %89 : vector<2x512xf32>
    %91 = vector.extract_strided_slice %90 {offsets = [0, 0], sizes = [2, 128], strides = [1, 1]} : vector<2x512xf32> to vector<2x128xf32>
    %92 = arith.negf %91 : vector<2x128xf32>
    %93 = math.exp %92 : vector<2x128xf32>
    %cst_49 = arith.constant 1.000000e+00 : f32
    %94 = vector.broadcast %cst_49 : f32 to vector<2x128xf32>
    %95 = arith.addf %94, %93 : vector<2x128xf32>
    %96 = arith.divf %94, %95 : vector<2x128xf32>
    %97 = vector.extract_strided_slice %90 {offsets = [0, 128], sizes = [2, 128], strides = [1, 1]} : vector<2x512xf32> to vector<2x128xf32>
    %98 = arith.negf %97 : vector<2x128xf32>
    %99 = math.exp %98 : vector<2x128xf32>
    %cst_50 = arith.constant 1.000000e+00 : f32
    %100 = vector.broadcast %cst_50 : f32 to vector<2x128xf32>
    %101 = arith.addf %100, %99 : vector<2x128xf32>
    %102 = arith.divf %100, %101 : vector<2x128xf32>
    %103 = vector.extract_strided_slice %90 {offsets = [0, 256], sizes = [2, 128], strides = [1, 1]} : vector<2x512xf32> to vector<2x128xf32>
    %104 = math.tanh %103 : vector<2x128xf32>
    %105 = vector.extract_strided_slice %90 {offsets = [0, 384], sizes = [2, 128], strides = [1, 1]} : vector<2x512xf32> to vector<2x128xf32>
    %106 = arith.negf %105 : vector<2x128xf32>
    %107 = math.exp %106 : vector<2x128xf32>
    %cst_51 = arith.constant 1.000000e+00 : f32
    %108 = vector.broadcast %cst_51 : f32 to vector<2x128xf32>
    %109 = arith.addf %108, %107 : vector<2x128xf32>
    %110 = arith.divf %108, %109 : vector<2x128xf32>
    %c0_52 = arith.constant 0 : index
    %c0_53 = arith.constant 0 : index
    %111 = vector.load %arg5[%c0_52, %c0_53] : memref<2x128xf32, #tpu.memory_space<vmem>>, vector<2x128xf32>
    %112 = arith.mulf %102, %111 : vector<2x128xf32>
    %113 = arith.mulf %96, %104 : vector<2x128xf32>
    %114 = arith.addf %112, %113 : vector<2x128xf32>
    %115 = math.tanh %114 : vector<2x128xf32>
    %116 = arith.mulf %110, %115 : vector<2x128xf32>
    %c0_54 = arith.constant 0 : index
    %c0_55 = arith.constant 0 : index
    %117 = vector.load %arg5[%c0_54, %c0_55] : memref<2x128xf32, #tpu.memory_space<vmem>>, vector<2x128xf32>
    tpu.vector_store %arg5[%c0_54, %c0_55], %114 {strides = array<i32>} : memref<2x128xf32, #tpu.memory_space<vmem>>, vector<2x128xf32>,
    %c0_56 = arith.constant 0 : index
    %c0_57 = arith.constant 0 : index
    %118 = vector.load %arg4[%c0_56, %c0_57] : memref<2x128xf32, #tpu.memory_space<vmem>>, vector<2x128xf32>
    tpu.vector_store %arg4[%c0_56, %c0_57], %116 {strides = array<i32>} : memref<2x128xf32, #tpu.memory_space<vmem>>, vector<2x128xf32>,
    %c0_58 = arith.constant 0 : index
    %119 = arith.index_cast %c2_i32 : i32 to index
    %c0_59 = arith.constant 0 : index
    %c0_60 = arith.constant 0 : index
    %120 = vector.load %arg3[%c0_58, %119, %c0_59, %c0_60] : memref<1x9x2x128xf32, #tpu.memory_space<vmem>>, vector<1x1x2x128xf32>
    %121 = vector.shape_cast %120 : vector<1x1x2x128xf32> to vector<2x128xf32>
    %122 = vector.shape_cast %116 : vector<2x128xf32> to vector<1x1x2x128xf32>
    tpu.vector_store %arg3[%c0_58, %119, %c0_59, %c0_60], %122 {strides = array<i32>} : memref<1x9x2x128xf32, #tpu.memory_space<vmem>>, vector<1x1x2x128xf32>,
    %c3_i32 = arith.constant 3 : i32
    %c0_61 = arith.constant 0 : index
    %123 = arith.index_cast %c3_i32 : i32 to index
    %c0_62 = arith.constant 0 : index
    %c0_63 = arith.constant 0 : index
    %124 = vector.load %arg1[%c0_61, %123, %c0_62, %c0_63] : memref<1x9x2x512xf32, #tpu.memory_space<vmem>>, vector<1x1x2x512xf32>
    %125 = vector.shape_cast %124 : vector<1x1x2x512xf32> to vector<2x512xf32>
    %c0_64 = arith.constant 0 : index
    %c0_65 = arith.constant 0 : index
    %126 = vector.load %arg4[%c0_64, %c0_65] : memref<2x128xf32, #tpu.memory_space<vmem>>, vector<2x128xf32>
    %127 = arith.truncf %126 : vector<2x128xf32> to vector<2x128xbf16>
    %cst_66 = arith.constant dense<0.000000e+00> : vector<2x512xf32>
    %128 = tpu.matmul %127, %5, %cst_66 {dimension_numbers = #tpu.dot_dimension_numbers<[1], [0], [0], [1], [0, 0, 1, 1], [], []>} : vector<2x128xbf16>, vector<128x512xbf16>, vector<2x512xf32> -> vector<2x512xf32>
    %129 = arith.addf %125, %128 : vector<2x512xf32>
    %130 = vector.extract_strided_slice %129 {offsets = [0, 0], sizes = [2, 128], strides = [1, 1]} : vector<2x512xf32> to vector<2x128xf32>
    %131 = arith.negf %130 : vector<2x128xf32>
    %132 = math.exp %131 : vector<2x128xf32>
    %cst_67 = arith.constant 1.000000e+00 : f32
    %133 = vector.broadcast %cst_67 : f32 to vector<2x128xf32>
    %134 = arith.addf %133, %132 : vector<2x128xf32>
    %135 = arith.divf %133, %134 : vector<2x128xf32>
    %136 = vector.extract_strided_slice %129 {offsets = [0, 128], sizes = [2, 128], strides = [1, 1]} : vector<2x512xf32> to vector<2x128xf32>
    %137 = arith.negf %136 : vector<2x128xf32>
    %138 = math.exp %137 : vector<2x128xf32>
    %cst_68 = arith.constant 1.000000e+00 : f32
    %139 = vector.broadcast %cst_68 : f32 to vector<2x128xf32>
    %140 = arith.addf %139, %138 : vector<2x128xf32>
    %141 = arith.divf %139, %140 : vector<2x128xf32>
    %142 = vector.extract_strided_slice %129 {offsets = [0, 256], sizes = [2, 128], strides = [1, 1]} : vector<2x512xf32> to vector<2x128xf32>
    %143 = math.tanh %142 : vector<2x128xf32>
    %144 = vector.extract_strided_slice %129 {offsets = [0, 384], sizes = [2, 128], strides = [1, 1]} : vector<2x512xf32> to vector<2x128xf32>
    %145 = arith.negf %144 : vector<2x128xf32>
    %146 = math.exp %145 : vector<2x128xf32>
    %cst_69 = arith.constant 1.000000e+00 : f32
    %147 = vector.broadcast %cst_69 : f32 to vector<2x128xf32>
    %148 = arith.addf %147, %146 : vector<2x128xf32>
    %149 = arith.divf %147, %148 : vector<2x128xf32>
    %c0_70 = arith.constant 0 : index
    %c0_71 = arith.constant 0 : index
    %150 = vector.load %arg5[%c0_70, %c0_71] : memref<2x128xf32, #tpu.memory_space<vmem>>, vector<2x128xf32>
    %151 = arith.mulf %141, %150 : vector<2x128xf32>
    %152 = arith.mulf %135, %143 : vector<2x128xf32>
    %153 = arith.addf %151, %152 : vector<2x128xf32>
    %154 = math.tanh %153 : vector<2x128xf32>
    %155 = arith.mulf %149, %154 : vector<2x128xf32>
    %c0_72 = arith.constant 0 : index
    %c0_73 = arith.constant 0 : index
    %156 = vector.load %arg5[%c0_72, %c0_73] : memref<2x128xf32, #tpu.memory_space<vmem>>, vector<2x128xf32>
    tpu.vector_store %arg5[%c0_72, %c0_73], %153 {strides = array<i32>} : memref<2x128xf32, #tpu.memory_space<vmem>>, vector<2x128xf32>,
    %c0_74 = arith.constant 0 : index
    %c0_75 = arith.constant 0 : index
    %157 = vector.load %arg4[%c0_74, %c0_75] : memref<2x128xf32, #tpu.memory_space<vmem>>, vector<2x128xf32>
    tpu.vector_store %arg4[%c0_74, %c0_75], %155 {strides = array<i32>} : memref<2x128xf32, #tpu.memory_space<vmem>>, vector<2x128xf32>,
    %c0_76 = arith.constant 0 : index
    %158 = arith.index_cast %c3_i32 : i32 to index
    %c0_77 = arith.constant 0 : index
    %c0_78 = arith.constant 0 : index
    %159 = vector.load %arg3[%c0_76, %158, %c0_77, %c0_78] : memref<1x9x2x128xf32, #tpu.memory_space<vmem>>, vector<1x1x2x128xf32>
    %160 = vector.shape_cast %159 : vector<1x1x2x128xf32> to vector<2x128xf32>
    %161 = vector.shape_cast %155 : vector<2x128xf32> to vector<1x1x2x128xf32>
    tpu.vector_store %arg3[%c0_76, %158, %c0_77, %c0_78], %161 {strides = array<i32>} : memref<1x9x2x128xf32, #tpu.memory_space<vmem>>, vector<1x1x2x128xf32>,
    %c4_i32 = arith.constant 4 : i32
    %c0_79 = arith.constant 0 : index
    %162 = arith.index_cast %c4_i32 : i32 to index
    %c0_80 = arith.constant 0 : index
    %c0_81 = arith.constant 0 : index
    %163 = vector.load %arg1[%c0_79, %162, %c0_80, %c0_81] : memref<1x9x2x512xf32, #tpu.memory_space<vmem>>, vector<1x1x2x512xf32>
    %164 = vector.shape_cast %163 : vector<1x1x2x512xf32> to vector<2x512xf32>
    %c0_82 = arith.constant 0 : index
    %c0_83 = arith.constant 0 : index
    %165 = vector.load %arg4[%c0_82, %c0_83] : memref<2x128xf32, #tpu.memory_space<vmem>>, vector<2x128xf32>
    %166 = arith.truncf %165 : vector<2x128xf32> to vector<2x128xbf16>
    %cst_84 = arith.constant dense<0.000000e+00> : vector<2x512xf32>
    %167 = tpu.matmul %166, %5, %cst_84 {dimension_numbers = #tpu.dot_dimension_numbers<[1], [0], [0], [1], [0, 0, 1, 1], [], []>} : vector<2x128xbf16>, vector<128x512xbf16>, vector<2x512xf32> -> vector<2x512xf32>
    %168 = arith.addf %164, %167 : vector<2x512xf32>
    %169 = vector.extract_strided_slice %168 {offsets = [0, 0], sizes = [2, 128], strides = [1, 1]} : vector<2x512xf32> to vector<2x128xf32>
    %170 = arith.negf %169 : vector<2x128xf32>
    %171 = math.exp %170 : vector<2x128xf32>
    %cst_85 = arith.constant 1.000000e+00 : f32
    %172 = vector.broadcast %cst_85 : f32 to vector<2x128xf32>
    %173 = arith.addf %172, %171 : vector<2x128xf32>
    %174 = arith.divf %172, %173 : vector<2x128xf32>
    %175 = vector.extract_strided_slice %168 {offsets = [0, 128], sizes = [2, 128], strides = [1, 1]} : vector<2x512xf32> to vector<2x128xf32>
    %176 = arith.negf %175 : vector<2x128xf32>
    %177 = math.exp %176 : vector<2x128xf32>
    %cst_86 = arith.constant 1.000000e+00 : f32
    %178 = vector.broadcast %cst_86 : f32 to vector<2x128xf32>
    %179 = arith.addf %178, %177 : vector<2x128xf32>
    %180 = arith.divf %178, %179 : vector<2x128xf32>
    %181 = vector.extract_strided_slice %168 {offsets = [0, 256], sizes = [2, 128], strides = [1, 1]} : vector<2x512xf32> to vector<2x128xf32>
    %182 = math.tanh %181 : vector<2x128xf32>
    %183 = vector.extract_strided_slice %168 {offsets = [0, 384], sizes = [2, 128], strides = [1, 1]} : vector<2x512xf32> to vector<2x128xf32>
    %184 = arith.negf %183 : vector<2x128xf32>
    %185 = math.exp %184 : vector<2x128xf32>
    %cst_87 = arith.constant 1.000000e+00 : f32
    %186 = vector.broadcast %cst_87 : f32 to vector<2x128xf32>
    %187 = arith.addf %186, %185 : vector<2x128xf32>
    %188 = arith.divf %186, %187 : vector<2x128xf32>
    %c0_88 = arith.constant 0 : index
    %c0_89 = arith.constant 0 : index
    %189 = vector.load %arg5[%c0_88, %c0_89] : memref<2x128xf32, #tpu.memory_space<vmem>>, vector<2x128xf32>
    %190 = arith.mulf %180, %189 : vector<2x128xf32>
    %191 = arith.mulf %174, %182 : vector<2x128xf32>
    %192 = arith.addf %190, %191 : vector<2x128xf32>
    %193 = math.tanh %192 : vector<2x128xf32>
    %194 = arith.mulf %188, %193 : vector<2x128xf32>
    %c0_90 = arith.constant 0 : index
    %c0_91 = arith.constant 0 : index
    %195 = vector.load %arg5[%c0_90, %c0_91] : memref<2x128xf32, #tpu.memory_space<vmem>>, vector<2x128xf32>
    tpu.vector_store %arg5[%c0_90, %c0_91], %192 {strides = array<i32>} : memref<2x128xf32, #tpu.memory_space<vmem>>, vector<2x128xf32>,
    %c0_92 = arith.constant 0 : index
    %c0_93 = arith.constant 0 : index
    %196 = vector.load %arg4[%c0_92, %c0_93] : memref<2x128xf32, #tpu.memory_space<vmem>>, vector<2x128xf32>
    tpu.vector_store %arg4[%c0_92, %c0_93], %194 {strides = array<i32>} : memref<2x128xf32, #tpu.memory_space<vmem>>, vector<2x128xf32>,
    %c0_94 = arith.constant 0 : index
    %197 = arith.index_cast %c4_i32 : i32 to index
    %c0_95 = arith.constant 0 : index
    %c0_96 = arith.constant 0 : index
    %198 = vector.load %arg3[%c0_94, %197, %c0_95, %c0_96] : memref<1x9x2x128xf32, #tpu.memory_space<vmem>>, vector<1x1x2x128xf32>
    %199 = vector.shape_cast %198 : vector<1x1x2x128xf32> to vector<2x128xf32>
    %200 = vector.shape_cast %194 : vector<2x128xf32> to vector<1x1x2x128xf32>
    tpu.vector_store %arg3[%c0_94, %197, %c0_95, %c0_96], %200 {strides = array<i32>} : memref<1x9x2x128xf32, #tpu.memory_space<vmem>>, vector<1x1x2x128xf32>,
    %c5_i32 = arith.constant 5 : i32
    %c0_97 = arith.constant 0 : index
    %201 = arith.index_cast %c5_i32 : i32 to index
    %c0_98 = arith.constant 0 : index
    %c0_99 = arith.constant 0 : index
    %202 = vector.load %arg1[%c0_97, %201, %c0_98, %c0_99] : memref<1x9x2x512xf32, #tpu.memory_space<vmem>>, vector<1x1x2x512xf32>
    %203 = vector.shape_cast %202 : vector<1x1x2x512xf32> to vector<2x512xf32>
    %c0_100 = arith.constant 0 : index
    %c0_101 = arith.constant 0 : index
    %204 = vector.load %arg4[%c0_100, %c0_101] : memref<2x128xf32, #tpu.memory_space<vmem>>, vector<2x128xf32>
    %205 = arith.truncf %204 : vector<2x128xf32> to vector<2x128xbf16>
    %cst_102 = arith.constant dense<0.000000e+00> : vector<2x512xf32>
    %206 = tpu.matmul %205, %5, %cst_102 {dimension_numbers = #tpu.dot_dimension_numbers<[1], [0], [0], [1], [0, 0, 1, 1], [], []>} : vector<2x128xbf16>, vector<128x512xbf16>, vector<2x512xf32> -> vector<2x512xf32>
    %207 = arith.addf %203, %206 : vector<2x512xf32>
    %208 = vector.extract_strided_slice %207 {offsets = [0, 0], sizes = [2, 128], strides = [1, 1]} : vector<2x512xf32> to vector<2x128xf32>
    %209 = arith.negf %208 : vector<2x128xf32>
    %210 = math.exp %209 : vector<2x128xf32>
    %cst_103 = arith.constant 1.000000e+00 : f32
    %211 = vector.broadcast %cst_103 : f32 to vector<2x128xf32>
    %212 = arith.addf %211, %210 : vector<2x128xf32>
    %213 = arith.divf %211, %212 : vector<2x128xf32>
    %214 = vector.extract_strided_slice %207 {offsets = [0, 128], sizes = [2, 128], strides = [1, 1]} : vector<2x512xf32> to vector<2x128xf32>
    %215 = arith.negf %214 : vector<2x128xf32>
    %216 = math.exp %215 : vector<2x128xf32>
    %cst_104 = arith.constant 1.000000e+00 : f32
    %217 = vector.broadcast %cst_104 : f32 to vector<2x128xf32>
    %218 = arith.addf %217, %216 : vector<2x128xf32>
    %219 = arith.divf %217, %218 : vector<2x128xf32>
    %220 = vector.extract_strided_slice %207 {offsets = [0, 256], sizes = [2, 128], strides = [1, 1]} : vector<2x512xf32> to vector<2x128xf32>
    %221 = math.tanh %220 : vector<2x128xf32>
    %222 = vector.extract_strided_slice %207 {offsets = [0, 384], sizes = [2, 128], strides = [1, 1]} : vector<2x512xf32> to vector<2x128xf32>
    %223 = arith.negf %222 : vector<2x128xf32>
    %224 = math.exp %223 : vector<2x128xf32>
    %cst_105 = arith.constant 1.000000e+00 : f32
    %225 = vector.broadcast %cst_105 : f32 to vector<2x128xf32>
    %226 = arith.addf %225, %224 : vector<2x128xf32>
    %227 = arith.divf %225, %226 : vector<2x128xf32>
    %c0_106 = arith.constant 0 : index
    %c0_107 = arith.constant 0 : index
    %228 = vector.load %arg5[%c0_106, %c0_107] : memref<2x128xf32, #tpu.memory_space<vmem>>, vector<2x128xf32>
    %229 = arith.mulf %219, %228 : vector<2x128xf32>
    %230 = arith.mulf %213, %221 : vector<2x128xf32>
    %231 = arith.addf %229, %230 : vector<2x128xf32>
    %232 = math.tanh %231 : vector<2x128xf32>
    %233 = arith.mulf %227, %232 : vector<2x128xf32>
    %c0_108 = arith.constant 0 : index
    %c0_109 = arith.constant 0 : index
    %234 = vector.load %arg5[%c0_108, %c0_109] : memref<2x128xf32, #tpu.memory_space<vmem>>, vector<2x128xf32>
    tpu.vector_store %arg5[%c0_108, %c0_109], %231 {strides = array<i32>} : memref<2x128xf32, #tpu.memory_space<vmem>>, vector<2x128xf32>,
    %c0_110 = arith.constant 0 : index
    %c0_111 = arith.constant 0 : index
    %235 = vector.load %arg4[%c0_110, %c0_111] : memref<2x128xf32, #tpu.memory_space<vmem>>, vector<2x128xf32>
    tpu.vector_store %arg4[%c0_110, %c0_111], %233 {strides = array<i32>} : memref<2x128xf32, #tpu.memory_space<vmem>>, vector<2x128xf32>,
    %c0_112 = arith.constant 0 : index
    %236 = arith.index_cast %c5_i32 : i32 to index
    %c0_113 = arith.constant 0 : index
    %c0_114 = arith.constant 0 : index
    %237 = vector.load %arg3[%c0_112, %236, %c0_113, %c0_114] : memref<1x9x2x128xf32, #tpu.memory_space<vmem>>, vector<1x1x2x128xf32>
    %238 = vector.shape_cast %237 : vector<1x1x2x128xf32> to vector<2x128xf32>
    %239 = vector.shape_cast %233 : vector<2x128xf32> to vector<1x1x2x128xf32>
    tpu.vector_store %arg3[%c0_112, %236, %c0_113, %c0_114], %239 {strides = array<i32>} : memref<1x9x2x128xf32, #tpu.memory_space<vmem>>, vector<1x1x2x128xf32>,
    %c6_i32 = arith.constant 6 : i32
    %c0_115 = arith.constant 0 : index
    %240 = arith.index_cast %c6_i32 : i32 to index
    %c0_116 = arith.constant 0 : index
    %c0_117 = arith.constant 0 : index
    %241 = vector.load %arg1[%c0_115, %240, %c0_116, %c0_117] : memref<1x9x2x512xf32, #tpu.memory_space<vmem>>, vector<1x1x2x512xf32>
    %242 = vector.shape_cast %241 : vector<1x1x2x512xf32> to vector<2x512xf32>
    %c0_118 = arith.constant 0 : index
    %c0_119 = arith.constant 0 : index
    %243 = vector.load %arg4[%c0_118, %c0_119] : memref<2x128xf32, #tpu.memory_space<vmem>>, vector<2x128xf32>
    %244 = arith.truncf %243 : vector<2x128xf32> to vector<2x128xbf16>
    %cst_120 = arith.constant dense<0.000000e+00> : vector<2x512xf32>
    %245 = tpu.matmul %244, %5, %cst_120 {dimension_numbers = #tpu.dot_dimension_numbers<[1], [0], [0], [1], [0, 0, 1, 1], [], []>} : vector<2x128xbf16>, vector<128x512xbf16>, vector<2x512xf32> -> vector<2x512xf32>
    %246 = arith.addf %242, %245 : vector<2x512xf32>
    %247 = vector.extract_strided_slice %246 {offsets = [0, 0], sizes = [2, 128], strides = [1, 1]} : vector<2x512xf32> to vector<2x128xf32>
    %248 = arith.negf %247 : vector<2x128xf32>
    %249 = math.exp %248 : vector<2x128xf32>
    %cst_121 = arith.constant 1.000000e+00 : f32
    %250 = vector.broadcast %cst_121 : f32 to vector<2x128xf32>
    %251 = arith.addf %250, %249 : vector<2x128xf32>
    %252 = arith.divf %250, %251 : vector<2x128xf32>
    %253 = vector.extract_strided_slice %246 {offsets = [0, 128], sizes = [2, 128], strides = [1, 1]} : vector<2x512xf32> to vector<2x128xf32>
    %254 = arith.negf %253 : vector<2x128xf32>
    %255 = math.exp %254 : vector<2x128xf32>
    %cst_122 = arith.constant 1.000000e+00 : f32
    %256 = vector.broadcast %cst_122 : f32 to vector<2x128xf32>
    %257 = arith.addf %256, %255 : vector<2x128xf32>
    %258 = arith.divf %256, %257 : vector<2x128xf32>
    %259 = vector.extract_strided_slice %246 {offsets = [0, 256], sizes = [2, 128], strides = [1, 1]} : vector<2x512xf32> to vector<2x128xf32>
    %260 = math.tanh %259 : vector<2x128xf32>
    %261 = vector.extract_strided_slice %246 {offsets = [0, 384], sizes = [2, 128], strides = [1, 1]} : vector<2x512xf32> to vector<2x128xf32>
    %262 = arith.negf %261 : vector<2x128xf32>
    %263 = math.exp %262 : vector<2x128xf32>
    %cst_123 = arith.constant 1.000000e+00 : f32
    %264 = vector.broadcast %cst_123 : f32 to vector<2x128xf32>
    %265 = arith.addf %264, %263 : vector<2x128xf32>
    %266 = arith.divf %264, %265 : vector<2x128xf32>
    %c0_124 = arith.constant 0 : index
    %c0_125 = arith.constant 0 : index
    %267 = vector.load %arg5[%c0_124, %c0_125] : memref<2x128xf32, #tpu.memory_space<vmem>>, vector<2x128xf32>
    %268 = arith.mulf %258, %267 : vector<2x128xf32>
    %269 = arith.mulf %252, %260 : vector<2x128xf32>
    %270 = arith.addf %268, %269 : vector<2x128xf32>
    %271 = math.tanh %270 : vector<2x128xf32>
    %272 = arith.mulf %266, %271 : vector<2x128xf32>
    %c0_126 = arith.constant 0 : index
    %c0_127 = arith.constant 0 : index
    %273 = vector.load %arg5[%c0_126, %c0_127] : memref<2x128xf32, #tpu.memory_space<vmem>>, vector<2x128xf32>
    tpu.vector_store %arg5[%c0_126, %c0_127], %270 {strides = array<i32>} : memref<2x128xf32, #tpu.memory_space<vmem>>, vector<2x128xf32>,
    %c0_128 = arith.constant 0 : index
    %c0_129 = arith.constant 0 : index
    %274 = vector.load %arg4[%c0_128, %c0_129] : memref<2x128xf32, #tpu.memory_space<vmem>>, vector<2x128xf32>
    tpu.vector_store %arg4[%c0_128, %c0_129], %272 {strides = array<i32>} : memref<2x128xf32, #tpu.memory_space<vmem>>, vector<2x128xf32>,
    %c0_130 = arith.constant 0 : index
    %275 = arith.index_cast %c6_i32 : i32 to index
    %c0_131 = arith.constant 0 : index
    %c0_132 = arith.constant 0 : index
    %276 = vector.load %arg3[%c0_130, %275, %c0_131, %c0_132] : memref<1x9x2x128xf32, #tpu.memory_space<vmem>>, vector<1x1x2x128xf32>
    %277 = vector.shape_cast %276 : vector<1x1x2x128xf32> to vector<2x128xf32>
    %278 = vector.shape_cast %272 : vector<2x128xf32> to vector<1x1x2x128xf32>
    tpu.vector_store %arg3[%c0_130, %275, %c0_131, %c0_132], %278 {strides = array<i32>} : memref<1x9x2x128xf32, #tpu.memory_space<vmem>>, vector<1x1x2x128xf32>,
    %c7_i32 = arith.constant 7 : i32
    %c0_133 = arith.constant 0 : index
    %279 = arith.index_cast %c7_i32 : i32 to index
    %c0_134 = arith.constant 0 : index
    %c0_135 = arith.constant 0 : index
    %280 = vector.load %arg1[%c0_133, %279, %c0_134, %c0_135] : memref<1x9x2x512xf32, #tpu.memory_space<vmem>>, vector<1x1x2x512xf32>
    %281 = vector.shape_cast %280 : vector<1x1x2x512xf32> to vector<2x512xf32>
    %c0_136 = arith.constant 0 : index
    %c0_137 = arith.constant 0 : index
    %282 = vector.load %arg4[%c0_136, %c0_137] : memref<2x128xf32, #tpu.memory_space<vmem>>, vector<2x128xf32>
    %283 = arith.truncf %282 : vector<2x128xf32> to vector<2x128xbf16>
    %cst_138 = arith.constant dense<0.000000e+00> : vector<2x512xf32>
    %284 = tpu.matmul %283, %5, %cst_138 {dimension_numbers = #tpu.dot_dimension_numbers<[1], [0], [0], [1], [0, 0, 1, 1], [], []>} : vector<2x128xbf16>, vector<128x512xbf16>, vector<2x512xf32> -> vector<2x512xf32>
    %285 = arith.addf %281, %284 : vector<2x512xf32>
    %286 = vector.extract_strided_slice %285 {offsets = [0, 0], sizes = [2, 128], strides = [1, 1]} : vector<2x512xf32> to vector<2x128xf32>
    %287 = arith.negf %286 : vector<2x128xf32>
    %288 = math.exp %287 : vector<2x128xf32>
    %cst_139 = arith.constant 1.000000e+00 : f32
    %289 = vector.broadcast %cst_139 : f32 to vector<2x128xf32>
    %290 = arith.addf %289, %288 : vector<2x128xf32>
    %291 = arith.divf %289, %290 : vector<2x128xf32>
    %292 = vector.extract_strided_slice %285 {offsets = [0, 128], sizes = [2, 128], strides = [1, 1]} : vector<2x512xf32> to vector<2x128xf32>
    %293 = arith.negf %292 : vector<2x128xf32>
    %294 = math.exp %293 : vector<2x128xf32>
    %cst_140 = arith.constant 1.000000e+00 : f32
    %295 = vector.broadcast %cst_140 : f32 to vector<2x128xf32>
    %296 = arith.addf %295, %294 : vector<2x128xf32>
    %297 = arith.divf %295, %296 : vector<2x128xf32>
    %298 = vector.extract_strided_slice %285 {offsets = [0, 256], sizes = [2, 128], strides = [1, 1]} : vector<2x512xf32> to vector<2x128xf32>
    %299 = math.tanh %298 : vector<2x128xf32>
    %300 = vector.extract_strided_slice %285 {offsets = [0, 384], sizes = [2, 128], strides = [1, 1]} : vector<2x512xf32> to vector<2x128xf32>
    %301 = arith.negf %300 : vector<2x128xf32>
    %302 = math.exp %301 : vector<2x128xf32>
    %cst_141 = arith.constant 1.000000e+00 : f32
    %303 = vector.broadcast %cst_141 : f32 to vector<2x128xf32>
    %304 = arith.addf %303, %302 : vector<2x128xf32>
    %305 = arith.divf %303, %304 : vector<2x128xf32>
    %c0_142 = arith.constant 0 : index
    %c0_143 = arith.constant 0 : index
    %306 = vector.load %arg5[%c0_142, %c0_143] : memref<2x128xf32, #tpu.memory_space<vmem>>, vector<2x128xf32>
    %307 = arith.mulf %297, %306 : vector<2x128xf32>
    %308 = arith.mulf %291, %299 : vector<2x128xf32>
    %309 = arith.addf %307, %308 : vector<2x128xf32>
    %310 = math.tanh %309 : vector<2x128xf32>
    %311 = arith.mulf %305, %310 : vector<2x128xf32>
    %c0_144 = arith.constant 0 : index
    %c0_145 = arith.constant 0 : index
    %312 = vector.load %arg5[%c0_144, %c0_145] : memref<2x128xf32, #tpu.memory_space<vmem>>, vector<2x128xf32>
    tpu.vector_store %arg5[%c0_144, %c0_145], %309 {strides = array<i32>} : memref<2x128xf32, #tpu.memory_space<vmem>>, vector<2x128xf32>,
    %c0_146 = arith.constant 0 : index
    %c0_147 = arith.constant 0 : index
    %313 = vector.load %arg4[%c0_146, %c0_147] : memref<2x128xf32, #tpu.memory_space<vmem>>, vector<2x128xf32>
    tpu.vector_store %arg4[%c0_146, %c0_147], %311 {strides = array<i32>} : memref<2x128xf32, #tpu.memory_space<vmem>>, vector<2x128xf32>,
    %c0_148 = arith.constant 0 : index
    %314 = arith.index_cast %c7_i32 : i32 to index
    %c0_149 = arith.constant 0 : index
    %c0_150 = arith.constant 0 : index
    %315 = vector.load %arg3[%c0_148, %314, %c0_149, %c0_150] : memref<1x9x2x128xf32, #tpu.memory_space<vmem>>, vector<1x1x2x128xf32>
    %316 = vector.shape_cast %315 : vector<1x1x2x128xf32> to vector<2x128xf32>
    %317 = vector.shape_cast %311 : vector<2x128xf32> to vector<1x1x2x128xf32>
    tpu.vector_store %arg3[%c0_148, %314, %c0_149, %c0_150], %317 {strides = array<i32>} : memref<1x9x2x128xf32, #tpu.memory_space<vmem>>, vector<1x1x2x128xf32>,
    %c8_i32 = arith.constant 8 : i32
    %c0_151 = arith.constant 0 : index
    %318 = arith.index_cast %c8_i32 : i32 to index
    %c0_152 = arith.constant 0 : index
    %c0_153 = arith.constant 0 : index
    %319 = vector.load %arg1[%c0_151, %318, %c0_152, %c0_153] : memref<1x9x2x512xf32, #tpu.memory_space<vmem>>, vector<1x1x2x512xf32>
    %320 = vector.shape_cast %319 : vector<1x1x2x512xf32> to vector<2x512xf32>
    %c0_154 = arith.constant 0 : index
    %c0_155 = arith.constant 0 : index
    %321 = vector.load %arg4[%c0_154, %c0_155] : memref<2x128xf32, #tpu.memory_space<vmem>>, vector<2x128xf32>
    %322 = arith.truncf %321 : vector<2x128xf32> to vector<2x128xbf16>
    %cst_156 = arith.constant dense<0.000000e+00> : vector<2x512xf32>
    %323 = tpu.matmul %322, %5, %cst_156 {dimension_numbers = #tpu.dot_dimension_numbers<[1], [0], [0], [1], [0, 0, 1, 1], [], []>} : vector<2x128xbf16>, vector<128x512xbf16>, vector<2x512xf32> -> vector<2x512xf32>
    %324 = arith.addf %320, %323 : vector<2x512xf32>
    %325 = vector.extract_strided_slice %324 {offsets = [0, 0], sizes = [2, 128], strides = [1, 1]} : vector<2x512xf32> to vector<2x128xf32>
    %326 = arith.negf %325 : vector<2x128xf32>
    %327 = math.exp %326 : vector<2x128xf32>
    %cst_157 = arith.constant 1.000000e+00 : f32
    %328 = vector.broadcast %cst_157 : f32 to vector<2x128xf32>
    %329 = arith.addf %328, %327 : vector<2x128xf32>
    %330 = arith.divf %328, %329 : vector<2x128xf32>
    %331 = vector.extract_strided_slice %324 {offsets = [0, 128], sizes = [2, 128], strides = [1, 1]} : vector<2x512xf32> to vector<2x128xf32>
    %332 = arith.negf %331 : vector<2x128xf32>
    %333 = math.exp %332 : vector<2x128xf32>
    %cst_158 = arith.constant 1.000000e+00 : f32
    %334 = vector.broadcast %cst_158 : f32 to vector<2x128xf32>
    %335 = arith.addf %334, %333 : vector<2x128xf32>
    %336 = arith.divf %334, %335 : vector<2x128xf32>
    %337 = vector.extract_strided_slice %324 {offsets = [0, 256], sizes = [2, 128], strides = [1, 1]} : vector<2x512xf32> to vector<2x128xf32>
    %338 = math.tanh %337 : vector<2x128xf32>
    %339 = vector.extract_strided_slice %324 {offsets = [0, 384], sizes = [2, 128], strides = [1, 1]} : vector<2x512xf32> to vector<2x128xf32>
    %340 = arith.negf %339 : vector<2x128xf32>
    %341 = math.exp %340 : vector<2x128xf32>
    %cst_159 = arith.constant 1.000000e+00 : f32
    %342 = vector.broadcast %cst_159 : f32 to vector<2x128xf32>
    %343 = arith.addf %342, %341 : vector<2x128xf32>
    %344 = arith.divf %342, %343 : vector<2x128xf32>
    %c0_160 = arith.constant 0 : index
    %c0_161 = arith.constant 0 : index
    %345 = vector.load %arg5[%c0_160, %c0_161] : memref<2x128xf32, #tpu.memory_space<vmem>>, vector<2x128xf32>
    %346 = arith.mulf %336, %345 : vector<2x128xf32>
    %347 = arith.mulf %330, %338 : vector<2x128xf32>
    %348 = arith.addf %346, %347 : vector<2x128xf32>
    %349 = math.tanh %348 : vector<2x128xf32>
    %350 = arith.mulf %344, %349 : vector<2x128xf32>
    %c0_162 = arith.constant 0 : index
    %c0_163 = arith.constant 0 : index
    %351 = vector.load %arg5[%c0_162, %c0_163] : memref<2x128xf32, #tpu.memory_space<vmem>>, vector<2x128xf32>
    tpu.vector_store %arg5[%c0_162, %c0_163], %348 {strides = array<i32>} : memref<2x128xf32, #tpu.memory_space<vmem>>, vector<2x128xf32>,
    %c0_164 = arith.constant 0 : index
    %c0_165 = arith.constant 0 : index
    %352 = vector.load %arg4[%c0_164, %c0_165] : memref<2x128xf32, #tpu.memory_space<vmem>>, vector<2x128xf32>
    tpu.vector_store %arg4[%c0_164, %c0_165], %350 {strides = array<i32>} : memref<2x128xf32, #tpu.memory_space<vmem>>, vector<2x128xf32>,
    %c0_166 = arith.constant 0 : index
    %353 = arith.index_cast %c8_i32 : i32 to index
    %c0_167 = arith.constant 0 : index
    %c0_168 = arith.constant 0 : index
    %354 = vector.load %arg3[%c0_166, %353, %c0_167, %c0_168] : memref<1x9x2x128xf32, #tpu.memory_space<vmem>>, vector<1x1x2x128xf32>
    %355 = vector.shape_cast %354 : vector<1x1x2x128xf32> to vector<2x128xf32>
    %356 = vector.shape_cast %350 : vector<2x128xf32> to vector<1x1x2x128xf32>
    tpu.vector_store %arg3[%c0_166, %353, %c0_167, %c0_168], %356 {strides = array<i32>} : memref<1x9x2x128xf32, #tpu.memory_space<vmem>>, vector<1x1x2x128xf32>,
    %c9_i32 = arith.constant 9 : i32
    return
  }
  func.func @transform_0(%arg0: i32) -> (i32, i32, i32, i32) {
    %c0_i32 = arith.constant 0 : i32
    %c0_i32_0 = arith.constant 0 : i32
    %c0_i32_1 = arith.constant 0 : i32
    %c0_i32_2 = arith.constant 0 : i32
    return %arg0, %c0_i32, %c0_i32_0, %c0_i32_1 : i32, i32, i32, i32
  }
  func.func @transform_1(%arg0: i32) -> (i32, i32, i32) {
    %c0_i32 = arith.constant 0 : i32
    %c0_i32_0 = arith.constant 0 : i32
    %c0_i32_1 = arith.constant 0 : i32
    return %arg0, %c0_i32, %c0_i32_0 : i32, i32, i32
  }
  func.func @transform_2(%arg0: i32) -> (i32, i32, i32, i32) {
    %c0_i32 = arith.constant 0 : i32
    %c0_i32_0 = arith.constant 0 : i32
    %c0_i32_1 = arith.constant 0 : i32
    %c0_i32_2 = arith.constant 0 : i32
    return %arg0, %c0_i32, %c0_i32_0, %c0_i32_1 : i32, i32, i32, i32
  }
}

module attributes {stable_mosaic.version = 11 : i64} {
  func.func @_matmul_bias_kernel(%arg0: i32, %arg1: i32, %arg2: i32, %arg3: memref<24x128xbf16, #tpu.memory_space<vmem>>, %arg4: memref<128x128xbf16, #tpu.memory_space<vmem>>, %arg5: memref<1x128xf32, #tpu.memory_space<vmem>>, %arg6: memref<24x128xf32, #tpu.memory_space<vmem>>, %arg7: memref<24x128xf32, #tpu.memory_space<vmem>>) attributes {dimension_semantics = [#tpu.dimension_semantics<parallel>, #tpu.dimension_semantics<parallel>, #tpu.dimension_semantics<arbitrary>], iteration_bounds = array<i64: 1, 1, 1>, scalar_prefetch = 0 : i64, scratch_operands = 1 : i64, tpu.core_type = #tpu.core_type<tc>, window_params = [{transform_indices = @transform_0, window_bounds = array<i64: 24, 128>}, {transform_indices = @transform_1, window_bounds = array<i64: 128, 128>}, {transform_indices = @transform_2, window_bounds = array<i64: 1, 128>}, {transform_indices = @transform_3, window_bounds = array<i64: 24, 128>}]} {
    %c0_i32 = arith.constant 0 : i32
    %0 = arith.cmpi eq, %arg2, %c0_i32 : i32
    %1 = arith.extui %0 : i1 to i32
    %c0_i32_0 = arith.constant 0 : i32
    %2 = arith.cmpi ne, %1, %c0_i32_0 : i32
    scf.if %2 {
      %cst_10 = arith.constant 0.000000e+00 : f32
      %12 = vector.broadcast %cst_10 : f32 to vector<24x128xf32>
      %c0_11 = arith.constant 0 : index
      %c0_12 = arith.constant 0 : index
      %13 = vector.load %arg7[%c0_11, %c0_12] : memref<24x128xf32, #tpu.memory_space<vmem>>, vector<24x128xf32>
      tpu.vector_store %arg7[%c0_11, %c0_12], %12 {strides = array<i32>} : memref<24x128xf32, #tpu.memory_space<vmem>>, vector<24x128xf32>,
    } else {
    }
    %c0 = arith.constant 0 : index
    %c0_1 = arith.constant 0 : index
    %3 = vector.load %arg7[%c0, %c0_1] : memref<24x128xf32, #tpu.memory_space<vmem>>, vector<24x128xf32>
    %c0_2 = arith.constant 0 : index
    %c0_3 = arith.constant 0 : index
    %4 = vector.load %arg3[%c0_2, %c0_3] : memref<24x128xbf16, #tpu.memory_space<vmem>>, vector<24x128xbf16>
    %c0_4 = arith.constant 0 : index
    %c0_5 = arith.constant 0 : index
    %5 = vector.load %arg4[%c0_4, %c0_5] : memref<128x128xbf16, #tpu.memory_space<vmem>>, vector<128x128xbf16>
    %cst = arith.constant dense<0.000000e+00> : vector<24x128xf32>
    %6 = tpu.matmul %4, %5, %cst {dimension_numbers = #tpu.dot_dimension_numbers<[1], [0], [0], [1], [0, 0, 1, 1], [], []>} : vector<24x128xbf16>, vector<128x128xbf16>, vector<24x128xf32> -> vector<24x128xf32>
    %7 = arith.addf %3, %6 : vector<24x128xf32>
    %c0_6 = arith.constant 0 : index
    %c0_7 = arith.constant 0 : index
    %8 = vector.load %arg7[%c0_6, %c0_7] : memref<24x128xf32, #tpu.memory_space<vmem>>, vector<24x128xf32>
    tpu.vector_store %arg7[%c0_6, %c0_7], %7 {strides = array<i32>} : memref<24x128xf32, #tpu.memory_space<vmem>>, vector<24x128xf32>,
    %c0_i32_8 = arith.constant 0 : i32
    %9 = arith.cmpi eq, %arg2, %c0_i32_8 : i32
    %10 = arith.extui %9 : i1 to i32
    %c0_i32_9 = arith.constant 0 : i32
    %11 = arith.cmpi ne, %10, %c0_i32_9 : i32
    scf.if %11 {
      %c0_10 = arith.constant 0 : index
      %c0_11 = arith.constant 0 : index
      %12 = vector.load %arg7[%c0_10, %c0_11] : memref<24x128xf32, #tpu.memory_space<vmem>>, vector<24x128xf32>
      %c0_12 = arith.constant 0 : index
      %c0_13 = arith.constant 0 : index
      %13 = vector.load %arg5[%c0_12, %c0_13] : memref<1x128xf32, #tpu.memory_space<vmem>>, vector<1x128xf32>
      %14 = vector.broadcast %13 : vector<1x128xf32> to vector<24x128xf32>
      %15 = arith.addf %12, %14 : vector<24x128xf32>
      %c0_14 = arith.constant 0 : index
      %c0_15 = arith.constant 0 : index
      %16 = vector.load %arg6[%c0_14, %c0_15] : memref<24x128xf32, #tpu.memory_space<vmem>>, vector<24x128xf32>
      tpu.vector_store %arg6[%c0_14, %c0_15], %15 {strides = array<i32>} : memref<24x128xf32, #tpu.memory_space<vmem>>, vector<24x128xf32>,
    } else {
    }
    return
  }
  func.func @transform_0(%arg0: i32, %arg1: i32, %arg2: i32) -> (i32, i32) {
    %c0_i32 = arith.constant 0 : i32
    return %arg0, %arg2 : i32, i32
  }
  func.func @transform_1(%arg0: i32, %arg1: i32, %arg2: i32) -> (i32, i32) {
    %c0_i32 = arith.constant 0 : i32
    return %arg2, %arg1 : i32, i32
  }
  func.func @transform_2(%arg0: i32, %arg1: i32, %arg2: i32) -> (i32, i32) {
    %c0_i32 = arith.constant 0 : i32
    %c0_i32_0 = arith.constant 0 : i32
    return %c0_i32, %arg1 : i32, i32
  }
  func.func @transform_3(%arg0: i32, %arg1: i32, %arg2: i32) -> (i32, i32) {
    %c0_i32 = arith.constant 0 : i32
    return %arg0, %arg1 : i32, i32
  }
}

module attributes {stable_mosaic.version = 11 : i64} {
  func.func @_matmul_bias_kernel(%arg0: i32, %arg1: i32, %arg2: i32, %arg3: memref<24x128xbf16, #tpu.memory_space<vmem>>, %arg4: memref<128x256xbf16, #tpu.memory_space<vmem>>, %arg5: memref<1x256xf32, #tpu.memory_space<vmem>>, %arg6: memref<24x256xf32, #tpu.memory_space<vmem>>, %arg7: memref<24x256xf32, #tpu.memory_space<vmem>>) attributes {dimension_semantics = [#tpu.dimension_semantics<parallel>, #tpu.dimension_semantics<parallel>, #tpu.dimension_semantics<arbitrary>], iteration_bounds = array<i64: 1, 2, 1>, scalar_prefetch = 0 : i64, scratch_operands = 1 : i64, tpu.core_type = #tpu.core_type<tc>, window_params = [{transform_indices = @transform_0, window_bounds = array<i64: 24, 128>}, {transform_indices = @transform_1, window_bounds = array<i64: 128, 256>}, {transform_indices = @transform_2, window_bounds = array<i64: 1, 256>}, {transform_indices = @transform_3, window_bounds = array<i64: 24, 256>}]} {
    %c0_i32 = arith.constant 0 : i32
    %0 = arith.cmpi eq, %arg2, %c0_i32 : i32
    %1 = arith.extui %0 : i1 to i32
    %c0_i32_0 = arith.constant 0 : i32
    %2 = arith.cmpi ne, %1, %c0_i32_0 : i32
    scf.if %2 {
      %cst_10 = arith.constant 0.000000e+00 : f32
      %12 = vector.broadcast %cst_10 : f32 to vector<24x256xf32>
      %c0_11 = arith.constant 0 : index
      %c0_12 = arith.constant 0 : index
      %13 = vector.load %arg7[%c0_11, %c0_12] : memref<24x256xf32, #tpu.memory_space<vmem>>, vector<24x256xf32>
      tpu.vector_store %arg7[%c0_11, %c0_12], %12 {strides = array<i32>} : memref<24x256xf32, #tpu.memory_space<vmem>>, vector<24x256xf32>,
    } else {
    }
    %c0 = arith.constant 0 : index
    %c0_1 = arith.constant 0 : index
    %3 = vector.load %arg7[%c0, %c0_1] : memref<24x256xf32, #tpu.memory_space<vmem>>, vector<24x256xf32>
    %c0_2 = arith.constant 0 : index
    %c0_3 = arith.constant 0 : index
    %4 = vector.load %arg3[%c0_2, %c0_3] : memref<24x128xbf16, #tpu.memory_space<vmem>>, vector<24x128xbf16>
    %c0_4 = arith.constant 0 : index
    %c0_5 = arith.constant 0 : index
    %5 = vector.load %arg4[%c0_4, %c0_5] : memref<128x256xbf16, #tpu.memory_space<vmem>>, vector<128x256xbf16>
    %cst = arith.constant dense<0.000000e+00> : vector<24x256xf32>
    %6 = tpu.matmul %4, %5, %cst {dimension_numbers = #tpu.dot_dimension_numbers<[1], [0], [0], [1], [0, 0, 1, 1], [], []>} : vector<24x128xbf16>, vector<128x256xbf16>, vector<24x256xf32> -> vector<24x256xf32>
    %7 = arith.addf %3, %6 : vector<24x256xf32>
    %c0_6 = arith.constant 0 : index
    %c0_7 = arith.constant 0 : index
    %8 = vector.load %arg7[%c0_6, %c0_7] : memref<24x256xf32, #tpu.memory_space<vmem>>, vector<24x256xf32>
    tpu.vector_store %arg7[%c0_6, %c0_7], %7 {strides = array<i32>} : memref<24x256xf32, #tpu.memory_space<vmem>>, vector<24x256xf32>,
    %c0_i32_8 = arith.constant 0 : i32
    %9 = arith.cmpi eq, %arg2, %c0_i32_8 : i32
    %10 = arith.extui %9 : i1 to i32
    %c0_i32_9 = arith.constant 0 : i32
    %11 = arith.cmpi ne, %10, %c0_i32_9 : i32
    scf.if %11 {
      %c0_10 = arith.constant 0 : index
      %c0_11 = arith.constant 0 : index
      %12 = vector.load %arg7[%c0_10, %c0_11] : memref<24x256xf32, #tpu.memory_space<vmem>>, vector<24x256xf32>
      %c0_12 = arith.constant 0 : index
      %c0_13 = arith.constant 0 : index
      %13 = vector.load %arg5[%c0_12, %c0_13] : memref<1x256xf32, #tpu.memory_space<vmem>>, vector<1x256xf32>
      %14 = vector.broadcast %13 : vector<1x256xf32> to vector<24x256xf32>
      %15 = arith.addf %12, %14 : vector<24x256xf32>
      %c0_14 = arith.constant 0 : index
      %c0_15 = arith.constant 0 : index
      %16 = vector.load %arg6[%c0_14, %c0_15] : memref<24x256xf32, #tpu.memory_space<vmem>>, vector<24x256xf32>
      tpu.vector_store %arg6[%c0_14, %c0_15], %15 {strides = array<i32>} : memref<24x256xf32, #tpu.memory_space<vmem>>, vector<24x256xf32>,
    } else {
    }
    return
  }
  func.func @transform_0(%arg0: i32, %arg1: i32, %arg2: i32) -> (i32, i32) {
    %c0_i32 = arith.constant 0 : i32
    return %arg0, %arg2 : i32, i32
  }
  func.func @transform_1(%arg0: i32, %arg1: i32, %arg2: i32) -> (i32, i32) {
    %c0_i32 = arith.constant 0 : i32
    return %arg2, %arg1 : i32, i32
  }
  func.func @transform_2(%arg0: i32, %arg1: i32, %arg2: i32) -> (i32, i32) {
    %c0_i32 = arith.constant 0 : i32
    %c0_i32_0 = arith.constant 0 : i32
    return %c0_i32, %arg1 : i32, i32
  }
  func.func @transform_3(%arg0: i32, %arg1: i32, %arg2: i32) -> (i32, i32) {
    %c0_i32 = arith.constant 0 : i32
    return %arg0, %arg1 : i32, i32
  }
}

</mosaic_0001>

<bundles_post_ra>
// kernel: _lambda_.15
= control target key start
LH: loop header
LB: loop body
LE: loop exit
PB: predicated region body
PF: predicated region fallthrough
CT: control target
= control target key end

     0   :  { %s2379_s12 = smov 0   ;;  %s2381_s13 = smov 0   ;;  %s2580_s0 = inlined_call_operand.vmem [shape: bf16[2048,128], index: 0, kind: input, shape index: {}]   ;;  %s2581_s1 = inlined_call_operand.vmem [shape: bf16[128,128], index: 1, kind: input, shape index: {}]   ;;  %s2582_s2 = inlined_call_operand.vmem [shape: f32[1,128], index: 2, kind: input, shape index: {}]   ;;  %s2583_s3 = inlined_call_operand.vmem [shape: bf16[2048,128], index: 3, kind: output, shape index: {}]  }
   0x1   :  { %s2383_s14 = smov 0  }
   0x2 LB: > { %s32_s15 = sadd.s32 1, %s2353_s13  ;;  %p1768_p0 = scmp.ge.s32.totalorder %s2357_s14, 1  ;;  %s2357_s14 = sphi %s2383_s14, %s13_s14   ;;  %s2353_s13 = sphi %s2381_s13, %s2585_s13   ;;  %s2349_s12 = sphi %s2379_s12, %s2584_s12  }
   0x3   : > { %p34_p1 = scmp.ge.s32.totalorder %s32_s15, 4  ;;  %p188_p2 = scmp.lt.s32.totalorder %s2357_s14, 5 }
   0x5   : > { %s2587_s15 = smov (%p34_p1, %s32_s15), 0  ;;  %p189_p3 = pnand %p1768_p0, %p188_p2 }
   0x6   : > { %v2295_v0 = vld [vmem:[%s2581_s1] sm:$0xff] (!%p189_p3)   ;;  %s1769_s18 = sshll.u32 (!%p189_p3), %s2349_s12, 6  ;;  %v2296_v1 = vld [vmem:[%s2581_s1 + $0x8] sm:$0xff] (!%p189_p3)   ;;  %v2297_v2 = vld [vmem:[%s2581_s1 + $0x10] sm:$0xff] (!%p189_p3)  }
   0x7   : > { %192 = sbr.rel (%p189_p3) target bundleno = 317 (0x13d), region = 32  ;;  %p230_p4 = scmp.lt.s32.totalorder (!%p189_p3), %s1769_s18, 255  ;;  %2175 = vmatprep.subr.bf16.mxu0 (!%p189_p3), %v2295_v0  ;;  %2255 = vmatprep.subr.bf16.mxu1 (!%p189_p3), %v2295_v0  ;;  %v2298_v3 = vld [vmem:[%s2581_s1 + $0x18] sm:$0xff] (!%p189_p3)   ;;  %v2299_v6 = vld [vmem:[%s2581_s1 + $0x20] sm:$0xff] (!%p189_p3)   ;;  %v2300_v7 = vld [vmem:[%s2581_s1 + $0x28] sm:$0xff] (!%p189_p3)  }
   0x8   : > { %2176 = vmatpush3.bf16.msra.mxu0 (!%p189_p3), %v2295_v0  ;;  %2263 = vmatpush3.bf16.msra.mxu1 (!%p189_p3), %v2295_v0  ;;  %v2301_v8 = vld [vmem:[%s2581_s1 + $0x30] sm:$0xff] (!%p189_p3)   ;;  %v2302_v9 = vld [vmem:[%s2581_s1 + $0x38] sm:$0xff] (!%p189_p3)   ;;  %v2466_v40 = vld [vmem:[%s2582_s2] ss:$0 sm:$0xff] (!%p189_p3) }
   0x9   : > { %2177 = vmatprep.subr.bf16.mxu0 (!%p189_p3), %v2296_v1  ;;  %2256 = vmatprep.subr.bf16.mxu1 (!%p189_p3), %v2296_v1 }
   0xc   : > { %2178 = vmatpush3.bf16.msra.mxu0 (!%p189_p3), %v2296_v1  ;;  %2264 = vmatpush3.bf16.msra.mxu1 (!%p189_p3), %v2296_v1 }
   0xd   : > { %2179 = vmatprep.subr.bf16.mxu0 (!%p189_p3), %v2297_v2  ;;  %2257 = vmatprep.subr.bf16.mxu1 (!%p189_p3), %v2297_v2 }
   0xe   : > { %s2589_s18 = smov (!%p230_p4, %s1769_s18), 255 }
   0xf   : > { %s1770_s23 = sshll.u32 %s2589_s18, 2 }
  0x10   : > { %s2414_s26 = scalar_lea.vmem %s2580_s0, %s1770_s23  ;;  %2180 = vmatpush3.bf16.msra.mxu0 %v2297_v2  ;;  %2265 = vmatpush3.bf16.msra.mxu1 %v2297_v2  ;;  %s2481_s17 = scalar_lea.vmem %s2583_s3, %s1770_s23 }
  0x11   : > { %v2303_v4 = vld [vmem:[%s2414_s26] sm:$0xff]   ;;  %2181 = vmatprep.subr.bf16.mxu0 %v2298_v3  ;;  %2258 = vmatprep.subr.bf16.mxu1 %v2298_v3  ;;  %v2305_v10 = vld [vmem:[%s2414_s26 + $0x8] sm:$0xff]   ;;  %v2307_v12 = vld [vmem:[%s2414_s26 + $0x10] sm:$0xff]  }
  0x12   : > { %v2304_v5 = vld [vmem:[%s2414_s26 + $0x80] sm:$0xff]   ;;  %2191 = vmatprep.mubr.bf16.mxu0 %v2303_v4  ;;  %v2306_v11 = vld [vmem:[%s2414_s26 + $0x88] sm:$0xff]   ;;  %v2308_v13 = vld [vmem:[%s2414_s26 + $0x90] sm:$0xff]  }
  0x13   : > { %2223 = vmatprep.mubr.bf16.mxu1 %v2304_v5  ;;  %v2309_v14 = vld [vmem:[%s2414_s26 + $0x18] sm:$0xff]   ;;  %v2311_v16 = vld [vmem:[%s2414_s26 + $0x20] sm:$0xff]   ;;  %v2313_v18 = vld [vmem:[%s2414_s26 + $0x28] sm:$0xff]  }
  0x14   : > { %2182 = vmatpush3.bf16.msra.mxu0 %v2298_v3  ;;  %2266 = vmatpush3.bf16.msra.mxu1 %v2298_v3  ;;  %v2310_v15 = vld [vmem:[%s2414_s26 + $0x98] sm:$0xff]   ;;  %v2312_v17 = vld [vmem:[%s2414_s26 + $0xa0] sm:$0xff]   ;;  %v2314_v19 = vld [vmem:[%s2414_s26 + $0xa8] sm:$0xff]  }
  0x15   : > { %2183 = vmatprep.subr.bf16.mxu0 %v2299_v6  ;;  %2259 = vmatprep.subr.bf16.mxu1 %v2299_v6  ;;  %v2315_v20 = vld [vmem:[%s2414_s26 + $0x30] sm:$0xff]   ;;  %v2317_v22 = vld [vmem:[%s2414_s26 + $0x38] sm:$0xff]   ;;  %v2319_v24 = vld [vmem:[%s2414_s26 + $0x40] sm:$0xff]  }
  0x16   : > { %v2316_v21 = vld [vmem:[%s2414_s26 + $0xb0] sm:$0xff]   ;;  %v2318_v23 = vld [vmem:[%s2414_s26 + $0xb8] sm:$0xff]   ;;  %v2320_v25 = vld [vmem:[%s2414_s26 + $0xc0] sm:$0xff]  }
  0x17   : > { %v2321_v26 = vld [vmem:[%s2414_s26 + $0x48] sm:$0xff]   ;;  %v2323_v28 = vld [vmem:[%s2414_s26 + $0x50] sm:$0xff]   ;;  %v2325_v30 = vld [vmem:[%s2414_s26 + $0x58] sm:$0xff]  }
  0x18   : > { %2184 = vmatpush3.bf16.msra.mxu0 %v2299_v6  ;;  %2267 = vmatpush3.bf16.msra.mxu1 %v2299_v6  ;;  %v2322_v27 = vld [vmem:[%s2414_s26 + $0xc8] sm:$0xff]   ;;  %v2324_v29 = vld [vmem:[%s2414_s26 + $0xd0] sm:$0xff]   ;;  %v2326_v31 = vld [vmem:[%s2414_s26 + $0xd8] sm:$0xff]  }
  0x19   : > { %2185 = vmatprep.subr.bf16.mxu0 %v2300_v7  ;;  %2260 = vmatprep.subr.bf16.mxu1 %v2300_v7  ;;  %v2327_v32 = vld [vmem:[%s2414_s26 + $0x60] sm:$0xff]   ;;  %v2329_v34 = vld [vmem:[%s2414_s26 + $0x68] sm:$0xff]   ;;  %v2331_v36 = vld [vmem:[%s2414_s26 + $0x70] sm:$0xff]  }
  0x1a   : > { %v2328_v33 = vld [vmem:[%s2414_s26 + $0xe0] sm:$0xff]   ;;  %v2330_v35 = vld [vmem:[%s2414_s26 + $0xe8] sm:$0xff]   ;;  %v2332_v37 = vld [vmem:[%s2414_s26 + $0xf0] sm:$0xff]  }
  0x1b   : > { %v2333_v38 = vld [vmem:[%s2414_s26 + $0x78] sm:$0xff]  }
  0x1c   : > { %2186 = vmatpush3.bf16.msra.mxu0 %v2300_v7  ;;  %2268 = vmatpush3.bf16.msra.mxu1 %v2300_v7  ;;  %v2334_v39 = vld [vmem:[%s2414_s26 + $0xf8] sm:$0xff]  }
  0x1d   : > { %2187 = vmatprep.subr.bf16.mxu0 %v2301_v8  ;;  %2261 = vmatprep.subr.bf16.mxu1 %v2301_v8 }
  0x20   : > { %2188 = vmatpush3.bf16.msra.mxu0 %v2301_v8  ;;  %2269 = vmatpush3.bf16.msra.mxu1 %v2301_v8 }
  0x21   : > { %2189 = vmatprep.subr.bf16.mxu0 %v2302_v9  ;;  %2262 = vmatprep.subr.bf16.mxu1 %v2302_v9 }
  0x24   : > { %2190 = vmatpush3.bf16.msra.mxu0 %v2302_v9  ;;  %2270 = vmatpush3.bf16.msra.mxu1 %v2302_v9 }
  0x27   : > { %2192 = vmatmul.mubr.bf16.vlgmr.msra.gmra.mrb[0].mxu0 %v2305_v10  ;;  %2224 = vmatmul.mubr.bf16.vlgmr.msra.gmra.mrb[0].mxu1 %v2306_v11 }
  0x28   : > { %2195 = vmatprep.mubr.bf16.mxu0 %v2307_v12  ;;  %2227 = vmatprep.mubr.bf16.mxu1 %v2308_v13 }
  0x2f   : > { %2196 = vmatmul.mubr.bf16.gmra.mrb[4].mxu0 %v2309_v14  ;;  %2228 = vmatmul.mubr.bf16.gmra.mrb[4].mxu1 %v2310_v15 }
  0x30   : > { %2199 = vmatprep.mubr.bf16.mxu0 %v2311_v16  ;;  %2231 = vmatprep.mubr.bf16.mxu1 %v2312_v17 }
  0x37   : > { %2200 = vmatmul.mubr.bf16.gmra.mrb[8].mxu0 %v2313_v18  ;;  %2232 = vmatmul.mubr.bf16.gmra.mrb[8].mxu1 %v2314_v19 }
  0x38   : > { %2203 = vmatprep.mubr.bf16.mxu0 %v2315_v20  ;;  %2235 = vmatprep.mubr.bf16.mxu1 %v2316_v21 }
  0x3f   : > { %2204 = vmatmul.mubr.bf16.gmra.mrb[12].mxu0 %v2317_v22  ;;  %2236 = vmatmul.mubr.bf16.gmra.mrb[12].mxu1 %v2318_v23 }
  0x40   : > { %2207 = vmatprep.mubr.bf16.mxu0 %v2319_v24  ;;  %2239 = vmatprep.mubr.bf16.mxu1 %v2320_v25 }
  0x47   : > { %2208 = vmatmul.mubr.bf16.gmra.mrb[16].mxu0 %v2321_v26  ;;  %2240 = vmatmul.mubr.bf16.gmra.mrb[16].mxu1 %v2322_v27 }
  0x48   : > { %2211 = vmatprep.mubr.bf16.mxu0 %v2323_v28  ;;  %2243 = vmatprep.mubr.bf16.mxu1 %v2324_v29 }
  0x4f   : > { %2212 = vmatmul.mubr.bf16.gmra.mrb[20].mxu0 %v2325_v30  ;;  %2244 = vmatmul.mubr.bf16.gmra.mrb[20].mxu1 %v2326_v31 }
  0x50   : > { %2215 = vmatprep.mubr.bf16.mxu0 %v2327_v32  ;;  %2247 = vmatprep.mubr.bf16.mxu1 %v2328_v33 }
  0x57   : > { %2216 = vmatmul.mubr.bf16.gmra.mrb[24].mxu0 %v2329_v34  ;;  %2248 = vmatmul.mubr.bf16.gmra.mrb[24].mxu1 %v2330_v35 }
  0x58   : > { %2219 = vmatprep.mubr.bf16.mxu0 %v2331_v36  ;;  %2251 = vmatprep.mubr.bf16.mxu1 %v2332_v37 }
  0x5f   : > { %2220 = vmatmul.mubr.bf16.gmra.mrb[28].mxu0 %v2333_v38  ;;  %2252 = vmatmul.mubr.bf16.gmra.mrb[28].mxu1 %v2334_v39 }
  0xfa   : > { %v2193_v41 = vpop.f32.mrb[0].mxu0  ;;  %v2225_v42 = vpop.f32.mrb[0].mxu1 }
  0xfb   : > { %v1205_v43 = vadd.f32 %v2193_v41, %v2466_v40  ;;  %v1237_v44 = vadd.f32 %v2225_v42, %v2466_v40  ;;  %v746_v45 = vpop.f32.mrb[1].mxu0  ;;  %v874_v46 = vpop.f32.mrb[1].mxu1 }
  0xfc   : > { %v1203_v47 = vadd.f32 %v2466_v40, %v746_v45  ;;  %v1235_v48 = vadd.f32 %v2466_v40, %v874_v46  ;;  %v2194_v49 = vpop.f32.mrb[2].mxu0  ;;  %v2226_v50 = vpop.f32.mrb[2].mxu1 }
  0xfd   : > { %v1206_v51 = vadd.f32 %v2194_v49, %v2466_v40  ;;  %v1238_v52 = vadd.f32 %v2226_v50, %v2466_v40  ;;  %v749_v53 = vpop.f32.mrb[3].mxu0  ;;  %v877_v54 = vpop.f32.mrb[3].mxu1  ;;  %v1269_v57 = vmax.f32 %v1205_v43, 0.0  ;;  %v1301_v58 = vmax.f32 %v1237_v44, 0.0 }
  0xfe   : > { %v1204_v55 = vadd.f32 %v2466_v40, %v749_v53  ;;  %v1236_v56 = vadd.f32 %v2466_v40, %v877_v54  ;;  %v1267_v61 = vmax.f32 %v1203_v47, 0.0  ;;  %v1299_v62 = vmax.f32 %v1235_v48, 0.0 }
  0xff   : > { %v1270_v59 = vmax.f32 %v1206_v51, 0.0  ;;  %v1302_v60 = vmax.f32 %v1238_v52, 0.0 }
 0x100   : > { %v1268_v63 = vmax.f32 %v1204_v55, 0.0  ;;  %v1300_v0 = vmax.f32 %v1236_v56, 0.0 }
 0x101   : > { %v1952_v1 = vpack.c.bf16 %v1270_v59, %v1269_v57  ;;  %v2032_v2 = vpack.c.bf16 %v1302_v60, %v1301_v58 }
 0x102   : > { %v1947_v3 = vpack.c.bf16 %v1268_v63, %v1267_v61  ;;  %v2027_v4 = vpack.c.bf16 %v1300_v0, %v1299_v62  ;;  %v2197_v5 = vpop.f32.mrb[4].mxu0  ;;  %v2229_v6 = vpop.f32.mrb[4].mxu1 }
 0x103   : > { %2104 = vst [vmem:[%s2481_s17 + $0x8] sm:$0xff] %v1952_v1   ;;  %2120 = vst [vmem:[%s2481_s17 + $0x88] sm:$0xff] %v2032_v2   ;;  %v1209_v7 = vadd.f32 %v2197_v5, %v2466_v40  ;;  %v1241_v8 = vadd.f32 %v2229_v6, %v2466_v40  ;;  %v762_v9 = vpop.f32.mrb[5].mxu0  ;;  %v890_v10 = vpop.f32.mrb[5].mxu1 }
 0x104   : > { %1948 = vst [vmem:[%s2481_s17] sm:$0xff] %v1947_v3   ;;  %2119 = vst [vmem:[%s2481_s17 + $0x80] sm:$0xff] %v2027_v4   ;;  %v1207_v11 = vadd.f32 %v2466_v40, %v762_v9  ;;  %v1239_v12 = vadd.f32 %v2466_v40, %v890_v10  ;;  %v2198_v13 = vpop.f32.mrb[6].mxu0  ;;  %v2230_v14 = vpop.f32.mrb[6].mxu1 }
 0x105   : > { %v1210_v15 = vadd.f32 %v2198_v13, %v2466_v40  ;;  %v1242_v16 = vadd.f32 %v2230_v14, %v2466_v40  ;;  %v765_v17 = vpop.f32.mrb[7].mxu0  ;;  %v893_v18 = vpop.f32.mrb[7].mxu1  ;;  %v1273_v21 = vmax.f32 %v1209_v7, 0.0  ;;  %v1305_v22 = vmax.f32 %v1241_v8, 0.0 }
 0x106   : > { %v1208_v19 = vadd.f32 %v2466_v40, %v765_v17  ;;  %v1240_v20 = vadd.f32 %v2466_v40, %v893_v18  ;;  %v1271_v25 = vmax.f32 %v1207_v11, 0.0  ;;  %v1303_v26 = vmax.f32 %v1239_v12, 0.0 }
 0x107   : > { %v1274_v23 = vmax.f32 %v1210_v15, 0.0  ;;  %v1306_v24 = vmax.f32 %v1242_v16, 0.0 }
 0x108   : > { %v1272_v27 = vmax.f32 %v1208_v19, 0.0  ;;  %v1304_v28 = vmax.f32 %v1240_v20, 0.0 }
 0x109   : > { %v1962_v29 = vpack.c.bf16 %v1274_v23, %v1273_v21  ;;  %v2042_v30 = vpack.c.bf16 %v1306_v24, %v1305_v22 }
 0x10a   : > { %v1957_v31 = vpack.c.bf16 %v1272_v27, %v1271_v25  ;;  %v2037_v32 = vpack.c.bf16 %v1304_v28, %v1303_v26  ;;  %v2201_v33 = vpop.f32.mrb[8].mxu0  ;;  %v2233_v34 = vpop.f32.mrb[8].mxu1 }
 0x10b   : > { %2106 = vst [vmem:[%s2481_s17 + $0x18] sm:$0xff] %v1962_v29   ;;  %2122 = vst [vmem:[%s2481_s17 + $0x98] sm:$0xff] %v2042_v30   ;;  %v1213_v35 = vadd.f32 %v2201_v33, %v2466_v40  ;;  %v1245_v36 = vadd.f32 %v2233_v34, %v2466_v40  ;;  %v778_v37 = vpop.f32.mrb[9].mxu0  ;;  %v906_v38 = vpop.f32.mrb[9].mxu1 }
 0x10c   : > { %2105 = vst [vmem:[%s2481_s17 + $0x10] sm:$0xff] %v1957_v31   ;;  %2121 = vst [vmem:[%s2481_s17 + $0x90] sm:$0xff] %v2037_v32   ;;  %v1211_v39 = vadd.f32 %v2466_v40, %v778_v37  ;;  %v1243_v41 = vadd.f32 %v2466_v40, %v906_v38  ;;  %v2202_v42 = vpop.f32.mrb[10].mxu0  ;;  %v2234_v43 = vpop.f32.mrb[10].mxu1 }
 0x10d   : > { %v1214_v44 = vadd.f32 %v2202_v42, %v2466_v40  ;;  %v1246_v45 = vadd.f32 %v2234_v43, %v2466_v40  ;;  %v781_v46 = vpop.f32.mrb[11].mxu0  ;;  %v909_v47 = vpop.f32.mrb[11].mxu1  ;;  %v1277_v50 = vmax.f32 %v1213_v35, 0.0  ;;  %v1309_v51 = vmax.f32 %v1245_v36, 0.0 }
 0x10e   : > { %v1212_v48 = vadd.f32 %v2466_v40, %v781_v46  ;;  %v1244_v49 = vadd.f32 %v2466_v40, %v909_v47  ;;  %v1275_v54 = vmax.f32 %v1211_v39, 0.0  ;;  %v1307_v55 = vmax.f32 %v1243_v41, 0.0 }
 0x10f   : > { %v1278_v52 = vmax.f32 %v1214_v44, 0.0  ;;  %v1310_v53 = vmax.f32 %v1246_v45, 0.0 }
 0x110   : > { %v1276_v56 = vmax.f32 %v1212_v48, 0.0  ;;  %v1308_v57 = vmax.f32 %v1244_v49, 0.0 }
 0x111   : > { %v1972_v58 = vpack.c.bf16 %v1278_v52, %v1277_v50  ;;  %v2052_v59 = vpack.c.bf16 %v1310_v53, %v1309_v51 }
 0x112   : > { %v1967_v60 = vpack.c.bf16 %v1276_v56, %v1275_v54  ;;  %v2047_v61 = vpack.c.bf16 %v1308_v57, %v1307_v55  ;;  %v2205_v62 = vpop.f32.mrb[12].mxu0  ;;  %v2237_v63 = vpop.f32.mrb[12].mxu1 }
 0x113   : > { %2108 = vst [vmem:[%s2481_s17 + $0x28] sm:$0xff] %v1972_v58   ;;  %2124 = vst [vmem:[%s2481_s17 + $0xa8] sm:$0xff] %v2052_v59   ;;  %v1217_v0 = vadd.f32 %v2205_v62, %v2466_v40  ;;  %v1249_v1 = vadd.f32 %v2237_v63, %v2466_v40  ;;  %v794_v2 = vpop.f32.mrb[13].mxu0  ;;  %v922_v3 = vpop.f32.mrb[13].mxu1 }
 0x114   : > { %2107 = vst [vmem:[%s2481_s17 + $0x20] sm:$0xff] %v1967_v60   ;;  %2123 = vst [vmem:[%s2481_s17 + $0xa0] sm:$0xff] %v2047_v61   ;;  %v1215_v4 = vadd.f32 %v2466_v40, %v794_v2  ;;  %v1247_v5 = vadd.f32 %v2466_v40, %v922_v3  ;;  %v2206_v6 = vpop.f32.mrb[14].mxu0  ;;  %v2238_v7 = vpop.f32.mrb[14].mxu1 }
 0x115   : > { %v1218_v8 = vadd.f32 %v2206_v6, %v2466_v40  ;;  %v1250_v9 = vadd.f32 %v2238_v7, %v2466_v40  ;;  %v797_v10 = vpop.f32.mrb[15].mxu0  ;;  %v925_v11 = vpop.f32.mrb[15].mxu1  ;;  %v1281_v14 = vmax.f32 %v1217_v0, 0.0  ;;  %v1313_v15 = vmax.f32 %v1249_v1, 0.0 }
 0x116   : > { %v1216_v12 = vadd.f32 %v2466_v40, %v797_v10  ;;  %v1248_v13 = vadd.f32 %v2466_v40, %v925_v11  ;;  %v1279_v18 = vmax.f32 %v1215_v4, 0.0  ;;  %v1311_v19 = vmax.f32 %v1247_v5, 0.0 }
 0x117   : > { %v1282_v16 = vmax.f32 %v1218_v8, 0.0  ;;  %v1314_v17 = vmax.f32 %v1250_v9, 0.0 }
 0x118   : > { %v1280_v20 = vmax.f32 %v1216_v12, 0.0  ;;  %v1312_v21 = vmax.f32 %v1248_v13, 0.0 }
 0x119   : > { %v1982_v22 = vpack.c.bf16 %v1282_v16, %v1281_v14  ;;  %v2062_v23 = vpack.c.bf16 %v1314_v17, %v1313_v15 }
 0x11a   : > { %v1977_v24 = vpack.c.bf16 %v1280_v20, %v1279_v18  ;;  %v2057_v25 = vpack.c.bf16 %v1312_v21, %v1311_v19  ;;  %v2209_v26 = vpop.f32.mrb[16].mxu0  ;;  %v2241_v27 = vpop.f32.mrb[16].mxu1 }
 0x11b   : > { %2110 = vst [vmem:[%s2481_s17 + $0x38] sm:$0xff] %v1982_v22   ;;  %2126 = vst [vmem:[%s2481_s17 + $0xb8] sm:$0xff] %v2062_v23   ;;  %v1221_v28 = vadd.f32 %v2209_v26, %v2466_v40  ;;  %v1253_v29 = vadd.f32 %v2241_v27, %v2466_v40  ;;  %v810_v30 = vpop.f32.mrb[17].mxu0  ;;  %v938_v31 = vpop.f32.mrb[17].mxu1 }
 0x11c   : > { %2109 = vst [vmem:[%s2481_s17 + $0x30] sm:$0xff] %v1977_v24   ;;  %2125 = vst [vmem:[%s2481_s17 + $0xb0] sm:$0xff] %v2057_v25   ;;  %v1219_v32 = vadd.f32 %v2466_v40, %v810_v30  ;;  %v1251_v33 = vadd.f32 %v2466_v40, %v938_v31  ;;  %v2210_v34 = vpop.f32.mrb[18].mxu0  ;;  %v2242_v35 = vpop.f32.mrb[18].mxu1 }
 0x11d   : > { %v1222_v36 = vadd.f32 %v2210_v34, %v2466_v40  ;;  %v1254_v37 = vadd.f32 %v2242_v35, %v2466_v40  ;;  %v813_v38 = vpop.f32.mrb[19].mxu0  ;;  %v941_v39 = vpop.f32.mrb[19].mxu1  ;;  %v1285_v43 = vmax.f32 %v1221_v28, 0.0  ;;  %v1317_v44 = vmax.f32 %v1253_v29, 0.0 }
 0x11e   : > { %v1220_v41 = vadd.f32 %v2466_v40, %v813_v38  ;;  %v1252_v42 = vadd.f32 %v2466_v40, %v941_v39  ;;  %v1283_v47 = vmax.f32 %v1219_v32, 0.0  ;;  %v1315_v48 = vmax.f32 %v1251_v33, 0.0 }
 0x11f   : > { %v1286_v45 = vmax.f32 %v1222_v36, 0.0  ;;  %v1318_v46 = vmax.f32 %v1254_v37, 0.0 }
 0x120   : > { %v1284_v49 = vmax.f32 %v1220_v41, 0.0  ;;  %v1316_v50 = vmax.f32 %v1252_v42, 0.0 }
 0x121   : > { %v1992_v51 = vpack.c.bf16 %v1286_v45, %v1285_v43  ;;  %v2072_v52 = vpack.c.bf16 %v1318_v46, %v1317_v44 }
 0x122   : > { %v1987_v53 = vpack.c.bf16 %v1284_v49, %v1283_v47  ;;  %v2067_v54 = vpack.c.bf16 %v1316_v50, %v1315_v48  ;;  %v2213_v55 = vpop.f32.mrb[20].mxu0  ;;  %v2245_v56 = vpop.f32.mrb[20].mxu1 }
 0x123   : > { %2112 = vst [vmem:[%s2481_s17 + $0x48] sm:$0xff] %v1992_v51   ;;  %2128 = vst [vmem:[%s2481_s17 + $0xc8] sm:$0xff] %v2072_v52   ;;  %v1225_v57 = vadd.f32 %v2213_v55, %v2466_v40  ;;  %v1257_v58 = vadd.f32 %v2245_v56, %v2466_v40  ;;  %v826_v59 = vpop.f32.mrb[21].mxu0  ;;  %v954_v60 = vpop.f32.mrb[21].mxu1 }
 0x124   : > { %2111 = vst [vmem:[%s2481_s17 + $0x40] sm:$0xff] %v1987_v53   ;;  %2127 = vst [vmem:[%s2481_s17 + $0xc0] sm:$0xff] %v2067_v54   ;;  %v1223_v61 = vadd.f32 %v2466_v40, %v826_v59  ;;  %v1255_v62 = vadd.f32 %v2466_v40, %v954_v60  ;;  %v2214_v63 = vpop.f32.mrb[22].mxu0  ;;  %v2246_v0 = vpop.f32.mrb[22].mxu1 }
 0x125   : > { %v1226_v1 = vadd.f32 %v2214_v63, %v2466_v40  ;;  %v1258_v2 = vadd.f32 %v2246_v0, %v2466_v40  ;;  %v829_v3 = vpop.f32.mrb[23].mxu0  ;;  %v957_v4 = vpop.f32.mrb[23].mxu1  ;;  %v1289_v7 = vmax.f32 %v1225_v57, 0.0  ;;  %v1321_v8 = vmax.f32 %v1257_v58, 0.0 }
 0x126   : > { %v1224_v5 = vadd.f32 %v2466_v40, %v829_v3  ;;  %v1256_v6 = vadd.f32 %v2466_v40, %v957_v4  ;;  %v1287_v11 = vmax.f32 %v1223_v61, 0.0  ;;  %v1319_v12 = vmax.f32 %v1255_v62, 0.0 }
 0x127   : > { %v1290_v9 = vmax.f32 %v1226_v1, 0.0  ;;  %v1322_v10 = vmax.f32 %v1258_v2, 0.0 }
 0x128   : > { %v1288_v13 = vmax.f32 %v1224_v5, 0.0  ;;  %v1320_v14 = vmax.f32 %v1256_v6, 0.0 }
 0x129   : > { %v2002_v15 = vpack.c.bf16 %v1290_v9, %v1289_v7  ;;  %v2082_v16 = vpack.c.bf16 %v1322_v10, %v1321_v8 }
 0x12a   : > { %v1997_v17 = vpack.c.bf16 %v1288_v13, %v1287_v11  ;;  %v2077_v18 = vpack.c.bf16 %v1320_v14, %v1319_v12  ;;  %v2217_v19 = vpop.f32.mrb[24].mxu0  ;;  %v2249_v20 = vpop.f32.mrb[24].mxu1 }
 0x12b   : > { %2114 = vst [vmem:[%s2481_s17 + $0x58] sm:$0xff] %v2002_v15   ;;  %2130 = vst [vmem:[%s2481_s17 + $0xd8] sm:$0xff] %v2082_v16   ;;  %v1229_v21 = vadd.f32 %v2217_v19, %v2466_v40  ;;  %v1261_v22 = vadd.f32 %v2249_v20, %v2466_v40  ;;  %v842_v23 = vpop.f32.mrb[25].mxu0  ;;  %v970_v24 = vpop.f32.mrb[25].mxu1 }
 0x12c   : > { %2113 = vst [vmem:[%s2481_s17 + $0x50] sm:$0xff] %v1997_v17   ;;  %2129 = vst [vmem:[%s2481_s17 + $0xd0] sm:$0xff] %v2077_v18   ;;  %v1227_v25 = vadd.f32 %v2466_v40, %v842_v23  ;;  %v1259_v26 = vadd.f32 %v2466_v40, %v970_v24  ;;  %v2218_v27 = vpop.f32.mrb[26].mxu0  ;;  %v2250_v28 = vpop.f32.mrb[26].mxu1 }
 0x12d   : > { %v1230_v29 = vadd.f32 %v2218_v27, %v2466_v40  ;;  %v1262_v30 = vadd.f32 %v2250_v28, %v2466_v40  ;;  %v845_v31 = vpop.f32.mrb[27].mxu0  ;;  %v973_v32 = vpop.f32.mrb[27].mxu1  ;;  %v1293_v35 = vmax.f32 %v1229_v21, 0.0  ;;  %v1325_v36 = vmax.f32 %v1261_v22, 0.0 }
 0x12e   : > { %v1228_v33 = vadd.f32 %v2466_v40, %v845_v31  ;;  %v1260_v34 = vadd.f32 %v2466_v40, %v973_v32  ;;  %v1291_v39 = vmax.f32 %v1227_v25, 0.0  ;;  %v1323_v41 = vmax.f32 %v1259_v26, 0.0 }
 0x12f   : > { %v1294_v37 = vmax.f32 %v1230_v29, 0.0  ;;  %v1326_v38 = vmax.f32 %v1262_v30, 0.0 }
 0x130   : > { %v1292_v42 = vmax.f32 %v1228_v33, 0.0  ;;  %v1324_v43 = vmax.f32 %v1260_v34, 0.0 }
 0x131   : > { %v2012_v44 = vpack.c.bf16 %v1294_v37, %v1293_v35  ;;  %v2092_v45 = vpack.c.bf16 %v1326_v38, %v1325_v36 }
 0x132   : > { %v2007_v46 = vpack.c.bf16 %v1292_v42, %v1291_v39  ;;  %v2087_v47 = vpack.c.bf16 %v1324_v43, %v1323_v41  ;;  %v2221_v48 = vpop.f32.mrb[28].mxu0  ;;  %v2253_v49 = vpop.f32.mrb[28].mxu1 }
 0x133   : > { %2116 = vst [vmem:[%s2481_s17 + $0x68] sm:$0xff] %v2012_v44   ;;  %2132 = vst [vmem:[%s2481_s17 + $0xe8] sm:$0xff] %v2092_v45   ;;  %v1233_v50 = vadd.f32 %v2221_v48, %v2466_v40  ;;  %v1265_v51 = vadd.f32 %v2253_v49, %v2466_v40  ;;  %v858_v52 = vpop.f32.mrb[29].mxu0  ;;  %v986_v53 = vpop.f32.mrb[29].mxu1 }
 0x134   : > { %2115 = vst [vmem:[%s2481_s17 + $0x60] sm:$0xff] %v2007_v46   ;;  %2131 = vst [vmem:[%s2481_s17 + $0xe0] sm:$0xff] %v2087_v47   ;;  %v1231_v54 = vadd.f32 %v2466_v40, %v858_v52  ;;  %v1263_v55 = vadd.f32 %v2466_v40, %v986_v53  ;;  %v2222_v56 = vpop.f32.mrb[30].mxu0  ;;  %v2254_v57 = vpop.f32.mrb[30].mxu1 }
 0x135   : > { %v1234_v58 = vadd.f32 %v2222_v56, %v2466_v40  ;;  %v1266_v59 = vadd.f32 %v2254_v57, %v2466_v40  ;;  %v861_v60 = vpop.f32.mrb[31].mxu0  ;;  %v989_v61 = vpop.f32.mrb[31].mxu1  ;;  %v1297_v0 = vmax.f32 %v1233_v50, 0.0  ;;  %v1329_v1 = vmax.f32 %v1265_v51, 0.0 }
 0x136   : > { %v1232_v62 = vadd.f32 %v2466_v40, %v861_v60  ;;  %v1264_v63 = vadd.f32 %v2466_v40, %v989_v61  ;;  %v1295_v4 = vmax.f32 %v1231_v54, 0.0  ;;  %v1327_v5 = vmax.f32 %v1263_v55, 0.0 }
 0x137   : > { %v1298_v2 = vmax.f32 %v1234_v58, 0.0  ;;  %v1330_v3 = vmax.f32 %v1266_v59, 0.0 }
 0x138   : > { %v1296_v6 = vmax.f32 %v1232_v62, 0.0  ;;  %v1328_v7 = vmax.f32 %v1264_v63, 0.0 }
 0x139   : > { %v2022_v8 = vpack.c.bf16 %v1298_v2, %v1297_v0  ;;  %v2102_v9 = vpack.c.bf16 %v1330_v3, %v1329_v1 }
 0x13a   : > { %v2017_v10 = vpack.c.bf16 %v1296_v6, %v1295_v4  ;;  %v2097_v11 = vpack.c.bf16 %v1328_v7, %v1327_v5 }
 0x13b   : > { %2118 = vst [vmem:[%s2481_s17 + $0x78] sm:$0xff] %v2022_v8   ;;  %2134 = vst [vmem:[%s2481_s17 + $0xf8] sm:$0xff] %v2102_v9  }
 0x13c   : > { %2117 = vst [vmem:[%s2481_s17 + $0x70] sm:$0xff] %v2017_v10   ;;  %2133 = vst [vmem:[%s2481_s17 + $0xf0] sm:$0xff] %v2097_v11  }
 0x13d PF: > { %s13_s14 = sadd.s32 1, %s2357_s14   ;;  %s2584_s12 = smov %s2353_s13 }
 0x13e   : > { %p10_p5 = scmp.ge.s32.totalorder %s13_s14, 6   ;;  %s2585_s13 = smov %s2587_s15 }
 0x140   :  { %12 = sbr.rel (!%p10_p5) target bundleno = 2 (0x2), region = 76 }

// kernel: _lambda_.16
= control target key start
LH: loop header
LB: loop body
LE: loop exit
PB: predicated region body
PF: predicated region fallthrough
CT: control target
= control target key end

     0   :  { %s2702_s12 = smov 0   ;;  %s2704_s13 = smov 0   ;;  %s3174_s0 = inlined_call_operand.vmem [shape: bf16[512,640], index: 0, kind: input, shape index: {}]   ;;  %s3175_s1 = inlined_call_operand.vmem [shape: bf16[640,128], index: 1, kind: input, shape index: {}]   ;;  %s3176_s2 = inlined_call_operand.vmem [shape: f32[1,128], index: 2, kind: input, shape index: {}]   ;;  %s3177_s3 = inlined_call_operand.vmem [shape: bf16[512,128], index: 3, kind: output, shape index: {}]  }
   0x1   :  { %s2706_s14 = smov 0   ;;  %s2708_s15 = smov 0  }
   0x2   :  { %s2710_s16 = smov 0  }
   0x3 LB: > { %s25_s17 = sadd.s32 1, %s2675_s15  ;;  %p48_p1 = scmp.ne.s32.totalorder %s2667_s13, %s2663_s12  ;;  %s2679_s16 = sphi %s2710_s16, %s13_s16   ;;  %s2675_s15 = sphi %s2708_s15, %s3181_s15   ;;  %s2671_s14 = sphi %s2706_s14, %s3180_s14   ;;  %s2667_s13 = sphi %s2704_s13, %s3179_s13   ;;  %s2663_s12 = sphi %s2702_s12, %s3178_s12  }
   0x4   : > { %p26_p0 = scmp.ge.s32.totalorder %s25_s17, 5  ;;  %p49_p2 = scmp.eq.s32.totalorder %s2679_s16, 0 }
   0x5   : > { %s41_s19 = sadd.s32 1, %s2667_s13  ;;  %p2051_p5 = scmp.ge.s32.totalorder %s2679_s16, 5 }
   0x6   : > { %s3183_s17 = smov (%p26_p0, %s25_s17), 0  ;;  %p50_p3 = por %p49_p2, %p48_p1 }
   0x7   : > { %s37_s18 = ssub.s32 %s2675_s15, %s3183_s17  ;;  %162 = sbr.rel (%p2051_p5) target bundleno = 60 (0x3c), region = 20 }
   0x8   : > { %p39_p4 = scmp.eq.s32.totalorder %s37_s18, 0 }
   0xa   : > { %s2737_s20 = scalar_select %p39_p4, %s2667_s13, %s41_s19  }
   0xe   : > { %165 = sbr.rel (!%p50_p3) target bundleno = 60 (0x3c), region = 24  ;;  %s167_s21 = sand.u32 (%p50_p3), 1, %s2667_s13  }
   0xf   : > { %s2053_s22 = sshll.u32 (%p50_p3), %s2675_s15, 2  ;;  %s2052_s23 = sshll.u32 (%p50_p3), %s167_s21, 8 }
  0x10   : > { %s2745_s26 = scalar_lea.vmem (%p50_p3), %s3174_s0, %s2053_s22  ;;  %s2749_s27 = scalar_lea.vmem (%p50_p3), [#allocation3], %s2052_s23 }
  0x11   : > { %v190_v0 = vld [vmem:[%s2745_s26] sm:$0xf] (%p50_p3)  ;;  %v192_v1 = vld [vmem:[%s2745_s26 + $0x14] sm:$0xf] (%p50_p3)  ;;  %v194_v2 = vld [vmem:[%s2745_s26 + $0x28] sm:$0xf] (%p50_p3) }
  0x12   : > { %191 = vst [vmem:[%s2749_s27] sm:$0xf] (%p50_p3), %v190_v0  ;;  %193 = vst [vmem:[%s2749_s27 + $0x4] sm:$0xf] (%p50_p3), %v192_v1  ;;  %v196_v3 = vld [vmem:[%s2745_s26 + $0x3c] sm:$0xf] (%p50_p3) }
  0x13   : > { %v198_v4 = vld [vmem:[%s2745_s26 + $0x50] sm:$0xf] (%p50_p3)  ;;  %195 = vst [vmem:[%s2749_s27 + $0x8] sm:$0xf] (%p50_p3), %v194_v2  ;;  %197 = vst [vmem:[%s2749_s27 + $0xc] sm:$0xf] (%p50_p3), %v196_v3 }
  0x14   : > { %199 = vst [vmem:[%s2749_s27 + $0x10] sm:$0xf] (%p50_p3), %v198_v4  ;;  %v200_v5 = vld [vmem:[%s2745_s26 + $0x64] sm:$0xf] (%p50_p3)  ;;  %v202_v6 = vld [vmem:[%s2745_s26 + $0x78] sm:$0xf] (%p50_p3) }
  0x15   : > { %v204_v7 = vld [vmem:[%s2745_s26 + $0x8c] sm:$0xf]  ;;  %201 = vst [vmem:[%s2749_s27 + $0x14] sm:$0xf] %v200_v5  ;;  %203 = vst [vmem:[%s2749_s27 + $0x18] sm:$0xf] %v202_v6 }
  0x16   : > { %205 = vst [vmem:[%s2749_s27 + $0x1c] sm:$0xf] %v204_v7  ;;  %v206_v8 = vld [vmem:[%s2745_s26 + $0xa0] sm:$0xf]  ;;  %v208_v9 = vld [vmem:[%s2745_s26 + $0xb4] sm:$0xf] }
  0x17   : > { %v210_v10 = vld [vmem:[%s2745_s26 + $0xc8] sm:$0xf]  ;;  %207 = vst [vmem:[%s2749_s27 + $0x20] sm:$0xf] %v206_v8  ;;  %209 = vst [vmem:[%s2749_s27 + $0x24] sm:$0xf] %v208_v9 }
  0x18   : > { %211 = vst [vmem:[%s2749_s27 + $0x28] sm:$0xf] %v210_v10  ;;  %v212_v11 = vld [vmem:[%s2745_s26 + $0xdc] sm:$0xf]  ;;  %v214_v12 = vld [vmem:[%s2745_s26 + $0xf0] sm:$0xf] }
  0x19   : > { %v216_v13 = vld [vmem:[%s2745_s26 + $0x104] sm:$0xf]  ;;  %213 = vst [vmem:[%s2749_s27 + $0x2c] sm:$0xf] %v212_v11  ;;  %215 = vst [vmem:[%s2749_s27 + $0x30] sm:$0xf] %v214_v12 }
  0x1a   : > { %217 = vst [vmem:[%s2749_s27 + $0x34] sm:$0xf] %v216_v13  ;;  %v218_v14 = vld [vmem:[%s2745_s26 + $0x118] sm:$0xf]  ;;  %v220_v15 = vld [vmem:[%s2745_s26 + $0x12c] sm:$0xf] }
  0x1b   : > { %v222_v16 = vld [vmem:[%s2745_s26 + $0x140] sm:$0xf]  ;;  %219 = vst [vmem:[%s2749_s27 + $0x38] sm:$0xf] %v218_v14  ;;  %221 = vst [vmem:[%s2749_s27 + $0x3c] sm:$0xf] %v220_v15 }
  0x1c   : > { %223 = vst [vmem:[%s2749_s27 + $0x40] sm:$0xf] %v222_v16  ;;  %v224_v17 = vld [vmem:[%s2745_s26 + $0x154] sm:$0xf]  ;;  %v226_v18 = vld [vmem:[%s2745_s26 + $0x168] sm:$0xf] }
  0x1d   : > { %v228_v19 = vld [vmem:[%s2745_s26 + $0x17c] sm:$0xf]  ;;  %225 = vst [vmem:[%s2749_s27 + $0x44] sm:$0xf] %v224_v17  ;;  %227 = vst [vmem:[%s2749_s27 + $0x48] sm:$0xf] %v226_v18 }
  0x1e   : > { %229 = vst [vmem:[%s2749_s27 + $0x4c] sm:$0xf] %v228_v19  ;;  %v230_v20 = vld [vmem:[%s2745_s26 + $0x190] sm:$0xf]  ;;  %v232_v21 = vld [vmem:[%s2745_s26 + $0x1a4] sm:$0xf] }
  0x1f   : > { %v234_v22 = vld [vmem:[%s2745_s26 + $0x1b8] sm:$0xf]  ;;  %231 = vst [vmem:[%s2749_s27 + $0x50] sm:$0xf] %v230_v20  ;;  %233 = vst [vmem:[%s2749_s27 + $0x54] sm:$0xf] %v232_v21 }
  0x20   : > { %235 = vst [vmem:[%s2749_s27 + $0x58] sm:$0xf] %v234_v22  ;;  %v236_v23 = vld [vmem:[%s2745_s26 + $0x1cc] sm:$0xf]  ;;  %v238_v24 = vld [vmem:[%s2745_s26 + $0x1e0] sm:$0xf] }
  0x21   : > { %v240_v25 = vld [vmem:[%s2745_s26 + $0x1f4] sm:$0xf]  ;;  %237 = vst [vmem:[%s2749_s27 + $0x5c] sm:$0xf] %v236_v23  ;;  %239 = vst [vmem:[%s2749_s27 + $0x60] sm:$0xf] %v238_v24 }
  0x22   : > { %241 = vst [vmem:[%s2749_s27 + $0x64] sm:$0xf] %v240_v25  ;;  %v242_v26 = vld [vmem:[%s2745_s26 + $0x208] sm:$0xf]  ;;  %v244_v27 = vld [vmem:[%s2745_s26 + $0x21c] sm:$0xf] }
  0x23   : > { %v246_v28 = vld [vmem:[%s2745_s26 + $0x230] sm:$0xf]  ;;  %243 = vst [vmem:[%s2749_s27 + $0x68] sm:$0xf] %v242_v26  ;;  %245 = vst [vmem:[%s2749_s27 + $0x6c] sm:$0xf] %v244_v27 }
  0x24   : > { %247 = vst [vmem:[%s2749_s27 + $0x70] sm:$0xf] %v246_v28  ;;  %v248_v29 = vld [vmem:[%s2745_s26 + $0x244] sm:$0xf]  ;;  %v250_v30 = vld [vmem:[%s2745_s26 + $0x258] sm:$0xf] }
  0x25   : > { %v252_v31 = vld [vmem:[%s2745_s26 + $0x26c] sm:$0xf]  ;;  %249 = vst [vmem:[%s2749_s27 + $0x74] sm:$0xf] %v248_v29  ;;  %251 = vst [vmem:[%s2749_s27 + $0x78] sm:$0xf] %v250_v30 }
  0x26   : > { %253 = vst [vmem:[%s2749_s27 + $0x7c] sm:$0xf] %v252_v31  ;;  %v254_v32 = vld [vmem:[%s2745_s26 + $0x280] sm:$0xf]  ;;  %v256_v33 = vld [vmem:[%s2745_s26 + $0x294] sm:$0xf] }
  0x27   : > { %v258_v34 = vld [vmem:[%s2745_s26 + $0x2a8] sm:$0xf]  ;;  %255 = vst [vmem:[%s2749_s27 + $0x80] sm:$0xf] %v254_v32  ;;  %257 = vst [vmem:[%s2749_s27 + $0x84] sm:$0xf] %v256_v33 }
  0x28   : > { %259 = vst [vmem:[%s2749_s27 + $0x88] sm:$0xf] %v258_v34  ;;  %v260_v35 = vld [vmem:[%s2745_s26 + $0x2bc] sm:$0xf]  ;;  %v262_v36 = vld [vmem:[%s2745_s26 + $0x2d0] sm:$0xf] }
  0x29   : > { %v264_v37 = vld [vmem:[%s2745_s26 + $0x2e4] sm:$0xf]  ;;  %261 = vst [vmem:[%s2749_s27 + $0x8c] sm:$0xf] %v260_v35  ;;  %263 = vst [vmem:[%s2749_s27 + $0x90] sm:$0xf] %v262_v36 }
  0x2a   : > { %265 = vst [vmem:[%s2749_s27 + $0x94] sm:$0xf] %v264_v37  ;;  %v266_v38 = vld [vmem:[%s2745_s26 + $0x2f8] sm:$0xf]  ;;  %v268_v39 = vld [vmem:[%s2745_s26 + $0x30c] sm:$0xf] }
  0x2b   : > { %v270_v40 = vld [vmem:[%s2745_s26 + $0x320] sm:$0xf]  ;;  %267 = vst [vmem:[%s2749_s27 + $0x98] sm:$0xf] %v266_v38  ;;  %269 = vst [vmem:[%s2749_s27 + $0x9c] sm:$0xf] %v268_v39 }
  0x2c   : > { %271 = vst [vmem:[%s2749_s27 + $0xa0] sm:$0xf] %v270_v40  ;;  %v272_v41 = vld [vmem:[%s2745_s26 + $0x334] sm:$0xf]  ;;  %v274_v42 = vld [vmem:[%s2745_s26 + $0x348] sm:$0xf] }
  0x2d   : > { %v276_v43 = vld [vmem:[%s2745_s26 + $0x35c] sm:$0xf]  ;;  %273 = vst [vmem:[%s2749_s27 + $0xa4] sm:$0xf] %v272_v41  ;;  %275 = vst [vmem:[%s2749_s27 + $0xa8] sm:$0xf] %v274_v42 }
  0x2e   : > { %277 = vst [vmem:[%s2749_s27 + $0xac] sm:$0xf] %v276_v43  ;;  %v278_v44 = vld [vmem:[%s2745_s26 + $0x370] sm:$0xf]  ;;  %v280_v45 = vld [vmem:[%s2745_s26 + $0x384] sm:$0xf] }
  0x2f   : > { %v282_v46 = vld [vmem:[%s2745_s26 + $0x398] sm:$0xf]  ;;  %279 = vst [vmem:[%s2749_s27 + $0xb0] sm:$0xf] %v278_v44  ;;  %281 = vst [vmem:[%s2749_s27 + $0xb4] sm:$0xf] %v280_v45 }
  0x30   : > { %283 = vst [vmem:[%s2749_s27 + $0xb8] sm:$0xf] %v282_v46  ;;  %v284_v47 = vld [vmem:[%s2745_s26 + $0x3ac] sm:$0xf]  ;;  %v286_v48 = vld [vmem:[%s2745_s26 + $0x3c0] sm:$0xf] }
  0x31   : > { %v288_v49 = vld [vmem:[%s2745_s26 + $0x3d4] sm:$0xf]  ;;  %285 = vst [vmem:[%s2749_s27 + $0xbc] sm:$0xf] %v284_v47  ;;  %287 = vst [vmem:[%s2749_s27 + $0xc0] sm:$0xf] %v286_v48 }
  0x32   : > { %289 = vst [vmem:[%s2749_s27 + $0xc4] sm:$0xf] %v288_v49  ;;  %v290_v50 = vld [vmem:[%s2745_s26 + $0x3e8] sm:$0xf]  ;;  %v292_v51 = vld [vmem:[%s2745_s26 + $0x3fc] sm:$0xf] }
  0x33   : > { %v294_v52 = vld [vmem:[%s2745_s26 + $0x410] sm:$0xf]  ;;  %291 = vst [vmem:[%s2749_s27 + $0xc8] sm:$0xf] %v290_v50  ;;  %293 = vst [vmem:[%s2749_s27 + $0xcc] sm:$0xf] %v292_v51 }
  0x34   : > { %295 = vst [vmem:[%s2749_s27 + $0xd0] sm:$0xf] %v294_v52  ;;  %v296_v53 = vld [vmem:[%s2745_s26 + $0x424] sm:$0xf]  ;;  %v298_v54 = vld [vmem:[%s2745_s26 + $0x438] sm:$0xf] }
  0x35   : > { %v300_v55 = vld [vmem:[%s2745_s26 + $0x44c] sm:$0xf]  ;;  %297 = vst [vmem:[%s2749_s27 + $0xd4] sm:$0xf] %v296_v53  ;;  %299 = vst [vmem:[%s2749_s27 + $0xd8] sm:$0xf] %v298_v54 }
  0x36   : > { %301 = vst [vmem:[%s2749_s27 + $0xdc] sm:$0xf] %v300_v55  ;;  %v302_v56 = vld [vmem:[%s2745_s26 + $0x460] sm:$0xf]  ;;  %v304_v57 = vld [vmem:[%s2745_s26 + $0x474] sm:$0xf] }
  0x37   : > { %v306_v58 = vld [vmem:[%s2745_s26 + $0x488] sm:$0xf]  ;;  %303 = vst [vmem:[%s2749_s27 + $0xe0] sm:$0xf] %v302_v56  ;;  %305 = vst [vmem:[%s2749_s27 + $0xe4] sm:$0xf] %v304_v57 }
  0x38   : > { %307 = vst [vmem:[%s2749_s27 + $0xe8] sm:$0xf] %v306_v58  ;;  %v308_v59 = vld [vmem:[%s2745_s26 + $0x49c] sm:$0xf]  ;;  %v310_v60 = vld [vmem:[%s2745_s26 + $0x4b0] sm:$0xf] }
  0x39   : > { %v312_v61 = vld [vmem:[%s2745_s26 + $0x4c4] sm:$0xf]  ;;  %309 = vst [vmem:[%s2749_s27 + $0xec] sm:$0xf] %v308_v59  ;;  %311 = vst [vmem:[%s2749_s27 + $0xf0] sm:$0xf] %v310_v60 }
  0x3a   : > { %313 = vst [vmem:[%s2749_s27 + $0xf4] sm:$0xf] %v312_v61  ;;  %v314_v62 = vld [vmem:[%s2745_s26 + $0x4d8] sm:$0xf]  ;;  %v316_v63 = vld [vmem:[%s2745_s26 + $0x4ec] sm:$0xf] }
  0x3b   : > { %315 = vst [vmem:[%s2749_s27 + $0xf8] sm:$0xf] %v314_v62  ;;  %317 = vst [vmem:[%s2749_s27 + $0xfc] sm:$0xf] %v316_v63 }
  0x3c PF: > { %p2054_p6 = scmp.ge.s32.totalorder %s2679_s16, 1  ;;  %p479_p7 = scmp.lt.s32.totalorder %s2679_s16, 6 }
  0x3e   : > { %p480_p8 = pnand %p2054_p6, %p479_p7 }
  0x3f   : > { %s486_s28 = sand.u32 (!%p480_p8), 1, %s2663_s12   ;;  %s2056_s29 = sshll.u32 (!%p480_p8), %s2671_s14, 4 }
  0x40   : > { %483 = sbr.rel (%p480_p8) target bundleno = 446 (0x1be), region = 69  ;;  %s2055_s30 = sshll.u32 (!%p480_p8), %s486_s28, 8 }
  0x41   : > { %p525_p9 = scmp.lt.s32.totalorder (!%p480_p8), %s2056_s29, 79  ;;  %s2886_s8 = scalar_lea.vmem (!%p480_p8), [#allocation3], %s2055_s30 }
  0x42   : > { %p2058_p10 = scmp.ne.s32.totalorder (!%p480_p8), %s2671_s14, 0 }
  0x47   : > { %s3185_s29 = smov (!%p525_p9, %s2056_s29), 79  ;;  %549 = sbr.rel (%p2058_p10) target bundleno = 105 (0x69), region = 77 }
  0x48   : > { %s2057_s4 = sshll.u32 %s3185_s29, 2  ;;  %v2681_v0 = vmov (!%p2058_p10), 0.0  }
  0x49   : > { %s2884_s7 = scalar_lea.vmem %s3175_s1, %s2057_s4  ;;  %550 = vst [vmem:[#allocation2] sm:$0xff] (!%p2058_p10), %v2681_v0  ;;  %551 = vst [vmem:[#allocation2 + $0x8] sm:$0xff] (!%p2058_p10), %v2681_v0 }
  0x4a   : > { %552 = vst [vmem:[#allocation2 + $0x10] sm:$0xff] (!%p2058_p10), %v2681_v0  ;;  %553 = vst [vmem:[#allocation2 + $0x18] sm:$0xff] (!%p2058_p10), %v2681_v0 }
  0x4b   : > { %554 = vst [vmem:[#allocation2 + $0x20] sm:$0xff] (!%p2058_p10), %v2681_v0  ;;  %555 = vst [vmem:[#allocation2 + $0x28] sm:$0xff] (!%p2058_p10), %v2681_v0 }
  0x4c   : > { %556 = vst [vmem:[#allocation2 + $0x30] sm:$0xff] (!%p2058_p10), %v2681_v0  ;;  %557 = vst [vmem:[#allocation2 + $0x38] sm:$0xff] (!%p2058_p10), %v2681_v0 }
  0x4d   : > { %558 = vst [vmem:[#allocation2 + $0x40] sm:$0xff] (!%p2058_p10), %v2681_v0  ;;  %559 = vst [vmem:[#allocation2 + $0x48] sm:$0xff] (!%p2058_p10), %v2681_v0 }
  0x4e   : > { %560 = vst [vmem:[#allocation2 + $0x50] sm:$0xff] %v2681_v0  ;;  %561 = vst [vmem:[#allocation2 + $0x58] sm:$0xff] %v2681_v0 }
  0x4f   : > { %562 = vst [vmem:[#allocation2 + $0x60] sm:$0xff] %v2681_v0  ;;  %563 = vst [vmem:[#allocation2 + $0x68] sm:$0xff] %v2681_v0 }
  0x50   : > { %564 = vst [vmem:[#allocation2 + $0x70] sm:$0xff] %v2681_v0  ;;  %565 = vst [vmem:[#allocation2 + $0x78] sm:$0xff] %v2681_v0 }
  0x51   : > { %566 = vst [vmem:[#allocation2 + $0x80] sm:$0xff] %v2681_v0  ;;  %567 = vst [vmem:[#allocation2 + $0x88] sm:$0xff] %v2681_v0 }
  0x52   : > { %568 = vst [vmem:[#allocation2 + $0x90] sm:$0xff] %v2681_v0  ;;  %569 = vst [vmem:[#allocation2 + $0x98] sm:$0xff] %v2681_v0 }
  0x53   : > { %570 = vst [vmem:[#allocation2 + $0xa0] sm:$0xff] %v2681_v0  ;;  %571 = vst [vmem:[#allocation2 + $0xa8] sm:$0xff] %v2681_v0 }
  0x54   : > { %572 = vst [vmem:[#allocation2 + $0xb0] sm:$0xff] %v2681_v0  ;;  %573 = vst [vmem:[#allocation2 + $0xb8] sm:$0xff] %v2681_v0 }
  0x55   : > { %574 = vst [vmem:[#allocation2 + $0xc0] sm:$0xff] %v2681_v0  ;;  %575 = vst [vmem:[#allocation2 + $0xc8] sm:$0xff] %v2681_v0 }
  0x56   : > { %576 = vst [vmem:[#allocation2 + $0xd0] sm:$0xff] %v2681_v0  ;;  %577 = vst [vmem:[#allocation2 + $0xd8] sm:$0xff] %v2681_v0 }
  0x57   : > { %578 = vst [vmem:[#allocation2 + $0xe0] sm:$0xff] %v2681_v0  ;;  %579 = vst [vmem:[#allocation2 + $0xe8] sm:$0xff] %v2681_v0 }
  0x58   : > { %580 = vst [vmem:[#allocation2 + $0xf0] sm:$0xff] %v2681_v0  ;;  %581 = vst [vmem:[#allocation2 + $0xf8] sm:$0xff] %v2681_v0 }
  0x59   : > { %582 = vst [vmem:[#allocation2 + $0x100] sm:$0xff] %v2681_v0  ;;  %583 = vst [vmem:[#allocation2 + $0x108] sm:$0xff] %v2681_v0 }
  0x5a   : > { %584 = vst [vmem:[#allocation2 + $0x110] sm:$0xff] %v2681_v0  ;;  %585 = vst [vmem:[#allocation2 + $0x118] sm:$0xff] %v2681_v0 }
  0x5b   : > { %586 = vst [vmem:[#allocation2 + $0x120] sm:$0xff] %v2681_v0  ;;  %587 = vst [vmem:[#allocation2 + $0x128] sm:$0xff] %v2681_v0 }
  0x5c   : > { %588 = vst [vmem:[#allocation2 + $0x130] sm:$0xff] %v2681_v0  ;;  %589 = vst [vmem:[#allocation2 + $0x138] sm:$0xff] %v2681_v0 }
  0x5d   : > { %590 = vst [vmem:[#allocation2 + $0x140] sm:$0xff] %v2681_v0  ;;  %591 = vst [vmem:[#allocation2 + $0x148] sm:$0xff] %v2681_v0 }
  0x5e   : > { %592 = vst [vmem:[#allocation2 + $0x150] sm:$0xff] %v2681_v0  ;;  %593 = vst [vmem:[#allocation2 + $0x158] sm:$0xff] %v2681_v0 }
  0x5f   : > { %594 = vst [vmem:[#allocation2 + $0x160] sm:$0xff] %v2681_v0  ;;  %595 = vst [vmem:[#allocation2 + $0x168] sm:$0xff] %v2681_v0 }
  0x60   : > { %596 = vst [vmem:[#allocation2 + $0x170] sm:$0xff] %v2681_v0  ;;  %597 = vst [vmem:[#allocation2 + $0x178] sm:$0xff] %v2681_v0 }
  0x61   : > { %598 = vst [vmem:[#allocation2 + $0x180] sm:$0xff] %v2681_v0  ;;  %599 = vst [vmem:[#allocation2 + $0x188] sm:$0xff] %v2681_v0 }
  0x62   : > { %600 = vst [vmem:[#allocation2 + $0x190] sm:$0xff] %v2681_v0  ;;  %601 = vst [vmem:[#allocation2 + $0x198] sm:$0xff] %v2681_v0 }
  0x63   : > { %602 = vst [vmem:[#allocation2 + $0x1a0] sm:$0xff] %v2681_v0  ;;  %603 = vst [vmem:[#allocation2 + $0x1a8] sm:$0xff] %v2681_v0 }
  0x64   : > { %604 = vst [vmem:[#allocation2 + $0x1b0] sm:$0xff] %v2681_v0  ;;  %605 = vst [vmem:[#allocation2 + $0x1b8] sm:$0xff] %v2681_v0 }
  0x65   : > { %606 = vst [vmem:[#allocation2 + $0x1c0] sm:$0xff] %v2681_v0  ;;  %607 = vst [vmem:[#allocation2 + $0x1c8] sm:$0xff] %v2681_v0 }
  0x66   : > { %608 = vst [vmem:[#allocation2 + $0x1d0] sm:$0xff] %v2681_v0  ;;  %609 = vst [vmem:[#allocation2 + $0x1d8] sm:$0xff] %v2681_v0 }
  0x67   : > { %610 = vst [vmem:[#allocation2 + $0x1e0] sm:$0xff] %v2681_v0  ;;  %611 = vst [vmem:[#allocation2 + $0x1e8] sm:$0xff] %v2681_v0 }
  0x68   : > { %612 = vst [vmem:[#allocation2 + $0x1f0] sm:$0xff] %v2681_v0  ;;  %613 = vst [vmem:[#allocation2 + $0x1f8] sm:$0xff] %v2681_v0 }
  0x69 PF: > { %v2601_v1 = vld [vmem:[%s2884_s7] sm:$0xff]   ;;  %v2602_v2 = vld [vmem:[%s2884_s7 + $0x8] sm:$0xff]   ;;  %v2603_v3 = vld [vmem:[%s2884_s7 + $0x10] sm:$0xff]   ;;  %p2099_p11 = scmp.ne.s32.totalorder %s2671_s14, 4 }
  0x6a   : > { %2464 = vmatprep.subr.bf16.mxu0 %v2601_v1  ;;  %2544 = vmatprep.subr.bf16.mxu1 %v2601_v1  ;;  %v2604_v4 = vld [vmem:[%s2884_s7 + $0x18] sm:$0xff]   ;;  %v2609_v5 = vld [vmem:[%s2886_s8] sm:$0xff]   ;;  %v2606_v8 = vld [vmem:[%s2884_s7 + $0x28] sm:$0xff]  }
  0x6b   : > { %2465 = vmatpush3.bf16.msra.mxu0 %v2601_v1  ;;  %2552 = vmatpush3.bf16.msra.mxu1 %v2601_v1  ;;  %v2610_v6 = vld [vmem:[%s2886_s8 + $0x80] sm:$0xff]   ;;  %v2607_v9 = vld [vmem:[%s2884_s7 + $0x30] sm:$0xff]   ;;  %v2608_v10 = vld [vmem:[%s2884_s7 + $0x38] sm:$0xff]  }
  0x6c   : > { %2466 = vmatprep.subr.bf16.mxu0 %v2602_v2  ;;  %2545 = vmatprep.subr.bf16.mxu1 %v2602_v2  ;;  %v2605_v7 = vld [vmem:[%s2884_s7 + $0x20] sm:$0xff]   ;;  %v2611_v11 = vld [vmem:[%s2886_s8 + $0x8] sm:$0xff]   ;;  %v2613_v13 = vld [vmem:[%s2886_s8 + $0x10] sm:$0xff]  }
  0x6d   : > { %2480 = vmatprep.mubr.bf16.mxu0 %v2609_v5  ;;  %2512 = vmatprep.mubr.bf16.mxu1 %v2610_v6  ;;  %v2612_v12 = vld [vmem:[%s2886_s8 + $0x88] sm:$0xff]   ;;  %v2614_v14 = vld [vmem:[%s2886_s8 + $0x90] sm:$0xff]   ;;  %v2615_v15 = vld [vmem:[%s2886_s8 + $0x18] sm:$0xff]  }
  0x6e   : > { %v2616_v16 = vld [vmem:[%s2886_s8 + $0x98] sm:$0xff]   ;;  %v2617_v17 = vld [vmem:[%s2886_s8 + $0x20] sm:$0xff]   ;;  %v2619_v19 = vld [vmem:[%s2886_s8 + $0x28] sm:$0xff]  }
  0x6f   : > { %2467 = vmatpush3.bf16.msra.mxu0 %v2602_v2  ;;  %2553 = vmatpush3.bf16.msra.mxu1 %v2602_v2  ;;  %v2618_v18 = vld [vmem:[%s2886_s8 + $0xa0] sm:$0xff]   ;;  %v2620_v20 = vld [vmem:[%s2886_s8 + $0xa8] sm:$0xff]   ;;  %v2621_v21 = vld [vmem:[%s2886_s8 + $0x30] sm:$0xff]  }
  0x70   : > { %2468 = vmatprep.subr.bf16.mxu0 %v2603_v3  ;;  %2546 = vmatprep.subr.bf16.mxu1 %v2603_v3  ;;  %v2622_v22 = vld [vmem:[%s2886_s8 + $0xb0] sm:$0xff]   ;;  %v2623_v23 = vld [vmem:[%s2886_s8 + $0x38] sm:$0xff]   ;;  %v2625_v25 = vld [vmem:[%s2886_s8 + $0x40] sm:$0xff]  }
  0x71   : > { %v2624_v24 = vld [vmem:[%s2886_s8 + $0xb8] sm:$0xff]   ;;  %v2626_v26 = vld [vmem:[%s2886_s8 + $0xc0] sm:$0xff]   ;;  %v2627_v27 = vld [vmem:[%s2886_s8 + $0x48] sm:$0xff]  }
  0x72   : > { %v2628_v28 = vld [vmem:[%s2886_s8 + $0xc8] sm:$0xff]   ;;  %v2629_v29 = vld [vmem:[%s2886_s8 + $0x50] sm:$0xff]   ;;  %v2631_v31 = vld [vmem:[%s2886_s8 + $0x58] sm:$0xff]  }
  0x73   : > { %2469 = vmatpush3.bf16.msra.mxu0 %v2603_v3  ;;  %2554 = vmatpush3.bf16.msra.mxu1 %v2603_v3  ;;  %v2630_v30 = vld [vmem:[%s2886_s8 + $0xd0] sm:$0xff]   ;;  %v2632_v32 = vld [vmem:[%s2886_s8 + $0xd8] sm:$0xff]   ;;  %v2633_v33 = vld [vmem:[%s2886_s8 + $0x60] sm:$0xff]  }
  0x74   : > { %2470 = vmatprep.subr.bf16.mxu0 %v2604_v4  ;;  %2547 = vmatprep.subr.bf16.mxu1 %v2604_v4  ;;  %v2634_v34 = vld [vmem:[%s2886_s8 + $0xe0] sm:$0xff]   ;;  %v2635_v35 = vld [vmem:[%s2886_s8 + $0x68] sm:$0xff]   ;;  %v2637_v37 = vld [vmem:[%s2886_s8 + $0x70] sm:$0xff]  }
  0x75   : > { %v2636_v36 = vld [vmem:[%s2886_s8 + $0xe8] sm:$0xff]   ;;  %v2638_v38 = vld [vmem:[%s2886_s8 + $0xf0] sm:$0xff]   ;;  %v2639_v39 = vld [vmem:[%s2886_s8 + $0x78] sm:$0xff]  }
  0x76   : > { %v2640_v40 = vld [vmem:[%s2886_s8 + $0xf8] sm:$0xff]   ;;  %v616_v41 = vld [vmem:[#allocation2 + $0x10] sm:$0xff]  ;;  %v614_v43 = vld [vmem:[#allocation2] sm:$0xff] }
  0x77   : > { %2471 = vmatpush3.bf16.msra.mxu0 %v2604_v4  ;;  %2555 = vmatpush3.bf16.msra.mxu1 %v2604_v4  ;;  %v648_v42 = vld [vmem:[#allocation2 + $0x110] sm:$0xff]  ;;  %v646_v44 = vld [vmem:[#allocation2 + $0x100] sm:$0xff]  ;;  %v617_v47 = vld [vmem:[#allocation2 + $0x18] sm:$0xff] }
  0x78   : > { %2472 = vmatprep.subr.bf16.mxu0 %v2605_v7  ;;  %2548 = vmatprep.subr.bf16.mxu1 %v2605_v7  ;;  %v649_v48 = vld [vmem:[#allocation2 + $0x118] sm:$0xff]  ;;  %v615_v53 = vld [vmem:[#allocation2 + $0x8] sm:$0xff]  ;;  %v620_v1 = vld [vmem:[#allocation2 + $0x30] sm:$0xff] }
  0x79   : > { %v647_v54 = vld [vmem:[#allocation2 + $0x108] sm:$0xff]  ;;  %v652_v2 = vld [vmem:[#allocation2 + $0x130] sm:$0xff]  ;;  %v618_v3 = vld [vmem:[#allocation2 + $0x20] sm:$0xff] }
  0x7a   : > { %v650_v4 = vld [vmem:[#allocation2 + $0x120] sm:$0xff] }
  0x7b   : > { %2473 = vmatpush3.bf16.msra.mxu0 %v2605_v7  ;;  %2556 = vmatpush3.bf16.msra.mxu1 %v2605_v7  ;;  %v621_v7 = vld [vmem:[#allocation2 + $0x38] sm:$0xff] }
  0x7c   : > { %2474 = vmatprep.subr.bf16.mxu0 %v2606_v8  ;;  %2549 = vmatprep.subr.bf16.mxu1 %v2606_v8 }
  0x7f   : > { %2475 = vmatpush3.bf16.msra.mxu0 %v2606_v8  ;;  %2557 = vmatpush3.bf16.msra.mxu1 %v2606_v8  ;;  %v653_v8 = vld [vmem:[#allocation2 + $0x138] sm:$0xff] }
  0x80   : > { %2476 = vmatprep.subr.bf16.mxu0 %v2607_v9  ;;  %2550 = vmatprep.subr.bf16.mxu1 %v2607_v9 }
  0x83   : > { %2477 = vmatpush3.bf16.msra.mxu0 %v2607_v9  ;;  %2558 = vmatpush3.bf16.msra.mxu1 %v2607_v9 }
  0x84   : > { %2478 = vmatprep.subr.bf16.mxu0 %v2608_v10  ;;  %2551 = vmatprep.subr.bf16.mxu1 %v2608_v10 }
  0x87   : > { %2479 = vmatpush3.bf16.msra.mxu0 %v2608_v10  ;;  %2559 = vmatpush3.bf16.msra.mxu1 %v2608_v10 }
  0x8a   : > { %2481 = vmatmul.mubr.bf16.vlgmr.msra.gmra.mrb[0].mxu0 %v2611_v11  ;;  %2513 = vmatmul.mubr.bf16.vlgmr.msra.gmra.mrb[0].mxu1 %v2612_v12 }
  0x8b   : > { %2484 = vmatprep.mubr.bf16.mxu0 %v2613_v13  ;;  %2516 = vmatprep.mubr.bf16.mxu1 %v2614_v14  ;;  %v619_v13 = vld [vmem:[#allocation2 + $0x28] sm:$0xff] }
  0x8c   : > { %v651_v14 = vld [vmem:[#allocation2 + $0x128] sm:$0xff] }
  0x92   : > { %2485 = vmatmul.mubr.bf16.gmra.mrb[4].mxu0 %v2615_v15  ;;  %2517 = vmatmul.mubr.bf16.gmra.mrb[4].mxu1 %v2616_v16 }
  0x93   : > { %2488 = vmatprep.mubr.bf16.mxu0 %v2617_v17  ;;  %2520 = vmatprep.mubr.bf16.mxu1 %v2618_v18 }
  0x9a   : > { %2489 = vmatmul.mubr.bf16.gmra.mrb[8].mxu0 %v2619_v19  ;;  %2521 = vmatmul.mubr.bf16.gmra.mrb[8].mxu1 %v2620_v20 }
  0x9b   : > { %2492 = vmatprep.mubr.bf16.mxu0 %v2621_v21  ;;  %2524 = vmatprep.mubr.bf16.mxu1 %v2622_v22 }
  0xa2   : > { %2493 = vmatmul.mubr.bf16.gmra.mrb[12].mxu0 %v2623_v23  ;;  %2525 = vmatmul.mubr.bf16.gmra.mrb[12].mxu1 %v2624_v24 }
  0xa3   : > { %2496 = vmatprep.mubr.bf16.mxu0 %v2625_v25  ;;  %2528 = vmatprep.mubr.bf16.mxu1 %v2626_v26  ;;  %v624_v25 = vld [vmem:[#allocation2 + $0x50] sm:$0xff] }
  0xa4   : > { %v656_v26 = vld [vmem:[#allocation2 + $0x150] sm:$0xff] }
  0xaa   : > { %2497 = vmatmul.mubr.bf16.gmra.mrb[16].mxu0 %v2627_v27  ;;  %2529 = vmatmul.mubr.bf16.gmra.mrb[16].mxu1 %v2628_v28  ;;  %v622_v27 = vld [vmem:[#allocation2 + $0x40] sm:$0xff] }
  0xab   : > { %2500 = vmatprep.mubr.bf16.mxu0 %v2629_v29  ;;  %2532 = vmatprep.mubr.bf16.mxu1 %v2630_v30  ;;  %v654_v28 = vld [vmem:[#allocation2 + $0x140] sm:$0xff] }
  0xb2   : > { %2501 = vmatmul.mubr.bf16.gmra.mrb[20].mxu0 %v2631_v31  ;;  %2533 = vmatmul.mubr.bf16.gmra.mrb[20].mxu1 %v2632_v32  ;;  %v625_v31 = vld [vmem:[#allocation2 + $0x58] sm:$0xff] }
  0xb3   : > { %2504 = vmatprep.mubr.bf16.mxu0 %v2633_v33  ;;  %2536 = vmatprep.mubr.bf16.mxu1 %v2634_v34  ;;  %v657_v32 = vld [vmem:[#allocation2 + $0x158] sm:$0xff] }
  0xba   : > { %2505 = vmatmul.mubr.bf16.gmra.mrb[24].mxu0 %v2635_v35  ;;  %2537 = vmatmul.mubr.bf16.gmra.mrb[24].mxu1 %v2636_v36 }
  0xbb   : > { %2508 = vmatprep.mubr.bf16.mxu0 %v2637_v37  ;;  %2540 = vmatprep.mubr.bf16.mxu1 %v2638_v38  ;;  %v623_v37 = vld [vmem:[#allocation2 + $0x48] sm:$0xff] }
  0xbc   : > { %v655_v38 = vld [vmem:[#allocation2 + $0x148] sm:$0xff] }
  0xc2   : > { %2509 = vmatmul.mubr.bf16.gmra.mrb[28].mxu0 %v2639_v39  ;;  %2541 = vmatmul.mubr.bf16.gmra.mrb[28].mxu1 %v2640_v40 }
 0x15d   : > { %v2482_v45 = vpop.f32.mrb[0].mxu0  ;;  %v2514_v46 = vpop.f32.mrb[0].mxu1 }
 0x15e   : > { %v1289_v49 = vadd.f32 %v2482_v45, %v616_v41  ;;  %v1321_v50 = vadd.f32 %v2514_v46, %v648_v42  ;;  %v1032_v51 = vpop.f32.mrb[1].mxu0  ;;  %v1160_v52 = vpop.f32.mrb[1].mxu1 }
 0x15f   : > { %v1287_v55 = vadd.f32 %v1032_v51, %v614_v43  ;;  %v1319_v56 = vadd.f32 %v1160_v52, %v646_v44  ;;  %v2483_v57 = vpop.f32.mrb[2].mxu0  ;;  %v2515_v58 = vpop.f32.mrb[2].mxu1  ;;  %v626_v51 = vld [vmem:[#allocation2 + $0x60] sm:$0xff] }
 0x160   : > { %1353 = vst [vmem:[#allocation2 + $0x10] sm:$0xff] %v1289_v49  ;;  %1385 = vst [vmem:[#allocation2 + $0x110] sm:$0xff] %v1321_v50  ;;  %v1290_v59 = vadd.f32 %v2483_v57, %v617_v47  ;;  %v1322_v60 = vadd.f32 %v2515_v58, %v649_v48  ;;  %v1035_v61 = vpop.f32.mrb[3].mxu0  ;;  %v1163_v62 = vpop.f32.mrb[3].mxu1  ;;  %v628_v49 = vld [vmem:[#allocation2 + $0x70] sm:$0xff]  ;;  %v658_v52 = vld [vmem:[#allocation2 + $0x160] sm:$0xff] }
 0x161   : > { %1351 = vst [vmem:[#allocation2] sm:$0xff] %v1287_v55  ;;  %1383 = vst [vmem:[#allocation2 + $0x100] sm:$0xff] %v1319_v56  ;;  %v1288_v63 = vadd.f32 %v1035_v61, %v615_v53  ;;  %v1320_v0 = vadd.f32 %v1163_v62, %v647_v54  ;;  %v660_v50 = vld [vmem:[#allocation2 + $0x170] sm:$0xff]  ;;  %v629_v55 = vld [vmem:[#allocation2 + $0x78] sm:$0xff] }
 0x162   : > { %1354 = vst [vmem:[#allocation2 + $0x18] sm:$0xff] %v1290_v59  ;;  %1386 = vst [vmem:[#allocation2 + $0x118] sm:$0xff] %v1322_v60  ;;  %v661_v56 = vld [vmem:[#allocation2 + $0x178] sm:$0xff]  ;;  %v627_v61 = vld [vmem:[#allocation2 + $0x68] sm:$0xff] }
 0x163   : > { %1352 = vst [vmem:[#allocation2 + $0x8] sm:$0xff] %v1288_v63  ;;  %1384 = vst [vmem:[#allocation2 + $0x108] sm:$0xff] %v1320_v0  ;;  %v659_v62 = vld [vmem:[#allocation2 + $0x168] sm:$0xff] }
 0x165   : > { %v2486_v5 = vpop.f32.mrb[4].mxu0  ;;  %v2518_v6 = vpop.f32.mrb[4].mxu1 }
 0x166   : > { %v1293_v9 = vadd.f32 %v2486_v5, %v620_v1  ;;  %v1325_v10 = vadd.f32 %v2518_v6, %v652_v2  ;;  %v1048_v11 = vpop.f32.mrb[5].mxu0  ;;  %v1176_v12 = vpop.f32.mrb[5].mxu1 }
 0x167   : > { %v1291_v15 = vadd.f32 %v1048_v11, %v618_v3  ;;  %v1323_v16 = vadd.f32 %v1176_v12, %v650_v4  ;;  %v2487_v17 = vpop.f32.mrb[6].mxu0  ;;  %v2519_v18 = vpop.f32.mrb[6].mxu1  ;;  %v630_v11 = vld [vmem:[#allocation2 + $0x80] sm:$0xff] }
 0x168   : > { %1357 = vst [vmem:[#allocation2 + $0x30] sm:$0xff] %v1293_v9  ;;  %1389 = vst [vmem:[#allocation2 + $0x130] sm:$0xff] %v1325_v10  ;;  %v1294_v19 = vadd.f32 %v2487_v17, %v621_v7  ;;  %v1326_v20 = vadd.f32 %v2519_v18, %v653_v8  ;;  %v1051_v21 = vpop.f32.mrb[7].mxu0  ;;  %v1179_v22 = vpop.f32.mrb[7].mxu1  ;;  %v632_v9 = vld [vmem:[#allocation2 + $0x90] sm:$0xff]  ;;  %v662_v12 = vld [vmem:[#allocation2 + $0x180] sm:$0xff] }
 0x169   : > { %1355 = vst [vmem:[#allocation2 + $0x20] sm:$0xff] %v1291_v15  ;;  %1387 = vst [vmem:[#allocation2 + $0x120] sm:$0xff] %v1323_v16  ;;  %v1292_v23 = vadd.f32 %v1051_v21, %v619_v13  ;;  %v1324_v24 = vadd.f32 %v1179_v22, %v651_v14  ;;  %v664_v10 = vld [vmem:[#allocation2 + $0x190] sm:$0xff]  ;;  %v633_v15 = vld [vmem:[#allocation2 + $0x98] sm:$0xff] }
 0x16a   : > { %1358 = vst [vmem:[#allocation2 + $0x38] sm:$0xff] %v1294_v19  ;;  %1390 = vst [vmem:[#allocation2 + $0x138] sm:$0xff] %v1326_v20  ;;  %v665_v16 = vld [vmem:[#allocation2 + $0x198] sm:$0xff]  ;;  %v631_v21 = vld [vmem:[#allocation2 + $0x88] sm:$0xff] }
 0x16b   : > { %1356 = vst [vmem:[#allocation2 + $0x28] sm:$0xff] %v1292_v23  ;;  %1388 = vst [vmem:[#allocation2 + $0x128] sm:$0xff] %v1324_v24  ;;  %v663_v22 = vld [vmem:[#allocation2 + $0x188] sm:$0xff] }
 0x16d   : > { %v2490_v29 = vpop.f32.mrb[8].mxu0  ;;  %v2522_v30 = vpop.f32.mrb[8].mxu1 }
 0x16e   : > { %v1297_v33 = vadd.f32 %v2490_v29, %v624_v25  ;;  %v1329_v34 = vadd.f32 %v2522_v30, %v656_v26  ;;  %v1064_v35 = vpop.f32.mrb[9].mxu0  ;;  %v1192_v36 = vpop.f32.mrb[9].mxu1 }
 0x16f   : > { %v1295_v39 = vadd.f32 %v1064_v35, %v622_v27  ;;  %v1327_v40 = vadd.f32 %v1192_v36, %v654_v28  ;;  %v2491_v41 = vpop.f32.mrb[10].mxu0  ;;  %v2523_v42 = vpop.f32.mrb[10].mxu1  ;;  %v634_v35 = vld [vmem:[#allocation2 + $0xa0] sm:$0xff] }
 0x170   : > { %1361 = vst [vmem:[#allocation2 + $0x50] sm:$0xff] %v1297_v33  ;;  %1393 = vst [vmem:[#allocation2 + $0x150] sm:$0xff] %v1329_v34  ;;  %v1298_v43 = vadd.f32 %v2491_v41, %v625_v31  ;;  %v1330_v44 = vadd.f32 %v2523_v42, %v657_v32  ;;  %v1067_v45 = vpop.f32.mrb[11].mxu0  ;;  %v1195_v46 = vpop.f32.mrb[11].mxu1  ;;  %v636_v33 = vld [vmem:[#allocation2 + $0xb0] sm:$0xff]  ;;  %v666_v36 = vld [vmem:[#allocation2 + $0x1a0] sm:$0xff] }
 0x171   : > { %1359 = vst [vmem:[#allocation2 + $0x40] sm:$0xff] %v1295_v39  ;;  %1391 = vst [vmem:[#allocation2 + $0x140] sm:$0xff] %v1327_v40  ;;  %v1296_v47 = vadd.f32 %v1067_v45, %v623_v37  ;;  %v1328_v48 = vadd.f32 %v1195_v46, %v655_v38  ;;  %v668_v34 = vld [vmem:[#allocation2 + $0x1b0] sm:$0xff]  ;;  %v637_v39 = vld [vmem:[#allocation2 + $0xb8] sm:$0xff] }
 0x172   : > { %1362 = vst [vmem:[#allocation2 + $0x58] sm:$0xff] %v1298_v43  ;;  %1394 = vst [vmem:[#allocation2 + $0x158] sm:$0xff] %v1330_v44  ;;  %v669_v40 = vld [vmem:[#allocation2 + $0x1b8] sm:$0xff]  ;;  %v635_v45 = vld [vmem:[#allocation2 + $0xa8] sm:$0xff] }
 0x173   : > { %1360 = vst [vmem:[#allocation2 + $0x48] sm:$0xff] %v1296_v47  ;;  %1392 = vst [vmem:[#allocation2 + $0x148] sm:$0xff] %v1328_v48  ;;  %v667_v46 = vld [vmem:[#allocation2 + $0x1a8] sm:$0xff] }
 0x175   : > { %v2494_v53 = vpop.f32.mrb[12].mxu0  ;;  %v2526_v54 = vpop.f32.mrb[12].mxu1 }
 0x176   : > { %v1301_v57 = vadd.f32 %v2494_v53, %v628_v49  ;;  %v1333_v58 = vadd.f32 %v2526_v54, %v660_v50  ;;  %v1080_v59 = vpop.f32.mrb[13].mxu0  ;;  %v1208_v60 = vpop.f32.mrb[13].mxu1 }
 0x177   : > { %v1299_v63 = vadd.f32 %v1080_v59, %v626_v51  ;;  %v1331_v0 = vadd.f32 %v1208_v60, %v658_v52  ;;  %v2495_v1 = vpop.f32.mrb[14].mxu0  ;;  %v2527_v2 = vpop.f32.mrb[14].mxu1  ;;  %v638_v59 = vld [vmem:[#allocation2 + $0xc0] sm:$0xff] }
 0x178   : > { %1365 = vst [vmem:[#allocation2 + $0x70] sm:$0xff] %v1301_v57  ;;  %1397 = vst [vmem:[#allocation2 + $0x170] sm:$0xff] %v1333_v58  ;;  %v1302_v3 = vadd.f32 %v2495_v1, %v629_v55  ;;  %v1334_v4 = vadd.f32 %v2527_v2, %v661_v56  ;;  %v1083_v5 = vpop.f32.mrb[15].mxu0  ;;  %v1211_v6 = vpop.f32.mrb[15].mxu1  ;;  %v640_v57 = vld [vmem:[#allocation2 + $0xd0] sm:$0xff]  ;;  %v670_v60 = vld [vmem:[#allocation2 + $0x1c0] sm:$0xff] }
 0x179   : > { %1363 = vst [vmem:[#allocation2 + $0x60] sm:$0xff] %v1299_v63  ;;  %1395 = vst [vmem:[#allocation2 + $0x160] sm:$0xff] %v1331_v0  ;;  %v1300_v7 = vadd.f32 %v1083_v5, %v627_v61  ;;  %v1332_v8 = vadd.f32 %v1211_v6, %v659_v62  ;;  %v672_v58 = vld [vmem:[#allocation2 + $0x1d0] sm:$0xff]  ;;  %v641_v63 = vld [vmem:[#allocation2 + $0xd8] sm:$0xff] }
 0x17a   : > { %1366 = vst [vmem:[#allocation2 + $0x78] sm:$0xff] %v1302_v3  ;;  %1398 = vst [vmem:[#allocation2 + $0x178] sm:$0xff] %v1334_v4  ;;  %v673_v0 = vld [vmem:[#allocation2 + $0x1d8] sm:$0xff]  ;;  %v639_v5 = vld [vmem:[#allocation2 + $0xc8] sm:$0xff] }
 0x17b   : > { %1364 = vst [vmem:[#allocation2 + $0x68] sm:$0xff] %v1300_v7  ;;  %1396 = vst [vmem:[#allocation2 + $0x168] sm:$0xff] %v1332_v8  ;;  %v671_v6 = vld [vmem:[#allocation2 + $0x1c8] sm:$0xff] }
 0x17d   : > { %v2498_v13 = vpop.f32.mrb[16].mxu0  ;;  %v2530_v14 = vpop.f32.mrb[16].mxu1 }
 0x17e   : > { %v1305_v17 = vadd.f32 %v2498_v13, %v632_v9  ;;  %v1337_v18 = vadd.f32 %v2530_v14, %v664_v10  ;;  %v1096_v19 = vpop.f32.mrb[17].mxu0  ;;  %v1224_v20 = vpop.f32.mrb[17].mxu1 }
 0x17f   : > { %v1303_v23 = vadd.f32 %v1096_v19, %v630_v11  ;;  %v1335_v24 = vadd.f32 %v1224_v20, %v662_v12  ;;  %v2499_v25 = vpop.f32.mrb[18].mxu0  ;;  %v2531_v26 = vpop.f32.mrb[18].mxu1  ;;  %v642_v19 = vld [vmem:[#allocation2 + $0xe0] sm:$0xff] }
 0x180   : > { %1369 = vst [vmem:[#allocation2 + $0x90] sm:$0xff] %v1305_v17  ;;  %1401 = vst [vmem:[#allocation2 + $0x190] sm:$0xff] %v1337_v18  ;;  %v1306_v27 = vadd.f32 %v2499_v25, %v633_v15  ;;  %v1338_v28 = vadd.f32 %v2531_v26, %v665_v16  ;;  %v1099_v29 = vpop.f32.mrb[19].mxu0  ;;  %v1227_v30 = vpop.f32.mrb[19].mxu1  ;;  %v644_v17 = vld [vmem:[#allocation2 + $0xf0] sm:$0xff]  ;;  %v674_v20 = vld [vmem:[#allocation2 + $0x1e0] sm:$0xff] }
 0x181   : > { %1367 = vst [vmem:[#allocation2 + $0x80] sm:$0xff] %v1303_v23  ;;  %1399 = vst [vmem:[#allocation2 + $0x180] sm:$0xff] %v1335_v24  ;;  %v1304_v31 = vadd.f32 %v1099_v29, %v631_v21  ;;  %v1336_v32 = vadd.f32 %v1227_v30, %v663_v22  ;;  %v676_v18 = vld [vmem:[#allocation2 + $0x1f0] sm:$0xff]  ;;  %v645_v23 = vld [vmem:[#allocation2 + $0xf8] sm:$0xff] }
 0x182   : > { %1370 = vst [vmem:[#allocation2 + $0x98] sm:$0xff] %v1306_v27  ;;  %1402 = vst [vmem:[#allocation2 + $0x198] sm:$0xff] %v1338_v28  ;;  %v677_v24 = vld [vmem:[#allocation2 + $0x1f8] sm:$0xff]  ;;  %v643_v29 = vld [vmem:[#allocation2 + $0xe8] sm:$0xff] }
 0x183   : > { %1368 = vst [vmem:[#allocation2 + $0x88] sm:$0xff] %v1304_v31  ;;  %1400 = vst [vmem:[#allocation2 + $0x188] sm:$0xff] %v1336_v32  ;;  %v675_v30 = vld [vmem:[#allocation2 + $0x1e8] sm:$0xff] }
 0x185   : > { %v2502_v37 = vpop.f32.mrb[20].mxu0  ;;  %v2534_v38 = vpop.f32.mrb[20].mxu1 }
 0x186   : > { %v1309_v41 = vadd.f32 %v2502_v37, %v636_v33  ;;  %v1341_v42 = vadd.f32 %v2534_v38, %v668_v34  ;;  %v1112_v43 = vpop.f32.mrb[21].mxu0  ;;  %v1240_v44 = vpop.f32.mrb[21].mxu1 }
 0x187   : > { %v1307_v47 = vadd.f32 %v1112_v43, %v634_v35  ;;  %v1339_v48 = vadd.f32 %v1240_v44, %v666_v36  ;;  %v2503_v49 = vpop.f32.mrb[22].mxu0  ;;  %v2535_v50 = vpop.f32.mrb[22].mxu1  ;;  %v2997_v43 = vld [vmem:[%s3176_s2] ss:$0 sm:$0xff] (!%p2099_p11) }
 0x188   : > { %1373 = vst [vmem:[#allocation2 + $0xb0] sm:$0xff] %v1309_v41  ;;  %1405 = vst [vmem:[#allocation2 + $0x1b0] sm:$0xff] %v1341_v42  ;;  %v1310_v51 = vadd.f32 %v2503_v49, %v637_v39  ;;  %v1342_v52 = vadd.f32 %v2535_v50, %v669_v40  ;;  %v1115_v53 = vpop.f32.mrb[23].mxu0  ;;  %v1243_v54 = vpop.f32.mrb[23].mxu1  ;;  %v1419_v41 = vld [vmem:[#allocation2] sm:$0xff] (!%p2099_p11)  ;;  %v1420_v42 = vld [vmem:[#allocation2 + $0x8] sm:$0xff] (!%p2099_p11) }
 0x189   : > { %1371 = vst [vmem:[#allocation2 + $0xa0] sm:$0xff] %v1307_v47  ;;  %1403 = vst [vmem:[#allocation2 + $0x1a0] sm:$0xff] %v1339_v48  ;;  %v1308_v55 = vadd.f32 %v1115_v53, %v635_v45  ;;  %v1340_v56 = vadd.f32 %v1243_v54, %v667_v46  ;;  %v1490_v44 = vadd.f32 (!%p2099_p11), %v2997_v43, %v1419_v41  ;;  %v1421_v46 = vld [vmem:[#allocation2 + $0x10] sm:$0xff] (!%p2099_p11)  ;;  %v1422_v47 = vld [vmem:[#allocation2 + $0x18] sm:$0xff] (!%p2099_p11) }
 0x18a   : > { %1374 = vst [vmem:[#allocation2 + $0xb8] sm:$0xff] %v1310_v51  ;;  %1406 = vst [vmem:[#allocation2 + $0x1b8] sm:$0xff] %v1342_v52  ;;  %v1491_v45 = vadd.f32 (!%p2099_p11), %v2997_v43, %v1420_v42  ;;  %v1423_v48 = vld [vmem:[#allocation2 + $0x20] sm:$0xff] (!%p2099_p11)  ;;  %v1492_v49 = vadd.f32 (!%p2099_p11), %v2997_v43, %v1421_v46  ;;  %v1493_v50 = vadd.f32 (!%p2099_p11), %v2997_v43, %v1422_v47  ;;  %v1424_v51 = vld [vmem:[#allocation2 + $0x28] sm:$0xff] (!%p2099_p11) }
 0x18b   : > { %1372 = vst [vmem:[#allocation2 + $0xa8] sm:$0xff] %v1308_v55  ;;  %1404 = vst [vmem:[#allocation2 + $0x1a8] sm:$0xff] %v1340_v56  ;;  %v1494_v52 = vadd.f32 (!%p2099_p11), %v2997_v43, %v1423_v48  ;;  %v1425_v53 = vld [vmem:[#allocation2 + $0x30] sm:$0xff] (!%p2099_p11)  ;;  %v1426_v54 = vld [vmem:[#allocation2 + $0x38] sm:$0xff] (!%p2099_p11)  ;;  %v1554_v55 = vmax.f32 (!%p2099_p11), %v1490_v44, 0.0 }
 0x18c   : > { %v1555_v56 = vmax.f32 (!%p2099_p11), %v1491_v45, 0.0 }
 0x18d   : > { %v2506_v61 = vpop.f32.mrb[24].mxu0  ;;  %v2538_v62 = vpop.f32.mrb[24].mxu1 }
 0x18e   : > { %v1313_v1 = vadd.f32 %v2506_v61, %v640_v57  ;;  %v1345_v2 = vadd.f32 %v2538_v62, %v672_v58  ;;  %v1128_v3 = vpop.f32.mrb[25].mxu0  ;;  %v1256_v4 = vpop.f32.mrb[25].mxu1  ;;  %v1495_v57 = vadd.f32 (!%p2099_p11), %v2997_v43, %v1424_v51  ;;  %v1496_v58 = vadd.f32 (!%p2099_p11), %v2997_v43, %v1425_v53  ;;  %v1429_v61 = vld [vmem:[#allocation2 + $0x50] sm:$0xff] (!%p2099_p11) }
 0x18f   : > { %v1311_v7 = vadd.f32 %v1128_v3, %v638_v59  ;;  %v1343_v8 = vadd.f32 %v1256_v4, %v670_v60  ;;  %v2507_v9 = vpop.f32.mrb[26].mxu0  ;;  %v2539_v10 = vpop.f32.mrb[26].mxu1  ;;  %v1427_v59 = vld [vmem:[#allocation2 + $0x40] sm:$0xff] (!%p2099_p11)  ;;  %v1428_v60 = vld [vmem:[#allocation2 + $0x48] sm:$0xff] (!%p2099_p11)  ;;  %v1556_v62 = vmax.f32 (!%p2099_p11), %v1492_v49, 0.0  ;;  %v2236_v4 = vpack.c.bf16 (!%p2099_p11), %v1555_v56, %v1554_v55  ;;  %v1441_v41 = vld [vmem:[#allocation2 + $0xb0] sm:$0xff] (!%p2099_p11) }
 0x190   : > { %1377 = vst [vmem:[#allocation2 + $0xd0] sm:$0xff] %v1313_v1  ;;  %1409 = vst [vmem:[#allocation2 + $0x1d0] sm:$0xff] %v1345_v2  ;;  %v1314_v11 = vadd.f32 %v2507_v9, %v641_v63  ;;  %v1346_v12 = vadd.f32 %v2539_v10, %v673_v0  ;;  %v1131_v13 = vpop.f32.mrb[27].mxu0  ;;  %v1259_v14 = vpop.f32.mrb[27].mxu1  ;;  %v1557_v63 = vmax.f32 (!%p2099_p11), %v1493_v50, 0.0  ;;  %v1558_v0 = vmax.f32 (!%p2099_p11), %v1494_v52, 0.0 }
 0x191   : > { %1375 = vst [vmem:[#allocation2 + $0xc0] sm:$0xff] %v1311_v7  ;;  %1407 = vst [vmem:[#allocation2 + $0x1c0] sm:$0xff] %v1343_v8  ;;  %v1312_v15 = vadd.f32 %v1131_v13, %v639_v5  ;;  %v1344_v16 = vadd.f32 %v1259_v14, %v671_v6  ;;  %v1497_v1 = vadd.f32 (!%p2099_p11), %v2997_v43, %v1426_v54  ;;  %v1430_v2 = vld [vmem:[#allocation2 + $0x58] sm:$0xff] (!%p2099_p11)  ;;  %v1431_v3 = vld [vmem:[#allocation2 + $0x60] sm:$0xff] (!%p2099_p11)  ;;  %v1559_v5 = vmax.f32 (!%p2099_p11), %v1495_v57, 0.0 }
 0x192   : > { %1378 = vst [vmem:[#allocation2 + $0xd8] sm:$0xff] %v1314_v11  ;;  %1410 = vst [vmem:[#allocation2 + $0x1d8] sm:$0xff] %v1346_v12  ;;  %v1560_v6 = vmax.f32 (!%p2099_p11), %v1496_v58, 0.0  ;;  %v1498_v7 = vadd.f32 (!%p2099_p11), %v2997_v43, %v1427_v59  ;;  %v1432_v8 = vld [vmem:[#allocation2 + $0x68] sm:$0xff] (!%p2099_p11)  ;;  %v2241_v9 = vpack.c.bf16 (!%p2099_p11), %v1557_v63, %v1556_v62  ;;  %v1499_v11 = vadd.f32 (!%p2099_p11), %v2997_v43, %v1428_v60  ;;  %v1433_v13 = vld [vmem:[#allocation2 + $0x70] sm:$0xff] (!%p2099_p11) }
 0x193   : > { %1376 = vst [vmem:[#allocation2 + $0xc8] sm:$0xff] %v1312_v15  ;;  %1408 = vst [vmem:[#allocation2 + $0x1c8] sm:$0xff] %v1344_v16  ;;  %v1561_v10 = vmax.f32 (!%p2099_p11), %v1497_v1, 0.0  ;;  %v1500_v12 = vadd.f32 (!%p2099_p11), %v2997_v43, %v1429_v61  ;;  %v1434_v14 = vld [vmem:[#allocation2 + $0x78] sm:$0xff] (!%p2099_p11)  ;;  %v2246_v15 = vpack.c.bf16 (!%p2099_p11), %v1559_v5, %v1558_v0  ;;  %v1512_v57 = vadd.f32 (!%p2099_p11), %v2997_v43, %v1441_v41  ;;  %v1460_v41 = vld [vmem:[#allocation2 + $0x148] sm:$0xff] (!%p2099_p11) }
 0x194   : > { %2237 = vst [vmem:[%s3177_s3] sm:$0xff] (!%p2099_p11), %v2236_v4   ;;  %v1562_v16 = vmax.f32 (!%p2099_p11), %v1498_v7, 0.0  ;;  %2393 = vst [vmem:[%s3177_s3 + $0x8] sm:$0xff] (!%p2099_p11), %v2241_v9   ;;  %v1442_v42 = vld [vmem:[#allocation2 + $0xb8] sm:$0xff] (!%p2099_p11) }
 0x195   : > { %v2510_v21 = vpop.f32.mrb[28].mxu0  ;;  %v2542_v22 = vpop.f32.mrb[28].mxu1  ;;  %1418 = sbr.rel (%p2099_p11) target bundleno = 446 (0x1be), region = 81  ;;  %2394 = vst [vmem:[%s3177_s3 + $0x10] sm:$0xff] (!%p2099_p11), %v2246_v15   ;;  %v1513_v58 = vadd.f32 (!%p2099_p11), %v2997_v43, %v1442_v42 }
 0x196   : > { %v1317_v25 = vadd.f32 %v2510_v21, %v644_v17  ;;  %v1349_v26 = vadd.f32 %v2542_v22, %v676_v18  ;;  %v1144_v27 = vpop.f32.mrb[29].mxu0  ;;  %v1272_v28 = vpop.f32.mrb[29].mxu1  ;;  %v1501_v17 = vadd.f32 (!%p2099_p11), %v2997_v43, %v1430_v2  ;;  %v1502_v18 = vadd.f32 (!%p2099_p11), %v2997_v43, %v1431_v3 }
 0x197   : > { %v1315_v31 = vadd.f32 %v1144_v27, %v642_v19  ;;  %v1347_v32 = vadd.f32 %v1272_v28, %v674_v20  ;;  %v2511_v33 = vpop.f32.mrb[30].mxu0  ;;  %v2543_v34 = vpop.f32.mrb[30].mxu1  ;;  %v1435_v19 = vld [vmem:[#allocation2 + $0x80] sm:$0xff] (!%p2099_p11)  ;;  %v1436_v20 = vld [vmem:[#allocation2 + $0x88] sm:$0xff] (!%p2099_p11)  ;;  %v2251_v21 = vpack.c.bf16 (!%p2099_p11), %v1561_v10, %v1560_v6  ;;  %v1563_v22 = vmax.f32 (!%p2099_p11), %v1499_v11, 0.0  ;;  %v1445_v54 = vld [vmem:[#allocation2 + $0xd0] sm:$0xff] (!%p2099_p11) }
 0x198   : > { %1381 = vst [vmem:[#allocation2 + $0xf0] sm:$0xff] %v1317_v25  ;;  %1413 = vst [vmem:[#allocation2 + $0x1f0] sm:$0xff] %v1349_v26  ;;  %v1318_v35 = vadd.f32 %v2511_v33, %v645_v23  ;;  %v1350_v36 = vadd.f32 %v2543_v34, %v677_v24  ;;  %v1147_v37 = vpop.f32.mrb[31].mxu0  ;;  %v1275_v38 = vpop.f32.mrb[31].mxu1  ;;  %v1564_v23 = vmax.f32 (!%p2099_p11), %v1500_v12, 0.0  ;;  %v1503_v24 = vadd.f32 (!%p2099_p11), %v2997_v43, %v1432_v8  ;;  %v1437_v25 = vld [vmem:[#allocation2 + $0x90] sm:$0xff] (!%p2099_p11) }
 0x199   : > { %1379 = vst [vmem:[#allocation2 + $0xe0] sm:$0xff] %v1315_v31  ;;  %1411 = vst [vmem:[#allocation2 + $0x1e0] sm:$0xff] %v1347_v32  ;;  %v1316_v39 = vadd.f32 %v1147_v37, %v643_v29  ;;  %v1348_v40 = vadd.f32 %v1275_v38, %v675_v30  ;;  %v1565_v26 = vmax.f32 (!%p2099_p11), %v1501_v17, 0.0  ;;  %v1566_v27 = vmax.f32 (!%p2099_p11), %v1502_v18, 0.0  ;;  %v1438_v30 = vld [vmem:[#allocation2 + $0x98] sm:$0xff] (!%p2099_p11)  ;;  %v1443_v48 = vld [vmem:[#allocation2 + $0xc0] sm:$0xff] (!%p2099_p11) }
 0x19a   : > { %1382 = vst [vmem:[#allocation2 + $0xf8] sm:$0xff] %v1318_v35  ;;  %1414 = vst [vmem:[#allocation2 + $0x1f8] sm:$0xff] %v1350_v36  ;;  %v1504_v28 = vadd.f32 (!%p2099_p11), %v2997_v43, %v1433_v13  ;;  %v1505_v29 = vadd.f32 (!%p2099_p11), %v2997_v43, %v1434_v14  ;;  %v2256_v31 = vpack.c.bf16 (!%p2099_p11), %v1563_v22, %v1562_v16  ;;  %v1567_v32 = vmax.f32 (!%p2099_p11), %v1503_v24, 0.0  ;;  %v1439_v35 = vld [vmem:[#allocation2 + $0xa0] sm:$0xff] (!%p2099_p11)  ;;  %v1440_v36 = vld [vmem:[#allocation2 + $0xa8] sm:$0xff] (!%p2099_p11) }
 0x19b   : > { %1380 = vst [vmem:[#allocation2 + $0xe8] sm:$0xff] %v1316_v39  ;;  %1412 = vst [vmem:[#allocation2 + $0x1e8] sm:$0xff] %v1348_v40  ;;  %v1506_v33 = vadd.f32 (!%p2099_p11), %v2997_v43, %v1435_v19  ;;  %v1507_v34 = vadd.f32 (!%p2099_p11), %v2997_v43, %v1436_v20  ;;  %v2261_v37 = vpack.c.bf16 (!%p2099_p11), %v1565_v26, %v1564_v23  ;;  %v1444_v49 = vld [vmem:[#allocation2 + $0xc8] sm:$0xff] (!%p2099_p11)  ;;  %v1446_v59 = vld [vmem:[#allocation2 + $0xd8] sm:$0xff] (!%p2099_p11)  ;;  %v1576_v3 = vmax.f32 (!%p2099_p11), %v1512_v57, 0.0 }
 0x19c   : > { %2395 = vst [vmem:[%s3177_s3 + $0x18] sm:$0xff] %v2251_v21   ;;  %v1568_v38 = vmax.f32 %v1504_v28, 0.0  ;;  %v1569_v39 = vmax.f32 %v1505_v29, 0.0  ;;  %v1508_v40 = vadd.f32 %v2997_v43, %v1437_v25  ;;  %2396 = vst [vmem:[%s3177_s3 + $0x20] sm:$0xff] %v2256_v31   ;;  %v2266_v44 = vpack.c.bf16 %v1567_v32, %v1566_v27  ;;  %v1451_v12 = vld [vmem:[#allocation2 + $0x100] sm:$0xff]  ;;  %v1452_v13 = vld [vmem:[#allocation2 + $0x108] sm:$0xff] }
 0x19d   : > { %v1570_v45 = vmax.f32 %v1506_v33, 0.0  ;;  %v1571_v46 = vmax.f32 %v1507_v34, 0.0  ;;  %v1509_v47 = vadd.f32 %v2997_v43, %v1438_v30  ;;  %2397 = vst [vmem:[%s3177_s3 + $0x28] sm:$0xff] %v2261_v37   ;;  %v1510_v52 = vadd.f32 %v2997_v43, %v1439_v35  ;;  %v1453_v18 = vld [vmem:[#allocation2 + $0x110] sm:$0xff]  ;;  %v1454_v23 = vld [vmem:[#allocation2 + $0x118] sm:$0xff]  ;;  %v1455_v28 = vld [vmem:[#allocation2 + $0x120] sm:$0xff] }
 0x19e   : > { %v2271_v50 = vpack.c.bf16 %v1569_v39, %v1568_v38  ;;  %v1572_v51 = vmax.f32 %v1508_v40, 0.0  ;;  %v1511_v53 = vadd.f32 %v2997_v43, %v1440_v36  ;;  %2398 = vst [vmem:[%s3177_s3 + $0x30] sm:$0xff] %v2266_v44   ;;  %v1514_v62 = vadd.f32 %v2997_v43, %v1443_v48  ;;  %v1456_v29 = vld [vmem:[#allocation2 + $0x128] sm:$0xff]  ;;  %v1457_v34 = vld [vmem:[#allocation2 + $0x130] sm:$0xff]  ;;  %v1458_v35 = vld [vmem:[#allocation2 + $0x138] sm:$0xff] }
 0x19f   : > { %v2276_v55 = vpack.c.bf16 %v1571_v46, %v1570_v45  ;;  %v1573_v56 = vmax.f32 %v1509_v47, 0.0  ;;  %v1574_v60 = vmax.f32 %v1510_v52, 0.0  ;;  %v1515_v63 = vadd.f32 %v2997_v43, %v1444_v49  ;;  %v1449_v6 = vld [vmem:[#allocation2 + $0xf0] sm:$0xff]  ;;  %v1459_v40 = vld [vmem:[#allocation2 + $0x140] sm:$0xff]  ;;  %v1462_v52 = vld [vmem:[#allocation2 + $0x158] sm:$0xff] }
 0x1a0   : > { %2399 = vst [vmem:[%s3177_s3 + $0x38] sm:$0xff] %v2271_v50   ;;  %v1575_v61 = vmax.f32 %v1511_v53, 0.0  ;;  %v1447_v0 = vld [vmem:[#allocation2 + $0xe0] sm:$0xff]  ;;  %v1577_v4 = vmax.f32 %v1513_v58, 0.0  ;;  %v1516_v5 = vadd.f32 %v2997_v43, %v1445_v54  ;;  %v1578_v9 = vmax.f32 %v1514_v62, 0.0  ;;  %v1461_v47 = vld [vmem:[#allocation2 + $0x150] sm:$0xff] }
 0x1a1   : > { %2400 = vst [vmem:[%s3177_s3 + $0x40] sm:$0xff] %v2276_v55   ;;  %v2281_v2 = vpack.c.bf16 %v1573_v56, %v1572_v51  ;;  %v1450_v7 = vld [vmem:[#allocation2 + $0xf8] sm:$0xff]  ;;  %v1579_v10 = vmax.f32 %v1515_v63, 0.0  ;;  %v1517_v11 = vadd.f32 %v2997_v43, %v1446_v59  ;;  %v1518_v16 = vadd.f32 %v2997_v43, %v1447_v0  ;;  %v1463_v57 = vld [vmem:[#allocation2 + $0x160] sm:$0xff]  ;;  %v1464_v58 = vld [vmem:[#allocation2 + $0x168] sm:$0xff] }
 0x1a2   : > { %v1448_v1 = vld [vmem:[#allocation2 + $0xe8] sm:$0xff]  ;;  %v2286_v8 = vpack.c.bf16 %v1575_v61, %v1574_v60  ;;  %v2291_v14 = vpack.c.bf16 %v1577_v4, %v1576_v3  ;;  %v1580_v15 = vmax.f32 %v1516_v5, 0.0  ;;  %v1520_v21 = vadd.f32 %v2997_v43, %v1449_v6  ;;  %v1465_v63 = vld [vmem:[#allocation2 + $0x170] sm:$0xff]  ;;  %v1466_v0 = vld [vmem:[#allocation2 + $0x178] sm:$0xff] }
 0x1a3   : > { %2401 = vst [vmem:[%s3177_s3 + $0x48] sm:$0xff] %v2281_v2   ;;  %v1519_v17 = vadd.f32 %v2997_v43, %v1448_v1  ;;  %v2296_v19 = vpack.c.bf16 %v1579_v10, %v1578_v9  ;;  %v1581_v20 = vmax.f32 %v1517_v11, 0.0  ;;  %v1521_v22 = vadd.f32 %v2997_v43, %v1450_v7  ;;  %v1467_v5 = vld [vmem:[#allocation2 + $0x180] sm:$0xff]  ;;  %v1468_v6 = vld [vmem:[#allocation2 + $0x188] sm:$0xff]  ;;  %v1469_v11 = vld [vmem:[#allocation2 + $0x190] sm:$0xff] }
 0x1a4   : > { %2402 = vst [vmem:[%s3177_s3 + $0x50] sm:$0xff] %v2286_v8   ;;  %2403 = vst [vmem:[%s3177_s3 + $0x58] sm:$0xff] %v2291_v14   ;;  %v1582_v24 = vmax.f32 %v1518_v16, 0.0  ;;  %v1522_v26 = vadd.f32 %v2997_v43, %v1451_v12  ;;  %v1523_v27 = vadd.f32 %v2997_v43, %v1452_v13  ;;  %v1584_v31 = vmax.f32 %v1520_v21, 0.0  ;;  %v1470_v16 = vld [vmem:[#allocation2 + $0x198] sm:$0xff]  ;;  %v1471_v21 = vld [vmem:[#allocation2 + $0x1a0] sm:$0xff] }
 0x1a5   : > { %v1583_v25 = vmax.f32 %v1519_v17, 0.0  ;;  %2404 = vst [vmem:[%s3177_s3 + $0x60] sm:$0xff] %v2296_v19   ;;  %v2301_v30 = vpack.c.bf16 %v1581_v20, %v1580_v15  ;;  %v1585_v32 = vmax.f32 %v1521_v22, 0.0  ;;  %v1524_v33 = vadd.f32 %v2997_v43, %v1453_v18  ;;  %v1472_v22 = vld [vmem:[#allocation2 + $0x1a8] sm:$0xff] }
 0x1a6   : > { %v1586_v37 = vmax.f32 %v1522_v26, 0.0  ;;  %v1587_v38 = vmax.f32 %v1523_v27, 0.0  ;;  %v1525_v39 = vadd.f32 %v2997_v43, %v1454_v23  ;;  %v1526_v45 = vadd.f32 %v2997_v43, %v1455_v28  ;;  %v1473_v27 = vld [vmem:[#allocation2 + $0x1b0] sm:$0xff]  ;;  %v1474_v28 = vld [vmem:[#allocation2 + $0x1b8] sm:$0xff] }
 0x1a7   : > { %v2306_v36 = vpack.c.bf16 %v1583_v25, %v1582_v24  ;;  %2405 = vst [vmem:[%s3177_s3 + $0x68] sm:$0xff] %v2301_v30   ;;  %v2311_v42 = vpack.c.bf16 %v1585_v32, %v1584_v31  ;;  %v1588_v44 = vmax.f32 %v1524_v33, 0.0  ;;  %v1527_v46 = vadd.f32 %v2997_v43, %v1456_v29  ;;  %v1475_v33 = vld [vmem:[#allocation2 + $0x1c0] sm:$0xff] }
 0x1a8   : > { %v2316_v48 = vpack.c.bf16 %v1587_v38, %v1586_v37  ;;  %v1589_v49 = vmax.f32 %v1525_v39, 0.0  ;;  %v1528_v50 = vadd.f32 %v2997_v43, %v1457_v34  ;;  %v1529_v51 = vadd.f32 %v2997_v43, %v1458_v35  ;;  %v1476_v34 = vld [vmem:[#allocation2 + $0x1c8] sm:$0xff]  ;;  %v1477_v39 = vld [vmem:[#allocation2 + $0x1d0] sm:$0xff] }
 0x1a9   : > { %2406 = vst [vmem:[%s3177_s3 + $0x70] sm:$0xff] %v2306_v36   ;;  %2407 = vst [vmem:[%s3177_s3 + $0x78] sm:$0xff] %v2311_v42   ;;  %v1590_v53 = vmax.f32 %v1526_v45, 0.0  ;;  %v1591_v54 = vmax.f32 %v1527_v46, 0.0  ;;  %v1530_v55 = vadd.f32 %v2997_v43, %v1459_v40  ;;  %v1531_v56 = vadd.f32 %v2997_v43, %v1460_v41  ;;  %v1478_v45 = vld [vmem:[#allocation2 + $0x1d8] sm:$0xff] }
 0x1aa   : > { %2408 = vst [vmem:[%s3177_s3 + $0x80] sm:$0xff] %v2316_v48   ;;  %v2321_v59 = vpack.c.bf16 %v1589_v49, %v1588_v44  ;;  %v1592_v60 = vmax.f32 %v1528_v50, 0.0  ;;  %v1593_v61 = vmax.f32 %v1529_v51, 0.0  ;;  %v1532_v62 = vadd.f32 %v2997_v43, %v1461_v47  ;;  %v1479_v50 = vld [vmem:[#allocation2 + $0x1e0] sm:$0xff]  ;;  %v1480_v51 = vld [vmem:[#allocation2 + $0x1e8] sm:$0xff] }
 0x1ab   : > { %v2326_v1 = vpack.c.bf16 %v1591_v54, %v1590_v53  ;;  %v1594_v2 = vmax.f32 %v1530_v55, 0.0  ;;  %v1595_v3 = vmax.f32 %v1531_v56, 0.0  ;;  %v1533_v4 = vadd.f32 %v2997_v43, %v1462_v52  ;;  %v1481_v56 = vld [vmem:[#allocation2 + $0x1f0] sm:$0xff] }
 0x1ac   : > { %2409 = vst [vmem:[%s3177_s3 + $0x88] sm:$0xff] %v2321_v59   ;;  %v2331_v7 = vpack.c.bf16 %v1593_v61, %v1592_v60  ;;  %v1596_v8 = vmax.f32 %v1532_v62, 0.0  ;;  %v1534_v9 = vadd.f32 %v2997_v43, %v1463_v57  ;;  %v1535_v10 = vadd.f32 %v2997_v43, %v1464_v58  ;;  %v1482_v57 = vld [vmem:[#allocation2 + $0x1f8] sm:$0xff] }
 0x1ad   : > { %2410 = vst [vmem:[%s3177_s3 + $0x90] sm:$0xff] %v2326_v1   ;;  %v2336_v12 = vpack.c.bf16 %v1595_v3, %v1594_v2  ;;  %v1597_v13 = vmax.f32 %v1533_v4, 0.0  ;;  %v1536_v14 = vadd.f32 %v2997_v43, %v1465_v63  ;;  %v1537_v15 = vadd.f32 %v2997_v43, %v1466_v0 }
 0x1ae   : > { %2411 = vst [vmem:[%s3177_s3 + $0x98] sm:$0xff] %v2331_v7   ;;  %v1598_v17 = vmax.f32 %v1534_v9, 0.0  ;;  %v1599_v18 = vmax.f32 %v1535_v10, 0.0  ;;  %v1538_v19 = vadd.f32 %v2997_v43, %v1467_v5  ;;  %v1539_v20 = vadd.f32 %v2997_v43, %v1468_v6 }
 0x1af   : > { %2412 = vst [vmem:[%s3177_s3 + $0xa0] sm:$0xff] %v2336_v12   ;;  %v2341_v23 = vpack.c.bf16 %v1597_v13, %v1596_v8  ;;  %v1600_v24 = vmax.f32 %v1536_v14, 0.0  ;;  %v1601_v25 = vmax.f32 %v1537_v15, 0.0  ;;  %v1540_v26 = vadd.f32 %v2997_v43, %v1469_v11 }
 0x1b0   : > { %v2346_v29 = vpack.c.bf16 %v1599_v18, %v1598_v17  ;;  %v1602_v30 = vmax.f32 %v1538_v19, 0.0  ;;  %v1603_v31 = vmax.f32 %v1539_v20, 0.0  ;;  %v1541_v32 = vadd.f32 %v2997_v43, %v1470_v16 }
 0x1b1   : > { %2413 = vst [vmem:[%s3177_s3 + $0xa8] sm:$0xff] %v2341_v23   ;;  %v2351_v35 = vpack.c.bf16 %v1601_v25, %v1600_v24  ;;  %v1604_v36 = vmax.f32 %v1540_v26, 0.0  ;;  %v1542_v37 = vadd.f32 %v2997_v43, %v1471_v21  ;;  %v1543_v38 = vadd.f32 %v2997_v43, %v1472_v22 }
 0x1b2   : > { %2414 = vst [vmem:[%s3177_s3 + $0xb0] sm:$0xff] %v2346_v29   ;;  %v2356_v40 = vpack.c.bf16 %v1603_v31, %v1602_v30  ;;  %v1605_v41 = vmax.f32 %v1541_v32, 0.0  ;;  %v1544_v42 = vadd.f32 %v2997_v43, %v1473_v27  ;;  %v1545_v44 = vadd.f32 %v2997_v43, %v1474_v28 }
 0x1b3   : > { %2415 = vst [vmem:[%s3177_s3 + $0xb8] sm:$0xff] %v2351_v35   ;;  %v1606_v46 = vmax.f32 %v1542_v37, 0.0  ;;  %v1607_v47 = vmax.f32 %v1543_v38, 0.0  ;;  %v1546_v48 = vadd.f32 %v2997_v43, %v1475_v33  ;;  %v1547_v49 = vadd.f32 %v2997_v43, %v1476_v34 }
 0x1b4   : > { %2416 = vst [vmem:[%s3177_s3 + $0xc0] sm:$0xff] %v2356_v40   ;;  %v2361_v52 = vpack.c.bf16 %v1605_v41, %v1604_v36  ;;  %v1608_v53 = vmax.f32 %v1544_v42, 0.0  ;;  %v1609_v54 = vmax.f32 %v1545_v44, 0.0  ;;  %v1548_v55 = vadd.f32 %v2997_v43, %v1477_v39 }
 0x1b5   : > { %v2366_v58 = vpack.c.bf16 %v1607_v47, %v1606_v46  ;;  %v1610_v59 = vmax.f32 %v1546_v48, 0.0  ;;  %v1611_v60 = vmax.f32 %v1547_v49, 0.0  ;;  %v1549_v61 = vadd.f32 %v2997_v43, %v1478_v45 }
 0x1b6   : > { %2417 = vst [vmem:[%s3177_s3 + $0xc8] sm:$0xff] %v2361_v52   ;;  %v2371_v62 = vpack.c.bf16 %v1609_v54, %v1608_v53  ;;  %v1612_v63 = vmax.f32 %v1548_v55, 0.0  ;;  %v1550_v0 = vadd.f32 %v2997_v43, %v1479_v50  ;;  %v1551_v1 = vadd.f32 %v2997_v43, %v1480_v51 }
 0x1b7   : > { %2418 = vst [vmem:[%s3177_s3 + $0xd0] sm:$0xff] %v2366_v58   ;;  %v2376_v2 = vpack.c.bf16 %v1611_v60, %v1610_v59  ;;  %v1613_v3 = vmax.f32 %v1549_v61, 0.0  ;;  %v1552_v4 = vadd.f32 %v2997_v43, %v1481_v56  ;;  %v1553_v5 = vadd.f32 %v2997_v43, %v1482_v57 }
 0x1b8   : > { %2419 = vst [vmem:[%s3177_s3 + $0xd8] sm:$0xff] %v2371_v62   ;;  %v1614_v6 = vmax.f32 %v1550_v0, 0.0  ;;  %v1615_v7 = vmax.f32 %v1551_v1, 0.0 }
 0x1b9   : > { %2420 = vst [vmem:[%s3177_s3 + $0xe0] sm:$0xff] %v2376_v2   ;;  %v2381_v8 = vpack.c.bf16 %v1613_v3, %v1612_v63  ;;  %v1616_v9 = vmax.f32 %v1552_v4, 0.0  ;;  %v1617_v10 = vmax.f32 %v1553_v5, 0.0 }
 0x1ba   : > { %v2386_v11 = vpack.c.bf16 %v1615_v7, %v1614_v6 }
 0x1bb   : > { %2421 = vst [vmem:[%s3177_s3 + $0xe8] sm:$0xff] %v2381_v8   ;;  %v2391_v12 = vpack.c.bf16 %v1617_v10, %v1616_v9 }
 0x1bc   : > { %2422 = vst [vmem:[%s3177_s3 + $0xf0] sm:$0xff] %v2386_v11  }
 0x1bd   : > { %2423 = vst [vmem:[%s3177_s3 + $0xf8] sm:$0xff] %v2391_v12  }
 0x1be PF: > { %s13_s16 = sadd.s32 1, %s2679_s16   ;;  %s3178_s12 = smov %s2667_s13 }
 0x1bf   : > { %p10_p12 = scmp.ge.s32.totalorder %s13_s16, 7   ;;  %s3179_s13 = smov %s2737_s20 }
 0x1c0   : > { %s3180_s14 = smov %s2675_s15  ;;  %s3181_s15 = smov %s3183_s17 }
 0x1c1   :  { %12 = sbr.rel (!%p10_p12) target bundleno = 3 (0x3), region = 122 }

// kernel: _lambda_.17
= control target key start
LH: loop header
LB: loop body
LE: loop exit
PB: predicated region body
PF: predicated region fallthrough
CT: control target
= control target key end

     0   :  { %s1317_s12 = smov 0   ;;  %s1319_s13 = smov 0   ;;  %s1525_s0 = inlined_call_operand.vmem [shape: bf16[128,1152], index: 0, kind: input, shape index: {}]   ;;  %s1526_s1 = inlined_call_operand.vmem [shape: bf16[1152,256], index: 1, kind: input, shape index: {}]   ;;  %s1527_s2 = inlined_call_operand.vmem [shape: f32[1,256], index: 2, kind: input, shape index: {}]   ;;  %s1528_s3 = inlined_call_operand.vmem [shape: bf16[128,256], index: 3, kind: output, shape index: {}]  }
   0x1   :  { %s1321_s14 = smov 0   ;;  %s1323_s15 = smov 0  }
   0x2   :  { %s1325_s16 = smov 0  }
   0x3 LB: > { %s25_s17 = sadd.s32 1, %s1289_s15  ;;  %p48_p1 = scmp.ne.s32.totalorder %s1281_s13, %s1277_s12  ;;  %s1293_s16 = sphi %s1325_s16, %s13_s16   ;;  %s1289_s15 = sphi %s1323_s15, %s1532_s15   ;;  %s1285_s14 = sphi %s1321_s14, %s1531_s14   ;;  %s1281_s13 = sphi %s1319_s13, %s1530_s13   ;;  %s1277_s12 = sphi %s1317_s12, %s1529_s12  }
   0x4   : > { %p26_p0 = scmp.ge.s32.totalorder %s25_s17, 9  ;;  %p49_p2 = scmp.eq.s32.totalorder %s1293_s16, 0 }
   0x5   : > { %s41_s19 = sadd.s32 1, %s1281_s13  ;;  %p1094_p5 = scmp.ge.s32.totalorder %s1293_s16, 9 }
   0x6   : > { %s1534_s17 = smov (%p26_p0, %s25_s17), 0  ;;  %p50_p3 = por %p49_p2, %p48_p1 }
   0x7   : > { %s37_s18 = ssub.s32 %s1289_s15, %s1534_s17  ;;  %164 = sbr.rel (%p1094_p5) target bundleno = 28 (0x1c), region = 20 }
   0x8   : > { %p39_p4 = scmp.eq.s32.totalorder %s37_s18, 0 }
   0xa   : > { %s1352_s20 = scalar_select %p39_p4, %s1281_s13, %s41_s19  }
   0xe   : > { %167 = sbr.rel (!%p50_p3) target bundleno = 28 (0x1c), region = 24  ;;  %s169_s21 = sand.u32 (%p50_p3), 1, %s1281_s13  }
   0xf   : > { %s1096_s22 = sshll.u32 (%p50_p3), %s1289_s15, 2  ;;  %s1095_s23 = sshll.u32 (%p50_p3), %s169_s21, 6 }
  0x10   : > { %s1360_s26 = scalar_lea.vmem (%p50_p3), %s1525_s0, %s1096_s22  ;;  %s171_s27 = scalar_lea.vmem (%p50_p3), [#allocation3], %s1095_s23 }
  0x11   : > { %v192_v0 = vld [vmem:[%s1360_s26] sm:$0xf] (%p50_p3)  ;;  %v194_v1 = vld [vmem:[%s1360_s26 + $0x24] sm:$0xf] (%p50_p3)  ;;  %v196_v2 = vld [vmem:[%s1360_s26 + $0x48] sm:$0xf] (%p50_p3) }
  0x12   : > { %193 = vst [vmem:[%s171_s27] sm:$0xf] (%p50_p3), %v192_v0  ;;  %195 = vst [vmem:[%s171_s27 + $0x4] sm:$0xf] (%p50_p3), %v194_v1  ;;  %v198_v3 = vld [vmem:[%s1360_s26 + $0x6c] sm:$0xf] (%p50_p3) }
  0x13   : > { %v200_v4 = vld [vmem:[%s1360_s26 + $0x90] sm:$0xf] (%p50_p3)  ;;  %197 = vst [vmem:[%s171_s27 + $0x8] sm:$0xf] (%p50_p3), %v196_v2  ;;  %199 = vst [vmem:[%s171_s27 + $0xc] sm:$0xf] (%p50_p3), %v198_v3 }
  0x14   : > { %201 = vst [vmem:[%s171_s27 + $0x10] sm:$0xf] (%p50_p3), %v200_v4  ;;  %v202_v5 = vld [vmem:[%s1360_s26 + $0xb4] sm:$0xf] (%p50_p3)  ;;  %v204_v6 = vld [vmem:[%s1360_s26 + $0xd8] sm:$0xf] (%p50_p3) }
  0x15   : > { %v206_v7 = vld [vmem:[%s1360_s26 + $0xfc] sm:$0xf]  ;;  %203 = vst [vmem:[%s171_s27 + $0x14] sm:$0xf] %v202_v5  ;;  %205 = vst [vmem:[%s171_s27 + $0x18] sm:$0xf] %v204_v6 }
  0x16   : > { %207 = vst [vmem:[%s171_s27 + $0x1c] sm:$0xf] %v206_v7  ;;  %v208_v8 = vld [vmem:[%s1360_s26 + $0x120] sm:$0xf]  ;;  %v210_v9 = vld [vmem:[%s1360_s26 + $0x144] sm:$0xf] }
  0x17   : > { %v212_v10 = vld [vmem:[%s1360_s26 + $0x168] sm:$0xf]  ;;  %209 = vst [vmem:[%s171_s27 + $0x20] sm:$0xf] %v208_v8  ;;  %211 = vst [vmem:[%s171_s27 + $0x24] sm:$0xf] %v210_v9 }
  0x18   : > { %213 = vst [vmem:[%s171_s27 + $0x28] sm:$0xf] %v212_v10  ;;  %v214_v11 = vld [vmem:[%s1360_s26 + $0x18c] sm:$0xf]  ;;  %v216_v12 = vld [vmem:[%s1360_s26 + $0x1b0] sm:$0xf] }
  0x19   : > { %v218_v13 = vld [vmem:[%s1360_s26 + $0x1d4] sm:$0xf]  ;;  %215 = vst [vmem:[%s171_s27 + $0x2c] sm:$0xf] %v214_v11  ;;  %217 = vst [vmem:[%s171_s27 + $0x30] sm:$0xf] %v216_v12 }
  0x1a   : > { %219 = vst [vmem:[%s171_s27 + $0x34] sm:$0xf] %v218_v13  ;;  %v220_v14 = vld [vmem:[%s1360_s26 + $0x1f8] sm:$0xf]  ;;  %v222_v15 = vld [vmem:[%s1360_s26 + $0x21c] sm:$0xf] }
  0x1b   : > { %221 = vst [vmem:[%s171_s27 + $0x38] sm:$0xf] %v220_v14  ;;  %223 = vst [vmem:[%s171_s27 + $0x3c] sm:$0xf] %v222_v15 }
  0x1c PF: > { %p1097_p6 = scmp.ge.s32.totalorder %s1293_s16, 1  ;;  %p292_p7 = scmp.lt.s32.totalorder %s1293_s16, 10 }
  0x1e   : > { %p293_p8 = pnand %p1097_p6, %p292_p7 }
  0x1f   : > { %s299_s28 = sand.u32 (!%p293_p8), 1, %s1277_s12   ;;  %s1099_s29 = sshll.u32 (!%p293_p8), %s1285_s14, 4 }
  0x20   : > { %296 = sbr.rel (%p293_p8) target bundleno = 346 (0x15a), region = 69  ;;  %s1098_s30 = sshll.u32 (!%p293_p8), %s299_s28, 6 }
  0x21   : > { %p344_p9 = scmp.lt.s32.totalorder (!%p293_p8), %s1099_s29, 143  ;;  %s1387_s8 = scalar_lea.vmem (!%p293_p8), [#allocation3], %s1098_s30 }
  0x22   : > { %p1102_p10 = scmp.ne.s32.totalorder (!%p293_p8), %s1285_s14, 0 }
  0x27   : > { %s1536_s29 = smov (!%p344_p9, %s1099_s29), 143  ;;  %375 = sbr.rel (%p1102_p10) target bundleno = 57 (0x39), region = 77 }
  0x28   : > { %s1148_s4 = sshll.u32 %s1536_s29, 3  ;;  %v1295_v16 = vmov (!%p1102_p10), 0.0  }
  0x29   : > { %s1385_s7 = scalar_lea.vmem %s1526_s1, %s1148_s4  ;;  %376 = vst [vmem:[#allocation2] sm:$0xff] (!%p1102_p10), %v1295_v16  ;;  %377 = vst [vmem:[#allocation2 + $0x8] sm:$0xff] (!%p1102_p10), %v1295_v16 }
  0x2a   : > { %378 = vst [vmem:[#allocation2 + $0x10] sm:$0xff] (!%p1102_p10), %v1295_v16  ;;  %379 = vst [vmem:[#allocation2 + $0x18] sm:$0xff] (!%p1102_p10), %v1295_v16 }
  0x2b   : > { %380 = vst [vmem:[#allocation2 + $0x20] sm:$0xff] (!%p1102_p10), %v1295_v16  ;;  %381 = vst [vmem:[#allocation2 + $0x28] sm:$0xff] (!%p1102_p10), %v1295_v16 }
  0x2c   : > { %382 = vst [vmem:[#allocation2 + $0x30] sm:$0xff] (!%p1102_p10), %v1295_v16  ;;  %383 = vst [vmem:[#allocation2 + $0x38] sm:$0xff] (!%p1102_p10), %v1295_v16 }
  0x2d   : > { %384 = vst [vmem:[#allocation2 + $0x40] sm:$0xff] (!%p1102_p10), %v1295_v16  ;;  %385 = vst [vmem:[#allocation2 + $0x48] sm:$0xff] (!%p1102_p10), %v1295_v16 }
  0x2e   : > { %386 = vst [vmem:[#allocation2 + $0x50] sm:$0xff] %v1295_v16  ;;  %387 = vst [vmem:[#allocation2 + $0x58] sm:$0xff] %v1295_v16 }
  0x2f   : > { %388 = vst [vmem:[#allocation2 + $0x60] sm:$0xff] %v1295_v16  ;;  %389 = vst [vmem:[#allocation2 + $0x68] sm:$0xff] %v1295_v16 }
  0x30   : > { %390 = vst [vmem:[#allocation2 + $0x70] sm:$0xff] %v1295_v16  ;;  %391 = vst [vmem:[#allocation2 + $0x78] sm:$0xff] %v1295_v16 }
  0x31   : > { %392 = vst [vmem:[#allocation2 + $0x80] sm:$0xff] %v1295_v16  ;;  %393 = vst [vmem:[#allocation2 + $0x88] sm:$0xff] %v1295_v16 }
  0x32   : > { %394 = vst [vmem:[#allocation2 + $0x90] sm:$0xff] %v1295_v16  ;;  %395 = vst [vmem:[#allocation2 + $0x98] sm:$0xff] %v1295_v16 }
  0x33   : > { %396 = vst [vmem:[#allocation2 + $0xa0] sm:$0xff] %v1295_v16  ;;  %397 = vst [vmem:[#allocation2 + $0xa8] sm:$0xff] %v1295_v16 }
  0x34   : > { %398 = vst [vmem:[#allocation2 + $0xb0] sm:$0xff] %v1295_v16  ;;  %399 = vst [vmem:[#allocation2 + $0xb8] sm:$0xff] %v1295_v16 }
  0x35   : > { %400 = vst [vmem:[#allocation2 + $0xc0] sm:$0xff] %v1295_v16  ;;  %401 = vst [vmem:[#allocation2 + $0xc8] sm:$0xff] %v1295_v16 }
  0x36   : > { %402 = vst [vmem:[#allocation2 + $0xd0] sm:$0xff] %v1295_v16  ;;  %403 = vst [vmem:[#allocation2 + $0xd8] sm:$0xff] %v1295_v16 }
  0x37   : > { %404 = vst [vmem:[#allocation2 + $0xe0] sm:$0xff] %v1295_v16  ;;  %405 = vst [vmem:[#allocation2 + $0xe8] sm:$0xff] %v1295_v16 }
  0x38   : > { %406 = vst [vmem:[#allocation2 + $0xf0] sm:$0xff] %v1295_v16  ;;  %407 = vst [vmem:[#allocation2 + $0xf8] sm:$0xff] %v1295_v16 }
  0x39 PF: > { %v1223_v17 = vld [vmem:[%s1385_s7 + $0x4] ss:$8 sps:$4 sm:$0xff]   ;;  %v1225_v18 = vld [vmem:[%s1385_s7] ss:$8 sps:$4 sm:$0xff]   ;;  %v1296_v19 = vmov 0   ;;  %v1251_v38 = vld [vmem:[%s1387_s8 + $0x10] sm:$0xff]  }
  0x3a   : > { %632 = vmatprep.mubr.bf16.mxu0 %v1296_v19  ;;  %672 = vmatprep.mubr.bf16.mxu1 %v1296_v19  ;;  %v1226_v20 = vld [vmem:[%s1385_s7 + $0x14] ss:$8 sps:$4 sm:$0xff]   ;;  %v1228_v21 = vld [vmem:[%s1385_s7 + $0x10] ss:$8 sps:$4 sm:$0xff]   ;;  %v1229_v22 = vld [vmem:[%s1385_s7 + $0x24] ss:$8 sps:$4 sm:$0xff]  }
  0x3b   : > { %600 = vmatprep.subr.bf16.mxu0 %v1223_v17  ;;  %1165 = vmatprep.subr.bf16.mxu1 %v1223_v17  ;;  %v1231_v23 = vld [vmem:[%s1385_s7 + $0x20] ss:$8 sps:$4 sm:$0xff]   ;;  %v1232_v24 = vld [vmem:[%s1385_s7 + $0x34] ss:$8 sps:$4 sm:$0xff]   ;;  %v1234_v25 = vld [vmem:[%s1385_s7 + $0x30] ss:$8 sps:$4 sm:$0xff]  }
  0x3c   : > { %601 = vmatpush1.bf16.msra.mxu0 %v1225_v18  ;;  %1173 = vmatpush1.bf16.msra.mxu1 %v1225_v18  ;;  %v1235_v26 = vld [vmem:[%s1385_s7 + $0x44] ss:$8 sps:$4 sm:$0xff]   ;;  %v1237_v27 = vld [vmem:[%s1385_s7 + $0x40] ss:$8 sps:$4 sm:$0xff]   ;;  %v1238_v28 = vld [vmem:[%s1385_s7 + $0x54] ss:$8 sps:$4 sm:$0xff]  }
  0x3d   : > { %602 = vmatprep.subr.bf16.mxu0 %v1226_v20  ;;  %1166 = vmatprep.subr.bf16.mxu1 %v1226_v20  ;;  %v1240_v29 = vld [vmem:[%s1385_s7 + $0x50] ss:$8 sps:$4 sm:$0xff]   ;;  %v1241_v30 = vld [vmem:[%s1385_s7 + $0x64] ss:$8 sps:$4 sm:$0xff]   ;;  %v1243_v31 = vld [vmem:[%s1385_s7 + $0x60] ss:$8 sps:$4 sm:$0xff]  }
  0x3e   : > { %v1244_v32 = vld [vmem:[%s1385_s7 + $0x74] ss:$8 sps:$4 sm:$0xff]   ;;  %v1246_v33 = vld [vmem:[%s1385_s7 + $0x70] ss:$8 sps:$4 sm:$0xff]   ;;  %v1247_v34 = vld [vmem:[%s1387_s8] sm:$0xff]   ;;  %p1127_p11 = scmp.ne.s32.totalorder %s1285_s14, 8 }
  0x3f   : > { %v1248_v35 = vld [vmem:[%s1387_s8 + $0x20] sm:$0xff]   ;;  %v1249_v36 = vld [vmem:[%s1387_s8 + $0x8] sm:$0xff]   ;;  %v1252_v39 = vld [vmem:[%s1387_s8 + $0x30] sm:$0xff]  }
  0x40   : > { %603 = vmatpush1.bf16.msra.mxu0 %v1228_v21  ;;  %1174 = vmatpush1.bf16.msra.mxu1 %v1228_v21  ;;  %v1250_v37 = vld [vmem:[%s1387_s8 + $0x28] sm:$0xff]   ;;  %v1253_v40 = vld [vmem:[%s1387_s8 + $0x18] sm:$0xff]   ;;  %v408_v42 = vld [vmem:[#allocation2] sm:$0xff] }
  0x41   : > { %604 = vmatprep.subr.bf16.mxu0 %v1229_v22  ;;  %1167 = vmatprep.subr.bf16.mxu1 %v1229_v22  ;;  %v1254_v41 = vld [vmem:[%s1387_s8 + $0x38] sm:$0xff]   ;;  %v424_v43 = vld [vmem:[#allocation2 + $0x80] sm:$0xff]  ;;  %v409_v44 = vld [vmem:[#allocation2 + $0x8] sm:$0xff] }
  0x42   : > { %v425_v45 = vld [vmem:[#allocation2 + $0x88] sm:$0xff]  ;;  %v410_v48 = vld [vmem:[#allocation2 + $0x10] sm:$0xff]  ;;  %v411_v54 = vld [vmem:[#allocation2 + $0x18] sm:$0xff] }
  0x43   : > { %v426_v49 = vld [vmem:[#allocation2 + $0x90] sm:$0xff]  ;;  %v427_v55 = vld [vmem:[#allocation2 + $0x98] sm:$0xff]  ;;  %v412_v2 = vld [vmem:[#allocation2 + $0x20] sm:$0xff] }
  0x44   : > { %605 = vmatpush1.bf16.msra.mxu0 %v1231_v23  ;;  %1175 = vmatpush1.bf16.msra.mxu1 %v1231_v23  ;;  %v428_v3 = vld [vmem:[#allocation2 + $0xa0] sm:$0xff]  ;;  %v413_v4 = vld [vmem:[#allocation2 + $0x28] sm:$0xff]  ;;  %v414_v8 = vld [vmem:[#allocation2 + $0x30] sm:$0xff] }
  0x45   : > { %606 = vmatprep.subr.bf16.mxu0 %v1232_v24  ;;  %1168 = vmatprep.subr.bf16.mxu1 %v1232_v24  ;;  %v429_v5 = vld [vmem:[#allocation2 + $0xa8] sm:$0xff]  ;;  %v430_v9 = vld [vmem:[#allocation2 + $0xb0] sm:$0xff]  ;;  %v415_v14 = vld [vmem:[#allocation2 + $0x38] sm:$0xff] }
  0x46   : > { %v431_v15 = vld [vmem:[#allocation2 + $0xb8] sm:$0xff] }
  0x48   : > { %607 = vmatpush1.bf16.msra.mxu0 %v1234_v25  ;;  %1176 = vmatpush1.bf16.msra.mxu1 %v1234_v25 }
  0x49   : > { %608 = vmatprep.subr.bf16.mxu0 %v1235_v26  ;;  %1169 = vmatprep.subr.bf16.mxu1 %v1235_v26  ;;  %v416_v26 = vld [vmem:[#allocation2 + $0x40] sm:$0xff] }
  0x4c   : > { %609 = vmatpush1.bf16.msra.mxu0 %v1237_v27  ;;  %1177 = vmatpush1.bf16.msra.mxu1 %v1237_v27  ;;  %v432_v27 = vld [vmem:[#allocation2 + $0xc0] sm:$0xff] }
  0x4d   : > { %610 = vmatprep.subr.bf16.mxu0 %v1238_v28  ;;  %1170 = vmatprep.subr.bf16.mxu1 %v1238_v28  ;;  %v417_v28 = vld [vmem:[#allocation2 + $0x48] sm:$0xff] }
  0x50   : > { %611 = vmatpush1.bf16.msra.mxu0 %v1240_v29  ;;  %1178 = vmatpush1.bf16.msra.mxu1 %v1240_v29  ;;  %v433_v29 = vld [vmem:[#allocation2 + $0xc8] sm:$0xff] }
  0x51   : > { %612 = vmatprep.subr.bf16.mxu0 %v1241_v30  ;;  %1171 = vmatprep.subr.bf16.mxu1 %v1241_v30 }
  0x54   : > { %613 = vmatpush1.bf16.msra.mxu0 %v1243_v31  ;;  %1179 = vmatpush1.bf16.msra.mxu1 %v1243_v31 }
  0x55   : > { %614 = vmatprep.subr.bf16.mxu0 %v1244_v32  ;;  %1172 = vmatprep.subr.bf16.mxu1 %v1244_v32  ;;  %v418_v32 = vld [vmem:[#allocation2 + $0x50] sm:$0xff] }
  0x58   : > { %615 = vmatpush1.bf16.msra.mxu0 %v1246_v33  ;;  %1180 = vmatpush1.bf16.msra.mxu1 %v1246_v33  ;;  %v434_v33 = vld [vmem:[#allocation2 + $0xd0] sm:$0xff] }
  0x5b   : > { %633 = vmatmul.mubr.bf16.vlgmr.msra.gmra.mrb[0].mxu0 %v1247_v34  ;;  %673 = vmatmul.mubr.bf16.vlgmr.msra.gmra.mrb[0].mxu1 %v1248_v35 }
  0x5c   : > { %642 = vmatprep.mubr.bf16.mxu0 %v1296_v19  ;;  %682 = vmatprep.mubr.bf16.mxu1 %v1296_v19 }
  0x63   : > { %643 = vmatmul.mubr.bf16.gmra.mrb[4].mxu0 %v1249_v36  ;;  %683 = vmatmul.mubr.bf16.gmra.mrb[4].mxu1 %v1250_v37 }
  0x64   : > { %652 = vmatprep.mubr.bf16.mxu0 %v1296_v19  ;;  %692 = vmatprep.mubr.bf16.mxu1 %v1296_v19 }
  0x6b   : > { %653 = vmatmul.mubr.bf16.gmra.mrb[8].mxu0 %v1251_v38  ;;  %693 = vmatmul.mubr.bf16.gmra.mrb[8].mxu1 %v1252_v39  ;;  %v419_v38 = vld [vmem:[#allocation2 + $0x58] sm:$0xff] }
  0x6c   : > { %662 = vmatprep.mubr.bf16.mxu0 %v1296_v19  ;;  %702 = vmatprep.mubr.bf16.mxu1 %v1296_v19  ;;  %v435_v39 = vld [vmem:[#allocation2 + $0xd8] sm:$0xff] }
  0x73   : > { %663 = vmatmul.mubr.bf16.gmra.mrb[12].mxu0 %v1253_v40  ;;  %703 = vmatmul.mubr.bf16.gmra.mrb[12].mxu1 %v1254_v41 }
 0x12e   : > { %v634_v46 = vpop.f32.mrb[0].mxu0  ;;  %v674_v47 = vpop.f32.mrb[0].mxu1 }
 0x12f   : > { %v713_v50 = vadd.f32 %v634_v46, %v408_v42  ;;  %v729_v51 = vadd.f32 %v674_v47, %v424_v43  ;;  %v636_v52 = vpop.f32.mrb[1].mxu0  ;;  %v676_v53 = vpop.f32.mrb[1].mxu1 }
 0x130   : > { %v714_v56 = vadd.f32 %v636_v52, %v409_v44  ;;  %v730_v57 = vadd.f32 %v676_v53, %v425_v45  ;;  %v638_v58 = vpop.f32.mrb[2].mxu0  ;;  %v678_v59 = vpop.f32.mrb[2].mxu1  ;;  %v421_v52 = vld [vmem:[#allocation2 + $0x68] sm:$0xff] }
 0x131   : > { %745 = vst [vmem:[#allocation2] sm:$0xff] %v713_v50  ;;  %761 = vst [vmem:[#allocation2 + $0x80] sm:$0xff] %v729_v51  ;;  %v715_v60 = vadd.f32 %v638_v58, %v410_v48  ;;  %v731_v61 = vadd.f32 %v678_v59, %v426_v49  ;;  %v640_v62 = vpop.f32.mrb[3].mxu0  ;;  %v680_v63 = vpop.f32.mrb[3].mxu1  ;;  %v420_v50 = vld [vmem:[#allocation2 + $0x60] sm:$0xff]  ;;  %v437_v53 = vld [vmem:[#allocation2 + $0xe8] sm:$0xff] }
 0x132   : > { %746 = vst [vmem:[#allocation2 + $0x8] sm:$0xff] %v714_v56  ;;  %762 = vst [vmem:[#allocation2 + $0x88] sm:$0xff] %v730_v57  ;;  %v716_v0 = vadd.f32 %v640_v62, %v411_v54  ;;  %v732_v1 = vadd.f32 %v680_v63, %v427_v55  ;;  %v436_v51 = vld [vmem:[#allocation2 + $0xe0] sm:$0xff]  ;;  %v422_v56 = vld [vmem:[#allocation2 + $0x70] sm:$0xff] }
 0x133   : > { %747 = vst [vmem:[#allocation2 + $0x10] sm:$0xff] %v715_v60  ;;  %763 = vst [vmem:[#allocation2 + $0x90] sm:$0xff] %v731_v61  ;;  %v438_v57 = vld [vmem:[#allocation2 + $0xf0] sm:$0xff]  ;;  %v423_v62 = vld [vmem:[#allocation2 + $0x78] sm:$0xff] }
 0x134   : > { %748 = vst [vmem:[#allocation2 + $0x18] sm:$0xff] %v716_v0  ;;  %764 = vst [vmem:[#allocation2 + $0x98] sm:$0xff] %v732_v1  ;;  %v439_v63 = vld [vmem:[#allocation2 + $0xf8] sm:$0xff] }
 0x136   : > { %v644_v6 = vpop.f32.mrb[4].mxu0  ;;  %v684_v7 = vpop.f32.mrb[4].mxu1 }
 0x137   : > { %v717_v10 = vadd.f32 %v644_v6, %v412_v2  ;;  %v733_v11 = vadd.f32 %v684_v7, %v428_v3  ;;  %v646_v12 = vpop.f32.mrb[5].mxu0  ;;  %v686_v13 = vpop.f32.mrb[5].mxu1 }
 0x138   : > { %v718_v16 = vadd.f32 %v646_v12, %v413_v4  ;;  %v734_v17 = vadd.f32 %v686_v13, %v429_v5  ;;  %v648_v18 = vpop.f32.mrb[6].mxu0  ;;  %v688_v19 = vpop.f32.mrb[6].mxu1  ;;  %v813_v12 = vld [vmem:[%s1527_s2] sm:$0x3] (!%p1127_p11) }
 0x139   : > { %749 = vst [vmem:[#allocation2 + $0x20] sm:$0xff] %v717_v10  ;;  %765 = vst [vmem:[#allocation2 + $0xa0] sm:$0xff] %v733_v11  ;;  %v719_v20 = vadd.f32 %v648_v18, %v414_v8  ;;  %v735_v21 = vadd.f32 %v688_v19, %v430_v9  ;;  %v650_v22 = vpop.f32.mrb[7].mxu0  ;;  %v690_v23 = vpop.f32.mrb[7].mxu1  ;;  %v815_v10 = vlaneseq (!%p1127_p11)  ;;  %v781_v13 = vld [vmem:[#allocation2] sm:$0xff] (!%p1127_p11) }
 0x13a   : > { %750 = vst [vmem:[#allocation2 + $0x28] sm:$0xff] %v718_v16  ;;  %766 = vst [vmem:[#allocation2 + $0xa8] sm:$0xff] %v734_v17  ;;  %v720_v24 = vadd.f32 %v650_v22, %v415_v14  ;;  %v736_v25 = vadd.f32 %v690_v23, %v431_v15  ;;  %v782_v14 = vld [vmem:[#allocation2 + $0x8] sm:$0xff] (!%p1127_p11)  ;;  %v783_v17 = vld [vmem:[#allocation2 + $0x10] sm:$0xff] (!%p1127_p11) }
 0x13b   : > { %751 = vst [vmem:[#allocation2 + $0x30] sm:$0xff] %v719_v20  ;;  %767 = vst [vmem:[#allocation2 + $0xb0] sm:$0xff] %v735_v21  ;;  %v816_v11 = vshrl.u32 (!%p1127_p11), %v815_v10, 7  ;;  %v784_v18 = vld [vmem:[#allocation2 + $0x18] sm:$0xff] (!%p1127_p11) }
 0x13c   : > { %752 = vst [vmem:[#allocation2 + $0x38] sm:$0xff] %v720_v24  ;;  %768 = vst [vmem:[#allocation2 + $0xb8] sm:$0xff] %v736_v25 }
 0x13d   : > { %v817_v15 = vsub.s32 (!%p1127_p11), 0, %v816_v11  ;;  %v821_v16 = vsub.s32 (!%p1127_p11), 1, %v816_v11 }
 0x13e   : > { %v654_v30 = vpop.f32.mrb[8].mxu0  ;;  %v694_v31 = vpop.f32.mrb[8].mxu1 }
 0x13f   : > { %v721_v34 = vadd.f32 %v654_v30, %v416_v26  ;;  %v737_v35 = vadd.f32 %v694_v31, %v432_v27  ;;  %v656_v36 = vpop.f32.mrb[9].mxu0  ;;  %v696_v37 = vpop.f32.mrb[9].mxu1  ;;  %v1426_v20 = vrot.slane (!%p1127_p11), %v813_v12, %v817_v15  ;;  %v1428_v21 = vrot.slane (!%p1127_p11), %v813_v12, %v821_v16 }
 0x140   : > { %v722_v40 = vadd.f32 %v656_v36, %v417_v28  ;;  %v738_v41 = vadd.f32 %v696_v37, %v433_v29  ;;  %v658_v42 = vpop.f32.mrb[10].mxu0  ;;  %v698_v43 = vpop.f32.mrb[10].mxu1  ;;  %v785_v19 = vld [vmem:[#allocation2 + $0x20] sm:$0xff] (!%p1127_p11) }
 0x141   : > { %753 = vst [vmem:[#allocation2 + $0x40] sm:$0xff] %v721_v34  ;;  %769 = vst [vmem:[#allocation2 + $0xc0] sm:$0xff] %v737_v35  ;;  %v723_v44 = vadd.f32 %v658_v42, %v418_v32  ;;  %v739_v45 = vadd.f32 %v698_v43, %v434_v33  ;;  %v660_v46 = vpop.f32.mrb[11].mxu0  ;;  %v700_v47 = vpop.f32.mrb[11].mxu1  ;;  %v786_v22 = vld [vmem:[#allocation2 + $0x28] sm:$0xff] (!%p1127_p11)  ;;  %v825_v27 = vadd.f32 (!%p1127_p11), %v1426_v20, %v781_v13 }
 0x142   : > { %754 = vst [vmem:[#allocation2 + $0x48] sm:$0xff] %v722_v40  ;;  %770 = vst [vmem:[#allocation2 + $0xc8] sm:$0xff] %v738_v41  ;;  %v724_v48 = vadd.f32 %v660_v46, %v419_v38  ;;  %v740_v49 = vadd.f32 %v700_v47, %v435_v39  ;;  %v787_v23 = vld [vmem:[#allocation2 + $0x30] sm:$0xff] (!%p1127_p11)  ;;  %v826_v28 = vadd.f32 (!%p1127_p11), %v1428_v21, %v782_v14  ;;  %v798_v46 = vld [vmem:[#allocation2 + $0x88] sm:$0xff] (!%p1127_p11) }
 0x143   : > { %755 = vst [vmem:[#allocation2 + $0x50] sm:$0xff] %v723_v44  ;;  %771 = vst [vmem:[#allocation2 + $0xd0] sm:$0xff] %v739_v45  ;;  %v788_v24 = vld [vmem:[#allocation2 + $0x38] sm:$0xff] (!%p1127_p11)  ;;  %v827_v29 = vadd.f32 (!%p1127_p11), %v1426_v20, %v783_v17  ;;  %v828_v30 = vadd.f32 (!%p1127_p11), %v1428_v21, %v784_v18  ;;  %v829_v33 = vadd.f32 (!%p1127_p11), %v1426_v20, %v785_v19  ;;  %v797_v45 = vld [vmem:[#allocation2 + $0x80] sm:$0xff] (!%p1127_p11) }
 0x144   : > { %756 = vst [vmem:[#allocation2 + $0x58] sm:$0xff] %v724_v48  ;;  %772 = vst [vmem:[#allocation2 + $0xd8] sm:$0xff] %v740_v49  ;;  %v830_v34 = vadd.f32 (!%p1127_p11), %v1428_v21, %v786_v22  ;;  %v831_v35 = vadd.f32 (!%p1127_p11), %v1426_v20, %v787_v23  ;;  %v832_v36 = vadd.f32 (!%p1127_p11), %v1428_v21, %v788_v24 }
 0x145   : > { %v1149_v40 = vpack.c.bf16 (!%p1127_p11), %v826_v28, %v825_v27  ;;  %v1150_v41 = vpack.c.bf16 (!%p1127_p11), %v828_v30, %v827_v29 }
 0x146   : > { %v664_v54 = vpop.f32.mrb[12].mxu0  ;;  %v704_v55 = vpop.f32.mrb[12].mxu1  ;;  %780 = sbr.rel (%p1127_p11) target bundleno = 346 (0x15a), region = 81  ;;  %v1151_v47 = vpack.c.bf16 (!%p1127_p11), %v830_v34, %v829_v33  ;;  %v1152_v48 = vpack.c.bf16 (!%p1127_p11), %v832_v36, %v831_v35 }
 0x147   : > { %v725_v58 = vadd.f32 %v664_v54, %v420_v50  ;;  %v741_v59 = vadd.f32 %v704_v55, %v436_v51  ;;  %v666_v60 = vpop.f32.mrb[13].mxu0  ;;  %v706_v61 = vpop.f32.mrb[13].mxu1  ;;  %v799_v51 = vld [vmem:[#allocation2 + $0x90] sm:$0xff] (!%p1127_p11)  ;;  %953 = vst [vmem:[%s1528_s3] sm:$0xff] (!%p1127_p11), %v1149_v40  ;;  %954 = vst [vmem:[%s1528_s3 + $0x8] sm:$0xff] (!%p1127_p11), %v1150_v41 }
 0x148   : > { %v726_v0 = vadd.f32 %v666_v60, %v421_v52  ;;  %v742_v1 = vadd.f32 %v706_v61, %v437_v53  ;;  %v668_v2 = vpop.f32.mrb[14].mxu0  ;;  %v708_v3 = vpop.f32.mrb[14].mxu1  ;;  %v789_v25 = vld [vmem:[#allocation2 + $0x40] sm:$0xff] (!%p1127_p11)  ;;  %v800_v52 = vld [vmem:[#allocation2 + $0x98] sm:$0xff] (!%p1127_p11)  ;;  %955 = vst [vmem:[%s1528_s3 + $0x10] sm:$0xff] (!%p1127_p11), %v1151_v47  ;;  %956 = vst [vmem:[%s1528_s3 + $0x18] sm:$0xff] (!%p1127_p11), %v1152_v48 }
 0x149   : > { %757 = vst [vmem:[#allocation2 + $0x60] sm:$0xff] %v725_v58  ;;  %773 = vst [vmem:[#allocation2 + $0xe0] sm:$0xff] %v741_v59  ;;  %v727_v4 = vadd.f32 %v668_v2, %v422_v56  ;;  %v743_v5 = vadd.f32 %v708_v3, %v438_v57  ;;  %v670_v6 = vpop.f32.mrb[15].mxu0  ;;  %v710_v7 = vpop.f32.mrb[15].mxu1  ;;  %v790_v26 = vld [vmem:[#allocation2 + $0x48] sm:$0xff] (!%p1127_p11)  ;;  %v833_v42 = vadd.f32 (!%p1127_p11), %v1426_v20, %v789_v25  ;;  %v801_v53 = vld [vmem:[#allocation2 + $0xa0] sm:$0xff] (!%p1127_p11) }
 0x14a   : > { %758 = vst [vmem:[#allocation2 + $0x68] sm:$0xff] %v726_v0  ;;  %774 = vst [vmem:[#allocation2 + $0xe8] sm:$0xff] %v742_v1  ;;  %v728_v8 = vadd.f32 %v670_v6, %v423_v62  ;;  %v744_v9 = vadd.f32 %v710_v7, %v439_v63  ;;  %v791_v31 = vld [vmem:[#allocation2 + $0x50] sm:$0xff] (!%p1127_p11)  ;;  %v834_v43 = vadd.f32 (!%p1127_p11), %v1428_v21, %v790_v26  ;;  %v802_v58 = vld [vmem:[#allocation2 + $0xa8] sm:$0xff] (!%p1127_p11) }
 0x14b   : > { %759 = vst [vmem:[#allocation2 + $0x70] sm:$0xff] %v727_v4  ;;  %775 = vst [vmem:[#allocation2 + $0xf0] sm:$0xff] %v743_v5  ;;  %v792_v32 = vld [vmem:[#allocation2 + $0x58] sm:$0xff] (!%p1127_p11)  ;;  %v835_v49 = vadd.f32 (!%p1127_p11), %v1426_v20, %v791_v31  ;;  %v803_v59 = vld [vmem:[#allocation2 + $0xb0] sm:$0xff] (!%p1127_p11)  ;;  %v841_v62 = vadd.f32 (!%p1127_p11), %v1426_v20, %v797_v45  ;;  %v842_v63 = vadd.f32 (!%p1127_p11), %v1428_v21, %v798_v46 }
 0x14c   : > { %760 = vst [vmem:[#allocation2 + $0x78] sm:$0xff] %v728_v8  ;;  %776 = vst [vmem:[#allocation2 + $0xf8] sm:$0xff] %v744_v9  ;;  %v836_v50 = vadd.f32 (!%p1127_p11), %v1428_v21, %v792_v32  ;;  %v1153_v54 = vpack.c.bf16 (!%p1127_p11), %v834_v43, %v833_v42  ;;  %v804_v0 = vld [vmem:[#allocation2 + $0xb8] sm:$0xff] (!%p1127_p11)  ;;  %v805_v1 = vld [vmem:[#allocation2 + $0xc0] sm:$0xff] (!%p1127_p11)  ;;  %v843_v4 = vadd.f32 (!%p1127_p11), %v1426_v20, %v799_v51 }
 0x14d   : > { %v806_v2 = vld [vmem:[#allocation2 + $0xc8] sm:$0xff]  ;;  %v844_v5 = vadd.f32 %v1428_v21, %v800_v52  ;;  %v845_v6 = vadd.f32 %v1426_v20, %v801_v53  ;;  %v807_v7 = vld [vmem:[#allocation2 + $0xd0] sm:$0xff]  ;;  %v808_v8 = vld [vmem:[#allocation2 + $0xd8] sm:$0xff]  ;;  %v1157_v11 = vpack.c.bf16 %v842_v63, %v841_v62  ;;  %v846_v12 = vadd.f32 %v1428_v21, %v802_v58 }
 0x14e   : > { %v1154_v60 = vpack.c.bf16 %v836_v50, %v835_v49  ;;  %957 = vst [vmem:[%s1528_s3 + $0x20] sm:$0xff] %v1153_v54  ;;  %v847_v13 = vadd.f32 %v1426_v20, %v803_v59  ;;  %v848_v17 = vadd.f32 %v1428_v21, %v804_v0  ;;  %v849_v18 = vadd.f32 %v1426_v20, %v805_v1 }
 0x14f   : > { %v1158_v16 = vpack.c.bf16 %v844_v5, %v843_v4  ;;  %v850_v19 = vadd.f32 %v1428_v21, %v806_v2  ;;  %961 = vst [vmem:[%s1528_s3 + $0x40] sm:$0xff] %v1157_v11  ;;  %v1159_v23 = vpack.c.bf16 %v846_v12, %v845_v6  ;;  %v851_v24 = vadd.f32 %v1426_v20, %v807_v7 }
 0x150   : > { %v793_v37 = vld [vmem:[#allocation2 + $0x60] sm:$0xff]  ;;  %958 = vst [vmem:[%s1528_s3 + $0x28] sm:$0xff] %v1154_v60  ;;  %v852_v25 = vadd.f32 %v1428_v21, %v808_v8  ;;  %v1160_v27 = vpack.c.bf16 %v848_v17, %v847_v13 }
 0x151   : > { %v794_v38 = vld [vmem:[#allocation2 + $0x68] sm:$0xff]  ;;  %v837_v55 = vadd.f32 %v1426_v20, %v793_v37  ;;  %v809_v9 = vld [vmem:[#allocation2 + $0xe0] sm:$0xff]  ;;  %962 = vst [vmem:[%s1528_s3 + $0x48] sm:$0xff] %v1158_v16  ;;  %v1161_v28 = vpack.c.bf16 %v850_v19, %v849_v18  ;;  %963 = vst [vmem:[%s1528_s3 + $0x50] sm:$0xff] %v1159_v23 }
 0x152   : > { %v795_v39 = vld [vmem:[#allocation2 + $0x70] sm:$0xff]  ;;  %v838_v56 = vadd.f32 %v1428_v21, %v794_v38  ;;  %v810_v14 = vld [vmem:[#allocation2 + $0xe8] sm:$0xff]  ;;  %v853_v26 = vadd.f32 %v1426_v20, %v809_v9  ;;  %v1162_v31 = vpack.c.bf16 %v852_v25, %v851_v24  ;;  %964 = vst [vmem:[%s1528_s3 + $0x58] sm:$0xff] %v1160_v27 }
 0x153   : > { %v796_v44 = vld [vmem:[#allocation2 + $0x78] sm:$0xff]  ;;  %v839_v57 = vadd.f32 %v1426_v20, %v795_v39  ;;  %v811_v15 = vld [vmem:[#allocation2 + $0xf0] sm:$0xff]  ;;  %v854_v29 = vadd.f32 %v1428_v21, %v810_v14  ;;  %965 = vst [vmem:[%s1528_s3 + $0x60] sm:$0xff] %v1161_v28 }
 0x154   : > { %v840_v61 = vadd.f32 %v1428_v21, %v796_v44  ;;  %v1155_v3 = vpack.c.bf16 %v838_v56, %v837_v55  ;;  %v812_v22 = vld [vmem:[#allocation2 + $0xf8] sm:$0xff]  ;;  %v855_v30 = vadd.f32 %v1426_v20, %v811_v15  ;;  %966 = vst [vmem:[%s1528_s3 + $0x68] sm:$0xff] %v1162_v31 }
 0x155   : > { %v856_v32 = vadd.f32 %v1428_v21, %v812_v22  ;;  %v1163_v33 = vpack.c.bf16 %v854_v29, %v853_v26 }
 0x156   : > { %v1156_v10 = vpack.c.bf16 %v840_v61, %v839_v57  ;;  %959 = vst [vmem:[%s1528_s3 + $0x30] sm:$0xff] %v1155_v3 }
 0x157   : > { %v1164_v20 = vpack.c.bf16 %v856_v32, %v855_v30  ;;  %967 = vst [vmem:[%s1528_s3 + $0x70] sm:$0xff] %v1163_v33 }
 0x158   : > { %960 = vst [vmem:[%s1528_s3 + $0x38] sm:$0xff] %v1156_v10 }
 0x159   : > { %968 = vst [vmem:[%s1528_s3 + $0x78] sm:$0xff] %v1164_v20 }
 0x15a PF: > { %s13_s16 = sadd.s32 1, %s1293_s16   ;;  %s1529_s12 = smov %s1281_s13 }
 0x15b   : > { %p10_p12 = scmp.ge.s32.totalorder %s13_s16, 11   ;;  %s1530_s13 = smov %s1352_s20 }
 0x15c   : > { %s1531_s14 = smov %s1289_s15  ;;  %s1532_s15 = smov %s1534_s17 }
 0x15d   :  { %12 = sbr.rel (!%p10_p12) target bundleno = 3 (0x3), region = 122 }

// kernel: _lambda_.18
= control target key start
LH: loop header
LB: loop body
LE: loop exit
PB: predicated region body
PF: predicated region fallthrough
CT: control target
= control target key end

     0   :  { %s1552_s12 = smov 0   ;;  %s1554_s13 = smov 0   ;;  %s1776_s0 = inlined_call_operand.vmem [shape: bf16[128,2304], index: 0, kind: input, shape index: {}]   ;;  %s1777_s1 = inlined_call_operand.vmem [shape: bf16[2304,256], index: 1, kind: input, shape index: {}]   ;;  %s1778_s2 = inlined_call_operand.vmem [shape: f32[1,256], index: 2, kind: input, shape index: {}]   ;;  %s1779_s3 = inlined_call_operand.vmem [shape: bf16[128,256], index: 3, kind: output, shape index: {}]  }
   0x1   :  { %s1556_s14 = smov 0   ;;  %s1558_s15 = smov 0  }
   0x2   :  { %s1560_s16 = smov 0  }
   0x3 LB: > { %s25_s17 = sadd.s32 1, %s1525_s15  ;;  %p48_p1 = scmp.ne.s32.totalorder %s1517_s13, %s1513_s12  ;;  %s1529_s16 = sphi %s1560_s16, %s13_s16   ;;  %s1525_s15 = sphi %s1558_s15, %s1783_s15   ;;  %s1521_s14 = sphi %s1556_s14, %s1782_s14   ;;  %s1517_s13 = sphi %s1554_s13, %s1781_s13   ;;  %s1513_s12 = sphi %s1552_s12, %s1780_s12  }
   0x4   : > { %p26_p0 = scmp.ge.s32.totalorder %s25_s17, 9  ;;  %p49_p2 = scmp.eq.s32.totalorder %s1529_s16, 0 }
   0x5   : > { %s41_s19 = sadd.s32 1, %s1517_s13  ;;  %p1249_p5 = scmp.ge.s32.totalorder %s1529_s16, 9 }
   0x6   : > { %s1785_s17 = smov (%p26_p0, %s25_s17), 0  ;;  %p50_p3 = por %p49_p2, %p48_p1 }
   0x7   : > { %s37_s18 = ssub.s32 %s1525_s15, %s1785_s17  ;;  %164 = sbr.rel (%p1249_p5) target bundleno = 26 (0x1a), region = 20 }
   0x8   : > { %p39_p4 = scmp.eq.s32.totalorder %s37_s18, 0 }
   0xa   : > { %s1587_s20 = scalar_select %p39_p4, %s1517_s13, %s41_s19  }
   0xe   : > { %167 = sbr.rel (!%p50_p3) target bundleno = 26 (0x1a), region = 24  ;;  %s169_s21 = sand.u32 (%p50_p3), 1, %s1517_s13  }
   0xf   : > { %s1328_s22 = sshll.u32 (%p50_p3), %s1525_s15, 3  ;;  %s1250_s23 = sshll.u32 (%p50_p3), %s169_s21, 7 }
  0x10   : > { %s1595_s26 = scalar_lea.vmem (%p50_p3), %s1776_s0, %s1328_s22  ;;  %s171_s27 = scalar_lea.vmem (%p50_p3), [#allocation3], %s1250_s23 }
  0x11   : > { %v235_v0 = vld [vmem:[%s1595_s26] sm:$0xff] (%p50_p3)  ;;  %v237_v1 = vld [vmem:[%s1595_s26 + $0x48] sm:$0xff] (%p50_p3)  ;;  %v239_v2 = vld [vmem:[%s1595_s26 + $0x90] sm:$0xff] (%p50_p3) }
  0x12   : > { %236 = vst [vmem:[%s171_s27] sm:$0xff] (%p50_p3), %v235_v0  ;;  %238 = vst [vmem:[%s171_s27 + $0x8] sm:$0xff] (%p50_p3), %v237_v1  ;;  %v241_v3 = vld [vmem:[%s1595_s26 + $0xd8] sm:$0xff] (%p50_p3)  ;;  %v243_v4 = vld [vmem:[%s1595_s26 + $0x120] sm:$0xff] (%p50_p3) }
  0x13   : > { %240 = vst [vmem:[%s171_s27 + $0x10] sm:$0xff] (%p50_p3), %v239_v2  ;;  %v245_v5 = vld [vmem:[%s1595_s26 + $0x168] sm:$0xff] (%p50_p3)  ;;  %242 = vst [vmem:[%s171_s27 + $0x18] sm:$0xff] (%p50_p3), %v241_v3  ;;  %v247_v6 = vld [vmem:[%s1595_s26 + $0x1b0] sm:$0xff] (%p50_p3) }
  0x14   : > { %244 = vst [vmem:[%s171_s27 + $0x20] sm:$0xff] (%p50_p3), %v243_v4  ;;  %246 = vst [vmem:[%s171_s27 + $0x28] sm:$0xff] (%p50_p3), %v245_v5  ;;  %v249_v7 = vld [vmem:[%s1595_s26 + $0x1f8] sm:$0xff] (%p50_p3)  ;;  %v251_v8 = vld [vmem:[%s1595_s26 + $0x240] sm:$0xff] (%p50_p3) }
  0x15   : > { %248 = vst [vmem:[%s171_s27 + $0x30] sm:$0xff] %v247_v6  ;;  %250 = vst [vmem:[%s171_s27 + $0x38] sm:$0xff] %v249_v7  ;;  %v253_v9 = vld [vmem:[%s1595_s26 + $0x288] sm:$0xff]  ;;  %v255_v10 = vld [vmem:[%s1595_s26 + $0x2d0] sm:$0xff] }
  0x16   : > { %252 = vst [vmem:[%s171_s27 + $0x40] sm:$0xff] %v251_v8  ;;  %v257_v11 = vld [vmem:[%s1595_s26 + $0x318] sm:$0xff]  ;;  %254 = vst [vmem:[%s171_s27 + $0x48] sm:$0xff] %v253_v9  ;;  %v259_v12 = vld [vmem:[%s1595_s26 + $0x360] sm:$0xff] }
  0x17   : > { %256 = vst [vmem:[%s171_s27 + $0x50] sm:$0xff] %v255_v10  ;;  %258 = vst [vmem:[%s171_s27 + $0x58] sm:$0xff] %v257_v11  ;;  %v261_v13 = vld [vmem:[%s1595_s26 + $0x3a8] sm:$0xff]  ;;  %v263_v14 = vld [vmem:[%s1595_s26 + $0x3f0] sm:$0xff] }
  0x18   : > { %260 = vst [vmem:[%s171_s27 + $0x60] sm:$0xff] %v259_v12  ;;  %262 = vst [vmem:[%s171_s27 + $0x68] sm:$0xff] %v261_v13  ;;  %v265_v15 = vld [vmem:[%s1595_s26 + $0x438] sm:$0xff] }
  0x19   : > { %264 = vst [vmem:[%s171_s27 + $0x70] sm:$0xff] %v263_v14  ;;  %266 = vst [vmem:[%s171_s27 + $0x78] sm:$0xff] %v265_v15 }
  0x1a PF: > { %p1253_p6 = scmp.ge.s32.totalorder %s1529_s16, 1  ;;  %p286_p7 = scmp.lt.s32.totalorder %s1529_s16, 10 }
  0x1c   : > { %p287_p8 = pnand %p1253_p6, %p286_p7 }
  0x1d   : > { %s293_s28 = sand.u32 (!%p287_p8), 1, %s1513_s12   ;;  %s1255_s29 = sshll.u32 (!%p287_p8), %s1521_s14, 5 }
  0x1e   : > { %290 = sbr.rel (%p287_p8) target bundleno = 378 (0x17a), region = 66  ;;  %s1254_s30 = sshll.u32 (!%p287_p8), %s293_s28, 7 }
  0x1f   : > { %p339_p9 = scmp.lt.s32.totalorder (!%p287_p8), %s1255_s29, 287  ;;  %s1622_s8 = scalar_lea.vmem (!%p287_p8), [#allocation3], %s1254_s30 }
  0x20   : > { %p1258_p10 = scmp.ne.s32.totalorder (!%p287_p8), %s1521_s14, 0 }
  0x25   : > { %s1787_s29 = smov (!%p339_p9, %s1255_s29), 287  ;;  %369 = sbr.rel (%p1258_p10) target bundleno = 55 (0x37), region = 74 }
  0x26   : > { %s1329_s4 = sshll.u32 %s1787_s29, 3  ;;  %v1531_v16 = vmov (!%p1258_p10), 0.0  }
  0x27   : > { %s1620_s7 = scalar_lea.vmem %s1777_s1, %s1329_s4  ;;  %370 = vst [vmem:[#allocation2] sm:$0xff] (!%p1258_p10), %v1531_v16  ;;  %371 = vst [vmem:[#allocation2 + $0x8] sm:$0xff] (!%p1258_p10), %v1531_v16 }
  0x28   : > { %372 = vst [vmem:[#allocation2 + $0x10] sm:$0xff] (!%p1258_p10), %v1531_v16  ;;  %373 = vst [vmem:[#allocation2 + $0x18] sm:$0xff] (!%p1258_p10), %v1531_v16 }
  0x29   : > { %374 = vst [vmem:[#allocation2 + $0x20] sm:$0xff] (!%p1258_p10), %v1531_v16  ;;  %375 = vst [vmem:[#allocation2 + $0x28] sm:$0xff] (!%p1258_p10), %v1531_v16 }
  0x2a   : > { %376 = vst [vmem:[#allocation2 + $0x30] sm:$0xff] (!%p1258_p10), %v1531_v16  ;;  %377 = vst [vmem:[#allocation2 + $0x38] sm:$0xff] (!%p1258_p10), %v1531_v16 }
  0x2b   : > { %378 = vst [vmem:[#allocation2 + $0x40] sm:$0xff] (!%p1258_p10), %v1531_v16  ;;  %379 = vst [vmem:[#allocation2 + $0x48] sm:$0xff] (!%p1258_p10), %v1531_v16 }
  0x2c   : > { %380 = vst [vmem:[#allocation2 + $0x50] sm:$0xff] %v1531_v16  ;;  %381 = vst [vmem:[#allocation2 + $0x58] sm:$0xff] %v1531_v16 }
  0x2d   : > { %382 = vst [vmem:[#allocation2 + $0x60] sm:$0xff] %v1531_v16  ;;  %383 = vst [vmem:[#allocation2 + $0x68] sm:$0xff] %v1531_v16 }
  0x2e   : > { %384 = vst [vmem:[#allocation2 + $0x70] sm:$0xff] %v1531_v16  ;;  %385 = vst [vmem:[#allocation2 + $0x78] sm:$0xff] %v1531_v16 }
  0x2f   : > { %386 = vst [vmem:[#allocation2 + $0x80] sm:$0xff] %v1531_v16  ;;  %387 = vst [vmem:[#allocation2 + $0x88] sm:$0xff] %v1531_v16 }
  0x30   : > { %388 = vst [vmem:[#allocation2 + $0x90] sm:$0xff] %v1531_v16  ;;  %389 = vst [vmem:[#allocation2 + $0x98] sm:$0xff] %v1531_v16 }
  0x31   : > { %390 = vst [vmem:[#allocation2 + $0xa0] sm:$0xff] %v1531_v16  ;;  %391 = vst [vmem:[#allocation2 + $0xa8] sm:$0xff] %v1531_v16 }
  0x32   : > { %392 = vst [vmem:[#allocation2 + $0xb0] sm:$0xff] %v1531_v16  ;;  %393 = vst [vmem:[#allocation2 + $0xb8] sm:$0xff] %v1531_v16 }
  0x33   : > { %394 = vst [vmem:[#allocation2 + $0xc0] sm:$0xff] %v1531_v16  ;;  %395 = vst [vmem:[#allocation2 + $0xc8] sm:$0xff] %v1531_v16 }
  0x34   : > { %396 = vst [vmem:[#allocation2 + $0xd0] sm:$0xff] %v1531_v16  ;;  %397 = vst [vmem:[#allocation2 + $0xd8] sm:$0xff] %v1531_v16 }
  0x35   : > { %398 = vst [vmem:[#allocation2 + $0xe0] sm:$0xff] %v1531_v16  ;;  %399 = vst [vmem:[#allocation2 + $0xe8] sm:$0xff] %v1531_v16 }
  0x36   : > { %400 = vst [vmem:[#allocation2 + $0xf0] sm:$0xff] %v1531_v16  ;;  %401 = vst [vmem:[#allocation2 + $0xf8] sm:$0xff] %v1531_v16 }
  0x37 PF: > { %v1419_v17 = vld [vmem:[%s1620_s7 + $0x4] ss:$8 sps:$4 sm:$0xff]   ;;  %v1421_v18 = vld [vmem:[%s1620_s7] ss:$8 sps:$4 sm:$0xff]   ;;  %v1422_v19 = vld [vmem:[%s1620_s7 + $0x14] ss:$8 sps:$4 sm:$0xff]  }
  0x38   : > { %722 = vmatprep.subr.bf16.mxu0 %v1419_v17  ;;  %1346 = vmatprep.subr.bf16.mxu1 %v1419_v17  ;;  %v1424_v20 = vld [vmem:[%s1620_s7 + $0x10] ss:$8 sps:$4 sm:$0xff]   ;;  %v1425_v21 = vld [vmem:[%s1620_s7 + $0x24] ss:$8 sps:$4 sm:$0xff]   ;;  %v1427_v22 = vld [vmem:[%s1620_s7 + $0x20] ss:$8 sps:$4 sm:$0xff]  }
  0x39   : > { %723 = vmatpush1.bf16.msra.mxu0 %v1421_v18  ;;  %1362 = vmatpush1.bf16.msra.mxu1 %v1421_v18  ;;  %v1428_v23 = vld [vmem:[%s1620_s7 + $0x34] ss:$8 sps:$4 sm:$0xff]   ;;  %v1430_v24 = vld [vmem:[%s1620_s7 + $0x30] ss:$8 sps:$4 sm:$0xff]   ;;  %v1431_v25 = vld [vmem:[%s1620_s7 + $0x44] ss:$8 sps:$4 sm:$0xff]  }
  0x3a   : > { %724 = vmatprep.subr.bf16.mxu0 %v1422_v19  ;;  %1347 = vmatprep.subr.bf16.mxu1 %v1422_v19  ;;  %v1433_v26 = vld [vmem:[%s1620_s7 + $0x40] ss:$8 sps:$4 sm:$0xff]   ;;  %v1434_v27 = vld [vmem:[%s1620_s7 + $0x54] ss:$8 sps:$4 sm:$0xff]   ;;  %v1436_v28 = vld [vmem:[%s1620_s7 + $0x50] ss:$8 sps:$4 sm:$0xff]  }
  0x3b   : > { %v1437_v29 = vld [vmem:[%s1620_s7 + $0x64] ss:$8 sps:$4 sm:$0xff]   ;;  %v1439_v31 = vld [vmem:[%s1620_s7 + $0x60] ss:$8 sps:$4 sm:$0xff]   ;;  %v1440_v33 = vld [vmem:[%s1620_s7 + $0x74] ss:$8 sps:$4 sm:$0xff]  }
  0x3c   : > { %v1469_v30 = vld [vmem:[%s1622_s8 + $0x4] ss:$8 sps:$4 sm:$0xff]   ;;  %v1442_v34 = vld [vmem:[%s1620_s7 + $0x70] ss:$8 sps:$4 sm:$0xff]   ;;  %v1445_v36 = vld [vmem:[%s1620_s7 + $0x80] ss:$8 sps:$4 sm:$0xff]  }
  0x3d   : > { %725 = vmatpush1.bf16.msra.mxu0 %v1424_v20  ;;  %1363 = vmatpush1.bf16.msra.mxu1 %v1424_v20  ;;  %v1472_v32 = vld [vmem:[%s1622_s8 + $0x44] ss:$8 sps:$4 sm:$0xff]   ;;  %v1446_v37 = vld [vmem:[%s1620_s7 + $0x94] ss:$8 sps:$4 sm:$0xff]   ;;  %v1448_v38 = vld [vmem:[%s1620_s7 + $0x90] ss:$8 sps:$4 sm:$0xff]  }
  0x3e   : > { %726 = vmatprep.subr.bf16.mxu0 %v1425_v21  ;;  %1348 = vmatprep.subr.bf16.mxu1 %v1425_v21  ;;  %v1443_v35 = vld [vmem:[%s1620_s7 + $0x84] ss:$8 sps:$4 sm:$0xff]   ;;  %v1451_v40 = vld [vmem:[%s1620_s7 + $0xa0] ss:$8 sps:$4 sm:$0xff]   ;;  %v1452_v41 = vld [vmem:[%s1620_s7 + $0xb4] ss:$8 sps:$4 sm:$0xff]  }
  0x3f   : > { %754 = vmatprep.mubr.bf16.mxu0 %v1469_v30  ;;  %794 = vmatprep.mubr.bf16.mxu1 %v1472_v32  ;;  %v1449_v39 = vld [vmem:[%s1620_s7 + $0xa4] ss:$8 sps:$4 sm:$0xff]   ;;  %v1454_v42 = vld [vmem:[%s1620_s7 + $0xb0] ss:$8 sps:$4 sm:$0xff]   ;;  %v1457_v44 = vld [vmem:[%s1620_s7 + $0xc0] ss:$8 sps:$4 sm:$0xff]  }
  0x40   : > { %v1455_v43 = vld [vmem:[%s1620_s7 + $0xc4] ss:$8 sps:$4 sm:$0xff]   ;;  %v1458_v45 = vld [vmem:[%s1620_s7 + $0xd4] ss:$8 sps:$4 sm:$0xff]   ;;  %v1460_v46 = vld [vmem:[%s1620_s7 + $0xd0] ss:$8 sps:$4 sm:$0xff]  }
  0x41   : > { %727 = vmatpush1.bf16.msra.mxu0 %v1427_v22  ;;  %1364 = vmatpush1.bf16.msra.mxu1 %v1427_v22  ;;  %v1461_v47 = vld [vmem:[%s1620_s7 + $0xe4] ss:$8 sps:$4 sm:$0xff]   ;;  %v1463_v48 = vld [vmem:[%s1620_s7 + $0xe0] ss:$8 sps:$4 sm:$0xff]   ;;  %v1464_v49 = vld [vmem:[%s1620_s7 + $0xf4] ss:$8 sps:$4 sm:$0xff]  }
  0x42   : > { %728 = vmatprep.subr.bf16.mxu0 %v1428_v23  ;;  %1349 = vmatprep.subr.bf16.mxu1 %v1428_v23  ;;  %v1466_v50 = vld [vmem:[%s1620_s7 + $0xf0] ss:$8 sps:$4 sm:$0xff]   ;;  %v1467_v51 = vld [vmem:[%s1622_s8] ss:$8 sps:$4 sm:$0xff]   ;;  %v1473_v53 = vld [vmem:[%s1622_s8 + $0x14] ss:$8 sps:$4 sm:$0xff]  }
  0x43   : > { %v1470_v52 = vld [vmem:[%s1622_s8 + $0x40] ss:$8 sps:$4 sm:$0xff]   ;;  %v1475_v54 = vld [vmem:[%s1622_s8 + $0x54] ss:$8 sps:$4 sm:$0xff]   ;;  %v1477_v55 = vld [vmem:[%s1622_s8 + $0x10] ss:$8 sps:$4 sm:$0xff]  }
  0x44   : > { %v1478_v56 = vld [vmem:[%s1622_s8 + $0x50] ss:$8 sps:$4 sm:$0xff]   ;;  %v1479_v57 = vld [vmem:[%s1622_s8 + $0x24] ss:$8 sps:$4 sm:$0xff]   ;;  %v1483_v59 = vld [vmem:[%s1622_s8 + $0x20] ss:$8 sps:$4 sm:$0xff]  }
  0x45   : > { %729 = vmatpush1.bf16.msra.mxu0 %v1430_v24  ;;  %1365 = vmatpush1.bf16.msra.mxu1 %v1430_v24  ;;  %v1481_v58 = vld [vmem:[%s1622_s8 + $0x64] ss:$8 sps:$4 sm:$0xff]   ;;  %v1484_v60 = vld [vmem:[%s1622_s8 + $0x60] ss:$8 sps:$4 sm:$0xff]   ;;  %v1485_v61 = vld [vmem:[%s1622_s8 + $0x34] ss:$8 sps:$4 sm:$0xff]  }
  0x46   : > { %730 = vmatprep.subr.bf16.mxu0 %v1431_v25  ;;  %1350 = vmatprep.subr.bf16.mxu1 %v1431_v25  ;;  %v1487_v62 = vld [vmem:[%s1622_s8 + $0x74] ss:$8 sps:$4 sm:$0xff]   ;;  %v1489_v63 = vld [vmem:[%s1622_s8 + $0x30] ss:$8 sps:$4 sm:$0xff]   ;;  %v402_v1 = vld [vmem:[#allocation2] sm:$0xff]  ;;  %p1307_p11 = scmp.ne.s32.totalorder %s1521_s14, 8 }
  0x47   : > { %v1490_v0 = vld [vmem:[%s1622_s8 + $0x70] ss:$8 sps:$4 sm:$0xff]   ;;  %v418_v2 = vld [vmem:[#allocation2 + $0x80] sm:$0xff]  ;;  %v403_v3 = vld [vmem:[#allocation2 + $0x8] sm:$0xff] }
  0x48   : > { %v419_v4 = vld [vmem:[#allocation2 + $0x88] sm:$0xff]  ;;  %v404_v7 = vld [vmem:[#allocation2 + $0x10] sm:$0xff]  ;;  %v405_v13 = vld [vmem:[#allocation2 + $0x18] sm:$0xff] }
  0x49   : > { %731 = vmatpush1.bf16.msra.mxu0 %v1433_v26  ;;  %1366 = vmatpush1.bf16.msra.mxu1 %v1433_v26  ;;  %v420_v8 = vld [vmem:[#allocation2 + $0x90] sm:$0xff]  ;;  %v421_v14 = vld [vmem:[#allocation2 + $0x98] sm:$0xff]  ;;  %v406_v25 = vld [vmem:[#allocation2 + $0x20] sm:$0xff] }
  0x4a   : > { %732 = vmatprep.subr.bf16.mxu0 %v1434_v27  ;;  %1351 = vmatprep.subr.bf16.mxu1 %v1434_v27  ;;  %v422_v26 = vld [vmem:[#allocation2 + $0xa0] sm:$0xff]  ;;  %v407_v27 = vld [vmem:[#allocation2 + $0x28] sm:$0xff]  ;;  %v424_v32 = vld [vmem:[#allocation2 + $0xb0] sm:$0xff] }
  0x4d   : > { %733 = vmatpush1.bf16.msra.mxu0 %v1436_v28  ;;  %1367 = vmatpush1.bf16.msra.mxu1 %v1436_v28  ;;  %v423_v28 = vld [vmem:[#allocation2 + $0xa8] sm:$0xff] }
  0x4e   : > { %734 = vmatprep.subr.bf16.mxu0 %v1437_v29  ;;  %1352 = vmatprep.subr.bf16.mxu1 %v1437_v29 }
  0x51   : > { %735 = vmatpush1.bf16.msra.mxu0 %v1439_v31  ;;  %1368 = vmatpush1.bf16.msra.mxu1 %v1439_v31  ;;  %v408_v31 = vld [vmem:[#allocation2 + $0x30] sm:$0xff] }
  0x52   : > { %736 = vmatprep.subr.bf16.mxu0 %v1440_v33  ;;  %1353 = vmatprep.subr.bf16.mxu1 %v1440_v33 }
  0x55   : > { %737 = vmatpush1.bf16.msra.mxu0 %v1442_v34  ;;  %1369 = vmatpush1.bf16.msra.mxu1 %v1442_v34 }
  0x56   : > { %738 = vmatprep.subr.bf16.mxu0 %v1443_v35  ;;  %1354 = vmatprep.subr.bf16.mxu1 %v1443_v35 }
  0x59   : > { %739 = vmatpush1.bf16.msra.mxu0 %v1445_v36  ;;  %1370 = vmatpush1.bf16.msra.mxu1 %v1445_v36 }
  0x5a   : > { %740 = vmatprep.subr.bf16.mxu0 %v1446_v37  ;;  %1355 = vmatprep.subr.bf16.mxu1 %v1446_v37  ;;  %v409_v37 = vld [vmem:[#allocation2 + $0x38] sm:$0xff] }
  0x5d   : > { %741 = vmatpush1.bf16.msra.mxu0 %v1448_v38  ;;  %1371 = vmatpush1.bf16.msra.mxu1 %v1448_v38  ;;  %v425_v38 = vld [vmem:[#allocation2 + $0xb8] sm:$0xff] }
  0x5e   : > { %742 = vmatprep.subr.bf16.mxu0 %v1449_v39  ;;  %1356 = vmatprep.subr.bf16.mxu1 %v1449_v39 }
  0x61   : > { %743 = vmatpush1.bf16.msra.mxu0 %v1451_v40  ;;  %1372 = vmatpush1.bf16.msra.mxu1 %v1451_v40 }
  0x62   : > { %744 = vmatprep.subr.bf16.mxu0 %v1452_v41  ;;  %1357 = vmatprep.subr.bf16.mxu1 %v1452_v41 }
  0x65   : > { %745 = vmatpush1.bf16.msra.mxu0 %v1454_v42  ;;  %1373 = vmatpush1.bf16.msra.mxu1 %v1454_v42 }
  0x66   : > { %746 = vmatprep.subr.bf16.mxu0 %v1455_v43  ;;  %1358 = vmatprep.subr.bf16.mxu1 %v1455_v43 }
  0x69   : > { %747 = vmatpush1.bf16.msra.mxu0 %v1457_v44  ;;  %1374 = vmatpush1.bf16.msra.mxu1 %v1457_v44 }
  0x6a   : > { %748 = vmatprep.subr.bf16.mxu0 %v1458_v45  ;;  %1359 = vmatprep.subr.bf16.mxu1 %v1458_v45 }
  0x6d   : > { %749 = vmatpush1.bf16.msra.mxu0 %v1460_v46  ;;  %1375 = vmatpush1.bf16.msra.mxu1 %v1460_v46 }
  0x6e   : > { %750 = vmatprep.subr.bf16.mxu0 %v1461_v47  ;;  %1360 = vmatprep.subr.bf16.mxu1 %v1461_v47 }
  0x71   : > { %751 = vmatpush1.bf16.msra.mxu0 %v1463_v48  ;;  %1376 = vmatpush1.bf16.msra.mxu1 %v1463_v48 }
  0x72   : > { %752 = vmatprep.subr.bf16.mxu0 %v1464_v49  ;;  %1361 = vmatprep.subr.bf16.mxu1 %v1464_v49  ;;  %v410_v49 = vld [vmem:[#allocation2 + $0x40] sm:$0xff] }
  0x75   : > { %753 = vmatpush1.bf16.msra.mxu0 %v1466_v50  ;;  %1377 = vmatpush1.bf16.msra.mxu1 %v1466_v50  ;;  %v426_v50 = vld [vmem:[#allocation2 + $0xc0] sm:$0xff] }
  0x78   : > { %755 = vmatmul.mubr.bf16.vlgmr.msra.gmra.mrb[0].mxu0 %v1467_v51  ;;  %795 = vmatmul.mubr.bf16.vlgmr.msra.gmra.mrb[0].mxu1 %v1470_v52  ;;  %v411_v51 = vld [vmem:[#allocation2 + $0x48] sm:$0xff] }
  0x79   : > { %764 = vmatprep.mubr.bf16.mxu0 %v1473_v53  ;;  %804 = vmatprep.mubr.bf16.mxu1 %v1475_v54  ;;  %v427_v52 = vld [vmem:[#allocation2 + $0xc8] sm:$0xff] }
  0x80   : > { %765 = vmatmul.mubr.bf16.gmra.mrb[4].mxu0 %v1477_v55  ;;  %805 = vmatmul.mubr.bf16.gmra.mrb[4].mxu1 %v1478_v56  ;;  %v412_v55 = vld [vmem:[#allocation2 + $0x50] sm:$0xff] }
  0x81   : > { %774 = vmatprep.mubr.bf16.mxu0 %v1479_v57  ;;  %814 = vmatprep.mubr.bf16.mxu1 %v1481_v58  ;;  %v428_v56 = vld [vmem:[#allocation2 + $0xd0] sm:$0xff] }
  0x88   : > { %775 = vmatmul.mubr.bf16.gmra.mrb[8].mxu0 %v1483_v59  ;;  %815 = vmatmul.mubr.bf16.gmra.mrb[8].mxu1 %v1484_v60 }
  0x89   : > { %784 = vmatprep.mubr.bf16.mxu0 %v1485_v61  ;;  %824 = vmatprep.mubr.bf16.mxu1 %v1487_v62  ;;  %v413_v61 = vld [vmem:[#allocation2 + $0x58] sm:$0xff] }
  0x8a   : > { %v429_v62 = vld [vmem:[#allocation2 + $0xd8] sm:$0xff] }
  0x90   : > { %785 = vmatmul.mubr.bf16.gmra.mrb[12].mxu0 %v1489_v63  ;;  %825 = vmatmul.mubr.bf16.gmra.mrb[12].mxu1 %v1490_v0 }
 0x14b   : > { %v756_v5 = vpop.f32.mrb[0].mxu0  ;;  %v796_v6 = vpop.f32.mrb[0].mxu1 }
 0x14c   : > { %v835_v9 = vadd.f32 %v756_v5, %v402_v1  ;;  %v851_v10 = vadd.f32 %v796_v6, %v418_v2  ;;  %v758_v11 = vpop.f32.mrb[1].mxu0  ;;  %v798_v12 = vpop.f32.mrb[1].mxu1 }
 0x14d   : > { %v836_v15 = vadd.f32 %v758_v11, %v403_v3  ;;  %v852_v16 = vadd.f32 %v798_v12, %v419_v4  ;;  %v760_v17 = vpop.f32.mrb[2].mxu0  ;;  %v800_v18 = vpop.f32.mrb[2].mxu1  ;;  %v415_v11 = vld [vmem:[#allocation2 + $0x68] sm:$0xff] }
 0x14e   : > { %867 = vst [vmem:[#allocation2] sm:$0xff] %v835_v9  ;;  %883 = vst [vmem:[#allocation2 + $0x80] sm:$0xff] %v851_v10  ;;  %v837_v19 = vadd.f32 %v760_v17, %v404_v7  ;;  %v853_v20 = vadd.f32 %v800_v18, %v420_v8  ;;  %v762_v21 = vpop.f32.mrb[3].mxu0  ;;  %v802_v22 = vpop.f32.mrb[3].mxu1  ;;  %v414_v9 = vld [vmem:[#allocation2 + $0x60] sm:$0xff]  ;;  %v431_v12 = vld [vmem:[#allocation2 + $0xe8] sm:$0xff] }
 0x14f   : > { %868 = vst [vmem:[#allocation2 + $0x8] sm:$0xff] %v836_v15  ;;  %884 = vst [vmem:[#allocation2 + $0x88] sm:$0xff] %v852_v16  ;;  %v838_v23 = vadd.f32 %v762_v21, %v405_v13  ;;  %v854_v24 = vadd.f32 %v802_v22, %v421_v14  ;;  %v430_v10 = vld [vmem:[#allocation2 + $0xe0] sm:$0xff]  ;;  %v416_v15 = vld [vmem:[#allocation2 + $0x70] sm:$0xff] }
 0x150   : > { %869 = vst [vmem:[#allocation2 + $0x10] sm:$0xff] %v837_v19  ;;  %885 = vst [vmem:[#allocation2 + $0x90] sm:$0xff] %v853_v20  ;;  %v432_v16 = vld [vmem:[#allocation2 + $0xf0] sm:$0xff]  ;;  %v417_v21 = vld [vmem:[#allocation2 + $0x78] sm:$0xff] }
 0x151   : > { %870 = vst [vmem:[#allocation2 + $0x18] sm:$0xff] %v838_v23  ;;  %886 = vst [vmem:[#allocation2 + $0x98] sm:$0xff] %v854_v24  ;;  %v433_v22 = vld [vmem:[#allocation2 + $0xf8] sm:$0xff] }
 0x153   : > { %v766_v29 = vpop.f32.mrb[4].mxu0  ;;  %v806_v30 = vpop.f32.mrb[4].mxu1 }
 0x154   : > { %v839_v33 = vadd.f32 %v766_v29, %v406_v25  ;;  %v855_v34 = vadd.f32 %v806_v30, %v422_v26  ;;  %v768_v35 = vpop.f32.mrb[5].mxu0  ;;  %v808_v36 = vpop.f32.mrb[5].mxu1 }
 0x155   : > { %v840_v39 = vadd.f32 %v768_v35, %v407_v27  ;;  %v856_v40 = vadd.f32 %v808_v36, %v423_v28  ;;  %v770_v41 = vpop.f32.mrb[6].mxu0  ;;  %v810_v42 = vpop.f32.mrb[6].mxu1  ;;  %v935_v35 = vld [vmem:[%s1778_s2] sm:$0x3] (!%p1307_p11) }
 0x156   : > { %871 = vst [vmem:[#allocation2 + $0x20] sm:$0xff] %v839_v33  ;;  %887 = vst [vmem:[#allocation2 + $0xa0] sm:$0xff] %v855_v34  ;;  %v841_v43 = vadd.f32 %v770_v41, %v408_v31  ;;  %v857_v44 = vadd.f32 %v810_v42, %v424_v32  ;;  %v772_v45 = vpop.f32.mrb[7].mxu0  ;;  %v812_v46 = vpop.f32.mrb[7].mxu1  ;;  %v937_v33 = vlaneseq (!%p1307_p11)  ;;  %v903_v36 = vld [vmem:[#allocation2] sm:$0xff] (!%p1307_p11) }
 0x157   : > { %872 = vst [vmem:[#allocation2 + $0x28] sm:$0xff] %v840_v39  ;;  %888 = vst [vmem:[#allocation2 + $0xa8] sm:$0xff] %v856_v40  ;;  %v842_v47 = vadd.f32 %v772_v45, %v409_v37  ;;  %v858_v48 = vadd.f32 %v812_v46, %v425_v38  ;;  %v904_v37 = vld [vmem:[#allocation2 + $0x8] sm:$0xff] (!%p1307_p11)  ;;  %v905_v40 = vld [vmem:[#allocation2 + $0x10] sm:$0xff] (!%p1307_p11) }
 0x158   : > { %873 = vst [vmem:[#allocation2 + $0x30] sm:$0xff] %v841_v43  ;;  %889 = vst [vmem:[#allocation2 + $0xb0] sm:$0xff] %v857_v44  ;;  %v938_v34 = vshrl.u32 (!%p1307_p11), %v937_v33, 7  ;;  %v906_v41 = vld [vmem:[#allocation2 + $0x18] sm:$0xff] (!%p1307_p11) }
 0x159   : > { %874 = vst [vmem:[#allocation2 + $0x38] sm:$0xff] %v842_v47  ;;  %890 = vst [vmem:[#allocation2 + $0xb8] sm:$0xff] %v858_v48 }
 0x15a   : > { %v939_v38 = vsub.s32 (!%p1307_p11), 0, %v938_v34  ;;  %v943_v39 = vsub.s32 (!%p1307_p11), 1, %v938_v34 }
 0x15b   : > { %v776_v53 = vpop.f32.mrb[8].mxu0  ;;  %v816_v54 = vpop.f32.mrb[8].mxu1 }
 0x15c   : > { %v843_v57 = vadd.f32 %v776_v53, %v410_v49  ;;  %v859_v58 = vadd.f32 %v816_v54, %v426_v50  ;;  %v778_v59 = vpop.f32.mrb[9].mxu0  ;;  %v818_v60 = vpop.f32.mrb[9].mxu1  ;;  %v1677_v43 = vrot.slane (!%p1307_p11), %v935_v35, %v939_v38  ;;  %v1679_v44 = vrot.slane (!%p1307_p11), %v935_v35, %v943_v39 }
 0x15d   : > { %v844_v63 = vadd.f32 %v778_v59, %v411_v51  ;;  %v860_v0 = vadd.f32 %v818_v60, %v427_v52  ;;  %v780_v1 = vpop.f32.mrb[10].mxu0  ;;  %v820_v2 = vpop.f32.mrb[10].mxu1  ;;  %v907_v42 = vld [vmem:[#allocation2 + $0x20] sm:$0xff] (!%p1307_p11) }
 0x15e   : > { %875 = vst [vmem:[#allocation2 + $0x40] sm:$0xff] %v843_v57  ;;  %891 = vst [vmem:[#allocation2 + $0xc0] sm:$0xff] %v859_v58  ;;  %v845_v3 = vadd.f32 %v780_v1, %v412_v55  ;;  %v861_v4 = vadd.f32 %v820_v2, %v428_v56  ;;  %v782_v5 = vpop.f32.mrb[11].mxu0  ;;  %v822_v6 = vpop.f32.mrb[11].mxu1  ;;  %v908_v45 = vld [vmem:[#allocation2 + $0x28] sm:$0xff] (!%p1307_p11)  ;;  %v947_v48 = vadd.f32 (!%p1307_p11), %v1677_v43, %v903_v36 }
 0x15f   : > { %876 = vst [vmem:[#allocation2 + $0x48] sm:$0xff] %v844_v63  ;;  %892 = vst [vmem:[#allocation2 + $0xc8] sm:$0xff] %v860_v0  ;;  %v846_v7 = vadd.f32 %v782_v5, %v413_v61  ;;  %v862_v8 = vadd.f32 %v822_v6, %v429_v62  ;;  %v909_v46 = vld [vmem:[#allocation2 + $0x30] sm:$0xff] (!%p1307_p11)  ;;  %v948_v49 = vadd.f32 (!%p1307_p11), %v1679_v44, %v904_v37  ;;  %v924_v33 = vld [vmem:[#allocation2 + $0xa8] sm:$0xff] (!%p1307_p11) }
 0x160   : > { %877 = vst [vmem:[#allocation2 + $0x50] sm:$0xff] %v845_v3  ;;  %893 = vst [vmem:[#allocation2 + $0xd0] sm:$0xff] %v861_v4  ;;  %v910_v47 = vld [vmem:[#allocation2 + $0x38] sm:$0xff] (!%p1307_p11)  ;;  %v949_v50 = vadd.f32 (!%p1307_p11), %v1677_v43, %v905_v40  ;;  %v950_v51 = vadd.f32 (!%p1307_p11), %v1679_v44, %v906_v41  ;;  %v951_v52 = vadd.f32 (!%p1307_p11), %v1677_v43, %v907_v42  ;;  %v979_v58 = vmax.f32 (!%p1307_p11), %v947_v48, 0.0  ;;  %v925_v38 = vld [vmem:[#allocation2 + $0xb0] sm:$0xff] (!%p1307_p11) }
 0x161   : > { %878 = vst [vmem:[#allocation2 + $0x58] sm:$0xff] %v846_v7  ;;  %894 = vst [vmem:[#allocation2 + $0xd8] sm:$0xff] %v862_v8  ;;  %v952_v53 = vadd.f32 (!%p1307_p11), %v1679_v44, %v908_v45  ;;  %v953_v54 = vadd.f32 (!%p1307_p11), %v1677_v43, %v909_v46  ;;  %v954_v55 = vadd.f32 (!%p1307_p11), %v1679_v44, %v910_v47  ;;  %v980_v59 = vmax.f32 (!%p1307_p11), %v948_v49, 0.0  ;;  %v926_v39 = vld [vmem:[#allocation2 + $0xb8] sm:$0xff] (!%p1307_p11) }
 0x162   : > { %v981_v60 = vmax.f32 (!%p1307_p11), %v949_v50, 0.0  ;;  %v982_v61 = vmax.f32 (!%p1307_p11), %v950_v51, 0.0  ;;  %v983_v0 = vmax.f32 (!%p1307_p11), %v951_v52, 0.0  ;;  %v968_v50 = vadd.f32 (!%p1307_p11), %v1679_v44, %v924_v33 }
 0x163   : > { %v786_v13 = vpop.f32.mrb[12].mxu0  ;;  %v826_v14 = vpop.f32.mrb[12].mxu1  ;;  %902 = sbr.rel (%p1307_p11) target bundleno = 378 (0x17a), region = 78  ;;  %v984_v1 = vmax.f32 (!%p1307_p11), %v952_v53, 0.0  ;;  %v985_v2 = vmax.f32 (!%p1307_p11), %v953_v54, 0.0  ;;  %v986_v3 = vmax.f32 (!%p1307_p11), %v954_v55, 0.0  ;;  %v1330_v6 = vpack.c.bf16 (!%p1307_p11), %v980_v59, %v979_v58 }
 0x164   : > { %v847_v17 = vadd.f32 %v786_v13, %v414_v9  ;;  %v863_v18 = vadd.f32 %v826_v14, %v430_v10  ;;  %v788_v19 = vpop.f32.mrb[13].mxu0  ;;  %v828_v20 = vpop.f32.mrb[13].mxu1  ;;  %v1331_v7 = vpack.c.bf16 (!%p1307_p11), %v982_v61, %v981_v60  ;;  %v969_v54 = vadd.f32 (!%p1307_p11), %v1677_v43, %v925_v38 }
 0x165   : > { %v848_v23 = vadd.f32 %v788_v19, %v415_v11  ;;  %v864_v24 = vadd.f32 %v828_v20, %v431_v12  ;;  %v790_v25 = vpop.f32.mrb[14].mxu0  ;;  %v830_v26 = vpop.f32.mrb[14].mxu1  ;;  %v911_v56 = vld [vmem:[#allocation2 + $0x40] sm:$0xff] (!%p1307_p11)  ;;  %v1332_v12 = vpack.c.bf16 (!%p1307_p11), %v984_v1, %v983_v0  ;;  %v1333_v13 = vpack.c.bf16 (!%p1307_p11), %v986_v3, %v985_v2  ;;  %1107 = vst [vmem:[%s1779_s3] sm:$0xff] (!%p1307_p11), %v1330_v6 }
 0x166   : > { %879 = vst [vmem:[#allocation2 + $0x60] sm:$0xff] %v847_v17  ;;  %895 = vst [vmem:[#allocation2 + $0xe0] sm:$0xff] %v863_v18  ;;  %v849_v27 = vadd.f32 %v790_v25, %v416_v15  ;;  %v865_v28 = vadd.f32 %v830_v26, %v432_v16  ;;  %v792_v29 = vpop.f32.mrb[15].mxu0  ;;  %v832_v30 = vpop.f32.mrb[15].mxu1  ;;  %v912_v57 = vld [vmem:[#allocation2 + $0x48] sm:$0xff] (!%p1307_p11)  ;;  %v955_v8 = vadd.f32 (!%p1307_p11), %v1677_v43, %v911_v56  ;;  %v919_v16 = vld [vmem:[#allocation2 + $0x80] sm:$0xff] (!%p1307_p11) }
 0x167   : > { %880 = vst [vmem:[#allocation2 + $0x68] sm:$0xff] %v848_v23  ;;  %896 = vst [vmem:[#allocation2 + $0xe8] sm:$0xff] %v864_v24  ;;  %v850_v31 = vadd.f32 %v792_v29, %v417_v21  ;;  %v866_v32 = vadd.f32 %v832_v30, %v433_v22  ;;  %v913_v62 = vld [vmem:[#allocation2 + $0x50] sm:$0xff] (!%p1307_p11)  ;;  %v956_v9 = vadd.f32 (!%p1307_p11), %v1679_v44, %v912_v57  ;;  %v920_v21 = vld [vmem:[#allocation2 + $0x88] sm:$0xff] (!%p1307_p11)  ;;  %v1000_v60 = vmax.f32 (!%p1307_p11), %v968_v50, 0.0 }
 0x168   : > { %881 = vst [vmem:[#allocation2 + $0x70] sm:$0xff] %v849_v27  ;;  %897 = vst [vmem:[#allocation2 + $0xf0] sm:$0xff] %v865_v28  ;;  %v914_v63 = vld [vmem:[#allocation2 + $0x58] sm:$0xff] (!%p1307_p11)  ;;  %v957_v14 = vadd.f32 (!%p1307_p11), %v1677_v43, %v913_v62  ;;  %v987_v17 = vmax.f32 (!%p1307_p11), %v955_v8, 0.0  ;;  %v921_v26 = vld [vmem:[#allocation2 + $0x90] sm:$0xff] (!%p1307_p11)  ;;  %v964_v37 = vadd.f32 (!%p1307_p11), %v1679_v44, %v920_v21  ;;  %v970_v55 = vadd.f32 (!%p1307_p11), %v1679_v44, %v926_v39 }
 0x169   : > { %882 = vst [vmem:[#allocation2 + $0x78] sm:$0xff] %v850_v31  ;;  %898 = vst [vmem:[#allocation2 + $0xf8] sm:$0xff] %v866_v32  ;;  %v958_v15 = vadd.f32 (!%p1307_p11), %v1679_v44, %v914_v63  ;;  %v988_v18 = vmax.f32 (!%p1307_p11), %v956_v9, 0.0  ;;  %v922_v27 = vld [vmem:[#allocation2 + $0x98] sm:$0xff] (!%p1307_p11)  ;;  %v963_v31 = vadd.f32 (!%p1307_p11), %v1677_v43, %v919_v16  ;;  %v923_v32 = vld [vmem:[#allocation2 + $0xa0] sm:$0xff] (!%p1307_p11)  ;;  %v965_v42 = vadd.f32 (!%p1307_p11), %v1677_v43, %v921_v26 }
 0x16a   : > { %1108 = vst [vmem:[%s1779_s3 + $0x8] sm:$0xff] %v1331_v7  ;;  %1109 = vst [vmem:[%s1779_s3 + $0x10] sm:$0xff] %v1332_v12  ;;  %v989_v22 = vmax.f32 %v957_v14, 0.0  ;;  %v966_v45 = vadd.f32 %v1679_v44, %v922_v27  ;;  %v927_v46 = vld [vmem:[#allocation2 + $0xc0] sm:$0xff]  ;;  %v996_v48 = vmax.f32 %v964_v37, 0.0  ;;  %v967_v49 = vadd.f32 %v1677_v43, %v923_v32  ;;  %v928_v51 = vld [vmem:[#allocation2 + $0xc8] sm:$0xff] }
 0x16b   : > { %1110 = vst [vmem:[%s1779_s3 + $0x18] sm:$0xff] %v1333_v13  ;;  %v990_v23 = vmax.f32 %v958_v15, 0.0  ;;  %v1334_v28 = vpack.c.bf16 %v988_v18, %v987_v17  ;;  %v995_v41 = vmax.f32 %v963_v31, 0.0  ;;  %v997_v52 = vmax.f32 %v965_v42, 0.0  ;;  %v929_v56 = vld [vmem:[#allocation2 + $0xd0] sm:$0xff]  ;;  %v930_v57 = vld [vmem:[#allocation2 + $0xd8] sm:$0xff] }
 0x16c   : > { %v998_v53 = vmax.f32 %v966_v45, 0.0  ;;  %v999_v59 = vmax.f32 %v967_v49, 0.0  ;;  %v971_v61 = vadd.f32 %v1677_v43, %v927_v46  ;;  %v1001_v1 = vmax.f32 %v969_v54, 0.0 }
 0x16d   : > { %v915_v4 = vld [vmem:[#allocation2 + $0x60] sm:$0xff]  ;;  %v1335_v34 = vpack.c.bf16 %v990_v23, %v989_v22  ;;  %1111 = vst [vmem:[%s1779_s3 + $0x20] sm:$0xff] %v1334_v28  ;;  %v1338_v58 = vpack.c.bf16 %v996_v48, %v995_v41  ;;  %v1002_v2 = vmax.f32 %v970_v55, 0.0  ;;  %v972_v3 = vadd.f32 %v1679_v44, %v928_v51 }
 0x16e   : > { %v916_v5 = vld [vmem:[#allocation2 + $0x68] sm:$0xff]  ;;  %v959_v19 = vadd.f32 %v1677_v43, %v915_v4  ;;  %v931_v62 = vld [vmem:[#allocation2 + $0xe0] sm:$0xff]  ;;  %v1339_v0 = vpack.c.bf16 %v998_v53, %v997_v52  ;;  %v1340_v6 = vpack.c.bf16 %v1000_v60, %v999_v59  ;;  %v1003_v7 = vmax.f32 %v971_v61, 0.0 }
 0x16f   : > { %v917_v10 = vld [vmem:[#allocation2 + $0x70] sm:$0xff]  ;;  %v960_v20 = vadd.f32 %v1679_v44, %v916_v5  ;;  %1112 = vst [vmem:[%s1779_s3 + $0x28] sm:$0xff] %v1335_v34  ;;  %v932_v63 = vld [vmem:[#allocation2 + $0xe8] sm:$0xff]  ;;  %1115 = vst [vmem:[%s1779_s3 + $0x40] sm:$0xff] %v1338_v58  ;;  %v973_v8 = vadd.f32 %v1677_v43, %v929_v56  ;;  %v974_v9 = vadd.f32 %v1679_v44, %v930_v57 }
 0x170   : > { %v918_v11 = vld [vmem:[#allocation2 + $0x78] sm:$0xff]  ;;  %v961_v24 = vadd.f32 %v1677_v43, %v917_v10  ;;  %v991_v29 = vmax.f32 %v959_v19, 0.0  ;;  %v933_v4 = vld [vmem:[#allocation2 + $0xf0] sm:$0xff]  ;;  %1116 = vst [vmem:[%s1779_s3 + $0x48] sm:$0xff] %v1339_v0  ;;  %v1341_v10 = vpack.c.bf16 %v1002_v2, %v1001_v1  ;;  %v975_v12 = vadd.f32 %v1677_v43, %v931_v62  ;;  %1117 = vst [vmem:[%s1779_s3 + $0x50] sm:$0xff] %v1340_v6 }
 0x171   : > { %v962_v25 = vadd.f32 %v1679_v44, %v918_v11  ;;  %v992_v30 = vmax.f32 %v960_v20, 0.0  ;;  %v934_v5 = vld [vmem:[#allocation2 + $0xf8] sm:$0xff]  ;;  %v1004_v11 = vmax.f32 %v972_v3, 0.0  ;;  %v976_v13 = vadd.f32 %v1679_v44, %v932_v63 }
 0x172   : > { %v993_v35 = vmax.f32 %v961_v24, 0.0  ;;  %v1005_v14 = vmax.f32 %v973_v8, 0.0  ;;  %v1006_v15 = vmax.f32 %v974_v9, 0.0  ;;  %v977_v16 = vadd.f32 %v1677_v43, %v933_v4  ;;  %1118 = vst [vmem:[%s1779_s3 + $0x58] sm:$0xff] %v1341_v10 }
 0x173   : > { %v994_v36 = vmax.f32 %v962_v25, 0.0  ;;  %v1336_v40 = vpack.c.bf16 %v992_v30, %v991_v29  ;;  %v978_v17 = vadd.f32 %v1679_v44, %v934_v5  ;;  %v1342_v18 = vpack.c.bf16 %v1004_v11, %v1003_v7 }
 0x174   : > { %v1007_v19 = vmax.f32 %v975_v12, 0.0  ;;  %v1008_v20 = vmax.f32 %v976_v13, 0.0  ;;  %v1343_v21 = vpack.c.bf16 %v1006_v15, %v1005_v14  ;;  %v1009_v22 = vmax.f32 %v977_v16, 0.0 }
 0x175   : > { %v1337_v47 = vpack.c.bf16 %v994_v36, %v993_v35  ;;  %1113 = vst [vmem:[%s1779_s3 + $0x30] sm:$0xff] %v1336_v40  ;;  %v1010_v23 = vmax.f32 %v978_v17, 0.0  ;;  %1119 = vst [vmem:[%s1779_s3 + $0x60] sm:$0xff] %v1342_v18 }
 0x176   : > { %v1344_v24 = vpack.c.bf16 %v1008_v20, %v1007_v19  ;;  %1120 = vst [vmem:[%s1779_s3 + $0x68] sm:$0xff] %v1343_v21 }
 0x177   : > { %1114 = vst [vmem:[%s1779_s3 + $0x38] sm:$0xff] %v1337_v47  ;;  %v1345_v43 = vpack.c.bf16 %v1010_v23, %v1009_v22 }
 0x178   : > { %1121 = vst [vmem:[%s1779_s3 + $0x70] sm:$0xff] %v1344_v24 }
 0x179   : > { %1122 = vst [vmem:[%s1779_s3 + $0x78] sm:$0xff] %v1345_v43 }
 0x17a PF: > { %s13_s16 = sadd.s32 1, %s1529_s16   ;;  %s1780_s12 = smov %s1517_s13 }
 0x17b   : > { %p10_p12 = scmp.ge.s32.totalorder %s13_s16, 11   ;;  %s1781_s13 = smov %s1587_s20 }
 0x17c   : > { %s1782_s14 = smov %s1525_s15  ;;  %s1783_s15 = smov %s1785_s17 }
 0x17d   :  { %12 = sbr.rel (!%p10_p12) target bundleno = 3 (0x3), region = 119 }

// kernel: _lambda_.19
= control target key start
LH: loop header
LB: loop body
LE: loop exit
PB: predicated region body
PF: predicated region fallthrough
CT: control target
= control target key end

     0   :  { %s1856_s0 = inlined_call_operand.vmem [shape: bf16[72,2304], index: 0, kind: input, shape index: {}]   ;;  %s1857_s1 = inlined_call_operand.vmem [shape: bf16[2304,512], index: 1, kind: input, shape index: {}]   ;;  %s1858_s2 = inlined_call_operand.vmem [shape: f32[1,512], index: 2, kind: input, shape index: {}]   ;;  %s1859_s3 = inlined_call_operand.vmem [shape: bf16[72,512], index: 3, kind: output, shape index: {}]  }
   0x1   :  { %1861 = sst [smem:[#allocation7_spill]] %s1856_s0 }
   0x2   :  { %1862 = sst [smem:[#allocation8_spill]] %s1857_s1 }
   0x3   :  { %s1551_s12 = smov 0   ;;  %s1553_s13 = smov 0  }
   0x4   :  { %s1555_s14 = smov 0   ;;  %s1557_s15 = smov 0  }
   0x5   :  { %s1559_s16 = smov 0   ;;  %s1561_s17 = smov 0  }
   0x6   :  { %s1563_s18 = smov 0   ;;  %s1565_s19 = smov 0  }
   0x7   :  { %s1567_s20 = smov 0   ;;  %s1569_s21 = smov 0  }
   0x8   :  { %s1571_s22 = smov 0  }
   0x9 LB: > { %s1173_s23 = sadd.s32 4294967295, %s1528_s22   ;;  %s25_s24 = sadd.s32 1, %s1520_s20  ;;  %s1528_s22 = sphi %s1571_s22, %s13_s22   ;;  %s1524_s21 = sphi %s1569_s21, %s1879_s21   ;;  %s1520_s20 = sphi %s1567_s20, %s1878_s20   ;;  %s1516_s19 = sphi %s1565_s19, %s1877_s19   ;;  %s1512_s18 = sphi %s1563_s18, %s1876_s18   ;;  %s1508_s17 = sphi %s1561_s17, %s1875_s17   ;;  %s1504_s16 = sphi %s1559_s16, %s1874_s16   ;;  %s1500_s15 = sphi %s1557_s15, %s1873_s15   ;;  %s1496_s14 = sphi %s1555_s14, %s1872_s14   ;;  %s1492_s13 = sphi %s1553_s13, %s1871_s13   ;;  %s1488_s12 = sphi %s1551_s12, %s1870_s12  }
   0xa   : > { %p26_p0 = scmp.ge.s32.totalorder %s25_s24, 9  ;;  %s28_s25 = sadd.s32 1, %s1524_s21 }
   0xb   : > { %s41_s26 = sadd.s32 1, %s1508_s17  ;;  %p48_p1 = scmp.ne.s32.totalorder %s1508_s17, %s1504_s16 }
   0xc   : > { %s1881_s24 = smov (%p26_p0, %s25_s24), 0  ;;  %s1883_s25 = smov (!%p26_p0, %s28_s25), %s1524_s21 }
   0xd   : > { %s37_s27 = ssub.s32 %s1520_s20, %s1881_s24  ;;  %p49_p2 = scmp.eq.s32.totalorder %s1528_s22, 0 }
   0xe   : > { %p30_p3 = scmp.ge.s32.totalorder %s1883_s25, 2  ;;  %p39_p4 = scmp.eq.s32.totalorder %s37_s27, 0 }
   0xf   : > { %p1618_p5 = por %p49_p2, %p48_p1  ;;  %s69_s29 = sadd.s32 1, %s1500_s15 }
  0x10   : > { %s1885_s25 = smov (%p30_p3, %s1883_s25), 0  ;;  %p76_p6 = scmp.ne.s32.totalorder %s1500_s15, %s1496_s14 }
  0x11   : > { %1864 = sst [smem:[#allocation6_spill]] %s1885_s25  ;;  %s65_s4 = ssub.s32 %s1524_s21, %s1885_s25 }
  0x12   : > { %s1626_s30 = scalar_select %p39_p4, %s1508_s17, %s41_s26  }
  0x13   : > { %s66_s5 = sor.u32 %s65_s4, %s37_s27  ;;  %p121_p7 = scmp.eq.s32.totalorder %s65_s4, 0 }
  0x14   : > { %p67_p8 = scmp.eq.s32.totalorder %s66_s5, 0  ;;  %p1632_p9 = por %p76_p6, %p49_p2 }
  0x15   : > { %s123_s7 = sadd.s32 1, %s1492_s13  ;;  %p133_p10 = scmp.ne.s32.totalorder %s1492_s13, %s1488_s12 }
  0x16   : > { %s1640_s8 = scalar_select %p67_p8, %s1500_s15, %s69_s29  }
  0x17   : > { %s1643_s9 = scalar_select %p121_p7, %s1492_s13, %s123_s7  }
  0x18   : > { %p134_p11 = scmp.eq.s32.totalorder %s1173_s23, 17  ;;  %p1176_p13 = scmp.ge.s32.totalorder %s1528_s22, 18 }
  0x1a   : > { %p1645_p12 = por %p134_p11, %p133_p10  ;;  %156 = sbr.rel (%p1176_p13) target bundleno = 74 (0x4a), region = 16 }
  0x21   : > { %159 = sbr.rel (!%p1618_p5) target bundleno = 48 (0x30), region = 20  ;;  %s161_s11 = sand.u32 (%p1618_p5), 1, %s1508_s17  }
  0x22   : > { %s1244_s26 = sshll.u32 (%p1618_p5), %s1520_s20, 3  ;;  %s1288_s27 = smul.u32 (%p1618_p5), 72, %s161_s11 }
  0x23   : > { %s1867_s0 = sld [smem:[#allocation7_spill]] (%p1618_p5) }
  0x24   : > { %s163_s23 = scalar_lea.vmem (%p1618_p5), [#allocation3], %s1288_s27 }
  0x29   : > { %s169_s5 = scalar_lea.vmem %s1867_s0, %s1244_s26 }
  0x2a   : > { %v213_v0 = vld [vmem:[%s169_s5] sm:$0xff]  ;;  %v215_v1 = vld [vmem:[%s169_s5 + $0x48] sm:$0xff]  ;;  %v217_v2 = vld [vmem:[%s169_s5 + $0x90] sm:$0xff] }
  0x2b   : > { %v219_v3 = vld [vmem:[%s169_s5 + $0xd8] sm:$0xff]  ;;  %v221_v4 = vld [vmem:[%s169_s5 + $0x120] sm:$0xff]  ;;  %v223_v5 = vld [vmem:[%s169_s5 + $0x168] sm:$0xff]  ;;  %214 = vst [vmem:[%s163_s23] sm:$0xff] %v213_v0 }
  0x2c   : > { %216 = vst [vmem:[%s163_s23 + $0x8] sm:$0xff] %v215_v1  ;;  %218 = vst [vmem:[%s163_s23 + $0x10] sm:$0xff] %v217_v2  ;;  %v225_v6 = vld [vmem:[%s169_s5 + $0x1b0] sm:$0xff]  ;;  %v227_v7 = vld [vmem:[%s169_s5 + $0x1f8] sm:$0xff] }
  0x2d   : > { %220 = vst [vmem:[%s163_s23 + $0x18] sm:$0xff] %v219_v3  ;;  %222 = vst [vmem:[%s163_s23 + $0x20] sm:$0xff] %v221_v4  ;;  %v229_v8 = vld [vmem:[%s169_s5 + $0x240] sm:$0xff] }
  0x2e   : > { %224 = vst [vmem:[%s163_s23 + $0x28] sm:$0xff] %v223_v5  ;;  %226 = vst [vmem:[%s163_s23 + $0x30] sm:$0xff] %v225_v6 }
  0x2f   : > { %228 = vst [vmem:[%s163_s23 + $0x38] sm:$0xff] %v227_v7  ;;  %230 = vst [vmem:[%s163_s23 + $0x40] sm:$0xff] %v229_v8 }
  0x30 PF: > { %236 = sbr.rel (!%p1632_p9) target bundleno = 74 (0x4a), region = 58  ;;  %s238_s28 = sand.u32 (%p1632_p9), 1, %s1500_s15  }
  0x31   : > { %s1181_s7 = sshll.u32 (%p1632_p9), %s1524_s21, 1  ;;  %s1179_s11 = sshll.u32 (%p1632_p9), %s238_s28, 8 }
  0x32   : > { %s1245_s26 = sshll.u32 (%p1632_p9), %s1520_s20, 7  ;;  %s1868_s1 = sld [smem:[#allocation8_spill]] (%p1632_p9) }
  0x33   : > { %s244_s27 = sadd.s32 (%p1632_p9), %s1245_s26, %s1181_s7  ;;  %s1670_s6 = scalar_lea.vmem (%p1632_p9), [#allocation4], %s1179_s11 }
  0x34   : > { %s1183_s29 = sshll.u32 (%p1632_p9), %s244_s27, 2 }
  0x38   : > { %s1665_s5 = scalar_lea.vmem %s1868_s1, %s1183_s29 }
  0x39   : > { %v336_v9 = vld [vmem:[%s1665_s5] sm:$0xff]  ;;  %v338_v10 = vld [vmem:[%s1665_s5 + $0x10] sm:$0xff] }
  0x3a   : > { %v340_v11 = vld [vmem:[%s1665_s5 + $0x20] sm:$0xff]  ;;  %337 = vst [vmem:[%s1670_s6] sm:$0xff] %v336_v9  ;;  %339 = vst [vmem:[%s1670_s6 + $0x8] sm:$0xff] %v338_v10  ;;  %v342_v12 = vld [vmem:[%s1665_s5 + $0x30] sm:$0xff] }
  0x3b   : > { %341 = vst [vmem:[%s1670_s6 + $0x10] sm:$0xff] %v340_v11  ;;  %v344_v13 = vld [vmem:[%s1665_s5 + $0x40] sm:$0xff]  ;;  %v346_v14 = vld [vmem:[%s1665_s5 + $0x50] sm:$0xff]  ;;  %343 = vst [vmem:[%s1670_s6 + $0x18] sm:$0xff] %v342_v12 }
  0x3c   : > { %345 = vst [vmem:[%s1670_s6 + $0x20] sm:$0xff] %v344_v13  ;;  %347 = vst [vmem:[%s1670_s6 + $0x28] sm:$0xff] %v346_v14  ;;  %v348_v15 = vld [vmem:[%s1665_s5 + $0x60] sm:$0xff]  ;;  %v350_v16 = vld [vmem:[%s1665_s5 + $0x70] sm:$0xff] }
  0x3d   : > { %v352_v17 = vld [vmem:[%s1665_s5 + $0x80] sm:$0xff]  ;;  %349 = vst [vmem:[%s1670_s6 + $0x30] sm:$0xff] %v348_v15  ;;  %351 = vst [vmem:[%s1670_s6 + $0x38] sm:$0xff] %v350_v16  ;;  %v354_v18 = vld [vmem:[%s1665_s5 + $0x90] sm:$0xff] }
  0x3e   : > { %353 = vst [vmem:[%s1670_s6 + $0x40] sm:$0xff] %v352_v17  ;;  %v356_v19 = vld [vmem:[%s1665_s5 + $0xa0] sm:$0xff]  ;;  %v358_v20 = vld [vmem:[%s1665_s5 + $0xb0] sm:$0xff]  ;;  %355 = vst [vmem:[%s1670_s6 + $0x48] sm:$0xff] %v354_v18 }
  0x3f   : > { %357 = vst [vmem:[%s1670_s6 + $0x50] sm:$0xff] %v356_v19  ;;  %359 = vst [vmem:[%s1670_s6 + $0x58] sm:$0xff] %v358_v20  ;;  %v360_v21 = vld [vmem:[%s1665_s5 + $0xc0] sm:$0xff]  ;;  %v362_v22 = vld [vmem:[%s1665_s5 + $0xd0] sm:$0xff] }
  0x40   : > { %v364_v23 = vld [vmem:[%s1665_s5 + $0xe0] sm:$0xff]  ;;  %361 = vst [vmem:[%s1670_s6 + $0x60] sm:$0xff] %v360_v21  ;;  %363 = vst [vmem:[%s1670_s6 + $0x68] sm:$0xff] %v362_v22  ;;  %v366_v24 = vld [vmem:[%s1665_s5 + $0xf0] sm:$0xff] }
  0x41   : > { %365 = vst [vmem:[%s1670_s6 + $0x70] sm:$0xff] %v364_v23  ;;  %v368_v25 = vld [vmem:[%s1665_s5 + $0x100] sm:$0xff]  ;;  %v370_v26 = vld [vmem:[%s1665_s5 + $0x110] sm:$0xff]  ;;  %367 = vst [vmem:[%s1670_s6 + $0x78] sm:$0xff] %v366_v24 }
  0x42   : > { %369 = vst [vmem:[%s1670_s6 + $0x80] sm:$0xff] %v368_v25  ;;  %371 = vst [vmem:[%s1670_s6 + $0x88] sm:$0xff] %v370_v26  ;;  %v372_v27 = vld [vmem:[%s1665_s5 + $0x120] sm:$0xff]  ;;  %v374_v28 = vld [vmem:[%s1665_s5 + $0x130] sm:$0xff] }
  0x43   : > { %v376_v29 = vld [vmem:[%s1665_s5 + $0x140] sm:$0xff]  ;;  %373 = vst [vmem:[%s1670_s6 + $0x90] sm:$0xff] %v372_v27  ;;  %375 = vst [vmem:[%s1670_s6 + $0x98] sm:$0xff] %v374_v28  ;;  %v378_v30 = vld [vmem:[%s1665_s5 + $0x150] sm:$0xff] }
  0x44   : > { %377 = vst [vmem:[%s1670_s6 + $0xa0] sm:$0xff] %v376_v29  ;;  %v380_v31 = vld [vmem:[%s1665_s5 + $0x160] sm:$0xff]  ;;  %v382_v32 = vld [vmem:[%s1665_s5 + $0x170] sm:$0xff]  ;;  %379 = vst [vmem:[%s1670_s6 + $0xa8] sm:$0xff] %v378_v30 }
  0x45   : > { %381 = vst [vmem:[%s1670_s6 + $0xb0] sm:$0xff] %v380_v31  ;;  %383 = vst [vmem:[%s1670_s6 + $0xb8] sm:$0xff] %v382_v32  ;;  %v384_v33 = vld [vmem:[%s1665_s5 + $0x180] sm:$0xff]  ;;  %v386_v34 = vld [vmem:[%s1665_s5 + $0x190] sm:$0xff] }
  0x46   : > { %v388_v35 = vld [vmem:[%s1665_s5 + $0x1a0] sm:$0xff]  ;;  %385 = vst [vmem:[%s1670_s6 + $0xc0] sm:$0xff] %v384_v33  ;;  %387 = vst [vmem:[%s1670_s6 + $0xc8] sm:$0xff] %v386_v34  ;;  %v390_v36 = vld [vmem:[%s1665_s5 + $0x1b0] sm:$0xff] }
  0x47   : > { %389 = vst [vmem:[%s1670_s6 + $0xd0] sm:$0xff] %v388_v35  ;;  %v392_v37 = vld [vmem:[%s1665_s5 + $0x1c0] sm:$0xff]  ;;  %v394_v38 = vld [vmem:[%s1665_s5 + $0x1d0] sm:$0xff]  ;;  %391 = vst [vmem:[%s1670_s6 + $0xd8] sm:$0xff] %v390_v36 }
  0x48   : > { %393 = vst [vmem:[%s1670_s6 + $0xe0] sm:$0xff] %v392_v37  ;;  %395 = vst [vmem:[%s1670_s6 + $0xe8] sm:$0xff] %v394_v38  ;;  %v396_v39 = vld [vmem:[%s1665_s5 + $0x1e0] sm:$0xff]  ;;  %v398_v40 = vld [vmem:[%s1665_s5 + $0x1f0] sm:$0xff] }
  0x49   : > { %397 = vst [vmem:[%s1670_s6 + $0xf0] sm:$0xff] %v396_v39  ;;  %399 = vst [vmem:[%s1670_s6 + $0xf8] sm:$0xff] %v398_v40 }
  0x4a PF: > { %p1184_p0 = scmp.ge.s32.totalorder %s1528_s22, 1  ;;  %p412_p1 = scmp.lt.s32.totalorder %s1528_s22, 19 }
  0x4c   : > { %p413_p2 = pnand %p1184_p0, %p412_p1 }
  0x4d   : > { %s419_s0 = sand.u32 (!%p413_p2), 1, %s1504_s16   ;;  %s426_s23 = sand.u32 (!%p413_p2), 1, %s1496_s14  }
  0x4e   : > { %416 = sbr.rel (%p413_p2) target bundleno = 415 (0x19f), region = 100  ;;  %s1185_s7 = sshll.u32 (!%p413_p2), %s426_s23, 8 }
  0x4f   : > { %s1289_s28 = smul.u32 (!%p413_p2), 72, %s419_s0  ;;  %s453_s11 = sand.u32 (!%p413_p2), 1, %s1488_s12  }
  0x50   : > { %s1290_s26 = smul.u32 (!%p413_p2), 72, %s453_s11  ;;  %s1186_s27 = sshll.u32 (!%p413_p2), %s1516_s19, 1 }
  0x51   : > { %p461_p3 = scmp.lt.s32.totalorder (!%p413_p2), %s1186_s27, 3  ;;  %s1745_s6 = scalar_lea.vmem (!%p413_p2), [#allocation3], %s1289_s28 }
  0x52   : > { %s1747_s1 = scalar_lea.vmem (!%p413_p2), [#allocation4], %s1185_s7  ;;  %s1749_s25 = scalar_lea.vmem (!%p413_p2), [#allocation5], %s1290_s26 }
  0x53   : > { %p1187_p4 = scmp.ne.s32.totalorder (!%p413_p2), %s1512_s18, 0 }
  0x55   : > { %s1887_s27 = smov (!%p461_p3, %s1186_s27), 3  ;;  %470 = sbr.rel (%p1187_p4) target bundleno = 96 (0x60), region = 112 }
  0x56   : > { %s463_s5 = scalar_lea.vmem %s1858_s2, %s1887_s27  ;;  %v1530_v41 = vmov (!%p1187_p4), 0.0  }
  0x57   : > { %471 = vst [vmem:[#allocation2] sm:$0xff] (!%p1187_p4), %v1530_v41  ;;  %472 = vst [vmem:[#allocation2 + $0x8] sm:$0xff] (!%p1187_p4), %v1530_v41 }
  0x58   : > { %473 = vst [vmem:[#allocation2 + $0x10] sm:$0xff] (!%p1187_p4), %v1530_v41  ;;  %474 = vst [vmem:[#allocation2 + $0x18] sm:$0xff] (!%p1187_p4), %v1530_v41 }
  0x59   : > { %475 = vst [vmem:[#allocation2 + $0x20] sm:$0xff] (!%p1187_p4), %v1530_v41  ;;  %476 = vst [vmem:[#allocation2 + $0x28] sm:$0xff] (!%p1187_p4), %v1530_v41 }
  0x5a   : > { %477 = vst [vmem:[#allocation2 + $0x30] sm:$0xff] (!%p1187_p4), %v1530_v41  ;;  %478 = vst [vmem:[#allocation2 + $0x38] sm:$0xff] (!%p1187_p4), %v1530_v41 }
  0x5b   : > { %479 = vst [vmem:[#allocation2 + $0x40] sm:$0xff] (!%p1187_p4), %v1530_v41  ;;  %480 = vst [vmem:[#allocation2 + $0x48] sm:$0xff] (!%p1187_p4), %v1530_v41 }
  0x5c   : > { %481 = vst [vmem:[#allocation2 + $0x50] sm:$0xff] %v1530_v41  ;;  %482 = vst [vmem:[#allocation2 + $0x58] sm:$0xff] %v1530_v41 }
  0x5d   : > { %483 = vst [vmem:[#allocation2 + $0x60] sm:$0xff] %v1530_v41  ;;  %484 = vst [vmem:[#allocation2 + $0x68] sm:$0xff] %v1530_v41 }
  0x5e   : > { %485 = vst [vmem:[#allocation2 + $0x70] sm:$0xff] %v1530_v41  ;;  %486 = vst [vmem:[#allocation2 + $0x78] sm:$0xff] %v1530_v41 }
  0x5f   : > { %487 = vst [vmem:[#allocation2 + $0x80] sm:$0xff] %v1530_v41  ;;  %488 = vst [vmem:[#allocation2 + $0x88] sm:$0xff] %v1530_v41 }
  0x60 PF: > { %v1380_v42 = vld [vmem:[%s1747_s1 + $0x4] ss:$8 sps:$4 sm:$0xff]   ;;  %v1382_v43 = vld [vmem:[%s1747_s1] ss:$8 sps:$4 sm:$0xff]   ;;  %v1383_v44 = vld [vmem:[%s1747_s1 + $0x14] ss:$8 sps:$4 sm:$0xff]  }
  0x61   : > { %755 = vmatprep.subr.bf16.mxu0 %v1380_v42  ;;  %1256 = vmatprep.subr.bf16.mxu1 %v1380_v42  ;;  %v1385_v45 = vld [vmem:[%s1747_s1 + $0x10] ss:$8 sps:$4 sm:$0xff]   ;;  %v1386_v46 = vld [vmem:[%s1747_s1 + $0x24] ss:$8 sps:$4 sm:$0xff]   ;;  %v1388_v47 = vld [vmem:[%s1747_s1 + $0x20] ss:$8 sps:$4 sm:$0xff]  }
  0x62   : > { %756 = vmatpush1.bf16.msra.mxu0 %v1382_v43  ;;  %1272 = vmatpush1.bf16.msra.mxu1 %v1382_v43  ;;  %v1389_v48 = vld [vmem:[%s1747_s1 + $0x34] ss:$8 sps:$4 sm:$0xff]   ;;  %v1391_v49 = vld [vmem:[%s1747_s1 + $0x30] ss:$8 sps:$4 sm:$0xff]   ;;  %v1392_v50 = vld [vmem:[%s1747_s1 + $0x44] ss:$8 sps:$4 sm:$0xff]  }
  0x63   : > { %757 = vmatprep.subr.bf16.mxu0 %v1383_v44  ;;  %1257 = vmatprep.subr.bf16.mxu1 %v1383_v44  ;;  %v1394_v51 = vld [vmem:[%s1747_s1 + $0x40] ss:$8 sps:$4 sm:$0xff]   ;;  %v1395_v52 = vld [vmem:[%s1747_s1 + $0x54] ss:$8 sps:$4 sm:$0xff]   ;;  %v1397_v53 = vld [vmem:[%s1747_s1 + $0x50] ss:$8 sps:$4 sm:$0xff]  }
  0x64   : > { %v1398_v54 = vld [vmem:[%s1747_s1 + $0x64] ss:$8 sps:$4 sm:$0xff]   ;;  %v1400_v56 = vld [vmem:[%s1747_s1 + $0x60] ss:$8 sps:$4 sm:$0xff]   ;;  %v1401_v58 = vld [vmem:[%s1747_s1 + $0x74] ss:$8 sps:$4 sm:$0xff]  }
  0x65   : > { %v1430_v55 = vld [vmem:[%s1745_s6 + $0x4] ss:$8 sps:$4 sm:$0xff]   ;;  %v1433_v57 = vld [vmem:[%s1745_s6 + $0x34] ss:$8 sps:$4 sm:$0xff]   ;;  %v1403_v59 = vld [vmem:[%s1747_s1 + $0x70] ss:$8 sps:$4 sm:$0xff]  }
  0x66   : > { %758 = vmatpush1.bf16.msra.mxu0 %v1385_v45  ;;  %1273 = vmatpush1.bf16.msra.mxu1 %v1385_v45  ;;  %v1404_v60 = vld [vmem:[%s1747_s1 + $0x84] ss:$8 sps:$4 sm:$0xff]   ;;  %v1406_v61 = vld [vmem:[%s1747_s1 + $0x80] ss:$8 sps:$4 sm:$0xff]   ;;  %v1407_v62 = vld [vmem:[%s1747_s1 + $0x94] ss:$8 sps:$4 sm:$0xff]  }
  0x67   : > { %759 = vmatprep.subr.bf16.mxu0 %v1386_v46  ;;  %1258 = vmatprep.subr.bf16.mxu1 %v1386_v46  ;;  %v1409_v63 = vld [vmem:[%s1747_s1 + $0x90] ss:$8 sps:$4 sm:$0xff]   ;;  %v1410_v0 = vld [vmem:[%s1747_s1 + $0xa4] ss:$8 sps:$4 sm:$0xff]   ;;  %v1412_v1 = vld [vmem:[%s1747_s1 + $0xa0] ss:$8 sps:$4 sm:$0xff]  }
  0x68   : > { %787 = vmatprep.mubr.bf16.mxu0 %v1430_v55  ;;  %817 = vmatprep.mubr.bf16.mxu1 %v1433_v57  ;;  %v1413_v2 = vld [vmem:[%s1747_s1 + $0xb4] ss:$8 sps:$4 sm:$0xff]   ;;  %v1415_v3 = vld [vmem:[%s1747_s1 + $0xb0] ss:$8 sps:$4 sm:$0xff]   ;;  %v1416_v4 = vld [vmem:[%s1747_s1 + $0xc4] ss:$8 sps:$4 sm:$0xff]  }
  0x69   : > { %v1418_v5 = vld [vmem:[%s1747_s1 + $0xc0] ss:$8 sps:$4 sm:$0xff]   ;;  %v1419_v6 = vld [vmem:[%s1747_s1 + $0xd4] ss:$8 sps:$4 sm:$0xff]   ;;  %v1421_v7 = vld [vmem:[%s1747_s1 + $0xd0] ss:$8 sps:$4 sm:$0xff]  }
  0x6a   : > { %760 = vmatpush1.bf16.msra.mxu0 %v1388_v47  ;;  %1274 = vmatpush1.bf16.msra.mxu1 %v1388_v47  ;;  %v1422_v8 = vld [vmem:[%s1747_s1 + $0xe4] ss:$8 sps:$4 sm:$0xff]   ;;  %v1424_v9 = vld [vmem:[%s1747_s1 + $0xe0] ss:$8 sps:$4 sm:$0xff]   ;;  %v1425_v10 = vld [vmem:[%s1747_s1 + $0xf4] ss:$8 sps:$4 sm:$0xff]  }
  0x6b   : > { %761 = vmatprep.subr.bf16.mxu0 %v1389_v48  ;;  %1259 = vmatprep.subr.bf16.mxu1 %v1389_v48  ;;  %v1427_v11 = vld [vmem:[%s1747_s1 + $0xf0] ss:$8 sps:$4 sm:$0xff]   ;;  %v1434_v15 = vld [vmem:[%s1745_s6 + $0x14] ss:$8 sps:$4 sm:$0xff]   ;;  %v1438_v19 = vld [vmem:[%s1745_s6 + $0x24] ss:$8 sps:$4 sm:$0xff]  }
  0x6c   : > { %v515_v12 = vld [vmem:[%s1745_s6 + $0x40] sm:$0xff]  ;;  %v1431_v14 = vld [vmem:[%s1745_s6 + $0x30] ss:$8 sps:$4 sm:$0xff]   ;;  %p1230_p5 = scmp.ne.s32.totalorder %s1512_s18, 8 }
  0x6d   : > { %v1428_v13 = vld [vmem:[%s1745_s6] ss:$8 sps:$4 sm:$0xff]   ;;  %v1197_v16 = vcombine.high %v515_v12, %v515_v12  ;;  %v1436_v17 = vld [vmem:[%s1745_s6 + $0x10] ss:$8 sps:$4 sm:$0xff]   ;;  %v1196_v18 = vcombine.low %v515_v12, %v515_v12 }
  0x6e   : > { %762 = vmatpush1.bf16.msra.mxu0 %v1391_v49  ;;  %1275 = vmatpush1.bf16.msra.mxu1 %v1391_v49  ;;  %v1441_v20 = vld [vmem:[%s1745_s6 + $0x20] ss:$8 sps:$4 sm:$0xff]   ;;  %v490_v23 = vld [vmem:[#allocation2 + $0x8] sm:$0xff] }
  0x6f   : > { %763 = vmatprep.subr.bf16.mxu0 %v1392_v50  ;;  %1260 = vmatprep.subr.bf16.mxu1 %v1392_v50  ;;  %v489_v21 = vld [vmem:[#allocation2] sm:$0xff]  ;;  %v502_v24 = vld [vmem:[#allocation2 + $0x68] sm:$0xff]  ;;  %v491_v26 = vld [vmem:[#allocation2 + $0x10] sm:$0xff] }
  0x70   : > { %v501_v22 = vld [vmem:[#allocation2 + $0x60] sm:$0xff]  ;;  %v503_v28 = vld [vmem:[#allocation2 + $0x70] sm:$0xff]  ;;  %v492_v31 = vld [vmem:[#allocation2 + $0x18] sm:$0xff] }
  0x71   : > { %v504_v34 = vld [vmem:[#allocation2 + $0x78] sm:$0xff]  ;;  %v493_v45 = vld [vmem:[#allocation2 + $0x20] sm:$0xff]  ;;  %v494_v47 = vld [vmem:[#allocation2 + $0x28] sm:$0xff] }
  0x72   : > { %764 = vmatpush1.bf16.msra.mxu0 %v1394_v51  ;;  %1276 = vmatpush1.bf16.msra.mxu1 %v1394_v51  ;;  %v505_v46 = vld [vmem:[#allocation2 + $0x80] sm:$0xff]  ;;  %v506_v48 = vld [vmem:[#allocation2 + $0x88] sm:$0xff]  ;;  %v495_v50 = vld [vmem:[#allocation2 + $0x30] sm:$0xff] }
  0x73   : > { %765 = vmatprep.subr.bf16.mxu0 %v1395_v52  ;;  %1261 = vmatprep.subr.bf16.mxu1 %v1395_v52 }
  0x76   : > { %766 = vmatpush1.bf16.msra.mxu0 %v1397_v53  ;;  %1277 = vmatpush1.bf16.msra.mxu1 %v1397_v53 }
  0x77   : > { %767 = vmatprep.subr.bf16.mxu0 %v1398_v54  ;;  %1262 = vmatprep.subr.bf16.mxu1 %v1398_v54  ;;  %v496_v54 = vld [vmem:[#allocation2 + $0x38] sm:$0xff] }
  0x7a   : > { %768 = vmatpush1.bf16.msra.mxu0 %v1400_v56  ;;  %1278 = vmatpush1.bf16.msra.mxu1 %v1400_v56 }
  0x7b   : > { %769 = vmatprep.subr.bf16.mxu0 %v1401_v58  ;;  %1263 = vmatprep.subr.bf16.mxu1 %v1401_v58 }
  0x7e   : > { %770 = vmatpush1.bf16.msra.mxu0 %v1403_v59  ;;  %1279 = vmatpush1.bf16.msra.mxu1 %v1403_v59 }
  0x7f   : > { %771 = vmatprep.subr.bf16.mxu0 %v1404_v60  ;;  %1264 = vmatprep.subr.bf16.mxu1 %v1404_v60 }
  0x82   : > { %772 = vmatpush1.bf16.msra.mxu0 %v1406_v61  ;;  %1280 = vmatpush1.bf16.msra.mxu1 %v1406_v61 }
  0x83   : > { %773 = vmatprep.subr.bf16.mxu0 %v1407_v62  ;;  %1265 = vmatprep.subr.bf16.mxu1 %v1407_v62 }
  0x86   : > { %774 = vmatpush1.bf16.msra.mxu0 %v1409_v63  ;;  %1281 = vmatpush1.bf16.msra.mxu1 %v1409_v63 }
  0x87   : > { %775 = vmatprep.subr.bf16.mxu0 %v1410_v0  ;;  %1266 = vmatprep.subr.bf16.mxu1 %v1410_v0 }
  0x8a   : > { %776 = vmatpush1.bf16.msra.mxu0 %v1412_v1  ;;  %1282 = vmatpush1.bf16.msra.mxu1 %v1412_v1  ;;  %v497_v1 = vld [vmem:[#allocation2 + $0x40] sm:$0xff] }
  0x8b   : > { %777 = vmatprep.subr.bf16.mxu0 %v1413_v2  ;;  %1267 = vmatprep.subr.bf16.mxu1 %v1413_v2  ;;  %v498_v2 = vld [vmem:[#allocation2 + $0x48] sm:$0xff] }
  0x8e   : > { %778 = vmatpush1.bf16.msra.mxu0 %v1415_v3  ;;  %1283 = vmatpush1.bf16.msra.mxu1 %v1415_v3 }
  0x8f   : > { %779 = vmatprep.subr.bf16.mxu0 %v1416_v4  ;;  %1268 = vmatprep.subr.bf16.mxu1 %v1416_v4  ;;  %v499_v4 = vld [vmem:[#allocation2 + $0x50] sm:$0xff] }
  0x92   : > { %780 = vmatpush1.bf16.msra.mxu0 %v1418_v5  ;;  %1284 = vmatpush1.bf16.msra.mxu1 %v1418_v5 }
  0x93   : > { %781 = vmatprep.subr.bf16.mxu0 %v1419_v6  ;;  %1269 = vmatprep.subr.bf16.mxu1 %v1419_v6 }
  0x96   : > { %782 = vmatpush1.bf16.msra.mxu0 %v1421_v7  ;;  %1285 = vmatpush1.bf16.msra.mxu1 %v1421_v7  ;;  %v500_v7 = vld [vmem:[#allocation2 + $0x58] sm:$0xff] }
  0x97   : > { %783 = vmatprep.subr.bf16.mxu0 %v1422_v8  ;;  %1270 = vmatprep.subr.bf16.mxu1 %v1422_v8 }
  0x9a   : > { %784 = vmatpush1.bf16.msra.mxu0 %v1424_v9  ;;  %1286 = vmatpush1.bf16.msra.mxu1 %v1424_v9 }
  0x9b   : > { %785 = vmatprep.subr.bf16.mxu0 %v1425_v10  ;;  %1271 = vmatprep.subr.bf16.mxu1 %v1425_v10 }
  0x9e   : > { %786 = vmatpush1.bf16.msra.mxu0 %v1427_v11  ;;  %1287 = vmatpush1.bf16.msra.mxu1 %v1427_v11 }
  0xa1   : > { %788 = vmatmul.mubr.bf16.vlgmr.msra.gmra.mrb[0].mxu0 %v1428_v13  ;;  %818 = vmatmul.mubr.bf16.vlgmr.msra.gmra.mrb[0].mxu1 %v1431_v14  ;;  %v896_v13 = vlaneseq (!%p1230_p5) }
  0xa2   : > { %797 = vmatprep.mubr.bf16.mxu0 %v1434_v15  ;;  %827 = vmatprep.mubr.bf16.mxu1 %v1197_v16  ;;  %v894_v15 = vld [vmem:[%s463_s5] sm:$0x3] (!%p1230_p5) }
  0xa3   : > { %v897_v14 = vshrl.u32 (!%p1230_p5), %v896_v13, 7 }
  0xa9   : > { %798 = vmatmul.mubr.bf16.gmra.mrb[4].mxu0 %v1436_v17  ;;  %828 = vmatmul.mubr.bf16.gmra.mrb[4].mxu1 %v1196_v18  ;;  %v898_v18 = vsub.s32 (!%p1230_p5), 0, %v897_v14 }
  0xaa   : > { %807 = vmatprep.mubr.bf16.mxu0 %v1438_v19  ;;  %v902_v19 = vsub.s32 (!%p1230_p5), 1, %v897_v14 }
  0xb1   : > { %808 = vmatmul.mubr.bf16.gmra.mrb[8].mxu0 %v1441_v20 }
 0x174   : > { %v789_v25 = vpop.f32.mrb[0].mxu0  ;;  %v819_v27 = vpop.f32.mrb[0].mxu1 }
 0x175   : > { %v836_v29 = vadd.f32 %v789_v25, %v489_v21  ;;  %v791_v30 = vpop.f32.mrb[1].mxu0  ;;  %v848_v32 = vadd.f32 %v819_v27, %v501_v22  ;;  %v821_v33 = vpop.f32.mrb[1].mxu1 }
 0x176   : > { %v837_v35 = vadd.f32 %v791_v30, %v490_v23  ;;  %v793_v36 = vpop.f32.mrb[2].mxu0  ;;  %v849_v37 = vadd.f32 %v821_v33, %v502_v24  ;;  %v823_v38 = vpop.f32.mrb[2].mxu1  ;;  %v899_v23 = vrot.slane (!%p1230_p5), %v894_v15, %v898_v18  ;;  %v903_v24 = vrot.slane (!%p1230_p5), %v894_v15, %v902_v19 }
 0x177   : > { %854 = vst [vmem:[#allocation2] sm:$0xff] %v836_v29  ;;  %v838_v39 = vadd.f32 %v793_v36, %v491_v26  ;;  %v795_v40 = vpop.f32.mrb[3].mxu0  ;;  %866 = vst [vmem:[#allocation2 + $0x60] sm:$0xff] %v848_v32  ;;  %v850_v41 = vadd.f32 %v823_v38, %v503_v28  ;;  %v825_v42 = vpop.f32.mrb[3].mxu1 }
 0x178   : > { %855 = vst [vmem:[#allocation2 + $0x8] sm:$0xff] %v837_v35  ;;  %v839_v43 = vadd.f32 %v795_v40, %v492_v31  ;;  %867 = vst [vmem:[#allocation2 + $0x68] sm:$0xff] %v849_v37  ;;  %v851_v44 = vadd.f32 %v825_v42, %v504_v34 }
 0x179   : > { %856 = vst [vmem:[#allocation2 + $0x10] sm:$0xff] %v838_v39  ;;  %868 = vst [vmem:[#allocation2 + $0x70] sm:$0xff] %v850_v41 }
 0x17a   : > { %857 = vst [vmem:[#allocation2 + $0x18] sm:$0xff] %v839_v43  ;;  %869 = vst [vmem:[#allocation2 + $0x78] sm:$0xff] %v851_v44 }
 0x17c   : > { %v799_v49 = vpop.f32.mrb[4].mxu0  ;;  %v829_v51 = vpop.f32.mrb[4].mxu1 }
 0x17d   : > { %v840_v52 = vadd.f32 %v799_v49, %v493_v45  ;;  %v801_v53 = vpop.f32.mrb[5].mxu0  ;;  %v852_v55 = vadd.f32 %v829_v51, %v505_v46  ;;  %v831_v56 = vpop.f32.mrb[5].mxu1 }
 0x17e   : > { %v841_v57 = vadd.f32 %v801_v53, %v494_v47  ;;  %v803_v58 = vpop.f32.mrb[6].mxu0  ;;  %v853_v59 = vadd.f32 %v831_v56, %v506_v48  ;;  %v833_v60 = vpop.f32.mrb[6].mxu1  ;;  %v876_v16 = vld [vmem:[#allocation2] sm:$0xff] (!%p1230_p5) }
 0x17f   : > { %858 = vst [vmem:[#allocation2 + $0x20] sm:$0xff] %v840_v52  ;;  %v842_v61 = vadd.f32 %v803_v58, %v495_v50  ;;  %v805_v62 = vpop.f32.mrb[7].mxu0  ;;  %870 = vst [vmem:[#allocation2 + $0x80] sm:$0xff] %v852_v55  ;;  %v834_v63 = vpop.f32.mrb[7].mxu1  ;;  %v877_v17 = vld [vmem:[#allocation2 + $0x8] sm:$0xff] (!%p1230_p5)  ;;  %v906_v30 = vadd.f32 (!%p1230_p5), %v899_v23, %v876_v16  ;;  %v888_v40 = vld [vmem:[#allocation2 + $0x60] sm:$0xff] (!%p1230_p5) }
 0x180   : > { %859 = vst [vmem:[#allocation2 + $0x28] sm:$0xff] %v841_v57  ;;  %v843_v0 = vadd.f32 %v805_v62, %v496_v54  ;;  %871 = vst [vmem:[#allocation2 + $0x88] sm:$0xff] %v853_v59  ;;  %v878_v20 = vld [vmem:[#allocation2 + $0x10] sm:$0xff] (!%p1230_p5)  ;;  %v907_v31 = vadd.f32 (!%p1230_p5), %v903_v24, %v877_v17  ;;  %v889_v41 = vld [vmem:[#allocation2 + $0x68] sm:$0xff] (!%p1230_p5)  ;;  %v918_v55 = vadd.f32 (!%p1230_p5), %v899_v23, %v888_v40 }
 0x181   : > { %860 = vst [vmem:[#allocation2 + $0x30] sm:$0xff] %v842_v61  ;;  %v879_v21 = vld [vmem:[#allocation2 + $0x18] sm:$0xff] (!%p1230_p5)  ;;  %v908_v32 = vadd.f32 (!%p1230_p5), %v899_v23, %v878_v20  ;;  %v890_v42 = vld [vmem:[#allocation2 + $0x70] sm:$0xff] (!%p1230_p5)  ;;  %v919_v56 = vadd.f32 (!%p1230_p5), %v903_v24, %v889_v41 }
 0x182   : > { %861 = vst [vmem:[#allocation2 + $0x38] sm:$0xff] %v843_v0  ;;  %v909_v33 = vadd.f32 (!%p1230_p5), %v903_v24, %v879_v21  ;;  %v1246_v43 = vpack.c.bf16 (!%p1230_p5), %v907_v31, %v906_v30  ;;  %v891_v47 = vld [vmem:[#allocation2 + $0x78] sm:$0xff] (!%p1230_p5)  ;;  %v920_v57 = vadd.f32 (!%p1230_p5), %v899_v23, %v890_v42 }
 0x183   : > { %v921_v59 = vadd.f32 (!%p1230_p5), %v903_v24, %v891_v47  ;;  %v1252_v62 = vpack.c.bf16 (!%p1230_p5), %v919_v56, %v918_v55 }
 0x184   : > { %v809_v3 = vpop.f32.mrb[8].mxu0  ;;  %875 = sbr.rel (%p1230_p5) target bundleno = 407 (0x197), region = 116  ;;  %v1247_v44 = vpack.c.bf16 (!%p1230_p5), %v909_v33, %v908_v32  ;;  %980 = vst [vmem:[%s1749_s25] sm:$0xff] (!%p1230_p5), %v1246_v43 }
 0x185   : > { %v844_v5 = vadd.f32 %v809_v3, %v497_v1  ;;  %v811_v6 = vpop.f32.mrb[9].mxu0  ;;  %v1253_v63 = vpack.c.bf16 (!%p1230_p5), %v921_v59, %v920_v57  ;;  %986 = vst [vmem:[%s1749_s25 + $0x30] sm:$0xff] (!%p1230_p5), %v1252_v62 }
 0x186   : > { %v845_v8 = vadd.f32 %v811_v6, %v498_v2  ;;  %v813_v9 = vpop.f32.mrb[10].mxu0  ;;  %v880_v22 = vld [vmem:[#allocation2 + $0x20] sm:$0xff] (!%p1230_p5)  ;;  %981 = vst [vmem:[%s1749_s25 + $0x8] sm:$0xff] (!%p1230_p5), %v1247_v44 }
 0x187   : > { %862 = vst [vmem:[#allocation2 + $0x40] sm:$0xff] %v844_v5  ;;  %v846_v10 = vadd.f32 %v813_v9, %v499_v4  ;;  %v815_v11 = vpop.f32.mrb[11].mxu0  ;;  %v881_v25 = vld [vmem:[#allocation2 + $0x28] sm:$0xff] (!%p1230_p5)  ;;  %v910_v36 = vadd.f32 (!%p1230_p5), %v899_v23, %v880_v22  ;;  %v892_v48 = vld [vmem:[#allocation2 + $0x80] sm:$0xff] (!%p1230_p5)  ;;  %987 = vst [vmem:[%s1749_s25 + $0x38] sm:$0xff] (!%p1230_p5), %v1253_v63 }
 0x188   : > { %863 = vst [vmem:[#allocation2 + $0x48] sm:$0xff] %v845_v8  ;;  %v847_v12 = vadd.f32 %v815_v11, %v500_v7  ;;  %v882_v26 = vld [vmem:[#allocation2 + $0x30] sm:$0xff] (!%p1230_p5)  ;;  %v911_v37 = vadd.f32 (!%p1230_p5), %v903_v24, %v881_v25  ;;  %v893_v49 = vld [vmem:[#allocation2 + $0x88] sm:$0xff] (!%p1230_p5)  ;;  %v922_v60 = vadd.f32 (!%p1230_p5), %v899_v23, %v892_v48 }
 0x189   : > { %864 = vst [vmem:[#allocation2 + $0x50] sm:$0xff] %v846_v10  ;;  %v883_v27 = vld [vmem:[#allocation2 + $0x38] sm:$0xff] (!%p1230_p5)  ;;  %v912_v38 = vadd.f32 (!%p1230_p5), %v899_v23, %v882_v26  ;;  %v923_v61 = vadd.f32 (!%p1230_p5), %v903_v24, %v893_v49 }
 0x18a   : > { %865 = vst [vmem:[#allocation2 + $0x58] sm:$0xff] %v847_v12  ;;  %v913_v39 = vadd.f32 (!%p1230_p5), %v903_v24, %v883_v27  ;;  %v1248_v50 = vpack.c.bf16 (!%p1230_p5), %v911_v37, %v910_v36 }
 0x18b   : > { %v1254_v0 = vpack.c.bf16 %v923_v61, %v922_v60 }
 0x18c   : > { %v1249_v51 = vpack.c.bf16 %v913_v39, %v912_v38  ;;  %982 = vst [vmem:[%s1749_s25 + $0x10] sm:$0xff] %v1248_v50 }
 0x18d   : > { %988 = vst [vmem:[%s1749_s25 + $0x40] sm:$0xff] %v1254_v0 }
 0x18e   : > { %v884_v28 = vld [vmem:[#allocation2 + $0x40] sm:$0xff]  ;;  %983 = vst [vmem:[%s1749_s25 + $0x18] sm:$0xff] %v1249_v51 }
 0x18f   : > { %v885_v29 = vld [vmem:[#allocation2 + $0x48] sm:$0xff]  ;;  %v914_v45 = vadd.f32 %v899_v23, %v884_v28 }
 0x190   : > { %v886_v34 = vld [vmem:[#allocation2 + $0x50] sm:$0xff]  ;;  %v915_v46 = vadd.f32 %v903_v24, %v885_v29 }
 0x191   : > { %v887_v35 = vld [vmem:[#allocation2 + $0x58] sm:$0xff]  ;;  %v916_v52 = vadd.f32 %v899_v23, %v886_v34 }
 0x192   : > { %v917_v53 = vadd.f32 %v903_v24, %v887_v35  ;;  %v1250_v54 = vpack.c.bf16 %v915_v46, %v914_v45 }
 0x194   : > { %v1251_v58 = vpack.c.bf16 %v917_v53, %v916_v52  ;;  %984 = vst [vmem:[%s1749_s25 + $0x20] sm:$0xff] %v1250_v54 }
 0x196   : > { %985 = vst [vmem:[%s1749_s25 + $0x28] sm:$0xff] %v1251_v58 }
 0x197 PF: > { %995 = sbr.rel (!%p1645_p12) target bundleno = 415 (0x19f), region = 120  ;;  %s1255_s14 = sshll.u32 (%p1645_p12), %s1516_s19, 3  ;;  %v1045_v1 = vld [vmem:[%s1749_s25] sm:$0xff] (%p1645_p12)  ;;  %v1049_v3 = vld [vmem:[%s1749_s25 + $0x10] sm:$0xff] (%p1645_p12)  ;;  %v1051_v4 = vld [vmem:[%s1749_s25 + $0x18] sm:$0xff] (%p1645_p12) }
 0x198   : > { %s1001_s0 = scalar_lea.vmem (%p1645_p12), %s1859_s3, %s1255_s14  ;;  %v1057_v7 = vld [vmem:[%s1749_s25 + $0x30] sm:$0xff] (%p1645_p12)  ;;  %v1061_v9 = vld [vmem:[%s1749_s25 + $0x40] sm:$0xff] (%p1645_p12) }
 0x199   : > { %v1047_v2 = vld [vmem:[%s1749_s25 + $0x8] sm:$0xff] (%p1645_p12)  ;;  %1046 = vst [vmem:[%s1001_s0] sm:$0xff] (%p1645_p12), %v1045_v1  ;;  %1050 = vst [vmem:[%s1001_s0 + $0x20] sm:$0xff] (%p1645_p12), %v1049_v3 }
 0x19a   : > { %1048 = vst [vmem:[%s1001_s0 + $0x10] sm:$0xff] (%p1645_p12), %v1047_v2  ;;  %1052 = vst [vmem:[%s1001_s0 + $0x30] sm:$0xff] (%p1645_p12), %v1051_v4  ;;  %v1059_v8 = vld [vmem:[%s1749_s25 + $0x38] sm:$0xff] (%p1645_p12) }
 0x19b   : > { %v1053_v5 = vld [vmem:[%s1749_s25 + $0x20] sm:$0xff] (%p1645_p12)  ;;  %1058 = vst [vmem:[%s1001_s0 + $0x60] sm:$0xff] (%p1645_p12), %v1057_v7  ;;  %1060 = vst [vmem:[%s1001_s0 + $0x70] sm:$0xff] (%p1645_p12), %v1059_v8 }
 0x19c   : > { %1054 = vst [vmem:[%s1001_s0 + $0x40] sm:$0xff] (%p1645_p12), %v1053_v5  ;;  %1062 = vst [vmem:[%s1001_s0 + $0x80] sm:$0xff] (%p1645_p12), %v1061_v9 }
 0x19d   : > { %v1055_v6 = vld [vmem:[%s1749_s25 + $0x28] sm:$0xff] (%p1645_p12) }
 0x19e   : > { %1056 = vst [vmem:[%s1001_s0 + $0x50] sm:$0xff] %v1055_v6 }
 0x19f PF: > { %s13_s22 = sadd.s32 1, %s1528_s22   ;;  %s1869_s10 = sld [smem:[#allocation6_spill]] }
 0x1a0   : > { %p10_p6 = scmp.ge.s32.totalorder %s13_s22, 20   ;;  %s1870_s12 = smov %s1492_s13 }
 0x1a1   : > { %s1871_s13 = smov %s1643_s9  ;;  %s1872_s14 = smov %s1500_s15 }
 0x1a2   : > { %s1873_s15 = smov %s1640_s8  ;;  %s1874_s16 = smov %s1508_s17 }
 0x1a3   : > { %s1875_s17 = smov %s1626_s30  ;;  %s1876_s18 = smov %s1520_s20 }
 0x1a4   : > { %s1877_s19 = smov %s1524_s21  ;;  %s1878_s20 = smov %s1881_s24 }
 0x1a5   : > { %s1879_s21 = smov %s1869_s10  ;;  %12 = sbr.rel (!%p10_p6) target bundleno = 9 (0x9), region = 200 }

// kernel: _lambda_.20
= control target key start
LH: loop header
LB: loop body
LE: loop exit
PB: predicated region body
PF: predicated region fallthrough
CT: control target
= control target key end

     0   :  { %s2531_s0 = inlined_call_operand.vmem [shape: bf16[72,4608], index: 0, kind: input, shape index: {}]   ;;  %s2532_s1 = inlined_call_operand.vmem [shape: bf16[4608,512], index: 1, kind: input, shape index: {}]   ;;  %s2533_s2 = inlined_call_operand.vmem [shape: f32[1,512], index: 2, kind: input, shape index: {}]   ;;  %s2534_s3 = inlined_call_operand.vmem [shape: bf16[72,512], index: 3, kind: output, shape index: {}]  }
   0x1   :  { %2536 = sst [smem:[#allocation7_spill]] %s2531_s0 }
   0x2   :  { %2537 = sst [smem:[#allocation8_spill]] %s2532_s1 }
   0x3   :  { %s2101_s12 = smov 0   ;;  %s2103_s13 = smov 0  }
   0x4   :  { %s2105_s14 = smov 0   ;;  %s2107_s15 = smov 0  }
   0x5   :  { %s2109_s16 = smov 0   ;;  %s2111_s17 = smov 0  }
   0x6   :  { %s2113_s18 = smov 0   ;;  %s2115_s19 = smov 0  }
   0x7   :  { %s2117_s20 = smov 0   ;;  %s2119_s21 = smov 0  }
   0x8   :  { %s2121_s22 = smov 0  }
   0x9 LB: > { %s1635_s23 = sadd.s32 4294967295, %s2078_s22   ;;  %s25_s24 = sadd.s32 1, %s2070_s20  ;;  %s2078_s22 = sphi %s2121_s22, %s13_s22   ;;  %s2074_s21 = sphi %s2119_s21, %s2554_s21   ;;  %s2070_s20 = sphi %s2117_s20, %s2553_s20   ;;  %s2066_s19 = sphi %s2115_s19, %s2552_s19   ;;  %s2062_s18 = sphi %s2113_s18, %s2551_s18   ;;  %s2058_s17 = sphi %s2111_s17, %s2550_s17   ;;  %s2054_s16 = sphi %s2109_s16, %s2549_s16   ;;  %s2050_s15 = sphi %s2107_s15, %s2548_s15   ;;  %s2046_s14 = sphi %s2105_s14, %s2547_s14   ;;  %s2042_s13 = sphi %s2103_s13, %s2546_s13   ;;  %s2038_s12 = sphi %s2101_s12, %s2545_s12  }
   0xa   : > { %p26_p0 = scmp.ge.s32.totalorder %s25_s24, 9  ;;  %s28_s25 = sadd.s32 1, %s2074_s21 }
   0xb   : > { %s41_s26 = sadd.s32 1, %s2058_s17  ;;  %p48_p1 = scmp.ne.s32.totalorder %s2058_s17, %s2054_s16 }
   0xc   : > { %s2556_s24 = smov (%p26_p0, %s25_s24), 0  ;;  %s2558_s25 = smov (!%p26_p0, %s28_s25), %s2074_s21 }
   0xd   : > { %s37_s27 = ssub.s32 %s2070_s20, %s2556_s24  ;;  %p49_p2 = scmp.eq.s32.totalorder %s2078_s22, 0 }
   0xe   : > { %p30_p3 = scmp.ge.s32.totalorder %s2558_s25, 2  ;;  %p39_p4 = scmp.eq.s32.totalorder %s37_s27, 0 }
   0xf   : > { %p2168_p5 = por %p49_p2, %p48_p1  ;;  %s69_s29 = sadd.s32 1, %s2050_s15 }
  0x10   : > { %s2560_s25 = smov (%p30_p3, %s2558_s25), 0  ;;  %p76_p6 = scmp.ne.s32.totalorder %s2050_s15, %s2046_s14 }
  0x11   : > { %2539 = sst [smem:[#allocation6_spill]] %s2560_s25  ;;  %s65_s4 = ssub.s32 %s2074_s21, %s2560_s25 }
  0x12   : > { %s2176_s30 = scalar_select %p39_p4, %s2058_s17, %s41_s26  }
  0x13   : > { %s66_s5 = sor.u32 %s65_s4, %s37_s27  ;;  %p121_p7 = scmp.eq.s32.totalorder %s65_s4, 0 }
  0x14   : > { %p67_p8 = scmp.eq.s32.totalorder %s66_s5, 0  ;;  %p2182_p9 = por %p76_p6, %p49_p2 }
  0x15   : > { %s123_s7 = sadd.s32 1, %s2042_s13  ;;  %p133_p10 = scmp.ne.s32.totalorder %s2042_s13, %s2038_s12 }
  0x16   : > { %s2190_s8 = scalar_select %p67_p8, %s2050_s15, %s69_s29  }
  0x17   : > { %s2193_s9 = scalar_select %p121_p7, %s2042_s13, %s123_s7  }
  0x18   : > { %p134_p11 = scmp.eq.s32.totalorder %s1635_s23, 17  ;;  %p1638_p13 = scmp.ge.s32.totalorder %s2078_s22, 18 }
  0x1a   : > { %p2195_p12 = por %p134_p11, %p133_p10  ;;  %156 = sbr.rel (%p1638_p13) target bundleno = 95 (0x5f), region = 16 }
  0x21   : > { %159 = sbr.rel (!%p2168_p5) target bundleno = 53 (0x35), region = 20  ;;  %s161_s11 = sand.u32 (%p2168_p5), 1, %s2058_s17  }
  0x22   : > { %s1748_s26 = sshll.u32 (%p2168_p5), %s2070_s20, 4  ;;  %s1776_s27 = smul.u32 (%p2168_p5), 144, %s161_s11 }
  0x23   : > { %s2542_s0 = sld [smem:[#allocation7_spill]] (%p2168_p5) }
  0x24   : > { %s163_s23 = scalar_lea.vmem (%p2168_p5), [#allocation3], %s1776_s27 }
  0x29   : > { %s2207_s5 = scalar_lea.vmem %s2542_s0, %s1748_s26 }
  0x2a   : > { %v182_v0 = vld [vmem:[%s2207_s5] sm:$0xff]  ;;  %v184_v1 = vld [vmem:[%s2207_s5 + $0x8] sm:$0xff]  ;;  %v186_v2 = vld [vmem:[%s2207_s5 + $0x90] sm:$0xff] }
  0x2b   : > { %v188_v3 = vld [vmem:[%s2207_s5 + $0x98] sm:$0xff]  ;;  %v190_v4 = vld [vmem:[%s2207_s5 + $0x120] sm:$0xff]  ;;  %v192_v5 = vld [vmem:[%s2207_s5 + $0x128] sm:$0xff]  ;;  %183 = vst [vmem:[%s163_s23] sm:$0xff] %v182_v0 }
  0x2c   : > { %185 = vst [vmem:[%s163_s23 + $0x8] sm:$0xff] %v184_v1  ;;  %187 = vst [vmem:[%s163_s23 + $0x10] sm:$0xff] %v186_v2  ;;  %v194_v6 = vld [vmem:[%s2207_s5 + $0x1b0] sm:$0xff]  ;;  %v196_v7 = vld [vmem:[%s2207_s5 + $0x1b8] sm:$0xff] }
  0x2d   : > { %189 = vst [vmem:[%s163_s23 + $0x18] sm:$0xff] %v188_v3  ;;  %191 = vst [vmem:[%s163_s23 + $0x20] sm:$0xff] %v190_v4  ;;  %v198_v8 = vld [vmem:[%s2207_s5 + $0x240] sm:$0xff]  ;;  %v200_v9 = vld [vmem:[%s2207_s5 + $0x248] sm:$0xff] }
  0x2e   : > { %193 = vst [vmem:[%s163_s23 + $0x28] sm:$0xff] %v192_v5  ;;  %195 = vst [vmem:[%s163_s23 + $0x30] sm:$0xff] %v194_v6  ;;  %v202_v10 = vld [vmem:[%s2207_s5 + $0x2d0] sm:$0xff]  ;;  %v204_v11 = vld [vmem:[%s2207_s5 + $0x2d8] sm:$0xff] }
  0x2f   : > { %197 = vst [vmem:[%s163_s23 + $0x38] sm:$0xff] %v196_v7  ;;  %199 = vst [vmem:[%s163_s23 + $0x40] sm:$0xff] %v198_v8  ;;  %v206_v12 = vld [vmem:[%s2207_s5 + $0x360] sm:$0xff]  ;;  %v208_v13 = vld [vmem:[%s2207_s5 + $0x368] sm:$0xff] }
  0x30   : > { %201 = vst [vmem:[%s163_s23 + $0x48] sm:$0xff] %v200_v9  ;;  %203 = vst [vmem:[%s163_s23 + $0x50] sm:$0xff] %v202_v10  ;;  %v210_v14 = vld [vmem:[%s2207_s5 + $0x3f0] sm:$0xff]  ;;  %v212_v15 = vld [vmem:[%s2207_s5 + $0x3f8] sm:$0xff] }
  0x31   : > { %205 = vst [vmem:[%s163_s23 + $0x58] sm:$0xff] %v204_v11  ;;  %207 = vst [vmem:[%s163_s23 + $0x60] sm:$0xff] %v206_v12  ;;  %v214_v16 = vld [vmem:[%s2207_s5 + $0x480] sm:$0xff]  ;;  %v216_v17 = vld [vmem:[%s2207_s5 + $0x488] sm:$0xff] }
  0x32   : > { %209 = vst [vmem:[%s163_s23 + $0x68] sm:$0xff] %v208_v13  ;;  %211 = vst [vmem:[%s163_s23 + $0x70] sm:$0xff] %v210_v14 }
  0x33   : > { %213 = vst [vmem:[%s163_s23 + $0x78] sm:$0xff] %v212_v15  ;;  %215 = vst [vmem:[%s163_s23 + $0x80] sm:$0xff] %v214_v16 }
  0x34   : > { %217 = vst [vmem:[%s163_s23 + $0x88] sm:$0xff] %v216_v17 }
  0x35 PF: > { %223 = sbr.rel (!%p2182_p9) target bundleno = 95 (0x5f), region = 43  ;;  %s225_s28 = sand.u32 (%p2182_p9), 1, %s2050_s15  }
  0x36   : > { %s1643_s7 = sshll.u32 (%p2182_p9), %s2074_s21, 1  ;;  %s1641_s11 = sshll.u32 (%p2182_p9), %s225_s28, 9 }
  0x37   : > { %s1749_s26 = sshll.u32 (%p2182_p9), %s2070_s20, 8  ;;  %s2543_s1 = sld [smem:[#allocation8_spill]] (%p2182_p9) }
  0x38   : > { %s231_s27 = sadd.s32 (%p2182_p9), %s1749_s26, %s1643_s7  ;;  %s2240_s6 = scalar_lea.vmem (%p2182_p9), [#allocation4], %s1641_s11 }
  0x39   : > { %s1645_s29 = sshll.u32 (%p2182_p9), %s231_s27, 2 }
  0x3d   : > { %s2235_s5 = scalar_lea.vmem %s2543_s1, %s1645_s29 }
  0x3e   : > { %v387_v18 = vld [vmem:[%s2235_s5] sm:$0xff]  ;;  %v389_v19 = vld [vmem:[%s2235_s5 + $0x10] sm:$0xff] }
  0x3f   : > { %v391_v20 = vld [vmem:[%s2235_s5 + $0x20] sm:$0xff]  ;;  %388 = vst [vmem:[%s2240_s6] sm:$0xff] %v387_v18  ;;  %390 = vst [vmem:[%s2240_s6 + $0x8] sm:$0xff] %v389_v19  ;;  %v393_v21 = vld [vmem:[%s2235_s5 + $0x30] sm:$0xff] }
  0x40   : > { %392 = vst [vmem:[%s2240_s6 + $0x10] sm:$0xff] %v391_v20  ;;  %v395_v22 = vld [vmem:[%s2235_s5 + $0x40] sm:$0xff]  ;;  %v397_v23 = vld [vmem:[%s2235_s5 + $0x50] sm:$0xff]  ;;  %394 = vst [vmem:[%s2240_s6 + $0x18] sm:$0xff] %v393_v21 }
  0x41   : > { %396 = vst [vmem:[%s2240_s6 + $0x20] sm:$0xff] %v395_v22  ;;  %398 = vst [vmem:[%s2240_s6 + $0x28] sm:$0xff] %v397_v23  ;;  %v399_v24 = vld [vmem:[%s2235_s5 + $0x60] sm:$0xff]  ;;  %v401_v25 = vld [vmem:[%s2235_s5 + $0x70] sm:$0xff] }
  0x42   : > { %v403_v26 = vld [vmem:[%s2235_s5 + $0x80] sm:$0xff]  ;;  %400 = vst [vmem:[%s2240_s6 + $0x30] sm:$0xff] %v399_v24  ;;  %402 = vst [vmem:[%s2240_s6 + $0x38] sm:$0xff] %v401_v25  ;;  %v405_v27 = vld [vmem:[%s2235_s5 + $0x90] sm:$0xff] }
  0x43   : > { %404 = vst [vmem:[%s2240_s6 + $0x40] sm:$0xff] %v403_v26  ;;  %v407_v28 = vld [vmem:[%s2235_s5 + $0xa0] sm:$0xff]  ;;  %v409_v29 = vld [vmem:[%s2235_s5 + $0xb0] sm:$0xff]  ;;  %406 = vst [vmem:[%s2240_s6 + $0x48] sm:$0xff] %v405_v27 }
  0x44   : > { %408 = vst [vmem:[%s2240_s6 + $0x50] sm:$0xff] %v407_v28  ;;  %410 = vst [vmem:[%s2240_s6 + $0x58] sm:$0xff] %v409_v29  ;;  %v411_v30 = vld [vmem:[%s2235_s5 + $0xc0] sm:$0xff]  ;;  %v413_v31 = vld [vmem:[%s2235_s5 + $0xd0] sm:$0xff] }
  0x45   : > { %v415_v32 = vld [vmem:[%s2235_s5 + $0xe0] sm:$0xff]  ;;  %412 = vst [vmem:[%s2240_s6 + $0x60] sm:$0xff] %v411_v30  ;;  %414 = vst [vmem:[%s2240_s6 + $0x68] sm:$0xff] %v413_v31  ;;  %v417_v33 = vld [vmem:[%s2235_s5 + $0xf0] sm:$0xff] }
  0x46   : > { %416 = vst [vmem:[%s2240_s6 + $0x70] sm:$0xff] %v415_v32  ;;  %v419_v34 = vld [vmem:[%s2235_s5 + $0x100] sm:$0xff]  ;;  %v421_v35 = vld [vmem:[%s2235_s5 + $0x110] sm:$0xff]  ;;  %418 = vst [vmem:[%s2240_s6 + $0x78] sm:$0xff] %v417_v33 }
  0x47   : > { %420 = vst [vmem:[%s2240_s6 + $0x80] sm:$0xff] %v419_v34  ;;  %422 = vst [vmem:[%s2240_s6 + $0x88] sm:$0xff] %v421_v35  ;;  %v423_v36 = vld [vmem:[%s2235_s5 + $0x120] sm:$0xff]  ;;  %v425_v37 = vld [vmem:[%s2235_s5 + $0x130] sm:$0xff] }
  0x48   : > { %v427_v38 = vld [vmem:[%s2235_s5 + $0x140] sm:$0xff]  ;;  %424 = vst [vmem:[%s2240_s6 + $0x90] sm:$0xff] %v423_v36  ;;  %426 = vst [vmem:[%s2240_s6 + $0x98] sm:$0xff] %v425_v37  ;;  %v429_v39 = vld [vmem:[%s2235_s5 + $0x150] sm:$0xff] }
  0x49   : > { %428 = vst [vmem:[%s2240_s6 + $0xa0] sm:$0xff] %v427_v38  ;;  %v431_v40 = vld [vmem:[%s2235_s5 + $0x160] sm:$0xff]  ;;  %v433_v41 = vld [vmem:[%s2235_s5 + $0x170] sm:$0xff]  ;;  %430 = vst [vmem:[%s2240_s6 + $0xa8] sm:$0xff] %v429_v39 }
  0x4a   : > { %432 = vst [vmem:[%s2240_s6 + $0xb0] sm:$0xff] %v431_v40  ;;  %434 = vst [vmem:[%s2240_s6 + $0xb8] sm:$0xff] %v433_v41  ;;  %v435_v42 = vld [vmem:[%s2235_s5 + $0x180] sm:$0xff]  ;;  %v437_v43 = vld [vmem:[%s2235_s5 + $0x190] sm:$0xff] }
  0x4b   : > { %v439_v44 = vld [vmem:[%s2235_s5 + $0x1a0] sm:$0xff]  ;;  %436 = vst [vmem:[%s2240_s6 + $0xc0] sm:$0xff] %v435_v42  ;;  %438 = vst [vmem:[%s2240_s6 + $0xc8] sm:$0xff] %v437_v43  ;;  %v441_v45 = vld [vmem:[%s2235_s5 + $0x1b0] sm:$0xff] }
  0x4c   : > { %440 = vst [vmem:[%s2240_s6 + $0xd0] sm:$0xff] %v439_v44  ;;  %v443_v46 = vld [vmem:[%s2235_s5 + $0x1c0] sm:$0xff]  ;;  %v445_v47 = vld [vmem:[%s2235_s5 + $0x1d0] sm:$0xff]  ;;  %442 = vst [vmem:[%s2240_s6 + $0xd8] sm:$0xff] %v441_v45 }
  0x4d   : > { %444 = vst [vmem:[%s2240_s6 + $0xe0] sm:$0xff] %v443_v46  ;;  %446 = vst [vmem:[%s2240_s6 + $0xe8] sm:$0xff] %v445_v47  ;;  %v447_v48 = vld [vmem:[%s2235_s5 + $0x1e0] sm:$0xff]  ;;  %v449_v49 = vld [vmem:[%s2235_s5 + $0x1f0] sm:$0xff] }
  0x4e   : > { %v451_v50 = vld [vmem:[%s2235_s5 + $0x200] sm:$0xff]  ;;  %448 = vst [vmem:[%s2240_s6 + $0xf0] sm:$0xff] %v447_v48  ;;  %450 = vst [vmem:[%s2240_s6 + $0xf8] sm:$0xff] %v449_v49  ;;  %v453_v51 = vld [vmem:[%s2235_s5 + $0x210] sm:$0xff] }
  0x4f   : > { %452 = vst [vmem:[%s2240_s6 + $0x100] sm:$0xff] %v451_v50  ;;  %v455_v52 = vld [vmem:[%s2235_s5 + $0x220] sm:$0xff]  ;;  %v457_v53 = vld [vmem:[%s2235_s5 + $0x230] sm:$0xff]  ;;  %454 = vst [vmem:[%s2240_s6 + $0x108] sm:$0xff] %v453_v51 }
  0x50   : > { %456 = vst [vmem:[%s2240_s6 + $0x110] sm:$0xff] %v455_v52  ;;  %458 = vst [vmem:[%s2240_s6 + $0x118] sm:$0xff] %v457_v53  ;;  %v459_v54 = vld [vmem:[%s2235_s5 + $0x240] sm:$0xff]  ;;  %v461_v55 = vld [vmem:[%s2235_s5 + $0x250] sm:$0xff] }
  0x51   : > { %v463_v56 = vld [vmem:[%s2235_s5 + $0x260] sm:$0xff]  ;;  %460 = vst [vmem:[%s2240_s6 + $0x120] sm:$0xff] %v459_v54  ;;  %462 = vst [vmem:[%s2240_s6 + $0x128] sm:$0xff] %v461_v55  ;;  %v465_v57 = vld [vmem:[%s2235_s5 + $0x270] sm:$0xff] }
  0x52   : > { %464 = vst [vmem:[%s2240_s6 + $0x130] sm:$0xff] %v463_v56  ;;  %v467_v58 = vld [vmem:[%s2235_s5 + $0x280] sm:$0xff]  ;;  %v469_v59 = vld [vmem:[%s2235_s5 + $0x290] sm:$0xff]  ;;  %466 = vst [vmem:[%s2240_s6 + $0x138] sm:$0xff] %v465_v57 }
  0x53   : > { %468 = vst [vmem:[%s2240_s6 + $0x140] sm:$0xff] %v467_v58  ;;  %470 = vst [vmem:[%s2240_s6 + $0x148] sm:$0xff] %v469_v59  ;;  %v471_v60 = vld [vmem:[%s2235_s5 + $0x2a0] sm:$0xff]  ;;  %v473_v61 = vld [vmem:[%s2235_s5 + $0x2b0] sm:$0xff] }
  0x54   : > { %v475_v62 = vld [vmem:[%s2235_s5 + $0x2c0] sm:$0xff]  ;;  %472 = vst [vmem:[%s2240_s6 + $0x150] sm:$0xff] %v471_v60  ;;  %474 = vst [vmem:[%s2240_s6 + $0x158] sm:$0xff] %v473_v61  ;;  %v477_v63 = vld [vmem:[%s2235_s5 + $0x2d0] sm:$0xff] }
  0x55   : > { %476 = vst [vmem:[%s2240_s6 + $0x160] sm:$0xff] %v475_v62  ;;  %v479_v0 = vld [vmem:[%s2235_s5 + $0x2e0] sm:$0xff]  ;;  %v481_v1 = vld [vmem:[%s2235_s5 + $0x2f0] sm:$0xff]  ;;  %478 = vst [vmem:[%s2240_s6 + $0x168] sm:$0xff] %v477_v63 }
  0x56   : > { %480 = vst [vmem:[%s2240_s6 + $0x170] sm:$0xff] %v479_v0  ;;  %482 = vst [vmem:[%s2240_s6 + $0x178] sm:$0xff] %v481_v1  ;;  %v483_v2 = vld [vmem:[%s2235_s5 + $0x300] sm:$0xff]  ;;  %v485_v3 = vld [vmem:[%s2235_s5 + $0x310] sm:$0xff] }
  0x57   : > { %v487_v4 = vld [vmem:[%s2235_s5 + $0x320] sm:$0xff]  ;;  %484 = vst [vmem:[%s2240_s6 + $0x180] sm:$0xff] %v483_v2  ;;  %486 = vst [vmem:[%s2240_s6 + $0x188] sm:$0xff] %v485_v3  ;;  %v489_v5 = vld [vmem:[%s2235_s5 + $0x330] sm:$0xff] }
  0x58   : > { %488 = vst [vmem:[%s2240_s6 + $0x190] sm:$0xff] %v487_v4  ;;  %v491_v6 = vld [vmem:[%s2235_s5 + $0x340] sm:$0xff]  ;;  %v493_v7 = vld [vmem:[%s2235_s5 + $0x350] sm:$0xff]  ;;  %490 = vst [vmem:[%s2240_s6 + $0x198] sm:$0xff] %v489_v5 }
  0x59   : > { %492 = vst [vmem:[%s2240_s6 + $0x1a0] sm:$0xff] %v491_v6  ;;  %494 = vst [vmem:[%s2240_s6 + $0x1a8] sm:$0xff] %v493_v7  ;;  %v495_v8 = vld [vmem:[%s2235_s5 + $0x360] sm:$0xff]  ;;  %v497_v9 = vld [vmem:[%s2235_s5 + $0x370] sm:$0xff] }
  0x5a   : > { %v499_v10 = vld [vmem:[%s2235_s5 + $0x380] sm:$0xff]  ;;  %496 = vst [vmem:[%s2240_s6 + $0x1b0] sm:$0xff] %v495_v8  ;;  %498 = vst [vmem:[%s2240_s6 + $0x1b8] sm:$0xff] %v497_v9  ;;  %v501_v11 = vld [vmem:[%s2235_s5 + $0x390] sm:$0xff] }
  0x5b   : > { %500 = vst [vmem:[%s2240_s6 + $0x1c0] sm:$0xff] %v499_v10  ;;  %v503_v12 = vld [vmem:[%s2235_s5 + $0x3a0] sm:$0xff]  ;;  %v505_v13 = vld [vmem:[%s2235_s5 + $0x3b0] sm:$0xff]  ;;  %502 = vst [vmem:[%s2240_s6 + $0x1c8] sm:$0xff] %v501_v11 }
  0x5c   : > { %504 = vst [vmem:[%s2240_s6 + $0x1d0] sm:$0xff] %v503_v12  ;;  %506 = vst [vmem:[%s2240_s6 + $0x1d8] sm:$0xff] %v505_v13  ;;  %v507_v14 = vld [vmem:[%s2235_s5 + $0x3c0] sm:$0xff]  ;;  %v509_v15 = vld [vmem:[%s2235_s5 + $0x3d0] sm:$0xff] }
  0x5d   : > { %v511_v16 = vld [vmem:[%s2235_s5 + $0x3e0] sm:$0xff]  ;;  %508 = vst [vmem:[%s2240_s6 + $0x1e0] sm:$0xff] %v507_v14  ;;  %510 = vst [vmem:[%s2240_s6 + $0x1e8] sm:$0xff] %v509_v15  ;;  %v513_v17 = vld [vmem:[%s2235_s5 + $0x3f0] sm:$0xff] }
  0x5e   : > { %512 = vst [vmem:[%s2240_s6 + $0x1f0] sm:$0xff] %v511_v16  ;;  %514 = vst [vmem:[%s2240_s6 + $0x1f8] sm:$0xff] %v513_v17 }
  0x5f PF: > { %p1646_p0 = scmp.ge.s32.totalorder %s2078_s22, 1  ;;  %p527_p1 = scmp.lt.s32.totalorder %s2078_s22, 19 }
  0x61   : > { %p528_p2 = pnand %p1646_p0, %p527_p1 }
  0x62   : > { %s534_s0 = sand.u32 (!%p528_p2), 1, %s2054_s16   ;;  %s541_s23 = sand.u32 (!%p528_p2), 1, %s2046_s14  }
  0x63   : > { %531 = sbr.rel (%p528_p2) target bundleno = 456 (0x1c8), region = 85  ;;  %s1647_s7 = sshll.u32 (!%p528_p2), %s541_s23, 9 }
  0x64   : > { %s1777_s28 = smul.u32 (!%p528_p2), 144, %s534_s0  ;;  %s568_s11 = sand.u32 (!%p528_p2), 1, %s2038_s12  }
  0x65   : > { %s1778_s26 = smul.u32 (!%p528_p2), 72, %s568_s11  ;;  %s1648_s27 = sshll.u32 (!%p528_p2), %s2066_s19, 1 }
  0x66   : > { %p576_p3 = scmp.lt.s32.totalorder (!%p528_p2), %s1648_s27, 3  ;;  %s2379_s6 = scalar_lea.vmem (!%p528_p2), [#allocation3], %s1777_s28 }
  0x67   : > { %s2381_s1 = scalar_lea.vmem (!%p528_p2), [#allocation4], %s1647_s7  ;;  %s2383_s25 = scalar_lea.vmem (!%p528_p2), [#allocation5], %s1778_s26 }
  0x68   : > { %p1649_p4 = scmp.ne.s32.totalorder (!%p528_p2), %s2062_s18, 0 }
  0x6a   : > { %s2562_s27 = smov (!%p576_p3, %s1648_s27), 3  ;;  %585 = sbr.rel (%p1649_p4) target bundleno = 117 (0x75), region = 97 }
  0x6b   : > { %s578_s5 = scalar_lea.vmem %s2533_s2, %s2562_s27  ;;  %v2080_v18 = vmov (!%p1649_p4), 0.0  }
  0x6c   : > { %586 = vst [vmem:[#allocation2] sm:$0xff] (!%p1649_p4), %v2080_v18  ;;  %587 = vst [vmem:[#allocation2 + $0x8] sm:$0xff] (!%p1649_p4), %v2080_v18 }
  0x6d   : > { %588 = vst [vmem:[#allocation2 + $0x10] sm:$0xff] (!%p1649_p4), %v2080_v18  ;;  %589 = vst [vmem:[#allocation2 + $0x18] sm:$0xff] (!%p1649_p4), %v2080_v18 }
  0x6e   : > { %590 = vst [vmem:[#allocation2 + $0x20] sm:$0xff] (!%p1649_p4), %v2080_v18  ;;  %591 = vst [vmem:[#allocation2 + $0x28] sm:$0xff] (!%p1649_p4), %v2080_v18 }
  0x6f   : > { %592 = vst [vmem:[#allocation2 + $0x30] sm:$0xff] (!%p1649_p4), %v2080_v18  ;;  %593 = vst [vmem:[#allocation2 + $0x38] sm:$0xff] (!%p1649_p4), %v2080_v18 }
  0x70   : > { %594 = vst [vmem:[#allocation2 + $0x40] sm:$0xff] (!%p1649_p4), %v2080_v18  ;;  %595 = vst [vmem:[#allocation2 + $0x48] sm:$0xff] (!%p1649_p4), %v2080_v18 }
  0x71   : > { %596 = vst [vmem:[#allocation2 + $0x50] sm:$0xff] %v2080_v18  ;;  %597 = vst [vmem:[#allocation2 + $0x58] sm:$0xff] %v2080_v18 }
  0x72   : > { %598 = vst [vmem:[#allocation2 + $0x60] sm:$0xff] %v2080_v18  ;;  %599 = vst [vmem:[#allocation2 + $0x68] sm:$0xff] %v2080_v18 }
  0x73   : > { %600 = vst [vmem:[#allocation2 + $0x70] sm:$0xff] %v2080_v18  ;;  %601 = vst [vmem:[#allocation2 + $0x78] sm:$0xff] %v2080_v18 }
  0x74   : > { %602 = vst [vmem:[#allocation2 + $0x80] sm:$0xff] %v2080_v18  ;;  %603 = vst [vmem:[#allocation2 + $0x88] sm:$0xff] %v2080_v18 }
  0x75 PF: > { %v1868_v19 = vld [vmem:[%s2381_s1 + $0x4] ss:$8 sps:$4 sm:$0xff]   ;;  %v1872_v21 = vld [vmem:[%s2381_s1] ss:$8 sps:$4 sm:$0xff]   ;;  %v1874_v23 = vld [vmem:[%s2381_s1 + $0x14] ss:$8 sps:$4 sm:$0xff]  }
  0x76   : > { %v1870_v20 = vld [vmem:[%s2381_s1 + $0x104] ss:$8 sps:$4 sm:$0xff]   ;;  %1118 = vmatprep.subr.bf16.mxu1 %v1868_v19  ;;  %v1873_v22 = vld [vmem:[%s2381_s1 + $0x100] ss:$8 sps:$4 sm:$0xff]   ;;  %v1876_v24 = vld [vmem:[%s2381_s1 + $0x114] ss:$8 sps:$4 sm:$0xff]  }
  0x77   : > { %1199 = vmatprep.subr.bf16.mxu0 %v1870_v20  ;;  %1119 = vmatpush1.bf16.msra.mxu1 %v1872_v21  ;;  %v1878_v25 = vld [vmem:[%s2381_s1 + $0x10] ss:$8 sps:$4 sm:$0xff]   ;;  %v1880_v27 = vld [vmem:[%s2381_s1 + $0x24] ss:$8 sps:$4 sm:$0xff]   ;;  %v1884_v29 = vld [vmem:[%s2381_s1 + $0x20] ss:$8 sps:$4 sm:$0xff]  }
  0x78   : > { %1200 = vmatpush1.bf16.msra.mxu0 %v1873_v22  ;;  %1120 = vmatprep.subr.bf16.mxu1 %v1874_v23  ;;  %v1879_v26 = vld [vmem:[%s2381_s1 + $0x110] ss:$8 sps:$4 sm:$0xff]   ;;  %v1882_v28 = vld [vmem:[%s2381_s1 + $0x124] ss:$8 sps:$4 sm:$0xff]   ;;  %v1885_v30 = vld [vmem:[%s2381_s1 + $0x120] ss:$8 sps:$4 sm:$0xff]  }
  0x79   : > { %1201 = vmatprep.subr.bf16.mxu0 %v1876_v24  ;;  %v1886_v31 = vld [vmem:[%s2381_s1 + $0x34] ss:$8 sps:$4 sm:$0xff]   ;;  %v1890_v33 = vld [vmem:[%s2381_s1 + $0x30] ss:$8 sps:$4 sm:$0xff]   ;;  %v1892_v35 = vld [vmem:[%s2381_s1 + $0x44] ss:$8 sps:$4 sm:$0xff]  }
  0x7a   : > { %v1888_v32 = vld [vmem:[%s2381_s1 + $0x134] ss:$8 sps:$4 sm:$0xff]   ;;  %v1891_v34 = vld [vmem:[%s2381_s1 + $0x130] ss:$8 sps:$4 sm:$0xff]   ;;  %v1894_v36 = vld [vmem:[%s2381_s1 + $0x144] ss:$8 sps:$4 sm:$0xff]  }
  0x7b   : > { %1121 = vmatpush1.bf16.msra.mxu1 %v1878_v25  ;;  %v1896_v37 = vld [vmem:[%s2381_s1 + $0x40] ss:$8 sps:$4 sm:$0xff]   ;;  %v1898_v39 = vld [vmem:[%s2381_s1 + $0x54] ss:$8 sps:$4 sm:$0xff]   ;;  %v1902_v41 = vld [vmem:[%s2381_s1 + $0x50] ss:$8 sps:$4 sm:$0xff]  }
  0x7c   : > { %1202 = vmatpush1.bf16.msra.mxu0 %v1879_v26  ;;  %1122 = vmatprep.subr.bf16.mxu1 %v1880_v27  ;;  %v1897_v38 = vld [vmem:[%s2381_s1 + $0x140] ss:$8 sps:$4 sm:$0xff]   ;;  %v1900_v40 = vld [vmem:[%s2381_s1 + $0x154] ss:$8 sps:$4 sm:$0xff]   ;;  %v1903_v42 = vld [vmem:[%s2381_s1 + $0x150] ss:$8 sps:$4 sm:$0xff]  }
  0x7d   : > { %1203 = vmatprep.subr.bf16.mxu0 %v1882_v28  ;;  %v1904_v43 = vld [vmem:[%s2381_s1 + $0x64] ss:$8 sps:$4 sm:$0xff]   ;;  %v1908_v45 = vld [vmem:[%s2381_s1 + $0x60] ss:$8 sps:$4 sm:$0xff]   ;;  %v1910_v47 = vld [vmem:[%s2381_s1 + $0x74] ss:$8 sps:$4 sm:$0xff]  }
  0x7e   : > { %v1906_v44 = vld [vmem:[%s2381_s1 + $0x164] ss:$8 sps:$4 sm:$0xff]   ;;  %v1909_v46 = vld [vmem:[%s2381_s1 + $0x160] ss:$8 sps:$4 sm:$0xff]   ;;  %v1912_v48 = vld [vmem:[%s2381_s1 + $0x174] ss:$8 sps:$4 sm:$0xff]  }
  0x7f   : > { %1123 = vmatpush1.bf16.msra.mxu1 %v1884_v29  ;;  %v1914_v49 = vld [vmem:[%s2381_s1 + $0x70] ss:$8 sps:$4 sm:$0xff]   ;;  %v1916_v51 = vld [vmem:[%s2381_s1 + $0x84] ss:$8 sps:$4 sm:$0xff]   ;;  %v1920_v53 = vld [vmem:[%s2381_s1 + $0x80] ss:$8 sps:$4 sm:$0xff]  }
  0x80   : > { %1204 = vmatpush1.bf16.msra.mxu0 %v1885_v30  ;;  %1124 = vmatprep.subr.bf16.mxu1 %v1886_v31  ;;  %v1915_v50 = vld [vmem:[%s2381_s1 + $0x170] ss:$8 sps:$4 sm:$0xff]   ;;  %v1918_v52 = vld [vmem:[%s2381_s1 + $0x184] ss:$8 sps:$4 sm:$0xff]   ;;  %v1921_v54 = vld [vmem:[%s2381_s1 + $0x180] ss:$8 sps:$4 sm:$0xff]  }
  0x81   : > { %1205 = vmatprep.subr.bf16.mxu0 %v1888_v32  ;;  %v1922_v55 = vld [vmem:[%s2381_s1 + $0x94] ss:$8 sps:$4 sm:$0xff]   ;;  %v1926_v57 = vld [vmem:[%s2381_s1 + $0x90] ss:$8 sps:$4 sm:$0xff]   ;;  %v1928_v59 = vld [vmem:[%s2381_s1 + $0xa4] ss:$8 sps:$4 sm:$0xff]  }
  0x82   : > { %v1924_v56 = vld [vmem:[%s2381_s1 + $0x194] ss:$8 sps:$4 sm:$0xff]   ;;  %v1927_v58 = vld [vmem:[%s2381_s1 + $0x190] ss:$8 sps:$4 sm:$0xff]   ;;  %v1930_v60 = vld [vmem:[%s2381_s1 + $0x1a4] ss:$8 sps:$4 sm:$0xff]  }
  0x83   : > { %1125 = vmatpush1.bf16.msra.mxu1 %v1890_v33  ;;  %v1932_v61 = vld [vmem:[%s2381_s1 + $0xa0] ss:$8 sps:$4 sm:$0xff]   ;;  %v1934_v63 = vld [vmem:[%s2381_s1 + $0xb4] ss:$8 sps:$4 sm:$0xff]   ;;  %v1938_v1 = vld [vmem:[%s2381_s1 + $0xb0] ss:$8 sps:$4 sm:$0xff]  }
  0x84   : > { %1206 = vmatpush1.bf16.msra.mxu0 %v1891_v34  ;;  %1126 = vmatprep.subr.bf16.mxu1 %v1892_v35  ;;  %v1933_v62 = vld [vmem:[%s2381_s1 + $0x1a0] ss:$8 sps:$4 sm:$0xff]   ;;  %v1936_v0 = vld [vmem:[%s2381_s1 + $0x1b4] ss:$8 sps:$4 sm:$0xff]   ;;  %v1939_v2 = vld [vmem:[%s2381_s1 + $0x1b0] ss:$8 sps:$4 sm:$0xff]  }
  0x85   : > { %1207 = vmatprep.subr.bf16.mxu0 %v1894_v36  ;;  %v1940_v3 = vld [vmem:[%s2381_s1 + $0xc4] ss:$8 sps:$4 sm:$0xff]   ;;  %v1944_v7 = vld [vmem:[%s2381_s1 + $0xc0] ss:$8 sps:$4 sm:$0xff]   ;;  %v1946_v9 = vld [vmem:[%s2381_s1 + $0xd4] ss:$8 sps:$4 sm:$0xff]  }
  0x86   : > { %v1966_v4 = vld [vmem:[%s2379_s6 + $0x4] ss:$16 sps:$4 sm:$0xff]   ;;  %v1969_v6 = vld [vmem:[%s2379_s6 + $0xc] ss:$16 sps:$4 sm:$0xff]   ;;  %v1945_v8 = vld [vmem:[%s2381_s1 + $0x1c0] ss:$8 sps:$4 sm:$0xff]  }
  0x87   : > { %1127 = vmatpush1.bf16.msra.mxu1 %v1896_v37  ;;  %v1942_v5 = vld [vmem:[%s2381_s1 + $0x1c4] ss:$8 sps:$4 sm:$0xff]   ;;  %1150 = vmatprep.mubr.bf16.mxu1 %v1966_v4  ;;  %v1948_v10 = vld [vmem:[%s2381_s1 + $0x1d4] ss:$8 sps:$4 sm:$0xff]   ;;  %v1950_v11 = vld [vmem:[%s2381_s1 + $0xd0] ss:$8 sps:$4 sm:$0xff]  }
  0x88   : > { %1208 = vmatpush1.bf16.msra.mxu0 %v1897_v38  ;;  %1128 = vmatprep.subr.bf16.mxu1 %v1898_v39  ;;  %v1951_v12 = vld [vmem:[%s2381_s1 + $0x1d0] ss:$8 sps:$4 sm:$0xff]   ;;  %v1952_v13 = vld [vmem:[%s2381_s1 + $0xe4] ss:$8 sps:$4 sm:$0xff]   ;;  %v1956_v15 = vld [vmem:[%s2381_s1 + $0xe0] ss:$8 sps:$4 sm:$0xff]  }
  0x89   : > { %1209 = vmatprep.subr.bf16.mxu0 %v1900_v40  ;;  %1231 = vmatprep.mubr.bf16.mxu0 %v1969_v6  ;;  %v1954_v14 = vld [vmem:[%s2381_s1 + $0x1e4] ss:$8 sps:$4 sm:$0xff]   ;;  %v1957_v16 = vld [vmem:[%s2381_s1 + $0x1e0] ss:$8 sps:$4 sm:$0xff]   ;;  %v1958_v17 = vld [vmem:[%s2381_s1 + $0xf4] ss:$8 sps:$4 sm:$0xff]  }
  0x8a   : > { %v1960_v18 = vld [vmem:[%s2381_s1 + $0x1f4] ss:$8 sps:$4 sm:$0xff]   ;;  %v1962_v19 = vld [vmem:[%s2381_s1 + $0xf0] ss:$8 sps:$4 sm:$0xff]   ;;  %v610_v6 = vld [vmem:[#allocation2 + $0x30] sm:$0xff]  ;;  %p1734_p5 = scmp.ne.s32.totalorder %s2062_s18, 8 }
  0x8b   : > { %1129 = vmatpush1.bf16.msra.mxu1 %v1902_v41  ;;  %v1963_v20 = vld [vmem:[%s2381_s1 + $0x1f0] ss:$8 sps:$4 sm:$0xff]   ;;  %v1970_v23 = vld [vmem:[%s2379_s6 + $0x24] ss:$16 sps:$4 sm:$0xff]   ;;  %v1972_v24 = vld [vmem:[%s2379_s6 + $0x2c] ss:$16 sps:$4 sm:$0xff]  }
  0x8c   : > { %1210 = vmatpush1.bf16.msra.mxu0 %v1903_v42  ;;  %1130 = vmatprep.subr.bf16.mxu1 %v1904_v43  ;;  %v1964_v21 = vld [vmem:[%s2379_s6] ss:$16 sps:$4 sm:$0xff]   ;;  %v1967_v22 = vld [vmem:[%s2379_s6 + $0x8] ss:$16 sps:$4 sm:$0xff]   ;;  %v1976_v27 = vld [vmem:[%s2379_s6 + $0x44] ss:$16 sps:$4 sm:$0xff]  }
  0x8d   : > { %1211 = vmatprep.subr.bf16.mxu0 %v1906_v44  ;;  %v1974_v25 = vld [vmem:[%s2379_s6 + $0x20] ss:$16 sps:$4 sm:$0xff]   ;;  %v1975_v26 = vld [vmem:[%s2379_s6 + $0x28] ss:$16 sps:$4 sm:$0xff]   ;;  %v1978_v28 = vld [vmem:[%s2379_s6 + $0x4c] ss:$16 sps:$4 sm:$0xff]  }
  0x8e   : > { %v1980_v29 = vld [vmem:[%s2379_s6 + $0x40] ss:$16 sps:$4 sm:$0xff]   ;;  %v1981_v30 = vld [vmem:[%s2379_s6 + $0x48] ss:$16 sps:$4 sm:$0xff]   ;;  %v1982_v31 = vld [vmem:[%s2379_s6 + $0x64] ss:$16 sps:$4 sm:$0xff]  }
  0x8f   : > { %1131 = vmatpush1.bf16.msra.mxu1 %v1908_v45  ;;  %v1984_v32 = vld [vmem:[%s2379_s6 + $0x6c] ss:$16 sps:$4 sm:$0xff]   ;;  %v638_v33 = vld [vmem:[%s2379_s6 + $0x80] sm:$0xff]  ;;  %v1987_v36 = vld [vmem:[%s2379_s6 + $0x68] ss:$16 sps:$4 sm:$0xff]  }
  0x90   : > { %1212 = vmatpush1.bf16.msra.mxu0 %v1909_v46  ;;  %1132 = vmatprep.subr.bf16.mxu1 %v1910_v47  ;;  %v639_v34 = vld [vmem:[%s2379_s6 + $0x88] sm:$0xff]  ;;  %v1986_v35 = vld [vmem:[%s2379_s6 + $0x60] ss:$16 sps:$4 sm:$0xff]   ;;  %v1667_v37 = vcombine.high %v638_v33, %v638_v33  ;;  %v1666_v39 = vcombine.low %v638_v33, %v638_v33 }
  0x91   : > { %1213 = vmatprep.subr.bf16.mxu0 %v1912_v48  ;;  %v1669_v38 = vcombine.high %v639_v34, %v639_v34  ;;  %v1668_v40 = vcombine.low %v639_v34, %v639_v34  ;;  %v604_v42 = vld [vmem:[#allocation2] sm:$0xff]  ;;  %v605_v46 = vld [vmem:[#allocation2 + $0x8] sm:$0xff] }
  0x93   : > { %1133 = vmatpush1.bf16.msra.mxu1 %v1914_v49 }
  0x94   : > { %1214 = vmatpush1.bf16.msra.mxu0 %v1915_v50  ;;  %1134 = vmatprep.subr.bf16.mxu1 %v1916_v51  ;;  %v606_v50 = vld [vmem:[#allocation2 + $0x10] sm:$0xff] }
  0x95   : > { %1215 = vmatprep.subr.bf16.mxu0 %v1918_v52 }
  0x97   : > { %1135 = vmatpush1.bf16.msra.mxu1 %v1920_v53 }
  0x98   : > { %1216 = vmatpush1.bf16.msra.mxu0 %v1921_v54  ;;  %1136 = vmatprep.subr.bf16.mxu1 %v1922_v55  ;;  %v607_v55 = vld [vmem:[#allocation2 + $0x18] sm:$0xff] }
  0x99   : > { %1217 = vmatprep.subr.bf16.mxu0 %v1924_v56 }
  0x9b   : > { %1137 = vmatpush1.bf16.msra.mxu1 %v1926_v57 }
  0x9c   : > { %1218 = vmatpush1.bf16.msra.mxu0 %v1927_v58  ;;  %1138 = vmatprep.subr.bf16.mxu1 %v1928_v59 }
  0x9d   : > { %1219 = vmatprep.subr.bf16.mxu0 %v1930_v60 }
  0x9f   : > { %1139 = vmatpush1.bf16.msra.mxu1 %v1932_v61 }
  0xa0   : > { %1220 = vmatpush1.bf16.msra.mxu0 %v1933_v62  ;;  %1140 = vmatprep.subr.bf16.mxu1 %v1934_v63  ;;  %v608_v62 = vld [vmem:[#allocation2 + $0x20] sm:$0xff] }
  0xa1   : > { %1221 = vmatprep.subr.bf16.mxu0 %v1936_v0 }
  0xa3   : > { %1141 = vmatpush1.bf16.msra.mxu1 %v1938_v1 }
  0xa4   : > { %1222 = vmatpush1.bf16.msra.mxu0 %v1939_v2  ;;  %1142 = vmatprep.subr.bf16.mxu1 %v1940_v3  ;;  %v609_v2 = vld [vmem:[#allocation2 + $0x28] sm:$0xff] }
  0xa5   : > { %1223 = vmatprep.subr.bf16.mxu0 %v1942_v5 }
  0xa7   : > { %1143 = vmatpush1.bf16.msra.mxu1 %v1944_v7 }
  0xa8   : > { %1224 = vmatpush1.bf16.msra.mxu0 %v1945_v8  ;;  %1144 = vmatprep.subr.bf16.mxu1 %v1946_v9 }
  0xa9   : > { %1225 = vmatprep.subr.bf16.mxu0 %v1948_v10 }
  0xab   : > { %1145 = vmatpush1.bf16.msra.mxu1 %v1950_v11  ;;  %v611_v11 = vld [vmem:[#allocation2 + $0x38] sm:$0xff] }
  0xac   : > { %1226 = vmatpush1.bf16.msra.mxu0 %v1951_v12  ;;  %1146 = vmatprep.subr.bf16.mxu1 %v1952_v13 }
  0xad   : > { %1227 = vmatprep.subr.bf16.mxu0 %v1954_v14 }
  0xaf   : > { %1147 = vmatpush1.bf16.msra.mxu1 %v1956_v15 }
  0xb0   : > { %1228 = vmatpush1.bf16.msra.mxu0 %v1957_v16  ;;  %1148 = vmatprep.subr.bf16.mxu1 %v1958_v17 }
  0xb1   : > { %1229 = vmatprep.subr.bf16.mxu0 %v1960_v18  ;;  %v612_v18 = vld [vmem:[#allocation2 + $0x40] sm:$0xff] }
  0xb3   : > { %1149 = vmatpush1.bf16.msra.mxu1 %v1962_v19 }
  0xb4   : > { %1230 = vmatpush1.bf16.msra.mxu0 %v1963_v20 }
  0xb6   : > { %1151 = vmatmul.mubr.bf16.vlgmr.msra.gmra.mrb[0].mxu1 %v1964_v21 }
  0xb7   : > { %1232 = vmatmul.mubr.bf16.vlgmr.msra.gmra.mrb[0].mxu0 %v1967_v22  ;;  %1160 = vmatprep.mubr.bf16.mxu1 %v1970_v23  ;;  %v613_v22 = vld [vmem:[#allocation2 + $0x48] sm:$0xff] }
  0xb8   : > { %1241 = vmatprep.mubr.bf16.mxu0 %v1972_v24 }
  0xbe   : > { %1161 = vmatmul.mubr.bf16.gmra.mrb[4].mxu1 %v1974_v25 }
  0xbf   : > { %1242 = vmatmul.mubr.bf16.gmra.mrb[4].mxu0 %v1975_v26  ;;  %1170 = vmatprep.mubr.bf16.mxu1 %v1976_v27  ;;  %v614_v26 = vld [vmem:[#allocation2 + $0x50] sm:$0xff] }
  0xc0   : > { %1251 = vmatprep.mubr.bf16.mxu0 %v1978_v28 }
  0xc6   : > { %1171 = vmatmul.mubr.bf16.gmra.mrb[8].mxu1 %v1980_v29 }
  0xc7   : > { %1252 = vmatmul.mubr.bf16.gmra.mrb[8].mxu0 %v1981_v30  ;;  %1180 = vmatprep.mubr.bf16.mxu1 %v1982_v31  ;;  %v615_v31 = vld [vmem:[#allocation2 + $0x58] sm:$0xff] }
  0xc8   : > { %1261 = vmatprep.mubr.bf16.mxu0 %v1984_v32 }
  0xce   : > { %1181 = vmatmul.mubr.bf16.gmra.mrb[12].mxu1 %v1986_v35 }
  0xcf   : > { %1262 = vmatmul.mubr.bf16.gmra.mrb[12].mxu0 %v1987_v36  ;;  %1190 = vmatprep.mubr.bf16.mxu1 %v1667_v37 }
  0xd0   : > { %1271 = vmatprep.mubr.bf16.mxu0 %v1669_v38  ;;  %v616_v38 = vld [vmem:[#allocation2 + $0x60] sm:$0xff] }
  0xd6   : > { %1191 = vmatmul.mubr.bf16.gmra.mrb[16].mxu1 %v1666_v39 }
  0xd7   : > { %1272 = vmatmul.mubr.bf16.gmra.mrb[16].mxu0 %v1668_v40 }
 0x189   : > { %v1152_v41 = vpop.f32.mrb[0].mxu1 }
 0x18a   : > { %v1233_v43 = vpop.f32.mrb[0].mxu0  ;;  %v1154_v45 = vpop.f32.mrb[1].mxu1 }
 0x18b   : > { %v1234_v44 = vadd.f32 %v1233_v43, %v1152_v41  ;;  %v1235_v47 = vpop.f32.mrb[1].mxu0  ;;  %v1156_v49 = vpop.f32.mrb[2].mxu1 }
 0x18c   : > { %v1236_v48 = vadd.f32 %v1235_v47, %v1154_v45  ;;  %v1237_v51 = vpop.f32.mrb[2].mxu0  ;;  %v1158_v54 = vpop.f32.mrb[3].mxu1 }
 0x18d   : > { %v1280_v52 = vadd.f32 %v1234_v44, %v604_v42  ;;  %v1238_v53 = vadd.f32 %v1237_v51, %v1156_v49  ;;  %v1239_v56 = vpop.f32.mrb[3].mxu0  ;;  %v617_v42 = vld [vmem:[#allocation2 + $0x68] sm:$0xff]  ;;  %v619_v51 = vld [vmem:[#allocation2 + $0x78] sm:$0xff] }
 0x18e   : > { %v1281_v57 = vadd.f32 %v1236_v48, %v605_v46  ;;  %v1240_v58 = vadd.f32 %v1239_v56, %v1158_v54  ;;  %v618_v46 = vld [vmem:[#allocation2 + $0x70] sm:$0xff] }
 0x18f   : > { %1298 = vst [vmem:[#allocation2] sm:$0xff] %v1280_v52  ;;  %v1282_v59 = vadd.f32 %v1238_v53, %v606_v50 }
 0x190   : > { %1299 = vst [vmem:[#allocation2 + $0x8] sm:$0xff] %v1281_v57  ;;  %v1283_v60 = vadd.f32 %v1240_v58, %v607_v55  ;;  %v620_v58 = vld [vmem:[#allocation2 + $0x80] sm:$0xff] }
 0x191   : > { %1300 = vst [vmem:[#allocation2 + $0x10] sm:$0xff] %v1282_v59  ;;  %v1162_v61 = vpop.f32.mrb[4].mxu1 }
 0x192   : > { %1301 = vst [vmem:[#allocation2 + $0x18] sm:$0xff] %v1283_v60  ;;  %v1243_v63 = vpop.f32.mrb[4].mxu0  ;;  %v1164_v1 = vpop.f32.mrb[5].mxu1 }
 0x193   : > { %v1244_v0 = vadd.f32 %v1243_v63, %v1162_v61  ;;  %v1245_v3 = vpop.f32.mrb[5].mxu0  ;;  %v1166_v5 = vpop.f32.mrb[6].mxu1 }
 0x194   : > { %v1246_v4 = vadd.f32 %v1245_v3, %v1164_v1  ;;  %v1247_v7 = vpop.f32.mrb[6].mxu0  ;;  %v1168_v10 = vpop.f32.mrb[7].mxu1 }
 0x195   : > { %v1284_v8 = vadd.f32 %v1244_v0, %v608_v62  ;;  %v1248_v9 = vadd.f32 %v1247_v7, %v1166_v5  ;;  %v1249_v12 = vpop.f32.mrb[7].mxu0  ;;  %v621_v62 = vld [vmem:[#allocation2 + $0x88] sm:$0xff]  ;;  %v1340_v7 = vlaneseq (!%p1734_p5) }
 0x196   : > { %v1285_v13 = vadd.f32 %v1246_v4, %v609_v2  ;;  %v1250_v14 = vadd.f32 %v1249_v12, %v1168_v10  ;;  %v1320_v10 = vld [vmem:[#allocation2] sm:$0xff] (!%p1734_p5) }
 0x197   : > { %1302 = vst [vmem:[#allocation2 + $0x20] sm:$0xff] %v1284_v8  ;;  %v1286_v15 = vadd.f32 %v1248_v9, %v610_v6  ;;  %v1341_v8 = vshrl.u32 (!%p1734_p5), %v1340_v7, 7  ;;  %v1338_v9 = vld [vmem:[%s578_s5] sm:$0x3] (!%p1734_p5) }
 0x198   : > { %1303 = vst [vmem:[#allocation2 + $0x28] sm:$0xff] %v1285_v13  ;;  %v1287_v16 = vadd.f32 %v1250_v14, %v611_v11  ;;  %v1321_v11 = vld [vmem:[#allocation2 + $0x8] sm:$0xff] (!%p1734_p5)  ;;  %v1322_v14 = vld [vmem:[#allocation2 + $0x10] sm:$0xff] (!%p1734_p5) }
 0x199   : > { %1304 = vst [vmem:[#allocation2 + $0x30] sm:$0xff] %v1286_v15  ;;  %v1172_v17 = vpop.f32.mrb[8].mxu1  ;;  %v1342_v12 = vsub.s32 (!%p1734_p5), 0, %v1341_v8  ;;  %v1346_v13 = vsub.s32 (!%p1734_p5), 1, %v1341_v8  ;;  %v1323_v15 = vld [vmem:[#allocation2 + $0x18] sm:$0xff] (!%p1734_p5) }
 0x19a   : > { %1305 = vst [vmem:[#allocation2 + $0x38] sm:$0xff] %v1287_v16  ;;  %v1253_v19 = vpop.f32.mrb[8].mxu0  ;;  %v1174_v21 = vpop.f32.mrb[9].mxu1 }
 0x19b   : > { %v1254_v20 = vadd.f32 %v1253_v19, %v1172_v17  ;;  %v1255_v23 = vpop.f32.mrb[9].mxu0  ;;  %v1176_v25 = vpop.f32.mrb[10].mxu1  ;;  %v1343_v17 = vrot.slane (!%p1734_p5), %v1338_v9, %v1342_v12 }
 0x19c   : > { %v1256_v24 = vadd.f32 %v1255_v23, %v1174_v21  ;;  %v1257_v27 = vpop.f32.mrb[10].mxu0  ;;  %v1178_v30 = vpop.f32.mrb[11].mxu1 }
 0x19d   : > { %v1288_v28 = vadd.f32 %v1254_v20, %v612_v18  ;;  %v1258_v29 = vadd.f32 %v1257_v27, %v1176_v25  ;;  %v1259_v32 = vpop.f32.mrb[11].mxu0  ;;  %v1347_v18 = vrot.slane (!%p1734_p5), %v1338_v9, %v1346_v13 }
 0x19e   : > { %v1289_v33 = vadd.f32 %v1256_v24, %v613_v22  ;;  %v1260_v34 = vadd.f32 %v1259_v32, %v1178_v30  ;;  %v1324_v16 = vld [vmem:[#allocation2 + $0x20] sm:$0xff] (!%p1734_p5)  ;;  %v1350_v22 = vadd.f32 (!%p1734_p5), %v1343_v17, %v1320_v10  ;;  %v1352_v24 = vadd.f32 (!%p1734_p5), %v1343_v17, %v1322_v14 }
 0x19f   : > { %1306 = vst [vmem:[#allocation2 + $0x40] sm:$0xff] %v1288_v28  ;;  %v1290_v35 = vadd.f32 %v1258_v29, %v614_v26  ;;  %v1325_v19 = vld [vmem:[#allocation2 + $0x28] sm:$0xff] (!%p1734_p5)  ;;  %v1351_v23 = vadd.f32 (!%p1734_p5), %v1347_v18, %v1321_v11  ;;  %v1353_v25 = vadd.f32 (!%p1734_p5), %v1347_v18, %v1323_v15  ;;  %v1354_v26 = vadd.f32 (!%p1734_p5), %v1343_v17, %v1324_v16 }
 0x1a0   : > { %1307 = vst [vmem:[#allocation2 + $0x48] sm:$0xff] %v1289_v33  ;;  %v1291_v36 = vadd.f32 %v1260_v34, %v615_v31  ;;  %v1326_v20 = vld [vmem:[#allocation2 + $0x30] sm:$0xff] (!%p1734_p5)  ;;  %v1355_v27 = vadd.f32 (!%p1734_p5), %v1347_v18, %v1325_v19  ;;  %v1368_v32 = vmax.f32 (!%p1734_p5), %v1350_v22, 0.0  ;;  %v1370_v34 = vmax.f32 (!%p1734_p5), %v1352_v24, 0.0 }
 0x1a1   : > { %1308 = vst [vmem:[#allocation2 + $0x50] sm:$0xff] %v1290_v35  ;;  %v1182_v37 = vpop.f32.mrb[12].mxu1  ;;  %v1327_v21 = vld [vmem:[#allocation2 + $0x38] sm:$0xff] (!%p1734_p5)  ;;  %v1356_v28 = vadd.f32 (!%p1734_p5), %v1343_v17, %v1326_v20  ;;  %v1369_v33 = vmax.f32 (!%p1734_p5), %v1351_v23, 0.0  ;;  %v1371_v35 = vmax.f32 (!%p1734_p5), %v1353_v25, 0.0 }
 0x1a2   : > { %1309 = vst [vmem:[#allocation2 + $0x58] sm:$0xff] %v1291_v36  ;;  %v1263_v39 = vpop.f32.mrb[12].mxu0  ;;  %v1184_v41 = vpop.f32.mrb[13].mxu1  ;;  %v1357_v29 = vadd.f32 (!%p1734_p5), %v1347_v18, %v1327_v21 }
 0x1a3   : > { %v1264_v40 = vadd.f32 %v1263_v39, %v1182_v37  ;;  %v1265_v43 = vpop.f32.mrb[13].mxu0  ;;  %v1186_v45 = vpop.f32.mrb[14].mxu1  ;;  %v1373_v39 = vmax.f32 (!%p1734_p5), %v1355_v27, 0.0 }
 0x1a4   : > { %v1266_v44 = vadd.f32 %v1265_v43, %v1184_v41  ;;  %v1267_v47 = vpop.f32.mrb[14].mxu0  ;;  %v1188_v50 = vpop.f32.mrb[15].mxu1  ;;  %v1375_v41 = vmax.f32 (!%p1734_p5), %v1357_v29, 0.0 }
 0x1a5   : > { %v1292_v48 = vadd.f32 %v1264_v40, %v616_v38  ;;  %v1268_v49 = vadd.f32 %v1267_v47, %v1186_v45  ;;  %v1269_v52 = vpop.f32.mrb[15].mxu0  ;;  %v1372_v38 = vmax.f32 (!%p1734_p5), %v1354_v26, 0.0  ;;  %v1374_v40 = vmax.f32 (!%p1734_p5), %v1356_v28, 0.0 }
 0x1a6   : > { %v1293_v53 = vadd.f32 %v1266_v44, %v617_v42  ;;  %v1270_v54 = vadd.f32 %v1269_v52, %v1188_v50  ;;  %v1328_v30 = vld [vmem:[#allocation2 + $0x40] sm:$0xff] (!%p1734_p5)  ;;  %v1750_v44 = vpack.c.bf16 (!%p1734_p5), %v1369_v33, %v1368_v32  ;;  %v1751_v45 = vpack.c.bf16 (!%p1734_p5), %v1371_v35, %v1370_v34 }
 0x1a7   : > { %1310 = vst [vmem:[#allocation2 + $0x60] sm:$0xff] %v1292_v48  ;;  %v1294_v55 = vadd.f32 %v1268_v49, %v618_v46  ;;  %v1329_v31 = vld [vmem:[#allocation2 + $0x48] sm:$0xff] (!%p1734_p5)  ;;  %v1358_v46 = vadd.f32 (!%p1734_p5), %v1343_v17, %v1328_v30  ;;  %v1752_v50 = vpack.c.bf16 (!%p1734_p5), %v1373_v39, %v1372_v38 }
 0x1a8   : > { %1311 = vst [vmem:[#allocation2 + $0x68] sm:$0xff] %v1293_v53  ;;  %v1295_v56 = vadd.f32 %v1270_v54, %v619_v51  ;;  %v1330_v36 = vld [vmem:[#allocation2 + $0x50] sm:$0xff] (!%p1734_p5)  ;;  %v1359_v47 = vadd.f32 (!%p1734_p5), %v1347_v18, %v1329_v31  ;;  %v1753_v51 = vpack.c.bf16 (!%p1734_p5), %v1375_v41, %v1374_v40  ;;  %1442 = vst [vmem:[%s2383_s25] sm:$0xff] (!%p1734_p5), %v1750_v44 }
 0x1a9   : > { %1312 = vst [vmem:[#allocation2 + $0x70] sm:$0xff] %v1294_v55  ;;  %v1192_v57 = vpop.f32.mrb[16].mxu1  ;;  %v1331_v37 = vld [vmem:[#allocation2 + $0x58] sm:$0xff] (!%p1734_p5)  ;;  %v1360_v52 = vadd.f32 (!%p1734_p5), %v1343_v17, %v1330_v36  ;;  %1443 = vst [vmem:[%s2383_s25 + $0x8] sm:$0xff] (!%p1734_p5), %v1751_v45  ;;  %v1376_v55 = vmax.f32 (!%p1734_p5), %v1358_v46, 0.0 }
 0x1aa   : > { %1313 = vst [vmem:[#allocation2 + $0x78] sm:$0xff] %v1295_v56  ;;  %v1273_v59 = vpop.f32.mrb[16].mxu0  ;;  %v1194_v61 = vpop.f32.mrb[17].mxu1  ;;  %1319 = sbr.rel (%p1734_p5) target bundleno = 447 (0x1bf), region = 101  ;;  %v1361_v53 = vadd.f32 (!%p1734_p5), %v1347_v18, %v1331_v37  ;;  %v1377_v56 = vmax.f32 (!%p1734_p5), %v1359_v47, 0.0  ;;  %1444 = vst [vmem:[%s2383_s25 + $0x10] sm:$0xff] (!%p1734_p5), %v1752_v50 }
 0x1ab   : > { %v1274_v60 = vadd.f32 %v1273_v59, %v1192_v57  ;;  %v1275_v63 = vpop.f32.mrb[17].mxu0  ;;  %v1196_v1 = vpop.f32.mrb[18].mxu1  ;;  %1445 = vst [vmem:[%s2383_s25 + $0x18] sm:$0xff] (!%p1734_p5), %v1753_v51 }
 0x1ac   : > { %v1276_v0 = vadd.f32 %v1275_v63, %v1194_v61  ;;  %v1277_v2 = vpop.f32.mrb[18].mxu0  ;;  %v1197_v4 = vpop.f32.mrb[19].mxu1  ;;  %v1379_v61 = vmax.f32 (!%p1734_p5), %v1361_v53, 0.0 }
 0x1ad   : > { %v1296_v3 = vadd.f32 %v1274_v60, %v620_v58  ;;  %v1278_v5 = vpop.f32.mrb[19].mxu0  ;;  %v1378_v60 = vmax.f32 (!%p1734_p5), %v1360_v52, 0.0 }
 0x1ae   : > { %v1297_v6 = vadd.f32 %v1276_v0, %v621_v62  ;;  %v1332_v42 = vld [vmem:[#allocation2 + $0x60] sm:$0xff] (!%p1734_p5)  ;;  %v1754_v0 = vpack.c.bf16 (!%p1734_p5), %v1377_v56, %v1376_v55 }
 0x1af   : > { %1314 = vst [vmem:[#allocation2 + $0x80] sm:$0xff] %v1296_v3  ;;  %v1333_v43 = vld [vmem:[#allocation2 + $0x68] sm:$0xff] (!%p1734_p5)  ;;  %v1362_v57 = vadd.f32 (!%p1734_p5), %v1343_v17, %v1332_v42  ;;  %v1755_v4 = vpack.c.bf16 (!%p1734_p5), %v1379_v61, %v1378_v60 }
 0x1b0   : > { %1315 = vst [vmem:[#allocation2 + $0x88] sm:$0xff] %v1297_v6  ;;  %v1334_v48 = vld [vmem:[#allocation2 + $0x70] sm:$0xff] (!%p1734_p5)  ;;  %v1363_v58 = vadd.f32 (!%p1734_p5), %v1347_v18, %v1333_v43  ;;  %1446 = vst [vmem:[%s2383_s25 + $0x20] sm:$0xff] (!%p1734_p5), %v1754_v0 }
 0x1b1   : > { %v1335_v49 = vld [vmem:[#allocation2 + $0x78] sm:$0xff]  ;;  %v1364_v62 = vadd.f32 %v1343_v17, %v1334_v48  ;;  %v1380_v1 = vmax.f32 %v1362_v57, 0.0  ;;  %1447 = vst [vmem:[%s2383_s25 + $0x28] sm:$0xff] %v1755_v4 }
 0x1b2   : > { %v1365_v63 = vadd.f32 %v1347_v18, %v1335_v49  ;;  %v1381_v2 = vmax.f32 %v1363_v58, 0.0 }
 0x1b3   : > { %v1382_v5 = vmax.f32 %v1364_v62, 0.0 }
 0x1b4   : > { %v1383_v6 = vmax.f32 %v1365_v63, 0.0  ;;  %v1756_v8 = vpack.c.bf16 %v1381_v2, %v1380_v1 }
 0x1b6   : > { %v1336_v54 = vld [vmem:[#allocation2 + $0x80] sm:$0xff]  ;;  %v1757_v10 = vpack.c.bf16 %v1383_v6, %v1382_v5  ;;  %1448 = vst [vmem:[%s2383_s25 + $0x30] sm:$0xff] %v1756_v8 }
 0x1b7   : > { %v1337_v59 = vld [vmem:[#allocation2 + $0x88] sm:$0xff]  ;;  %v1366_v3 = vadd.f32 %v1343_v17, %v1336_v54 }
 0x1b8   : > { %v1367_v7 = vadd.f32 %v1347_v18, %v1337_v59  ;;  %1449 = vst [vmem:[%s2383_s25 + $0x38] sm:$0xff] %v1757_v10 }
 0x1b9   : > { %v1384_v9 = vmax.f32 %v1366_v3, 0.0 }
 0x1ba   : > { %v1385_v11 = vmax.f32 %v1367_v7, 0.0 }
 0x1bc   : > { %v1758_v12 = vpack.c.bf16 %v1385_v11, %v1384_v9 }
 0x1be   : > { %1450 = vst [vmem:[%s2383_s25 + $0x40] sm:$0xff] %v1758_v12 }
 0x1bf PF: > { %1457 = sbr.rel (!%p2195_p12) target bundleno = 456 (0x1c8), region = 105  ;;  %s1759_s14 = sshll.u32 (%p2195_p12), %s2066_s19, 3  ;;  %v1507_v13 = vld [vmem:[%s2383_s25] sm:$0xff] (%p2195_p12)  ;;  %v1509_v14 = vld [vmem:[%s2383_s25 + $0x8] sm:$0xff] (%p2195_p12)  ;;  %v1511_v15 = vld [vmem:[%s2383_s25 + $0x10] sm:$0xff] (%p2195_p12) }
 0x1c0   : > { %s1463_s0 = scalar_lea.vmem (%p2195_p12), %s2534_s3, %s1759_s14  ;;  %v1513_v16 = vld [vmem:[%s2383_s25 + $0x18] sm:$0xff] (%p2195_p12)  ;;  %v1519_v19 = vld [vmem:[%s2383_s25 + $0x30] sm:$0xff] (%p2195_p12) }
 0x1c1   : > { %1508 = vst [vmem:[%s1463_s0] sm:$0xff] (%p2195_p12), %v1507_v13  ;;  %1510 = vst [vmem:[%s1463_s0 + $0x10] sm:$0xff] (%p2195_p12), %v1509_v14  ;;  %v1521_v20 = vld [vmem:[%s2383_s25 + $0x38] sm:$0xff] (%p2195_p12) }
 0x1c2   : > { %1512 = vst [vmem:[%s1463_s0 + $0x20] sm:$0xff] (%p2195_p12), %v1511_v15  ;;  %1514 = vst [vmem:[%s1463_s0 + $0x30] sm:$0xff] (%p2195_p12), %v1513_v16 }
 0x1c3   : > { %1520 = vst [vmem:[%s1463_s0 + $0x60] sm:$0xff] (%p2195_p12), %v1519_v19  ;;  %1522 = vst [vmem:[%s1463_s0 + $0x70] sm:$0xff] (%p2195_p12), %v1521_v20 }
 0x1c5   : > { %v1515_v17 = vld [vmem:[%s2383_s25 + $0x20] sm:$0xff] (%p2195_p12) }
 0x1c6   : > { %v1517_v18 = vld [vmem:[%s2383_s25 + $0x28] sm:$0xff]  ;;  %1516 = vst [vmem:[%s1463_s0 + $0x40] sm:$0xff] %v1515_v17  ;;  %v1523_v21 = vld [vmem:[%s2383_s25 + $0x40] sm:$0xff] }
 0x1c7   : > { %1518 = vst [vmem:[%s1463_s0 + $0x50] sm:$0xff] %v1517_v18  ;;  %1524 = vst [vmem:[%s1463_s0 + $0x80] sm:$0xff] %v1523_v21 }
 0x1c8 PF: > { %s13_s22 = sadd.s32 1, %s2078_s22   ;;  %s2544_s10 = sld [smem:[#allocation6_spill]] }
 0x1c9   : > { %p10_p6 = scmp.ge.s32.totalorder %s13_s22, 20   ;;  %s2545_s12 = smov %s2042_s13 }
 0x1ca   : > { %s2546_s13 = smov %s2193_s9  ;;  %s2547_s14 = smov %s2050_s15 }
 0x1cb   : > { %s2548_s15 = smov %s2190_s8  ;;  %s2549_s16 = smov %s2058_s17 }
 0x1cc   : > { %s2550_s17 = smov %s2176_s30  ;;  %s2551_s18 = smov %s2070_s20 }
 0x1cd   : > { %s2552_s19 = smov %s2074_s21  ;;  %s2553_s20 = smov %s2556_s24 }
 0x1ce   : > { %s2554_s21 = smov %s2544_s10  ;;  %12 = sbr.rel (!%p10_p6) target bundleno = 9 (0x9), region = 185 }

// kernel: _lambda_.21
= control target key start
LH: loop header
LB: loop body
LE: loop exit
PB: predicated region body
PF: predicated region fallthrough
CT: control target
= control target key end

     0   :  { %s2121_s0 = inlined_call_operand.vmem [shape: bf16[24,2048], index: 0, kind: input, shape index: {}]   ;;  %s2122_s1 = inlined_call_operand.vmem [shape: bf16[2048,512], index: 1, kind: input, shape index: {}]   ;;  %s2123_s2 = inlined_call_operand.vmem [shape: f32[1,512], index: 2, kind: input, shape index: {}]   ;;  %s2124_s3 = inlined_call_operand.vmem [shape: bf16[24,512], index: 3, kind: output, shape index: {}]  }
   0x1   :  { %2126 = sst [smem:[#allocation7_spill]] %s2121_s0 }
   0x2   :  { %2127 = sst [smem:[#allocation8_spill]] %s2122_s1 }
   0x3   :  { %s1735_s12 = smov 0   ;;  %s1737_s13 = smov 0  }
   0x4   :  { %s1739_s14 = smov 0   ;;  %s1741_s15 = smov 0  }
   0x5   :  { %s1743_s16 = smov 0   ;;  %s1745_s17 = smov 0  }
   0x6   :  { %s1747_s18 = smov 0   ;;  %s1749_s19 = smov 0  }
   0x7   :  { %s1751_s20 = smov 0   ;;  %s1753_s21 = smov 0  }
   0x8   :  { %s1755_s22 = smov 0  }
   0x9 LB: > { %s1323_s23 = sadd.s32 4294967295, %s1712_s22   ;;  %s25_s24 = sadd.s32 1, %s1704_s20  ;;  %s1712_s22 = sphi %s1755_s22, %s13_s22   ;;  %s1708_s21 = sphi %s1753_s21, %s2144_s21   ;;  %s1704_s20 = sphi %s1751_s20, %s2143_s20   ;;  %s1700_s19 = sphi %s1749_s19, %s2142_s19   ;;  %s1696_s18 = sphi %s1747_s18, %s2141_s18   ;;  %s1692_s17 = sphi %s1745_s17, %s2140_s17   ;;  %s1688_s16 = sphi %s1743_s16, %s2139_s16   ;;  %s1684_s15 = sphi %s1741_s15, %s2138_s15   ;;  %s1680_s14 = sphi %s1739_s14, %s2137_s14   ;;  %s1676_s13 = sphi %s1737_s13, %s2136_s13   ;;  %s1672_s12 = sphi %s1735_s12, %s2135_s12  }
   0xa   : > { %p26_p0 = scmp.ge.s32.totalorder %s25_s24, 4  ;;  %s28_s25 = sadd.s32 1, %s1708_s21 }
   0xb   : > { %s41_s26 = sadd.s32 1, %s1692_s17  ;;  %p48_p1 = scmp.ne.s32.totalorder %s1692_s17, %s1688_s16 }
   0xc   : > { %s2146_s24 = smov (%p26_p0, %s25_s24), 0  ;;  %s2148_s25 = smov (!%p26_p0, %s28_s25), %s1708_s21 }
   0xd   : > { %s37_s27 = ssub.s32 %s1704_s20, %s2146_s24  ;;  %p49_p2 = scmp.eq.s32.totalorder %s1712_s22, 0 }
   0xe   : > { %p30_p3 = scmp.ge.s32.totalorder %s2148_s25, 2  ;;  %p39_p4 = scmp.eq.s32.totalorder %s37_s27, 0 }
   0xf   : > { %p1802_p5 = por %p49_p2, %p48_p1  ;;  %s69_s29 = sadd.s32 1, %s1684_s15 }
  0x10   : > { %s2150_s25 = smov (%p30_p3, %s2148_s25), 0  ;;  %p76_p6 = scmp.ne.s32.totalorder %s1684_s15, %s1680_s14 }
  0x11   : > { %2129 = sst [smem:[#allocation6_spill]] %s2150_s25  ;;  %s65_s4 = ssub.s32 %s1708_s21, %s2150_s25 }
  0x12   : > { %s1810_s30 = scalar_select %p39_p4, %s1692_s17, %s41_s26  }
  0x13   : > { %s66_s5 = sor.u32 %s65_s4, %s37_s27  ;;  %p121_p7 = scmp.eq.s32.totalorder %s65_s4, 0 }
  0x14   : > { %p67_p8 = scmp.eq.s32.totalorder %s66_s5, 0  ;;  %p1816_p9 = por %p76_p6, %p49_p2 }
  0x15   : > { %s123_s7 = sadd.s32 1, %s1676_s13  ;;  %p133_p10 = scmp.ne.s32.totalorder %s1676_s13, %s1672_s12 }
  0x16   : > { %s1824_s8 = scalar_select %p67_p8, %s1684_s15, %s69_s29  }
  0x17   : > { %s1827_s9 = scalar_select %p121_p7, %s1676_s13, %s123_s7  }
  0x18   : > { %p134_p11 = scmp.eq.s32.totalorder %s1323_s23, 7  ;;  %p1326_p13 = scmp.ge.s32.totalorder %s1712_s22, 8 }
  0x1a   : > { %p1829_p12 = por %p134_p11, %p133_p10  ;;  %156 = sbr.rel (%p1326_p13) target bundleno = 88 (0x58), region = 16 }
  0x21   : > { %159 = sbr.rel (!%p1802_p5) target bundleno = 46 (0x2e), region = 20  ;;  %s161_s11 = sand.u32 (%p1802_p5), 1, %s1692_s17  }
  0x22   : > { %s1418_s26 = sshll.u32 (%p1802_p5), %s1704_s20, 4  ;;  %s1428_s27 = smul.u32 (%p1802_p5), 48, %s161_s11 }
  0x23   : > { %s2132_s0 = sld [smem:[#allocation7_spill]] (%p1802_p5) }
  0x24   : > { %s163_s23 = scalar_lea.vmem (%p1802_p5), [#allocation3], %s1428_s27 }
  0x29   : > { %s169_s5 = scalar_lea.vmem %s2132_s0, %s1418_s26 }
  0x2a   : > { %v182_v0 = vld [vmem:[%s169_s5] sm:$0xff]  ;;  %v184_v1 = vld [vmem:[%s169_s5 + $0x8] sm:$0xff] }
  0x2b   : > { %v186_v2 = vld [vmem:[%s169_s5 + $0x40] sm:$0xff]  ;;  %v188_v3 = vld [vmem:[%s169_s5 + $0x48] sm:$0xff]  ;;  %183 = vst [vmem:[%s163_s23] sm:$0xff] %v182_v0  ;;  %185 = vst [vmem:[%s163_s23 + $0x8] sm:$0xff] %v184_v1 }
  0x2c   : > { %v190_v4 = vld [vmem:[%s169_s5 + $0x80] sm:$0xff]  ;;  %v192_v5 = vld [vmem:[%s169_s5 + $0x88] sm:$0xff]  ;;  %187 = vst [vmem:[%s163_s23 + $0x10] sm:$0xff] %v186_v2  ;;  %189 = vst [vmem:[%s163_s23 + $0x18] sm:$0xff] %v188_v3 }
  0x2d   : > { %191 = vst [vmem:[%s163_s23 + $0x20] sm:$0xff] %v190_v4  ;;  %193 = vst [vmem:[%s163_s23 + $0x28] sm:$0xff] %v192_v5 }
  0x2e PF: > { %199 = sbr.rel (!%p1816_p9) target bundleno = 88 (0x58), region = 43  ;;  %s201_s28 = sand.u32 (%p1816_p9), 1, %s1684_s15  }
  0x2f   : > { %s1331_s7 = sshll.u32 (%p1816_p9), %s1708_s21, 1  ;;  %s1329_s11 = sshll.u32 (%p1816_p9), %s201_s28, 9 }
  0x30   : > { %s1419_s26 = sshll.u32 (%p1816_p9), %s1704_s20, 8  ;;  %s2133_s1 = sld [smem:[#allocation8_spill]] (%p1816_p9) }
  0x31   : > { %s207_s29 = sadd.s32 (%p1816_p9), %s1419_s26, %s1331_s7  ;;  %s1854_s6 = scalar_lea.vmem (%p1816_p9), [#allocation4], %s1329_s11 }
  0x32   : > { %s1333_s4 = sshll.u32 (%p1816_p9), %s207_s29, 2 }
  0x36   : > { %s1849_s0 = scalar_lea.vmem %s2133_s1, %s1333_s4 }
  0x37   : > { %v363_v6 = vld [vmem:[%s1849_s0] sm:$0xff]  ;;  %v365_v7 = vld [vmem:[%s1849_s0 + $0x10] sm:$0xff] }
  0x38   : > { %v367_v8 = vld [vmem:[%s1849_s0 + $0x20] sm:$0xff]  ;;  %364 = vst [vmem:[%s1854_s6] sm:$0xff] %v363_v6  ;;  %366 = vst [vmem:[%s1854_s6 + $0x8] sm:$0xff] %v365_v7  ;;  %v369_v9 = vld [vmem:[%s1849_s0 + $0x30] sm:$0xff] }
  0x39   : > { %368 = vst [vmem:[%s1854_s6 + $0x10] sm:$0xff] %v367_v8  ;;  %v371_v10 = vld [vmem:[%s1849_s0 + $0x40] sm:$0xff]  ;;  %v373_v11 = vld [vmem:[%s1849_s0 + $0x50] sm:$0xff]  ;;  %370 = vst [vmem:[%s1854_s6 + $0x18] sm:$0xff] %v369_v9 }
  0x3a   : > { %372 = vst [vmem:[%s1854_s6 + $0x20] sm:$0xff] %v371_v10  ;;  %374 = vst [vmem:[%s1854_s6 + $0x28] sm:$0xff] %v373_v11  ;;  %v375_v12 = vld [vmem:[%s1849_s0 + $0x60] sm:$0xff]  ;;  %v377_v13 = vld [vmem:[%s1849_s0 + $0x70] sm:$0xff] }
  0x3b   : > { %v379_v14 = vld [vmem:[%s1849_s0 + $0x80] sm:$0xff]  ;;  %376 = vst [vmem:[%s1854_s6 + $0x30] sm:$0xff] %v375_v12  ;;  %378 = vst [vmem:[%s1854_s6 + $0x38] sm:$0xff] %v377_v13  ;;  %v381_v15 = vld [vmem:[%s1849_s0 + $0x90] sm:$0xff] }
  0x3c   : > { %380 = vst [vmem:[%s1854_s6 + $0x40] sm:$0xff] %v379_v14  ;;  %v383_v16 = vld [vmem:[%s1849_s0 + $0xa0] sm:$0xff]  ;;  %v385_v17 = vld [vmem:[%s1849_s0 + $0xb0] sm:$0xff]  ;;  %382 = vst [vmem:[%s1854_s6 + $0x48] sm:$0xff] %v381_v15 }
  0x3d   : > { %384 = vst [vmem:[%s1854_s6 + $0x50] sm:$0xff] %v383_v16  ;;  %386 = vst [vmem:[%s1854_s6 + $0x58] sm:$0xff] %v385_v17  ;;  %v387_v18 = vld [vmem:[%s1849_s0 + $0xc0] sm:$0xff]  ;;  %v389_v19 = vld [vmem:[%s1849_s0 + $0xd0] sm:$0xff] }
  0x3e   : > { %v391_v20 = vld [vmem:[%s1849_s0 + $0xe0] sm:$0xff]  ;;  %388 = vst [vmem:[%s1854_s6 + $0x60] sm:$0xff] %v387_v18  ;;  %390 = vst [vmem:[%s1854_s6 + $0x68] sm:$0xff] %v389_v19  ;;  %v393_v21 = vld [vmem:[%s1849_s0 + $0xf0] sm:$0xff] }
  0x3f   : > { %392 = vst [vmem:[%s1854_s6 + $0x70] sm:$0xff] %v391_v20  ;;  %v395_v22 = vld [vmem:[%s1849_s0 + $0x100] sm:$0xff]  ;;  %v397_v23 = vld [vmem:[%s1849_s0 + $0x110] sm:$0xff]  ;;  %394 = vst [vmem:[%s1854_s6 + $0x78] sm:$0xff] %v393_v21 }
  0x40   : > { %396 = vst [vmem:[%s1854_s6 + $0x80] sm:$0xff] %v395_v22  ;;  %398 = vst [vmem:[%s1854_s6 + $0x88] sm:$0xff] %v397_v23  ;;  %v399_v24 = vld [vmem:[%s1849_s0 + $0x120] sm:$0xff]  ;;  %v401_v25 = vld [vmem:[%s1849_s0 + $0x130] sm:$0xff] }
  0x41   : > { %v403_v26 = vld [vmem:[%s1849_s0 + $0x140] sm:$0xff]  ;;  %400 = vst [vmem:[%s1854_s6 + $0x90] sm:$0xff] %v399_v24  ;;  %402 = vst [vmem:[%s1854_s6 + $0x98] sm:$0xff] %v401_v25  ;;  %v405_v27 = vld [vmem:[%s1849_s0 + $0x150] sm:$0xff] }
  0x42   : > { %404 = vst [vmem:[%s1854_s6 + $0xa0] sm:$0xff] %v403_v26  ;;  %v407_v28 = vld [vmem:[%s1849_s0 + $0x160] sm:$0xff]  ;;  %v409_v29 = vld [vmem:[%s1849_s0 + $0x170] sm:$0xff]  ;;  %406 = vst [vmem:[%s1854_s6 + $0xa8] sm:$0xff] %v405_v27 }
  0x43   : > { %408 = vst [vmem:[%s1854_s6 + $0xb0] sm:$0xff] %v407_v28  ;;  %410 = vst [vmem:[%s1854_s6 + $0xb8] sm:$0xff] %v409_v29  ;;  %v411_v30 = vld [vmem:[%s1849_s0 + $0x180] sm:$0xff]  ;;  %v413_v31 = vld [vmem:[%s1849_s0 + $0x190] sm:$0xff] }
  0x44   : > { %v415_v32 = vld [vmem:[%s1849_s0 + $0x1a0] sm:$0xff]  ;;  %412 = vst [vmem:[%s1854_s6 + $0xc0] sm:$0xff] %v411_v30  ;;  %414 = vst [vmem:[%s1854_s6 + $0xc8] sm:$0xff] %v413_v31  ;;  %v417_v33 = vld [vmem:[%s1849_s0 + $0x1b0] sm:$0xff] }
  0x45   : > { %416 = vst [vmem:[%s1854_s6 + $0xd0] sm:$0xff] %v415_v32  ;;  %v419_v34 = vld [vmem:[%s1849_s0 + $0x1c0] sm:$0xff]  ;;  %v421_v35 = vld [vmem:[%s1849_s0 + $0x1d0] sm:$0xff]  ;;  %418 = vst [vmem:[%s1854_s6 + $0xd8] sm:$0xff] %v417_v33 }
  0x46   : > { %420 = vst [vmem:[%s1854_s6 + $0xe0] sm:$0xff] %v419_v34  ;;  %422 = vst [vmem:[%s1854_s6 + $0xe8] sm:$0xff] %v421_v35  ;;  %v423_v36 = vld [vmem:[%s1849_s0 + $0x1e0] sm:$0xff]  ;;  %v425_v37 = vld [vmem:[%s1849_s0 + $0x1f0] sm:$0xff] }
  0x47   : > { %v427_v38 = vld [vmem:[%s1849_s0 + $0x200] sm:$0xff]  ;;  %424 = vst [vmem:[%s1854_s6 + $0xf0] sm:$0xff] %v423_v36  ;;  %426 = vst [vmem:[%s1854_s6 + $0xf8] sm:$0xff] %v425_v37  ;;  %v429_v39 = vld [vmem:[%s1849_s0 + $0x210] sm:$0xff] }
  0x48   : > { %428 = vst [vmem:[%s1854_s6 + $0x100] sm:$0xff] %v427_v38  ;;  %v431_v40 = vld [vmem:[%s1849_s0 + $0x220] sm:$0xff]  ;;  %v433_v41 = vld [vmem:[%s1849_s0 + $0x230] sm:$0xff]  ;;  %430 = vst [vmem:[%s1854_s6 + $0x108] sm:$0xff] %v429_v39 }
  0x49   : > { %432 = vst [vmem:[%s1854_s6 + $0x110] sm:$0xff] %v431_v40  ;;  %434 = vst [vmem:[%s1854_s6 + $0x118] sm:$0xff] %v433_v41  ;;  %v435_v42 = vld [vmem:[%s1849_s0 + $0x240] sm:$0xff]  ;;  %v437_v43 = vld [vmem:[%s1849_s0 + $0x250] sm:$0xff] }
  0x4a   : > { %v439_v44 = vld [vmem:[%s1849_s0 + $0x260] sm:$0xff]  ;;  %436 = vst [vmem:[%s1854_s6 + $0x120] sm:$0xff] %v435_v42  ;;  %438 = vst [vmem:[%s1854_s6 + $0x128] sm:$0xff] %v437_v43  ;;  %v441_v45 = vld [vmem:[%s1849_s0 + $0x270] sm:$0xff] }
  0x4b   : > { %440 = vst [vmem:[%s1854_s6 + $0x130] sm:$0xff] %v439_v44  ;;  %v443_v46 = vld [vmem:[%s1849_s0 + $0x280] sm:$0xff]  ;;  %v445_v47 = vld [vmem:[%s1849_s0 + $0x290] sm:$0xff]  ;;  %442 = vst [vmem:[%s1854_s6 + $0x138] sm:$0xff] %v441_v45 }
  0x4c   : > { %444 = vst [vmem:[%s1854_s6 + $0x140] sm:$0xff] %v443_v46  ;;  %446 = vst [vmem:[%s1854_s6 + $0x148] sm:$0xff] %v445_v47  ;;  %v447_v48 = vld [vmem:[%s1849_s0 + $0x2a0] sm:$0xff]  ;;  %v449_v49 = vld [vmem:[%s1849_s0 + $0x2b0] sm:$0xff] }
  0x4d   : > { %v451_v50 = vld [vmem:[%s1849_s0 + $0x2c0] sm:$0xff]  ;;  %448 = vst [vmem:[%s1854_s6 + $0x150] sm:$0xff] %v447_v48  ;;  %450 = vst [vmem:[%s1854_s6 + $0x158] sm:$0xff] %v449_v49  ;;  %v453_v51 = vld [vmem:[%s1849_s0 + $0x2d0] sm:$0xff] }
  0x4e   : > { %452 = vst [vmem:[%s1854_s6 + $0x160] sm:$0xff] %v451_v50  ;;  %v455_v52 = vld [vmem:[%s1849_s0 + $0x2e0] sm:$0xff]  ;;  %v457_v53 = vld [vmem:[%s1849_s0 + $0x2f0] sm:$0xff]  ;;  %454 = vst [vmem:[%s1854_s6 + $0x168] sm:$0xff] %v453_v51 }
  0x4f   : > { %456 = vst [vmem:[%s1854_s6 + $0x170] sm:$0xff] %v455_v52  ;;  %458 = vst [vmem:[%s1854_s6 + $0x178] sm:$0xff] %v457_v53  ;;  %v459_v54 = vld [vmem:[%s1849_s0 + $0x300] sm:$0xff]  ;;  %v461_v55 = vld [vmem:[%s1849_s0 + $0x310] sm:$0xff] }
  0x50   : > { %v463_v56 = vld [vmem:[%s1849_s0 + $0x320] sm:$0xff]  ;;  %460 = vst [vmem:[%s1854_s6 + $0x180] sm:$0xff] %v459_v54  ;;  %462 = vst [vmem:[%s1854_s6 + $0x188] sm:$0xff] %v461_v55  ;;  %v465_v57 = vld [vmem:[%s1849_s0 + $0x330] sm:$0xff] }
  0x51   : > { %464 = vst [vmem:[%s1854_s6 + $0x190] sm:$0xff] %v463_v56  ;;  %v467_v58 = vld [vmem:[%s1849_s0 + $0x340] sm:$0xff]  ;;  %v469_v59 = vld [vmem:[%s1849_s0 + $0x350] sm:$0xff]  ;;  %466 = vst [vmem:[%s1854_s6 + $0x198] sm:$0xff] %v465_v57 }
  0x52   : > { %468 = vst [vmem:[%s1854_s6 + $0x1a0] sm:$0xff] %v467_v58  ;;  %470 = vst [vmem:[%s1854_s6 + $0x1a8] sm:$0xff] %v469_v59  ;;  %v471_v60 = vld [vmem:[%s1849_s0 + $0x360] sm:$0xff]  ;;  %v473_v61 = vld [vmem:[%s1849_s0 + $0x370] sm:$0xff] }
  0x53   : > { %v475_v62 = vld [vmem:[%s1849_s0 + $0x380] sm:$0xff]  ;;  %472 = vst [vmem:[%s1854_s6 + $0x1b0] sm:$0xff] %v471_v60  ;;  %474 = vst [vmem:[%s1854_s6 + $0x1b8] sm:$0xff] %v473_v61  ;;  %v477_v63 = vld [vmem:[%s1849_s0 + $0x390] sm:$0xff] }
  0x54   : > { %476 = vst [vmem:[%s1854_s6 + $0x1c0] sm:$0xff] %v475_v62  ;;  %v479_v0 = vld [vmem:[%s1849_s0 + $0x3a0] sm:$0xff]  ;;  %v481_v1 = vld [vmem:[%s1849_s0 + $0x3b0] sm:$0xff]  ;;  %478 = vst [vmem:[%s1854_s6 + $0x1c8] sm:$0xff] %v477_v63 }
  0x55   : > { %480 = vst [vmem:[%s1854_s6 + $0x1d0] sm:$0xff] %v479_v0  ;;  %482 = vst [vmem:[%s1854_s6 + $0x1d8] sm:$0xff] %v481_v1  ;;  %v483_v2 = vld [vmem:[%s1849_s0 + $0x3c0] sm:$0xff]  ;;  %v485_v3 = vld [vmem:[%s1849_s0 + $0x3d0] sm:$0xff] }
  0x56   : > { %v487_v4 = vld [vmem:[%s1849_s0 + $0x3e0] sm:$0xff]  ;;  %484 = vst [vmem:[%s1854_s6 + $0x1e0] sm:$0xff] %v483_v2  ;;  %486 = vst [vmem:[%s1854_s6 + $0x1e8] sm:$0xff] %v485_v3  ;;  %v489_v5 = vld [vmem:[%s1849_s0 + $0x3f0] sm:$0xff] }
  0x57   : > { %488 = vst [vmem:[%s1854_s6 + $0x1f0] sm:$0xff] %v487_v4  ;;  %490 = vst [vmem:[%s1854_s6 + $0x1f8] sm:$0xff] %v489_v5 }
  0x58 PF: > { %p1334_p0 = scmp.ge.s32.totalorder %s1712_s22, 1  ;;  %p503_p1 = scmp.lt.s32.totalorder %s1712_s22, 9 }
  0x5a   : > { %p504_p2 = pnand %p1334_p0, %p503_p1 }
  0x5b   : > { %s510_s23 = sand.u32 (!%p504_p2), 1, %s1688_s16   ;;  %s517_s28 = sand.u32 (!%p504_p2), 1, %s1680_s14  }
  0x5c   : > { %507 = sbr.rel (%p504_p2) target bundleno = 418 (0x1a2), region = 85  ;;  %s1335_s11 = sshll.u32 (!%p504_p2), %s517_s28, 9 }
  0x5d   : > { %s1429_s7 = smul.u32 (!%p504_p2), 48, %s510_s23  ;;  %s544_s26 = sand.u32 (!%p504_p2), 1, %s1672_s12  }
  0x5e   : > { %s1430_s29 = smul.u32 (!%p504_p2), 24, %s544_s26  ;;  %s1336_s0 = sshll.u32 (!%p504_p2), %s1700_s19, 1 }
  0x5f   : > { %p552_p3 = scmp.lt.s32.totalorder (!%p504_p2), %s1336_s0, 3  ;;  %s1993_s6 = scalar_lea.vmem (!%p504_p2), [#allocation3], %s1429_s7 }
  0x60   : > { %s1995_s1 = scalar_lea.vmem (!%p504_p2), [#allocation4], %s1335_s11  ;;  %s1997_s25 = scalar_lea.vmem (!%p504_p2), [#allocation5], %s1430_s29 }
  0x61   : > { %p1337_p4 = scmp.ne.s32.totalorder (!%p504_p2), %s1696_s18, 0 }
  0x63   : > { %s2152_s0 = smov (!%p552_p3, %s1336_s0), 3  ;;  %561 = sbr.rel (%p1337_p4) target bundleno = 106 (0x6a), region = 97 }
  0x64   : > { %s554_s5 = scalar_lea.vmem %s2123_s2, %s2152_s0  ;;  %v1714_v6 = vmov (!%p1337_p4), 0.0  }
  0x65   : > { %562 = vst [vmem:[#allocation2] sm:$0xff] (!%p1337_p4), %v1714_v6  ;;  %563 = vst [vmem:[#allocation2 + $0x8] sm:$0xff] (!%p1337_p4), %v1714_v6 }
  0x66   : > { %564 = vst [vmem:[#allocation2 + $0x10] sm:$0xff] (!%p1337_p4), %v1714_v6  ;;  %565 = vst [vmem:[#allocation2 + $0x18] sm:$0xff] (!%p1337_p4), %v1714_v6 }
  0x67   : > { %566 = vst [vmem:[#allocation2 + $0x20] sm:$0xff] (!%p1337_p4), %v1714_v6  ;;  %567 = vst [vmem:[#allocation2 + $0x28] sm:$0xff] (!%p1337_p4), %v1714_v6 }
  0x6a PF: > { %v1520_v7 = vld [vmem:[%s1995_s1 + $0x4] ss:$8 sps:$4 sm:$0xff]   ;;  %v1524_v9 = vld [vmem:[%s1995_s1] ss:$8 sps:$4 sm:$0xff]   ;;  %v1526_v11 = vld [vmem:[%s1995_s1 + $0x14] ss:$8 sps:$4 sm:$0xff]  }
  0x6b   : > { %v1522_v8 = vld [vmem:[%s1995_s1 + $0x104] ss:$8 sps:$4 sm:$0xff]   ;;  %998 = vmatprep.subr.bf16.mxu1 %v1520_v7  ;;  %v1525_v10 = vld [vmem:[%s1995_s1 + $0x100] ss:$8 sps:$4 sm:$0xff]   ;;  %v1528_v12 = vld [vmem:[%s1995_s1 + $0x114] ss:$8 sps:$4 sm:$0xff]  }
  0x6c   : > { %1049 = vmatprep.subr.bf16.mxu0 %v1522_v8  ;;  %999 = vmatpush1.bf16.msra.mxu1 %v1524_v9  ;;  %v1530_v13 = vld [vmem:[%s1995_s1 + $0x10] ss:$8 sps:$4 sm:$0xff]   ;;  %v1532_v15 = vld [vmem:[%s1995_s1 + $0x24] ss:$8 sps:$4 sm:$0xff]   ;;  %v1536_v17 = vld [vmem:[%s1995_s1 + $0x20] ss:$8 sps:$4 sm:$0xff]  }
  0x6d   : > { %1050 = vmatpush1.bf16.msra.mxu0 %v1525_v10  ;;  %1000 = vmatprep.subr.bf16.mxu1 %v1526_v11  ;;  %v1531_v14 = vld [vmem:[%s1995_s1 + $0x110] ss:$8 sps:$4 sm:$0xff]   ;;  %v1534_v16 = vld [vmem:[%s1995_s1 + $0x124] ss:$8 sps:$4 sm:$0xff]   ;;  %v1537_v18 = vld [vmem:[%s1995_s1 + $0x120] ss:$8 sps:$4 sm:$0xff]  }
  0x6e   : > { %1051 = vmatprep.subr.bf16.mxu0 %v1528_v12  ;;  %v1538_v19 = vld [vmem:[%s1995_s1 + $0x34] ss:$8 sps:$4 sm:$0xff]   ;;  %v1542_v21 = vld [vmem:[%s1995_s1 + $0x30] ss:$8 sps:$4 sm:$0xff]   ;;  %v1544_v23 = vld [vmem:[%s1995_s1 + $0x44] ss:$8 sps:$4 sm:$0xff]  }
  0x6f   : > { %v1540_v20 = vld [vmem:[%s1995_s1 + $0x134] ss:$8 sps:$4 sm:$0xff]   ;;  %v1543_v22 = vld [vmem:[%s1995_s1 + $0x130] ss:$8 sps:$4 sm:$0xff]   ;;  %v1546_v24 = vld [vmem:[%s1995_s1 + $0x144] ss:$8 sps:$4 sm:$0xff]  }
  0x70   : > { %1001 = vmatpush1.bf16.msra.mxu1 %v1530_v13  ;;  %v1548_v25 = vld [vmem:[%s1995_s1 + $0x40] ss:$8 sps:$4 sm:$0xff]   ;;  %v1550_v27 = vld [vmem:[%s1995_s1 + $0x54] ss:$8 sps:$4 sm:$0xff]   ;;  %v1554_v29 = vld [vmem:[%s1995_s1 + $0x50] ss:$8 sps:$4 sm:$0xff]  }
  0x71   : > { %1052 = vmatpush1.bf16.msra.mxu0 %v1531_v14  ;;  %1002 = vmatprep.subr.bf16.mxu1 %v1532_v15  ;;  %v1549_v26 = vld [vmem:[%s1995_s1 + $0x140] ss:$8 sps:$4 sm:$0xff]   ;;  %v1552_v28 = vld [vmem:[%s1995_s1 + $0x154] ss:$8 sps:$4 sm:$0xff]   ;;  %v1555_v30 = vld [vmem:[%s1995_s1 + $0x150] ss:$8 sps:$4 sm:$0xff]  }
  0x72   : > { %1053 = vmatprep.subr.bf16.mxu0 %v1534_v16  ;;  %v1556_v31 = vld [vmem:[%s1995_s1 + $0x64] ss:$8 sps:$4 sm:$0xff]   ;;  %v1560_v33 = vld [vmem:[%s1995_s1 + $0x60] ss:$8 sps:$4 sm:$0xff]   ;;  %v1562_v35 = vld [vmem:[%s1995_s1 + $0x74] ss:$8 sps:$4 sm:$0xff]  }
  0x73   : > { %v1558_v32 = vld [vmem:[%s1995_s1 + $0x164] ss:$8 sps:$4 sm:$0xff]   ;;  %v1561_v34 = vld [vmem:[%s1995_s1 + $0x160] ss:$8 sps:$4 sm:$0xff]   ;;  %v1564_v36 = vld [vmem:[%s1995_s1 + $0x174] ss:$8 sps:$4 sm:$0xff]  }
  0x74   : > { %1003 = vmatpush1.bf16.msra.mxu1 %v1536_v17  ;;  %v1566_v37 = vld [vmem:[%s1995_s1 + $0x70] ss:$8 sps:$4 sm:$0xff]   ;;  %v1568_v39 = vld [vmem:[%s1995_s1 + $0x84] ss:$8 sps:$4 sm:$0xff]   ;;  %v1572_v41 = vld [vmem:[%s1995_s1 + $0x80] ss:$8 sps:$4 sm:$0xff]  }
  0x75   : > { %1054 = vmatpush1.bf16.msra.mxu0 %v1537_v18  ;;  %1004 = vmatprep.subr.bf16.mxu1 %v1538_v19  ;;  %v1567_v38 = vld [vmem:[%s1995_s1 + $0x170] ss:$8 sps:$4 sm:$0xff]   ;;  %v1570_v40 = vld [vmem:[%s1995_s1 + $0x184] ss:$8 sps:$4 sm:$0xff]   ;;  %v1573_v42 = vld [vmem:[%s1995_s1 + $0x180] ss:$8 sps:$4 sm:$0xff]  }
  0x76   : > { %1055 = vmatprep.subr.bf16.mxu0 %v1540_v20  ;;  %v1574_v43 = vld [vmem:[%s1995_s1 + $0x94] ss:$8 sps:$4 sm:$0xff]   ;;  %v1578_v45 = vld [vmem:[%s1995_s1 + $0x90] ss:$8 sps:$4 sm:$0xff]   ;;  %v1580_v47 = vld [vmem:[%s1995_s1 + $0xa4] ss:$8 sps:$4 sm:$0xff]  }
  0x77   : > { %v1576_v44 = vld [vmem:[%s1995_s1 + $0x194] ss:$8 sps:$4 sm:$0xff]   ;;  %v1579_v46 = vld [vmem:[%s1995_s1 + $0x190] ss:$8 sps:$4 sm:$0xff]   ;;  %v1582_v48 = vld [vmem:[%s1995_s1 + $0x1a4] ss:$8 sps:$4 sm:$0xff]  }
  0x78   : > { %1005 = vmatpush1.bf16.msra.mxu1 %v1542_v21  ;;  %v1584_v49 = vld [vmem:[%s1995_s1 + $0xa0] ss:$8 sps:$4 sm:$0xff]   ;;  %v1586_v51 = vld [vmem:[%s1995_s1 + $0xb4] ss:$8 sps:$4 sm:$0xff]   ;;  %v1590_v53 = vld [vmem:[%s1995_s1 + $0xb0] ss:$8 sps:$4 sm:$0xff]  }
  0x79   : > { %1056 = vmatpush1.bf16.msra.mxu0 %v1543_v22  ;;  %1006 = vmatprep.subr.bf16.mxu1 %v1544_v23  ;;  %v1585_v50 = vld [vmem:[%s1995_s1 + $0x1a0] ss:$8 sps:$4 sm:$0xff]   ;;  %v1588_v52 = vld [vmem:[%s1995_s1 + $0x1b4] ss:$8 sps:$4 sm:$0xff]   ;;  %v1591_v55 = vld [vmem:[%s1995_s1 + $0x1b0] ss:$8 sps:$4 sm:$0xff]  }
  0x7a   : > { %1057 = vmatprep.subr.bf16.mxu0 %v1546_v24  ;;  %v1618_v54 = vld [vmem:[%s1993_s6 + $0x4] ss:$16 sps:$4 sm:$0xff]   ;;  %v1621_v58 = vld [vmem:[%s1993_s6 + $0xc] ss:$16 sps:$4 sm:$0xff]   ;;  %v1596_v59 = vld [vmem:[%s1995_s1 + $0xc0] ss:$8 sps:$4 sm:$0xff]  }
  0x7b   : > { %v1592_v56 = vld [vmem:[%s1995_s1 + $0xc4] ss:$8 sps:$4 sm:$0xff]   ;;  %1030 = vmatprep.mubr.bf16.mxu1 %v1618_v54  ;;  %1081 = vmatprep.mubr.bf16.mxu0 %v1621_v58  ;;  %v1597_v60 = vld [vmem:[%s1995_s1 + $0x1c0] ss:$8 sps:$4 sm:$0xff]   ;;  %v1598_v61 = vld [vmem:[%s1995_s1 + $0xd4] ss:$8 sps:$4 sm:$0xff]  }
  0x7c   : > { %1007 = vmatpush1.bf16.msra.mxu1 %v1548_v25  ;;  %v1594_v57 = vld [vmem:[%s1995_s1 + $0x1c4] ss:$8 sps:$4 sm:$0xff]   ;;  %v1600_v62 = vld [vmem:[%s1995_s1 + $0x1d4] ss:$8 sps:$4 sm:$0xff]   ;;  %v1602_v63 = vld [vmem:[%s1995_s1 + $0xd0] ss:$8 sps:$4 sm:$0xff]  }
  0x7d   : > { %1058 = vmatpush1.bf16.msra.mxu0 %v1549_v26  ;;  %1008 = vmatprep.subr.bf16.mxu1 %v1550_v27  ;;  %v1603_v0 = vld [vmem:[%s1995_s1 + $0x1d0] ss:$8 sps:$4 sm:$0xff]   ;;  %v1604_v1 = vld [vmem:[%s1995_s1 + $0xe4] ss:$8 sps:$4 sm:$0xff]   ;;  %v1608_v3 = vld [vmem:[%s1995_s1 + $0xe0] ss:$8 sps:$4 sm:$0xff]  }
  0x7e   : > { %1059 = vmatprep.subr.bf16.mxu0 %v1552_v28  ;;  %v1606_v2 = vld [vmem:[%s1995_s1 + $0x1e4] ss:$8 sps:$4 sm:$0xff]   ;;  %v1609_v4 = vld [vmem:[%s1995_s1 + $0x1e0] ss:$8 sps:$4 sm:$0xff]   ;;  %v1610_v5 = vld [vmem:[%s1995_s1 + $0xf4] ss:$8 sps:$4 sm:$0xff]  }
  0x7f   : > { %v1612_v6 = vld [vmem:[%s1995_s1 + $0x1f4] ss:$8 sps:$4 sm:$0xff]   ;;  %v1614_v7 = vld [vmem:[%s1995_s1 + $0xf0] ss:$8 sps:$4 sm:$0xff]   ;;  %v570_v26 = vld [vmem:[#allocation2 + $0x10] sm:$0xff]  ;;  %p1410_p5 = scmp.ne.s32.totalorder %s1696_s18, 3 }
  0x80   : > { %1009 = vmatpush1.bf16.msra.mxu1 %v1554_v29  ;;  %v1615_v8 = vld [vmem:[%s1995_s1 + $0x1f0] ss:$8 sps:$4 sm:$0xff]  }
  0x81   : > { %1060 = vmatpush1.bf16.msra.mxu0 %v1555_v30  ;;  %1010 = vmatprep.subr.bf16.mxu1 %v1556_v31  ;;  %v578_v9 = vld [vmem:[%s1993_s6 + $0x20] sm:$0xff]  ;;  %v579_v10 = vld [vmem:[%s1993_s6 + $0x28] sm:$0xff] }
  0x82   : > { %1061 = vmatprep.subr.bf16.mxu0 %v1558_v32  ;;  %v1616_v11 = vld [vmem:[%s1993_s6] ss:$16 sps:$4 sm:$0xff]   ;;  %v1619_v12 = vld [vmem:[%s1993_s6 + $0x8] ss:$16 sps:$4 sm:$0xff]   ;;  %v1343_v13 = vcombine.high %v578_v9, %v578_v9  ;;  %v1345_v14 = vcombine.high %v579_v10, %v579_v10  ;;  %v1342_v15 = vcombine.low %v578_v9, %v578_v9  ;;  %v1344_v16 = vcombine.low %v579_v10, %v579_v10 }
  0x83   : > { %v568_v18 = vld [vmem:[#allocation2] sm:$0xff]  ;;  %v569_v22 = vld [vmem:[#allocation2 + $0x8] sm:$0xff]  ;;  %v571_v31 = vld [vmem:[#allocation2 + $0x18] sm:$0xff] }
  0x84   : > { %1011 = vmatpush1.bf16.msra.mxu1 %v1560_v33 }
  0x85   : > { %1062 = vmatpush1.bf16.msra.mxu0 %v1561_v34  ;;  %1012 = vmatprep.subr.bf16.mxu1 %v1562_v35 }
  0x86   : > { %1063 = vmatprep.subr.bf16.mxu0 %v1564_v36 }
  0x88   : > { %1013 = vmatpush1.bf16.msra.mxu1 %v1566_v37 }
  0x89   : > { %1064 = vmatpush1.bf16.msra.mxu0 %v1567_v38  ;;  %1014 = vmatprep.subr.bf16.mxu1 %v1568_v39  ;;  %v572_v38 = vld [vmem:[#allocation2 + $0x20] sm:$0xff] }
  0x8a   : > { %1065 = vmatprep.subr.bf16.mxu0 %v1570_v40 }
  0x8c   : > { %1015 = vmatpush1.bf16.msra.mxu1 %v1572_v41 }
  0x8d   : > { %1066 = vmatpush1.bf16.msra.mxu0 %v1573_v42  ;;  %1016 = vmatprep.subr.bf16.mxu1 %v1574_v43  ;;  %v573_v42 = vld [vmem:[#allocation2 + $0x28] sm:$0xff] }
  0x8e   : > { %1067 = vmatprep.subr.bf16.mxu0 %v1576_v44 }
  0x90   : > { %1017 = vmatpush1.bf16.msra.mxu1 %v1578_v45 }
  0x91   : > { %1068 = vmatpush1.bf16.msra.mxu0 %v1579_v46  ;;  %1018 = vmatprep.subr.bf16.mxu1 %v1580_v47 }
  0x92   : > { %1069 = vmatprep.subr.bf16.mxu0 %v1582_v48 }
  0x94   : > { %1019 = vmatpush1.bf16.msra.mxu1 %v1584_v49 }
  0x95   : > { %1070 = vmatpush1.bf16.msra.mxu0 %v1585_v50  ;;  %1020 = vmatprep.subr.bf16.mxu1 %v1586_v51  ;;  %v1124_v51 = vlaneseq (!%p1410_p5) }
  0x96   : > { %1071 = vmatprep.subr.bf16.mxu0 %v1588_v52 }
  0x97   : > { %v1125_v52 = vshrl.u32 (!%p1410_p5), %v1124_v51, 7 }
  0x98   : > { %1021 = vmatpush1.bf16.msra.mxu1 %v1590_v53  ;;  %v1122_v53 = vld [vmem:[%s554_s5] sm:$0x3] (!%p1410_p5) }
  0x99   : > { %1072 = vmatpush1.bf16.msra.mxu0 %v1591_v55  ;;  %1022 = vmatprep.subr.bf16.mxu1 %v1592_v56  ;;  %v1126_v55 = vsub.s32 (!%p1410_p5), 0, %v1125_v52  ;;  %v1130_v56 = vsub.s32 (!%p1410_p5), 1, %v1125_v52 }
  0x9a   : > { %1073 = vmatprep.subr.bf16.mxu0 %v1594_v57 }
  0x9c   : > { %1023 = vmatpush1.bf16.msra.mxu1 %v1596_v59 }
  0x9d   : > { %1074 = vmatpush1.bf16.msra.mxu0 %v1597_v60  ;;  %1024 = vmatprep.subr.bf16.mxu1 %v1598_v61  ;;  %v1127_v60 = vrot.slane (!%p1410_p5), %v1122_v53, %v1126_v55  ;;  %v1131_v61 = vrot.slane (!%p1410_p5), %v1122_v53, %v1130_v56 }
  0x9e   : > { %1075 = vmatprep.subr.bf16.mxu0 %v1600_v62 }
  0xa0   : > { %1025 = vmatpush1.bf16.msra.mxu1 %v1602_v63 }
  0xa1   : > { %1076 = vmatpush1.bf16.msra.mxu0 %v1603_v0  ;;  %1026 = vmatprep.subr.bf16.mxu1 %v1604_v1 }
  0xa2   : > { %1077 = vmatprep.subr.bf16.mxu0 %v1606_v2 }
  0xa4   : > { %1027 = vmatpush1.bf16.msra.mxu1 %v1608_v3 }
  0xa5   : > { %1078 = vmatpush1.bf16.msra.mxu0 %v1609_v4  ;;  %1028 = vmatprep.subr.bf16.mxu1 %v1610_v5 }
  0xa6   : > { %1079 = vmatprep.subr.bf16.mxu0 %v1612_v6 }
  0xa8   : > { %1029 = vmatpush1.bf16.msra.mxu1 %v1614_v7 }
  0xa9   : > { %1080 = vmatpush1.bf16.msra.mxu0 %v1615_v8 }
  0xab   : > { %1031 = vmatmul.mubr.bf16.vlgmr.msra.gmra.mrb[0].mxu1 %v1616_v11 }
  0xac   : > { %1082 = vmatmul.mubr.bf16.vlgmr.msra.gmra.mrb[0].mxu0 %v1619_v12  ;;  %1040 = vmatprep.mubr.bf16.mxu1 %v1343_v13 }
  0xad   : > { %1091 = vmatprep.mubr.bf16.mxu0 %v1345_v14 }
  0xb3   : > { %1041 = vmatmul.mubr.bf16.gmra.mrb[4].mxu1 %v1342_v15 }
  0xb4   : > { %1092 = vmatmul.mubr.bf16.gmra.mrb[4].mxu0 %v1344_v16 }
 0x17e   : > { %v1032_v17 = vpop.f32.mrb[0].mxu1 }
 0x17f   : > { %v1083_v19 = vpop.f32.mrb[0].mxu0  ;;  %v1034_v21 = vpop.f32.mrb[1].mxu1 }
 0x180   : > { %v1084_v20 = vadd.f32 %v1083_v19, %v1032_v17  ;;  %v1085_v23 = vpop.f32.mrb[1].mxu0  ;;  %v1036_v25 = vpop.f32.mrb[2].mxu1 }
 0x181   : > { %v1086_v24 = vadd.f32 %v1085_v23, %v1034_v21  ;;  %v1087_v27 = vpop.f32.mrb[2].mxu0  ;;  %v1038_v30 = vpop.f32.mrb[3].mxu1 }
 0x182   : > { %v1100_v28 = vadd.f32 %v1084_v20, %v568_v18  ;;  %v1088_v29 = vadd.f32 %v1087_v27, %v1036_v25  ;;  %v1089_v32 = vpop.f32.mrb[3].mxu0 }
 0x183   : > { %v1101_v33 = vadd.f32 %v1086_v24, %v569_v22  ;;  %v1090_v34 = vadd.f32 %v1089_v32, %v1038_v30 }
 0x184   : > { %1106 = vst [vmem:[#allocation2] sm:$0xff] %v1100_v28  ;;  %v1102_v35 = vadd.f32 %v1088_v29, %v570_v26 }
 0x185   : > { %1107 = vst [vmem:[#allocation2 + $0x8] sm:$0xff] %v1101_v33  ;;  %v1103_v36 = vadd.f32 %v1090_v34, %v571_v31 }
 0x186   : > { %1108 = vst [vmem:[#allocation2 + $0x10] sm:$0xff] %v1102_v35  ;;  %v1042_v37 = vpop.f32.mrb[4].mxu1 }
 0x187   : > { %1109 = vst [vmem:[#allocation2 + $0x18] sm:$0xff] %v1103_v36  ;;  %v1093_v39 = vpop.f32.mrb[4].mxu0  ;;  %v1044_v41 = vpop.f32.mrb[5].mxu1  ;;  %1115 = sbr.rel (%p1410_p5) target bundleno = 410 (0x19a), region = 101 }
 0x188   : > { %v1094_v40 = vadd.f32 %v1093_v39, %v1042_v37  ;;  %v1095_v43 = vpop.f32.mrb[5].mxu0  ;;  %v1046_v45 = vpop.f32.mrb[6].mxu1 }
 0x189   : > { %v1096_v44 = vadd.f32 %v1095_v43, %v1044_v41  ;;  %v1097_v46 = vpop.f32.mrb[6].mxu0  ;;  %v1047_v48 = vpop.f32.mrb[7].mxu1 }
 0x18a   : > { %v1104_v47 = vadd.f32 %v1094_v40, %v572_v38  ;;  %v1098_v49 = vpop.f32.mrb[7].mxu0 }
 0x18b   : > { %v1105_v50 = vadd.f32 %v1096_v44, %v573_v42  ;;  %v1116_v54 = vld [vmem:[#allocation2] sm:$0xff] (!%p1410_p5) }
 0x18c   : > { %1110 = vst [vmem:[#allocation2 + $0x20] sm:$0xff] %v1104_v47  ;;  %v1117_v57 = vld [vmem:[#allocation2 + $0x8] sm:$0xff] (!%p1410_p5)  ;;  %v1134_v0 = vadd.f32 (!%p1410_p5), %v1127_v60, %v1116_v54 }
 0x18d   : > { %1111 = vst [vmem:[#allocation2 + $0x28] sm:$0xff] %v1105_v50  ;;  %v1118_v58 = vld [vmem:[#allocation2 + $0x10] sm:$0xff] (!%p1410_p5)  ;;  %v1135_v1 = vadd.f32 (!%p1410_p5), %v1131_v61, %v1117_v57 }
 0x18e   : > { %v1119_v59 = vld [vmem:[#allocation2 + $0x18] sm:$0xff]  ;;  %v1136_v2 = vadd.f32 %v1127_v60, %v1118_v58 }
 0x18f   : > { %v1137_v3 = vadd.f32 %v1131_v61, %v1119_v59  ;;  %v1420_v6 = vpack.c.bf16 %v1135_v1, %v1134_v0 }
 0x191   : > { %v1421_v7 = vpack.c.bf16 %v1137_v3, %v1136_v2  ;;  %1160 = vst [vmem:[%s1997_s25] sm:$0xff] %v1420_v6 }
 0x193   : > { %v1120_v62 = vld [vmem:[#allocation2 + $0x20] sm:$0xff]  ;;  %1161 = vst [vmem:[%s1997_s25 + $0x8] sm:$0xff] %v1421_v7 }
 0x194   : > { %v1121_v63 = vld [vmem:[#allocation2 + $0x28] sm:$0xff]  ;;  %v1138_v4 = vadd.f32 %v1127_v60, %v1120_v62 }
 0x195   : > { %v1139_v5 = vadd.f32 %v1131_v61, %v1121_v63 }
 0x197   : > { %v1422_v8 = vpack.c.bf16 %v1139_v5, %v1138_v4 }
 0x199   : > { %1162 = vst [vmem:[%s1997_s25 + $0x10] sm:$0xff] %v1422_v8 }
 0x19a PF: > { %1169 = sbr.rel (!%p1829_p12) target bundleno = 418 (0x1a2), region = 105  ;;  %s1423_s14 = sshll.u32 (%p1829_p12), %s1700_s19, 3  ;;  %v1207_v9 = vld [vmem:[%s1997_s25] sm:$0xff] (%p1829_p12)  ;;  %v1209_v10 = vld [vmem:[%s1997_s25 + $0x8] sm:$0xff] (%p1829_p12) }
 0x19b   : > { %s1175_s23 = scalar_lea.vmem (%p1829_p12), %s2124_s3, %s1423_s14 }
 0x19c   : > { %1208 = vst [vmem:[%s1175_s23] sm:$0xff] (%p1829_p12), %v1207_v9  ;;  %1210 = vst [vmem:[%s1175_s23 + $0x10] sm:$0xff] (%p1829_p12), %v1209_v10 }
 0x1a0   : > { %v1211_v11 = vld [vmem:[%s1997_s25 + $0x10] sm:$0xff] (%p1829_p12) }
 0x1a1   : > { %1212 = vst [vmem:[%s1175_s23 + $0x20] sm:$0xff] %v1211_v11 }
 0x1a2 PF: > { %s13_s22 = sadd.s32 1, %s1712_s22   ;;  %s2134_s25 = sld [smem:[#allocation6_spill]] }
 0x1a3   : > { %p10_p6 = scmp.ge.s32.totalorder %s13_s22, 10   ;;  %s2135_s12 = smov %s1676_s13 }
 0x1a4   : > { %s2136_s13 = smov %s1827_s9  ;;  %s2137_s14 = smov %s1684_s15 }
 0x1a5   : > { %s2138_s15 = smov %s1824_s8  ;;  %s2139_s16 = smov %s1692_s17 }
 0x1a6   : > { %s2140_s17 = smov %s1810_s30  ;;  %s2141_s18 = smov %s1704_s20 }
 0x1a7   : > { %s2142_s19 = smov %s1708_s21  ;;  %s2143_s20 = smov %s2146_s24 }
 0x1a8   : > { %s2144_s21 = smov %s2134_s25  ;;  %12 = sbr.rel (!%p10_p6) target bundleno = 9 (0x9), region = 185 }

// kernel: _lambda_.23
= control target key start
LH: loop header
LB: loop body
LE: loop exit
PB: predicated region body
PF: predicated region fallthrough
CT: control target
= control target key end

     0   :  { %s1573_s12 = smov 0   ;;  %s1575_s13 = smov 0   ;;  %s1869_s0 = inlined_call_operand.vmem [shape: bf16[24,512], index: 0, kind: input, shape index: {}]   ;;  %s1870_s1 = inlined_call_operand.vmem [shape: bf16[512,512], index: 1, kind: input, shape index: {}]   ;;  %s1871_s2 = inlined_call_operand.vmem [shape: f32[1,512], index: 2, kind: input, shape index: {}]   ;;  %s1872_s3 = inlined_call_operand.vmem [shape: f32[24,512], index: 3, kind: output, shape index: {}]  }
   0x1   :  { %s1577_s14 = smov 0   ;;  %s1579_s15 = smov 0  }
   0x2   :  { %s1581_s16 = smov 0  }
   0x3 LB: > { %s28_s17 = sadd.s32 1, %s1547_s15  ;;  %s1273_s18 = sadd.s32 4294967295, %s1551_s16   ;;  %s1551_s16 = sphi %s1581_s16, %s13_s16   ;;  %s1547_s15 = sphi %s1579_s15, %s1877_s15   ;;  %s1543_s14 = sphi %s1577_s14, %s1876_s14   ;;  %s1539_s13 = sphi %s1575_s13, %s1875_s13   ;;  %s1535_s12 = sphi %s1573_s12, %s1874_s12  }
   0x4   : > { %p30_p0 = scmp.ge.s32.totalorder %s28_s17, 2  ;;  %p76_p1 = scmp.ne.s32.totalorder %s1539_s13, %s1535_s12 }
   0x5   : > { %p77_p2 = scmp.eq.s32.totalorder %s1551_s16, 0  ;;  %p134_p4 = scmp.eq.s32.totalorder %s1273_s18, 1 }
   0x6   : > { %s1879_s17 = smov (%p30_p0, %s28_s17), 0  ;;  %s69_s20 = sadd.s32 1, %s1539_s13 }
   0x7   : > { %p78_p3 = por %p77_p2, %p76_p1  ;;  %s65_s19 = ssub.s32 %s1547_s15, %s1879_s17 }
   0x8   : > { %p67_p5 = scmp.eq.s32.totalorder %s65_s19, 0  ;;  %p1608_p6 = por %p134_p4, %p76_p1 }
   0x9   : > { %p1277_p7 = scmp.ge.s32.totalorder %s1551_s16, 2 }
   0xa   : > { %s1613_s22 = scalar_select %p67_p5, %s1539_s13, %s69_s20  }
   0xb   : > { %171 = sbr.rel (%p1277_p7) target bundleno = 54 (0x36), region = 20 }
  0x12   : > { %174 = sbr.rel (!%p78_p3) target bundleno = 54 (0x36), region = 24  ;;  %s176_s23 = sand.u32 (%p78_p3), 1, %s1539_s13  }
  0x13   : > { %s1360_s24 = sshll.u32 (%p78_p3), %s1547_s15, 3  ;;  %s1278_s25 = sshll.u32 (%p78_p3), %s176_s23, 9 }
  0x14   : > { %s1621_s28 = scalar_lea.vmem (%p78_p3), %s1870_s1, %s1360_s24  ;;  %s1626_s29 = scalar_lea.vmem (%p78_p3), [#allocation3], %s1278_s25 }
  0x15   : > { %v338_v0 = vld [vmem:[%s1621_s28] sm:$0xff] (%p78_p3)  ;;  %v340_v1 = vld [vmem:[%s1621_s28 + $0x10] sm:$0xff] (%p78_p3) }
  0x16   : > { %v342_v2 = vld [vmem:[%s1621_s28 + $0x20] sm:$0xff] (%p78_p3)  ;;  %339 = vst [vmem:[%s1626_s29] sm:$0xff] (%p78_p3), %v338_v0  ;;  %341 = vst [vmem:[%s1626_s29 + $0x8] sm:$0xff] (%p78_p3), %v340_v1  ;;  %v344_v3 = vld [vmem:[%s1621_s28 + $0x30] sm:$0xff] (%p78_p3) }
  0x17   : > { %343 = vst [vmem:[%s1626_s29 + $0x10] sm:$0xff] (%p78_p3), %v342_v2  ;;  %v346_v4 = vld [vmem:[%s1621_s28 + $0x40] sm:$0xff] (%p78_p3)  ;;  %v348_v5 = vld [vmem:[%s1621_s28 + $0x50] sm:$0xff] (%p78_p3)  ;;  %345 = vst [vmem:[%s1626_s29 + $0x18] sm:$0xff] (%p78_p3), %v344_v3 }
  0x18   : > { %347 = vst [vmem:[%s1626_s29 + $0x20] sm:$0xff] (%p78_p3), %v346_v4  ;;  %349 = vst [vmem:[%s1626_s29 + $0x28] sm:$0xff] (%p78_p3), %v348_v5  ;;  %v350_v6 = vld [vmem:[%s1621_s28 + $0x60] sm:$0xff] (%p78_p3)  ;;  %v352_v7 = vld [vmem:[%s1621_s28 + $0x70] sm:$0xff] (%p78_p3) }
  0x19   : > { %v354_v8 = vld [vmem:[%s1621_s28 + $0x80] sm:$0xff]  ;;  %351 = vst [vmem:[%s1626_s29 + $0x30] sm:$0xff] %v350_v6  ;;  %353 = vst [vmem:[%s1626_s29 + $0x38] sm:$0xff] %v352_v7  ;;  %v356_v9 = vld [vmem:[%s1621_s28 + $0x90] sm:$0xff] }
  0x1a   : > { %355 = vst [vmem:[%s1626_s29 + $0x40] sm:$0xff] %v354_v8  ;;  %v358_v10 = vld [vmem:[%s1621_s28 + $0xa0] sm:$0xff]  ;;  %v360_v11 = vld [vmem:[%s1621_s28 + $0xb0] sm:$0xff]  ;;  %357 = vst [vmem:[%s1626_s29 + $0x48] sm:$0xff] %v356_v9 }
  0x1b   : > { %359 = vst [vmem:[%s1626_s29 + $0x50] sm:$0xff] %v358_v10  ;;  %361 = vst [vmem:[%s1626_s29 + $0x58] sm:$0xff] %v360_v11  ;;  %v362_v12 = vld [vmem:[%s1621_s28 + $0xc0] sm:$0xff]  ;;  %v364_v13 = vld [vmem:[%s1621_s28 + $0xd0] sm:$0xff] }
  0x1c   : > { %v366_v14 = vld [vmem:[%s1621_s28 + $0xe0] sm:$0xff]  ;;  %363 = vst [vmem:[%s1626_s29 + $0x60] sm:$0xff] %v362_v12  ;;  %365 = vst [vmem:[%s1626_s29 + $0x68] sm:$0xff] %v364_v13  ;;  %v368_v15 = vld [vmem:[%s1621_s28 + $0xf0] sm:$0xff] }
  0x1d   : > { %367 = vst [vmem:[%s1626_s29 + $0x70] sm:$0xff] %v366_v14  ;;  %v370_v16 = vld [vmem:[%s1621_s28 + $0x100] sm:$0xff]  ;;  %v372_v17 = vld [vmem:[%s1621_s28 + $0x110] sm:$0xff]  ;;  %369 = vst [vmem:[%s1626_s29 + $0x78] sm:$0xff] %v368_v15 }
  0x1e   : > { %371 = vst [vmem:[%s1626_s29 + $0x80] sm:$0xff] %v370_v16  ;;  %373 = vst [vmem:[%s1626_s29 + $0x88] sm:$0xff] %v372_v17  ;;  %v374_v18 = vld [vmem:[%s1621_s28 + $0x120] sm:$0xff]  ;;  %v376_v19 = vld [vmem:[%s1621_s28 + $0x130] sm:$0xff] }
  0x1f   : > { %v378_v20 = vld [vmem:[%s1621_s28 + $0x140] sm:$0xff]  ;;  %375 = vst [vmem:[%s1626_s29 + $0x90] sm:$0xff] %v374_v18  ;;  %377 = vst [vmem:[%s1626_s29 + $0x98] sm:$0xff] %v376_v19  ;;  %v380_v21 = vld [vmem:[%s1621_s28 + $0x150] sm:$0xff] }
  0x20   : > { %379 = vst [vmem:[%s1626_s29 + $0xa0] sm:$0xff] %v378_v20  ;;  %v382_v22 = vld [vmem:[%s1621_s28 + $0x160] sm:$0xff]  ;;  %v384_v23 = vld [vmem:[%s1621_s28 + $0x170] sm:$0xff]  ;;  %381 = vst [vmem:[%s1626_s29 + $0xa8] sm:$0xff] %v380_v21 }
  0x21   : > { %383 = vst [vmem:[%s1626_s29 + $0xb0] sm:$0xff] %v382_v22  ;;  %385 = vst [vmem:[%s1626_s29 + $0xb8] sm:$0xff] %v384_v23  ;;  %v386_v24 = vld [vmem:[%s1621_s28 + $0x180] sm:$0xff]  ;;  %v388_v25 = vld [vmem:[%s1621_s28 + $0x190] sm:$0xff] }
  0x22   : > { %v390_v26 = vld [vmem:[%s1621_s28 + $0x1a0] sm:$0xff]  ;;  %387 = vst [vmem:[%s1626_s29 + $0xc0] sm:$0xff] %v386_v24  ;;  %389 = vst [vmem:[%s1626_s29 + $0xc8] sm:$0xff] %v388_v25  ;;  %v392_v27 = vld [vmem:[%s1621_s28 + $0x1b0] sm:$0xff] }
  0x23   : > { %391 = vst [vmem:[%s1626_s29 + $0xd0] sm:$0xff] %v390_v26  ;;  %v394_v28 = vld [vmem:[%s1621_s28 + $0x1c0] sm:$0xff]  ;;  %v396_v29 = vld [vmem:[%s1621_s28 + $0x1d0] sm:$0xff]  ;;  %393 = vst [vmem:[%s1626_s29 + $0xd8] sm:$0xff] %v392_v27 }
  0x24   : > { %395 = vst [vmem:[%s1626_s29 + $0xe0] sm:$0xff] %v394_v28  ;;  %397 = vst [vmem:[%s1626_s29 + $0xe8] sm:$0xff] %v396_v29  ;;  %v398_v30 = vld [vmem:[%s1621_s28 + $0x1e0] sm:$0xff]  ;;  %v400_v31 = vld [vmem:[%s1621_s28 + $0x1f0] sm:$0xff] }
  0x25   : > { %v402_v32 = vld [vmem:[%s1621_s28 + $0x200] sm:$0xff]  ;;  %399 = vst [vmem:[%s1626_s29 + $0xf0] sm:$0xff] %v398_v30  ;;  %401 = vst [vmem:[%s1626_s29 + $0xf8] sm:$0xff] %v400_v31  ;;  %v404_v33 = vld [vmem:[%s1621_s28 + $0x210] sm:$0xff] }
  0x26   : > { %403 = vst [vmem:[%s1626_s29 + $0x100] sm:$0xff] %v402_v32  ;;  %v406_v34 = vld [vmem:[%s1621_s28 + $0x220] sm:$0xff]  ;;  %v408_v35 = vld [vmem:[%s1621_s28 + $0x230] sm:$0xff]  ;;  %405 = vst [vmem:[%s1626_s29 + $0x108] sm:$0xff] %v404_v33 }
  0x27   : > { %407 = vst [vmem:[%s1626_s29 + $0x110] sm:$0xff] %v406_v34  ;;  %409 = vst [vmem:[%s1626_s29 + $0x118] sm:$0xff] %v408_v35  ;;  %v410_v36 = vld [vmem:[%s1621_s28 + $0x240] sm:$0xff]  ;;  %v412_v37 = vld [vmem:[%s1621_s28 + $0x250] sm:$0xff] }
  0x28   : > { %v414_v38 = vld [vmem:[%s1621_s28 + $0x260] sm:$0xff]  ;;  %411 = vst [vmem:[%s1626_s29 + $0x120] sm:$0xff] %v410_v36  ;;  %413 = vst [vmem:[%s1626_s29 + $0x128] sm:$0xff] %v412_v37  ;;  %v416_v39 = vld [vmem:[%s1621_s28 + $0x270] sm:$0xff] }
  0x29   : > { %415 = vst [vmem:[%s1626_s29 + $0x130] sm:$0xff] %v414_v38  ;;  %v418_v40 = vld [vmem:[%s1621_s28 + $0x280] sm:$0xff]  ;;  %v420_v41 = vld [vmem:[%s1621_s28 + $0x290] sm:$0xff]  ;;  %417 = vst [vmem:[%s1626_s29 + $0x138] sm:$0xff] %v416_v39 }
  0x2a   : > { %419 = vst [vmem:[%s1626_s29 + $0x140] sm:$0xff] %v418_v40  ;;  %421 = vst [vmem:[%s1626_s29 + $0x148] sm:$0xff] %v420_v41  ;;  %v422_v42 = vld [vmem:[%s1621_s28 + $0x2a0] sm:$0xff]  ;;  %v424_v43 = vld [vmem:[%s1621_s28 + $0x2b0] sm:$0xff] }
  0x2b   : > { %v426_v44 = vld [vmem:[%s1621_s28 + $0x2c0] sm:$0xff]  ;;  %423 = vst [vmem:[%s1626_s29 + $0x150] sm:$0xff] %v422_v42  ;;  %425 = vst [vmem:[%s1626_s29 + $0x158] sm:$0xff] %v424_v43  ;;  %v428_v45 = vld [vmem:[%s1621_s28 + $0x2d0] sm:$0xff] }
  0x2c   : > { %427 = vst [vmem:[%s1626_s29 + $0x160] sm:$0xff] %v426_v44  ;;  %v430_v46 = vld [vmem:[%s1621_s28 + $0x2e0] sm:$0xff]  ;;  %v432_v47 = vld [vmem:[%s1621_s28 + $0x2f0] sm:$0xff]  ;;  %429 = vst [vmem:[%s1626_s29 + $0x168] sm:$0xff] %v428_v45 }
  0x2d   : > { %431 = vst [vmem:[%s1626_s29 + $0x170] sm:$0xff] %v430_v46  ;;  %433 = vst [vmem:[%s1626_s29 + $0x178] sm:$0xff] %v432_v47  ;;  %v434_v48 = vld [vmem:[%s1621_s28 + $0x300] sm:$0xff]  ;;  %v436_v49 = vld [vmem:[%s1621_s28 + $0x310] sm:$0xff] }
  0x2e   : > { %v438_v50 = vld [vmem:[%s1621_s28 + $0x320] sm:$0xff]  ;;  %435 = vst [vmem:[%s1626_s29 + $0x180] sm:$0xff] %v434_v48  ;;  %437 = vst [vmem:[%s1626_s29 + $0x188] sm:$0xff] %v436_v49  ;;  %v440_v51 = vld [vmem:[%s1621_s28 + $0x330] sm:$0xff] }
  0x2f   : > { %439 = vst [vmem:[%s1626_s29 + $0x190] sm:$0xff] %v438_v50  ;;  %v442_v52 = vld [vmem:[%s1621_s28 + $0x340] sm:$0xff]  ;;  %v444_v53 = vld [vmem:[%s1621_s28 + $0x350] sm:$0xff]  ;;  %441 = vst [vmem:[%s1626_s29 + $0x198] sm:$0xff] %v440_v51 }
  0x30   : > { %443 = vst [vmem:[%s1626_s29 + $0x1a0] sm:$0xff] %v442_v52  ;;  %445 = vst [vmem:[%s1626_s29 + $0x1a8] sm:$0xff] %v444_v53  ;;  %v446_v54 = vld [vmem:[%s1621_s28 + $0x360] sm:$0xff]  ;;  %v448_v55 = vld [vmem:[%s1621_s28 + $0x370] sm:$0xff] }
  0x31   : > { %v450_v56 = vld [vmem:[%s1621_s28 + $0x380] sm:$0xff]  ;;  %447 = vst [vmem:[%s1626_s29 + $0x1b0] sm:$0xff] %v446_v54  ;;  %449 = vst [vmem:[%s1626_s29 + $0x1b8] sm:$0xff] %v448_v55  ;;  %v452_v57 = vld [vmem:[%s1621_s28 + $0x390] sm:$0xff] }
  0x32   : > { %451 = vst [vmem:[%s1626_s29 + $0x1c0] sm:$0xff] %v450_v56  ;;  %v454_v58 = vld [vmem:[%s1621_s28 + $0x3a0] sm:$0xff]  ;;  %v456_v59 = vld [vmem:[%s1621_s28 + $0x3b0] sm:$0xff]  ;;  %453 = vst [vmem:[%s1626_s29 + $0x1c8] sm:$0xff] %v452_v57 }
  0x33   : > { %455 = vst [vmem:[%s1626_s29 + $0x1d0] sm:$0xff] %v454_v58  ;;  %457 = vst [vmem:[%s1626_s29 + $0x1d8] sm:$0xff] %v456_v59  ;;  %v458_v60 = vld [vmem:[%s1621_s28 + $0x3c0] sm:$0xff]  ;;  %v460_v61 = vld [vmem:[%s1621_s28 + $0x3d0] sm:$0xff] }
  0x34   : > { %v462_v62 = vld [vmem:[%s1621_s28 + $0x3e0] sm:$0xff]  ;;  %459 = vst [vmem:[%s1626_s29 + $0x1e0] sm:$0xff] %v458_v60  ;;  %461 = vst [vmem:[%s1626_s29 + $0x1e8] sm:$0xff] %v460_v61  ;;  %v464_v63 = vld [vmem:[%s1621_s28 + $0x3f0] sm:$0xff] }
  0x35   : > { %463 = vst [vmem:[%s1626_s29 + $0x1f0] sm:$0xff] %v462_v62  ;;  %465 = vst [vmem:[%s1626_s29 + $0x1f8] sm:$0xff] %v464_v63 }
  0x36 PF: > { %p1281_p8 = scmp.ge.s32.totalorder %s1551_s16, 1  ;;  %p478_p9 = scmp.lt.s32.totalorder %s1551_s16, 3 }
  0x38   : > { %p479_p10 = pnand %p1281_p8, %p478_p9 }
  0x39   : > { %s485_s30 = sand.u32 (!%p479_p10), 1, %s1535_s12   ;;  %v1505_v0 = vld [vmem:[%s1869_s0 + $0x4] ss:$16 sps:$4 sm:$0xff] (!%p479_p10)   ;;  %v1508_v1 = vld [vmem:[%s1869_s0 + $0xc] ss:$16 sps:$4 sm:$0xff] (!%p479_p10)   ;;  %s1283_s26 = sshll.u32 (!%p479_p10), %s1543_s14, 1 }
  0x3a   : > { %482 = sbr.rel (%p479_p10) target bundleno = 360 (0x168), region = 66  ;;  %s1282_s4 = sshll.u32 (!%p479_p10), %s485_s30, 9  ;;  %1014 = vmatprep.mubr.bf16.mxu1 (!%p479_p10), %v1505_v0  ;;  %1065 = vmatprep.mubr.bf16.mxu0 (!%p479_p10), %v1508_v1 }
  0x3b   : > { %s1764_s9 = scalar_lea.vmem (!%p479_p10), [#allocation3], %s1282_s4  ;;  %p536_p11 = scmp.lt.s32.totalorder (!%p479_p10), %s1283_s26, 3 }
  0x3c   : > { %v1407_v2 = vld [vmem:[%s1764_s9 + $0x4] ss:$8 sps:$4 sm:$0xff] (!%p479_p10)   ;;  %v1411_v4 = vld [vmem:[%s1764_s9] ss:$8 sps:$4 sm:$0xff] (!%p479_p10)   ;;  %v1413_v6 = vld [vmem:[%s1764_s9 + $0x14] ss:$8 sps:$4 sm:$0xff] (!%p479_p10)  }
  0x3d   : > { %v1409_v3 = vld [vmem:[%s1764_s9 + $0x104] ss:$8 sps:$4 sm:$0xff] (!%p479_p10)   ;;  %982 = vmatprep.subr.bf16.mxu1 (!%p479_p10), %v1407_v2  ;;  %v1412_v5 = vld [vmem:[%s1764_s9 + $0x100] ss:$8 sps:$4 sm:$0xff] (!%p479_p10)   ;;  %v1415_v7 = vld [vmem:[%s1764_s9 + $0x114] ss:$8 sps:$4 sm:$0xff] (!%p479_p10)  }
  0x3e   : > { %1033 = vmatprep.subr.bf16.mxu0 (!%p479_p10), %v1409_v3  ;;  %983 = vmatpush1.bf16.msra.mxu1 (!%p479_p10), %v1411_v4  ;;  %v1417_v8 = vld [vmem:[%s1764_s9 + $0x10] ss:$8 sps:$4 sm:$0xff] (!%p479_p10)   ;;  %v1419_v10 = vld [vmem:[%s1764_s9 + $0x24] ss:$8 sps:$4 sm:$0xff] (!%p479_p10)   ;;  %v1423_v12 = vld [vmem:[%s1764_s9 + $0x20] ss:$8 sps:$4 sm:$0xff] (!%p479_p10)  }
  0x3f   : > { %1034 = vmatpush1.bf16.msra.mxu0 (!%p479_p10), %v1412_v5  ;;  %984 = vmatprep.subr.bf16.mxu1 (!%p479_p10), %v1413_v6  ;;  %v1418_v9 = vld [vmem:[%s1764_s9 + $0x110] ss:$8 sps:$4 sm:$0xff] (!%p479_p10)   ;;  %v1421_v11 = vld [vmem:[%s1764_s9 + $0x124] ss:$8 sps:$4 sm:$0xff] (!%p479_p10)   ;;  %v1424_v13 = vld [vmem:[%s1764_s9 + $0x120] ss:$8 sps:$4 sm:$0xff] (!%p479_p10)  }
  0x40   : > { %1035 = vmatprep.subr.bf16.mxu0 (!%p479_p10), %v1415_v7  ;;  %v1425_v14 = vld [vmem:[%s1764_s9 + $0x34] ss:$8 sps:$4 sm:$0xff] (!%p479_p10)   ;;  %v1429_v16 = vld [vmem:[%s1764_s9 + $0x30] ss:$8 sps:$4 sm:$0xff] (!%p479_p10)   ;;  %v1431_v18 = vld [vmem:[%s1764_s9 + $0x44] ss:$8 sps:$4 sm:$0xff] (!%p479_p10)  }
  0x41   : > { %v1427_v15 = vld [vmem:[%s1764_s9 + $0x134] ss:$8 sps:$4 sm:$0xff]   ;;  %v1430_v17 = vld [vmem:[%s1764_s9 + $0x130] ss:$8 sps:$4 sm:$0xff]   ;;  %v1433_v19 = vld [vmem:[%s1764_s9 + $0x144] ss:$8 sps:$4 sm:$0xff]  }
  0x42   : > { %985 = vmatpush1.bf16.msra.mxu1 %v1417_v8  ;;  %v1435_v20 = vld [vmem:[%s1764_s9 + $0x40] ss:$8 sps:$4 sm:$0xff]   ;;  %v1437_v22 = vld [vmem:[%s1764_s9 + $0x54] ss:$8 sps:$4 sm:$0xff]   ;;  %v1441_v24 = vld [vmem:[%s1764_s9 + $0x50] ss:$8 sps:$4 sm:$0xff]  }
  0x43   : > { %1036 = vmatpush1.bf16.msra.mxu0 %v1418_v9  ;;  %986 = vmatprep.subr.bf16.mxu1 %v1419_v10  ;;  %v1436_v21 = vld [vmem:[%s1764_s9 + $0x140] ss:$8 sps:$4 sm:$0xff]   ;;  %v1439_v23 = vld [vmem:[%s1764_s9 + $0x154] ss:$8 sps:$4 sm:$0xff]   ;;  %v1442_v25 = vld [vmem:[%s1764_s9 + $0x150] ss:$8 sps:$4 sm:$0xff]   ;;  %v1107_v10 = vlaneseq }
  0x44   : > { %1037 = vmatprep.subr.bf16.mxu0 %v1421_v11  ;;  %v1443_v26 = vld [vmem:[%s1764_s9 + $0x64] ss:$8 sps:$4 sm:$0xff]   ;;  %v1447_v28 = vld [vmem:[%s1764_s9 + $0x60] ss:$8 sps:$4 sm:$0xff]   ;;  %v1449_v30 = vld [vmem:[%s1764_s9 + $0x74] ss:$8 sps:$4 sm:$0xff]  }
  0x45   : > { %v1445_v27 = vld [vmem:[%s1764_s9 + $0x164] ss:$8 sps:$4 sm:$0xff]   ;;  %v1448_v29 = vld [vmem:[%s1764_s9 + $0x160] ss:$8 sps:$4 sm:$0xff]   ;;  %v1451_v31 = vld [vmem:[%s1764_s9 + $0x174] ss:$8 sps:$4 sm:$0xff]  }
  0x46   : > { %987 = vmatpush1.bf16.msra.mxu1 %v1423_v12  ;;  %v1453_v32 = vld [vmem:[%s1764_s9 + $0x70] ss:$8 sps:$4 sm:$0xff]   ;;  %v1455_v34 = vld [vmem:[%s1764_s9 + $0x84] ss:$8 sps:$4 sm:$0xff]   ;;  %v1459_v36 = vld [vmem:[%s1764_s9 + $0x80] ss:$8 sps:$4 sm:$0xff]  }
  0x47   : > { %1038 = vmatpush1.bf16.msra.mxu0 %v1424_v13  ;;  %988 = vmatprep.subr.bf16.mxu1 %v1425_v14  ;;  %v1454_v33 = vld [vmem:[%s1764_s9 + $0x170] ss:$8 sps:$4 sm:$0xff]   ;;  %v1457_v35 = vld [vmem:[%s1764_s9 + $0x184] ss:$8 sps:$4 sm:$0xff]   ;;  %v1460_v37 = vld [vmem:[%s1764_s9 + $0x180] ss:$8 sps:$4 sm:$0xff]  }
  0x48   : > { %1039 = vmatprep.subr.bf16.mxu0 %v1427_v15  ;;  %v1461_v38 = vld [vmem:[%s1764_s9 + $0x94] ss:$8 sps:$4 sm:$0xff]   ;;  %v1465_v40 = vld [vmem:[%s1764_s9 + $0x90] ss:$8 sps:$4 sm:$0xff]   ;;  %v1467_v42 = vld [vmem:[%s1764_s9 + $0xa4] ss:$8 sps:$4 sm:$0xff]  }
  0x49   : > { %v1463_v39 = vld [vmem:[%s1764_s9 + $0x194] ss:$8 sps:$4 sm:$0xff]   ;;  %v1466_v41 = vld [vmem:[%s1764_s9 + $0x190] ss:$8 sps:$4 sm:$0xff]   ;;  %v1469_v43 = vld [vmem:[%s1764_s9 + $0x1a4] ss:$8 sps:$4 sm:$0xff]  }
  0x4a   : > { %989 = vmatpush1.bf16.msra.mxu1 %v1429_v16  ;;  %v1471_v44 = vld [vmem:[%s1764_s9 + $0xa0] ss:$8 sps:$4 sm:$0xff]   ;;  %v1473_v46 = vld [vmem:[%s1764_s9 + $0xb4] ss:$8 sps:$4 sm:$0xff]   ;;  %v1477_v48 = vld [vmem:[%s1764_s9 + $0xb0] ss:$8 sps:$4 sm:$0xff]  }
  0x4b   : > { %1040 = vmatpush1.bf16.msra.mxu0 %v1430_v17  ;;  %990 = vmatprep.subr.bf16.mxu1 %v1431_v18  ;;  %v1472_v45 = vld [vmem:[%s1764_s9 + $0x1a0] ss:$8 sps:$4 sm:$0xff]   ;;  %v1475_v47 = vld [vmem:[%s1764_s9 + $0x1b4] ss:$8 sps:$4 sm:$0xff]   ;;  %v1478_v49 = vld [vmem:[%s1764_s9 + $0x1b0] ss:$8 sps:$4 sm:$0xff]  }
  0x4c   : > { %1041 = vmatprep.subr.bf16.mxu0 %v1433_v19  ;;  %v1479_v50 = vld [vmem:[%s1764_s9 + $0xc4] ss:$8 sps:$4 sm:$0xff]   ;;  %v1483_v52 = vld [vmem:[%s1764_s9 + $0xc0] ss:$8 sps:$4 sm:$0xff]   ;;  %v1485_v54 = vld [vmem:[%s1764_s9 + $0xd4] ss:$8 sps:$4 sm:$0xff]  }
  0x4d   : > { %v1481_v51 = vld [vmem:[%s1764_s9 + $0x1c4] ss:$8 sps:$4 sm:$0xff]   ;;  %v1484_v53 = vld [vmem:[%s1764_s9 + $0x1c0] ss:$8 sps:$4 sm:$0xff]   ;;  %v1487_v55 = vld [vmem:[%s1764_s9 + $0x1d4] ss:$8 sps:$4 sm:$0xff]  }
  0x4e   : > { %991 = vmatpush1.bf16.msra.mxu1 %v1435_v20  ;;  %v1489_v56 = vld [vmem:[%s1764_s9 + $0xd0] ss:$8 sps:$4 sm:$0xff]   ;;  %v1491_v58 = vld [vmem:[%s1764_s9 + $0xe4] ss:$8 sps:$4 sm:$0xff]   ;;  %v1495_v60 = vld [vmem:[%s1764_s9 + $0xe0] ss:$8 sps:$4 sm:$0xff]  }
  0x4f   : > { %1042 = vmatpush1.bf16.msra.mxu0 %v1436_v21  ;;  %992 = vmatprep.subr.bf16.mxu1 %v1437_v22  ;;  %v1490_v57 = vld [vmem:[%s1764_s9 + $0x1d0] ss:$8 sps:$4 sm:$0xff]   ;;  %v1493_v59 = vld [vmem:[%s1764_s9 + $0x1e4] ss:$8 sps:$4 sm:$0xff]   ;;  %v1496_v61 = vld [vmem:[%s1764_s9 + $0x1e0] ss:$8 sps:$4 sm:$0xff]  }
  0x50   : > { %1043 = vmatprep.subr.bf16.mxu0 %v1439_v23  ;;  %v1497_v62 = vld [vmem:[%s1764_s9 + $0xf4] ss:$8 sps:$4 sm:$0xff]   ;;  %v1501_v0 = vld [vmem:[%s1764_s9 + $0xf0] ss:$8 sps:$4 sm:$0xff]   ;;  %v562_v2 = vld [vmem:[%s1869_s0 + $0x20] sm:$0xff]  ;;  %s1881_s26 = smov (!%p536_p11, %s1283_s26), 3 }
  0x51   : > { %v1499_v63 = vld [vmem:[%s1764_s9 + $0x1f4] ss:$8 sps:$4 sm:$0xff]   ;;  %v1502_v1 = vld [vmem:[%s1764_s9 + $0x1f0] ss:$8 sps:$4 sm:$0xff]   ;;  %v563_v3 = vld [vmem:[%s1869_s0 + $0x28] sm:$0xff]  ;;  %v1289_v6 = vcombine.high %v562_v2, %v562_v2  ;;  %v1288_v8 = vcombine.low %v562_v2, %v562_v2  ;;  %v1108_v11 = vshrl.u32 %v1107_v10, 7  ;;  %s538_s29 = scalar_lea.vmem %s1871_s2, %s1881_s26 }
  0x52   : > { %993 = vmatpush1.bf16.msra.mxu1 %v1441_v24  ;;  %v1503_v4 = vld [vmem:[%s1869_s0] ss:$16 sps:$4 sm:$0xff]   ;;  %v1506_v5 = vld [vmem:[%s1869_s0 + $0x8] ss:$16 sps:$4 sm:$0xff]   ;;  %v1291_v7 = vcombine.high %v563_v3, %v563_v3  ;;  %v1290_v9 = vcombine.low %v563_v3, %v563_v3  ;;  %s1366_s4 = smul.u32 48, %s485_s30  ;;  %s1361_s12 = sshll.u32 (%p1608_p6), %s1543_s14, 4 }
  0x53   : > { %1044 = vmatpush1.bf16.msra.mxu0 %v1442_v25  ;;  %994 = vmatprep.subr.bf16.mxu1 %v1443_v26  ;;  %v1109_v12 = vsub.s32 0, %v1108_v11  ;;  %v1105_v13 = vld [vmem:[%s538_s29] sm:$0x3]  ;;  %v1113_v14 = vsub.s32 1, %v1108_v11  ;;  %s1141_s7 = scalar_lea.vmem (%p1608_p6), %s1872_s3, %s1361_s12 }
  0x54   : > { %1045 = vmatprep.subr.bf16.mxu0 %v1445_v27  ;;  %s520_s5 = scalar_lea.vmem [#allocation4], %s1366_s4 }
  0x55   : > { %v1110_v15 = vrot.slane %v1105_v13, %v1109_v12  ;;  %v1114_v18 = vrot.slane %v1105_v13, %v1113_v14 }
  0x56   : > { %995 = vmatpush1.bf16.msra.mxu1 %v1447_v28 }
  0x57   : > { %1046 = vmatpush1.bf16.msra.mxu0 %v1448_v29  ;;  %996 = vmatprep.subr.bf16.mxu1 %v1449_v30 }
  0x58   : > { %1047 = vmatprep.subr.bf16.mxu0 %v1451_v31 }
  0x5a   : > { %997 = vmatpush1.bf16.msra.mxu1 %v1453_v32 }
  0x5b   : > { %1048 = vmatpush1.bf16.msra.mxu0 %v1454_v33  ;;  %998 = vmatprep.subr.bf16.mxu1 %v1455_v34 }
  0x5c   : > { %1049 = vmatprep.subr.bf16.mxu0 %v1457_v35 }
  0x5e   : > { %999 = vmatpush1.bf16.msra.mxu1 %v1459_v36 }
  0x5f   : > { %1050 = vmatpush1.bf16.msra.mxu0 %v1460_v37  ;;  %1000 = vmatprep.subr.bf16.mxu1 %v1461_v38 }
  0x60   : > { %1051 = vmatprep.subr.bf16.mxu0 %v1463_v39 }
  0x62   : > { %1001 = vmatpush1.bf16.msra.mxu1 %v1465_v40 }
  0x63   : > { %1052 = vmatpush1.bf16.msra.mxu0 %v1466_v41  ;;  %1002 = vmatprep.subr.bf16.mxu1 %v1467_v42 }
  0x64   : > { %1053 = vmatprep.subr.bf16.mxu0 %v1469_v43 }
  0x66   : > { %1003 = vmatpush1.bf16.msra.mxu1 %v1471_v44 }
  0x67   : > { %1054 = vmatpush1.bf16.msra.mxu0 %v1472_v45  ;;  %1004 = vmatprep.subr.bf16.mxu1 %v1473_v46 }
  0x68   : > { %1055 = vmatprep.subr.bf16.mxu0 %v1475_v47 }
  0x6a   : > { %1005 = vmatpush1.bf16.msra.mxu1 %v1477_v48 }
  0x6b   : > { %1056 = vmatpush1.bf16.msra.mxu0 %v1478_v49  ;;  %1006 = vmatprep.subr.bf16.mxu1 %v1479_v50 }
  0x6c   : > { %1057 = vmatprep.subr.bf16.mxu0 %v1481_v51 }
  0x6e   : > { %1007 = vmatpush1.bf16.msra.mxu1 %v1483_v52 }
  0x6f   : > { %1058 = vmatpush1.bf16.msra.mxu0 %v1484_v53  ;;  %1008 = vmatprep.subr.bf16.mxu1 %v1485_v54 }
  0x70   : > { %1059 = vmatprep.subr.bf16.mxu0 %v1487_v55 }
  0x72   : > { %1009 = vmatpush1.bf16.msra.mxu1 %v1489_v56 }
  0x73   : > { %1060 = vmatpush1.bf16.msra.mxu0 %v1490_v57  ;;  %1010 = vmatprep.subr.bf16.mxu1 %v1491_v58 }
  0x74   : > { %1061 = vmatprep.subr.bf16.mxu0 %v1493_v59 }
  0x76   : > { %1011 = vmatpush1.bf16.msra.mxu1 %v1495_v60 }
  0x77   : > { %1062 = vmatpush1.bf16.msra.mxu0 %v1496_v61  ;;  %1012 = vmatprep.subr.bf16.mxu1 %v1497_v62 }
  0x78   : > { %1063 = vmatprep.subr.bf16.mxu0 %v1499_v63 }
  0x7a   : > { %1013 = vmatpush1.bf16.msra.mxu1 %v1501_v0 }
  0x7b   : > { %1064 = vmatpush1.bf16.msra.mxu0 %v1502_v1 }
  0x7d   : > { %1015 = vmatmul.mubr.bf16.vlgmr.msra.gmra.mrb[0].mxu1 %v1503_v4 }
  0x7e   : > { %1066 = vmatmul.mubr.bf16.vlgmr.msra.gmra.mrb[0].mxu0 %v1506_v5  ;;  %1024 = vmatprep.mubr.bf16.mxu1 %v1289_v6 }
  0x7f   : > { %1075 = vmatprep.mubr.bf16.mxu0 %v1291_v7 }
  0x85   : > { %1025 = vmatmul.mubr.bf16.gmra.mrb[4].mxu1 %v1288_v8 }
  0x86   : > { %1076 = vmatmul.mubr.bf16.gmra.mrb[4].mxu0 %v1290_v9 }
 0x150   : > { %v1016_v16 = vpop.f32.mrb[0].mxu1 }
 0x151   : > { %v1067_v17 = vpop.f32.mrb[0].mxu0  ;;  %v1018_v20 = vpop.f32.mrb[1].mxu1 }
 0x152   : > { %v1068_v19 = vadd.f32 %v1067_v17, %v1016_v16  ;;  %v1069_v21 = vpop.f32.mrb[1].mxu0  ;;  %v1020_v23 = vpop.f32.mrb[2].mxu1 }
 0x153   : > { %v1070_v22 = vadd.f32 %v1069_v21, %v1018_v20  ;;  %v1071_v24 = vpop.f32.mrb[2].mxu0  ;;  %v1022_v27 = vpop.f32.mrb[3].mxu1 }
 0x154   : > { %v1117_v25 = vadd.f32 %v1110_v15, %v1068_v19  ;;  %v1072_v26 = vadd.f32 %v1071_v24, %v1020_v23  ;;  %v1073_v28 = vpop.f32.mrb[3].mxu0 }
 0x155   : > { %v1118_v29 = vadd.f32 %v1114_v18, %v1070_v22  ;;  %v1074_v30 = vadd.f32 %v1073_v28, %v1022_v27 }
 0x156   : > { %1123 = vst [vmem:[%s520_s5] sm:$0xff] %v1117_v25  ;;  %v1119_v31 = vadd.f32 %v1110_v15, %v1072_v26 }
 0x157   : > { %1124 = vst [vmem:[%s520_s5 + $0x8] sm:$0xff] %v1118_v29  ;;  %v1120_v32 = vadd.f32 %v1114_v18, %v1074_v30 }
 0x158   : > { %1125 = vst [vmem:[%s520_s5 + $0x10] sm:$0xff] %v1119_v31  ;;  %v1026_v33 = vpop.f32.mrb[4].mxu1 }
 0x159   : > { %1126 = vst [vmem:[%s520_s5 + $0x18] sm:$0xff] %v1120_v32  ;;  %v1077_v34 = vpop.f32.mrb[4].mxu0  ;;  %v1028_v36 = vpop.f32.mrb[5].mxu1  ;;  %1135 = sbr.rel (!%p1608_p6) target bundleno = 360 (0x168), region = 82 }
 0x15a   : > { %v1078_v35 = vadd.f32 %v1077_v34, %v1026_v33  ;;  %v1079_v37 = vpop.f32.mrb[5].mxu0  ;;  %v1030_v39 = vpop.f32.mrb[6].mxu1 }
 0x15b   : > { %v1080_v38 = vadd.f32 %v1079_v37, %v1028_v36  ;;  %v1081_v40 = vpop.f32.mrb[6].mxu0  ;;  %v1031_v42 = vpop.f32.mrb[7].mxu1 }
 0x15c   : > { %v1121_v41 = vadd.f32 %v1110_v15, %v1078_v35  ;;  %v1082_v43 = vpop.f32.mrb[7].mxu0 }
 0x15d   : > { %v1122_v44 = vadd.f32 %v1114_v18, %v1080_v38  ;;  %v1154_v45 = vld [vmem:[%s520_s5] sm:$0xff] (%p1608_p6) }
 0x15e   : > { %1127 = vst [vmem:[%s520_s5 + $0x20] sm:$0xff] %v1121_v41  ;;  %v1156_v46 = vld [vmem:[%s520_s5 + $0x8] sm:$0xff] (%p1608_p6)  ;;  %1155 = vst [vmem:[%s1141_s7] sm:$0xff] (%p1608_p6), %v1154_v45 }
 0x15f   : > { %1128 = vst [vmem:[%s520_s5 + $0x28] sm:$0xff] %v1122_v44  ;;  %v1158_v47 = vld [vmem:[%s520_s5 + $0x10] sm:$0xff] (%p1608_p6)  ;;  %1157 = vst [vmem:[%s1141_s7 + $0x8] sm:$0xff] (%p1608_p6), %v1156_v46 }
 0x160   : > { %v1160_v48 = vld [vmem:[%s520_s5 + $0x18] sm:$0xff]  ;;  %1159 = vst [vmem:[%s1141_s7 + $0x20] sm:$0xff] %v1158_v47 }
 0x161   : > { %1161 = vst [vmem:[%s1141_s7 + $0x28] sm:$0xff] %v1160_v48 }
 0x165   : > { %v1162_v49 = vld [vmem:[%s520_s5 + $0x20] sm:$0xff] }
 0x166   : > { %v1164_v50 = vld [vmem:[%s520_s5 + $0x28] sm:$0xff]  ;;  %1163 = vst [vmem:[%s1141_s7 + $0x40] sm:$0xff] %v1162_v49 }
 0x167   : > { %1165 = vst [vmem:[%s1141_s7 + $0x48] sm:$0xff] %v1164_v50 }
 0x168 PF: > { %s13_s16 = sadd.s32 1, %s1551_s16   ;;  %s1874_s12 = smov %s1539_s13 }
 0x169   : > { %p10_p12 = scmp.ge.s32.totalorder %s13_s16, 4   ;;  %s1875_s13 = smov %s1613_s22 }
 0x16a   : > { %s1876_s14 = smov %s1547_s15  ;;  %s1877_s15 = smov %s1879_s17 }
 0x16b   :  { %12 = sbr.rel (!%p10_p12) target bundleno = 3 (0x3), region = 142 }

// kernel: _lambda_.25
= control target key start
LH: loop header
LB: loop body
LE: loop exit
PB: predicated region body
PF: predicated region fallthrough
CT: control target
= control target key end

     0   :  { %s292_s1 = inlined_call_operand.vmem [shape: bf16[128,128], index: 1, kind: input, shape index: {}]   ;;  %s293_s0 = inlined_call_operand.vmem [shape: bf16[24,128], index: 0, kind: input, shape index: {}]   ;;  %s294_s2 = inlined_call_operand.vmem [shape: f32[1,128], index: 2, kind: input, shape index: {}]   ;;  %s295_s3 = inlined_call_operand.vmem [shape: f32[24,128], index: 3, kind: output, shape index: {}]  }
   0x1   :  { %v220_v0 = vld [vmem:[%s292_s1] sm:$0xff]   ;;  %v221_v1 = vld [vmem:[%s292_s1 + $0x8] sm:$0xff]   ;;  %v222_v2 = vld [vmem:[%s292_s1 + $0x10] sm:$0xff]  }
   0x2   :  { %200 = vmatprep.subr.bf16.mxu0 %v220_v0  ;;  %v223_v3 = vld [vmem:[%s292_s1 + $0x18] sm:$0xff]   ;;  %v228_v4 = vld [vmem:[%s293_s0] sm:$0xff]   ;;  %v225_v6 = vld [vmem:[%s292_s1 + $0x28] sm:$0xff]  }
   0x3   :  { %201 = vmatpush3.bf16.msra.mxu0 %v220_v0  ;;  %216 = vmatprep.mubr.bf16.mxu0 %v228_v4  ;;  %v224_v5 = vld [vmem:[%s292_s1 + $0x20] sm:$0xff]   ;;  %v226_v7 = vld [vmem:[%s292_s1 + $0x30] sm:$0xff]   ;;  %v227_v8 = vld [vmem:[%s292_s1 + $0x38] sm:$0xff]  }
   0x4   :  { %202 = vmatprep.subr.bf16.mxu0 %v221_v1  ;;  %v229_v9 = vld [vmem:[%s293_s0 + $0x8] ss:$0 sps:$4 sm:$0xff]   ;;  %v189_v10 = vld [vmem:[%s294_s2] ss:$0 sm:$0xff] }
   0x7   :  { %203 = vmatpush3.bf16.msra.mxu0 %v221_v1 }
   0x8   :  { %204 = vmatprep.subr.bf16.mxu0 %v222_v2 }
   0xb   :  { %205 = vmatpush3.bf16.msra.mxu0 %v222_v2 }
   0xc   :  { %206 = vmatprep.subr.bf16.mxu0 %v223_v3 }
   0xf   :  { %207 = vmatpush3.bf16.msra.mxu0 %v223_v3 }
  0x10   :  { %208 = vmatprep.subr.bf16.mxu0 %v224_v5 }
  0x13   :  { %209 = vmatpush3.bf16.msra.mxu0 %v224_v5 }
  0x14   :  { %210 = vmatprep.subr.bf16.mxu0 %v225_v6 }
  0x17   :  { %211 = vmatpush3.bf16.msra.mxu0 %v225_v6 }
  0x18   :  { %212 = vmatprep.subr.bf16.mxu0 %v226_v7 }
  0x1b   :  { %213 = vmatpush3.bf16.msra.mxu0 %v226_v7 }
  0x1c   :  { %214 = vmatprep.subr.bf16.mxu0 %v227_v8 }
  0x1f   :  { %215 = vmatpush3.bf16.msra.mxu0 %v227_v8 }
  0x22   :  { %217 = vmatmul.mubr.bf16.vlgmr.msra.gmra.mrb[0].mxu0 %v229_v9 }
  0xf5   :  { %v218_v11 = vpop.f32.mrb[0].mxu0 }
  0xf6   :  { %v171_v12 = vadd.f32 %v218_v11, %v189_v10  ;;  %v136_v13 = vpop.f32.mrb[1].mxu0 }
  0xf7   :  { %v169_v14 = vadd.f32 %v189_v10, %v136_v13  ;;  %v219_v15 = vpop.f32.mrb[2].mxu0 }
  0xf8   :  { %174 = vst [vmem:[%s295_s3 + $0x10] sm:$0xff] %v171_v12  ;;  %v139_v16 = vpop.f32.mrb[3].mxu0 }
  0xf9   :  { %172 = vst [vmem:[%s295_s3] sm:$0xff] %v169_v14  ;;  %v170_v17 = vadd.f32 %v189_v10, %v139_v16 }
  0xfb   :  { %173 = vst [vmem:[%s295_s3 + $0x8] sm:$0xff] %v170_v17 }

// kernel: _lambda_.24
= control target key start
LH: loop header
LB: loop body
LE: loop exit
PB: predicated region body
PF: predicated region fallthrough
CT: control target
= control target key end

     0   :  { %s2079_s9 = smov 0   ;;  %s2646_s0 = inlined_call_operand.vmem [shape: f32[2,9,2,512], index: 0, kind: input, shape index: {}]   ;;  %s2647_s1 = inlined_call_operand.vmem [shape: bf16[2,128,512], index: 1, kind: input, shape index: {}]   ;;  %s2648_s2 = inlined_call_operand.vmem [shape: f32[2,9,2,128], index: 2, kind: output, shape index: {}]  }
   0x1 LB: > { %s1729_s10 = sadd.s32 4294967295, %s2059_s9   ;;  %p1733_p0 = scmp.ge.s32.totalorder %s2059_s9, 1  ;;  %s2059_s9 = sphi %s2079_s9, %s12_s9  }
   0x2   : > { %p122_p1 = scmp.lt.s32.totalorder %s2059_s9, 3 }
   0x4   : > { %p123_p2 = pnand %p1733_p0, %p122_p1 }
   0x5   : > { %p149_p3 = scmp.lt.s32.totalorder (!%p123_p2), %s1729_s10, 1  ;;  %v2061_v0 = vmov (!%p123_p2), 0   ;;  %v2062_v1 = vmov (!%p123_p2), 0.0   ;;  %v2063_v36 = vmov (!%p123_p2), 1983009808   ;;  %v453_v38 = vlaneseq (!%p123_p2) }
   0x6   : > { %126 = sbr.rel (%p123_p2) target bundleno = 2524 (0x9dc), region = 28  ;;  %394 = vmatprep.mubr.bf16.mxu0 (!%p123_p2), %v2061_v0  ;;  %435 = vmatprep.mubr.bf16.mxu1 (!%p123_p2), %v2061_v0  ;;  %165 = vst [vmem:[#allocation2] sm:$0x3] (!%p123_p2), %v2062_v1  ;;  %166 = vst [vmem:[#allocation3] sm:$0x3] (!%p123_p2), %v2062_v1  ;;  %v451_v37 = vunpack.c.l.s4 (!%p123_p2), %v2063_v36 }
   0x7   : > { %v454_v40 = vshrl.u32 (!%p123_p2), %v453_v38, 7 }
   0x8   : > { %v452_v39 = vunpack.c.0.s8 (!%p123_p2), %v451_v37 }
   0xa   : > { %v2262_v43 = vsub.s32 (!%p123_p2), %v452_v39, %v454_v40 }
   0xd   : > { %s2650_s10 = smov (!%p149_p3, %s1729_s10), 1  ;;  %v200_v34 = vld [vmem:[#allocation2] sm:$0x3]  ;;  %v493_v38 = vld [vmem:[#allocation3] sm:$0x3] }
   0xe   : > { %s1815_s11 = sshll.u32 %s2650_s10, 8  ;;  %v201_v35 = vpack.c.bf16 %v200_v34, %v200_v34  ;;  %s1816_s15 = smul.u32 72, %s2650_s10 }
   0xf   : > { %s2095_s14 = scalar_lea.vmem %s2647_s1, %s1815_s11  ;;  %s1817_s19 = smul.u32 18, %s2650_s10 }
  0x10   : > { %v2098_v2 = vld [vmem:[%s2095_s14 + $0x4] ss:$16 sps:$4 sm:$0xff]   ;;  %v2101_v3 = vld [vmem:[%s2095_s14 + $0xc] ss:$16 sps:$4 sm:$0xff]   ;;  %v2105_v4 = vld [vmem:[%s2095_s14] ss:$16 sps:$4 sm:$0xff]   ;;  %s2267_s18 = scalar_lea.vmem %s2646_s0, %s1816_s15 }
  0x11   : > { %362 = vmatprep.subr.bf16.mxu0 %v2098_v2  ;;  %v2108_v5 = vld [vmem:[%s2095_s14 + $0x8] ss:$16 sps:$4 sm:$0xff]   ;;  %403 = vmatprep.subr.bf16.mxu1 %v2101_v3  ;;  %v2112_v6 = vld [vmem:[%s2095_s14 + $0x24] ss:$16 sps:$4 sm:$0xff]   ;;  %v2117_v7 = vld [vmem:[%s2095_s14 + $0x2c] ss:$16 sps:$4 sm:$0xff]   ;;  %s2276_s22 = scalar_lea.vmem %s2648_s2, %s1817_s19 }
  0x12   : > { %363 = vmatpush1.bf16.msra.mxu0 %v2105_v4  ;;  %404 = vmatpush1.bf16.msra.mxu1 %v2108_v5  ;;  %v2120_v8 = vld [vmem:[%s2095_s14 + $0x20] ss:$16 sps:$4 sm:$0xff]   ;;  %v2124_v9 = vld [vmem:[%s2095_s14 + $0x28] ss:$16 sps:$4 sm:$0xff]   ;;  %v2128_v10 = vld [vmem:[%s2095_s14 + $0x44] ss:$16 sps:$4 sm:$0xff]  }
  0x13   : > { %364 = vmatprep.subr.bf16.mxu0 %v2112_v6  ;;  %405 = vmatprep.subr.bf16.mxu1 %v2117_v7  ;;  %v2131_v11 = vld [vmem:[%s2095_s14 + $0x4c] ss:$16 sps:$4 sm:$0xff]   ;;  %v2134_v12 = vld [vmem:[%s2095_s14 + $0x40] ss:$16 sps:$4 sm:$0xff]   ;;  %v2137_v13 = vld [vmem:[%s2095_s14 + $0x48] ss:$16 sps:$4 sm:$0xff]  }
  0x14   : > { %v2142_v14 = vld [vmem:[%s2095_s14 + $0x64] ss:$16 sps:$4 sm:$0xff]   ;;  %v2147_v15 = vld [vmem:[%s2095_s14 + $0x6c] ss:$16 sps:$4 sm:$0xff]   ;;  %v2150_v16 = vld [vmem:[%s2095_s14 + $0x60] ss:$16 sps:$4 sm:$0xff]  }
  0x15   : > { %v2155_v17 = vld [vmem:[%s2095_s14 + $0x68] ss:$16 sps:$4 sm:$0xff]   ;;  %v2158_v18 = vld [vmem:[%s2095_s14 + $0x84] ss:$16 sps:$4 sm:$0xff]   ;;  %v2163_v19 = vld [vmem:[%s2095_s14 + $0x8c] ss:$16 sps:$4 sm:$0xff]  }
  0x16   : > { %365 = vmatpush1.bf16.msra.mxu0 %v2120_v8  ;;  %406 = vmatpush1.bf16.msra.mxu1 %v2124_v9  ;;  %v2166_v20 = vld [vmem:[%s2095_s14 + $0x80] ss:$16 sps:$4 sm:$0xff]   ;;  %v2169_v21 = vld [vmem:[%s2095_s14 + $0x88] ss:$16 sps:$4 sm:$0xff]   ;;  %v2174_v22 = vld [vmem:[%s2095_s14 + $0xa4] ss:$16 sps:$4 sm:$0xff]  }
  0x17   : > { %366 = vmatprep.subr.bf16.mxu0 %v2128_v10  ;;  %407 = vmatprep.subr.bf16.mxu1 %v2131_v11  ;;  %v2179_v23 = vld [vmem:[%s2095_s14 + $0xac] ss:$16 sps:$4 sm:$0xff]   ;;  %v2184_v24 = vld [vmem:[%s2095_s14 + $0xa0] ss:$16 sps:$4 sm:$0xff]   ;;  %v2187_v25 = vld [vmem:[%s2095_s14 + $0xa8] ss:$16 sps:$4 sm:$0xff]  }
  0x18   : > { %v2192_v26 = vld [vmem:[%s2095_s14 + $0xc4] ss:$16 sps:$4 sm:$0xff]   ;;  %v2195_v27 = vld [vmem:[%s2095_s14 + $0xcc] ss:$16 sps:$4 sm:$0xff]   ;;  %v2200_v28 = vld [vmem:[%s2095_s14 + $0xc0] ss:$16 sps:$4 sm:$0xff]  }
  0x19   : > { %v2203_v29 = vld [vmem:[%s2095_s14 + $0xc8] ss:$16 sps:$4 sm:$0xff]   ;;  %v2208_v30 = vld [vmem:[%s2095_s14 + $0xe4] ss:$16 sps:$4 sm:$0xff]   ;;  %v2211_v31 = vld [vmem:[%s2095_s14 + $0xec] ss:$16 sps:$4 sm:$0xff]  }
  0x1a   : > { %367 = vmatpush1.bf16.msra.mxu0 %v2134_v12  ;;  %408 = vmatpush1.bf16.msra.mxu1 %v2137_v13  ;;  %v2216_v32 = vld [vmem:[%s2095_s14 + $0xe0] ss:$16 sps:$4 sm:$0xff]   ;;  %v2219_v33 = vld [vmem:[%s2095_s14 + $0xe8] ss:$16 sps:$4 sm:$0xff]  }
  0x1b   : > { %368 = vmatprep.subr.bf16.mxu0 %v2142_v14  ;;  %409 = vmatprep.subr.bf16.mxu1 %v2147_v15  ;;  %v199_v54 = vld [vmem:[%s2267_s18] sm:$0xff] }
  0x1e   : > { %369 = vmatpush1.bf16.msra.mxu0 %v2150_v16  ;;  %410 = vmatpush1.bf16.msra.mxu1 %v2155_v17 }
  0x1f   : > { %370 = vmatprep.subr.bf16.mxu0 %v2158_v18  ;;  %411 = vmatprep.subr.bf16.mxu1 %v2163_v19 }
  0x22   : > { %371 = vmatpush1.bf16.msra.mxu0 %v2166_v20  ;;  %412 = vmatpush1.bf16.msra.mxu1 %v2169_v21 }
  0x23   : > { %372 = vmatprep.subr.bf16.mxu0 %v2174_v22  ;;  %413 = vmatprep.subr.bf16.mxu1 %v2179_v23 }
  0x26   : > { %373 = vmatpush1.bf16.msra.mxu0 %v2184_v24  ;;  %414 = vmatpush1.bf16.msra.mxu1 %v2187_v25 }
  0x27   : > { %374 = vmatprep.subr.bf16.mxu0 %v2192_v26  ;;  %415 = vmatprep.subr.bf16.mxu1 %v2195_v27 }
  0x2a   : > { %375 = vmatpush1.bf16.msra.mxu0 %v2200_v28  ;;  %416 = vmatpush1.bf16.msra.mxu1 %v2203_v29 }
  0x2b   : > { %376 = vmatprep.subr.bf16.mxu0 %v2208_v30  ;;  %417 = vmatprep.subr.bf16.mxu1 %v2211_v31 }
  0x2e   : > { %377 = vmatpush1.bf16.msra.mxu0 %v2216_v32  ;;  %418 = vmatpush1.bf16.msra.mxu1 %v2219_v33 }
  0x2f   : > { %506 = vmatprep.subr.bf16.mxu0 %v2098_v2  ;;  %547 = vmatprep.subr.bf16.mxu1 %v2101_v3 }
  0x31   : > { %395 = vmatmul.mubr.bf16.vlgmr.msra.gmra.mrb[0].mxu0 %v201_v35  ;;  %436 = vmatmul.mubr.bf16.vlgmr.msra.gmra.mrb[0].mxu1 %v201_v35 }
  0x32   : > { %507 = vmatpush1.bf16.msra.mxu0 %v2105_v4  ;;  %548 = vmatpush1.bf16.msra.mxu1 %v2108_v5 }
  0x33   : > { %508 = vmatprep.subr.bf16.mxu0 %v2112_v6  ;;  %549 = vmatprep.subr.bf16.mxu1 %v2117_v7 }
  0x34   : > { %538 = vmatprep.mubr.bf16.mxu0 %v2061_v0  ;;  %579 = vmatprep.mubr.bf16.mxu1 %v2061_v0 }
  0x36   : > { %509 = vmatpush1.bf16.msra.mxu0 %v2120_v8  ;;  %550 = vmatpush1.bf16.msra.mxu1 %v2124_v9 }
  0x37   : > { %510 = vmatprep.subr.bf16.mxu0 %v2128_v10  ;;  %551 = vmatprep.subr.bf16.mxu1 %v2131_v11 }
  0x3a   : > { %511 = vmatpush1.bf16.msra.mxu0 %v2134_v12  ;;  %552 = vmatpush1.bf16.msra.mxu1 %v2137_v13 }
  0x3b   : > { %512 = vmatprep.subr.bf16.mxu0 %v2142_v14  ;;  %553 = vmatprep.subr.bf16.mxu1 %v2147_v15 }
  0x3e   : > { %513 = vmatpush1.bf16.msra.mxu0 %v2150_v16  ;;  %554 = vmatpush1.bf16.msra.mxu1 %v2155_v17 }
  0x3f   : > { %514 = vmatprep.subr.bf16.mxu0 %v2158_v18  ;;  %555 = vmatprep.subr.bf16.mxu1 %v2163_v19 }
  0x42   : > { %515 = vmatpush1.bf16.msra.mxu0 %v2166_v20  ;;  %556 = vmatpush1.bf16.msra.mxu1 %v2169_v21 }
  0x43   : > { %516 = vmatprep.subr.bf16.mxu0 %v2174_v22  ;;  %557 = vmatprep.subr.bf16.mxu1 %v2179_v23 }
  0x46   : > { %517 = vmatpush1.bf16.msra.mxu0 %v2184_v24  ;;  %558 = vmatpush1.bf16.msra.mxu1 %v2187_v25 }
  0x47   : > { %518 = vmatprep.subr.bf16.mxu0 %v2192_v26  ;;  %559 = vmatprep.subr.bf16.mxu1 %v2195_v27 }
  0x4a   : > { %519 = vmatpush1.bf16.msra.mxu0 %v2200_v28  ;;  %560 = vmatpush1.bf16.msra.mxu1 %v2203_v29 }
  0x4b   : > { %520 = vmatprep.subr.bf16.mxu0 %v2208_v30  ;;  %561 = vmatprep.subr.bf16.mxu1 %v2211_v31 }
  0x4e   : > { %521 = vmatpush1.bf16.msra.mxu0 %v2216_v32  ;;  %562 = vmatpush1.bf16.msra.mxu1 %v2219_v33 }
  0x4f   : > { %651 = vmatprep.subr.bf16.mxu0 %v2098_v2  ;;  %692 = vmatprep.subr.bf16.mxu1 %v2101_v3 }
 0x104   : > { %v396_v41 = vpop.f32.mrb[0].mxu0  ;;  %v437_v42 = vpop.f32.mrb[0].mxu1 }
 0x105   : > { %v398_v44 = vpop.f32.mrb[1].mxu0  ;;  %v439_v45 = vpop.f32.mrb[1].mxu1 }
 0x106   : > { %v448_v46 = vcombine.low %v396_v41, %v398_v44  ;;  %v449_v47 = vcombine.low %v437_v42, %v439_v45  ;;  %v400_v48 = vpop.f32.mrb[2].mxu0  ;;  %v441_v49 = vpop.f32.mrb[2].mxu1 }
 0x107   : > { %v401_v50 = vpop.f32.mrb[3].mxu0  ;;  %v442_v51 = vpop.f32.mrb[3].mxu1 }
 0x108   : > { %v456_v52 = vrot.slane %v448_v46, %v2262_v43  ;;  %v463_v53 = vrot.slane %v449_v47, %v2262_v43 }
 0x10a   : > { %v464_v55 = vcombine.low %v456_v52, %v463_v53 }
 0x10c   : > { %v466_v56 = vadd.f32 %v464_v55, %v199_v54 }
 0x10e   : > { %v1770_v57 = vmul.f32 -1.442695, %v466_v56  ;;  %v474_v58 = vrot.slane %v466_v56, 2  ;;  %v485_v60 = vrot.slane %v466_v56, 6  ;;  %v482_v63 = vrot.slane %v466_v56, 4 }
 0x110   : > { %1877 = vpow2.f32 %v1770_v57  ;;  %v1771_v59 = vmul.f32 -1.442695, %v474_v58  ;;  %v1772_v61 = vmul.f32 -1.442695, %v485_v60 }
 0x112   : > { %1879 = vpow2.f32 %v1771_v59 }
 0x113   : > { %1881 = vpow2.f32 %v1772_v61 }
 0x11a   : > { %v1878_v62 = vpop.eup %1877 }
 0x11b   : > { %v470_v1 = vadd.f32 1.0, %v1878_v62 }
 0x11c   : > { %v1880_v34 = vpop.eup %1879 }
 0x11d   : > { %1883 = vrcp.f32 %v470_v1  ;;  %v479_v35 = vadd.f32 1.0, %v1880_v34  ;;  %v1882_v36 = vpop.eup %1881 }
 0x11e   : > { %1885 = vtanh.f32 %v482_v63  ;;  %v490_v41 = vadd.f32 1.0, %v1882_v36  ;;  %v1773_v63 = vld [vmem:[%s2267_s18 + $0x8] sm:$0xff] }
 0x11f   : > { %1887 = vrcp.f32 %v479_v35 }
 0x120   : > { %1889 = vrcp.f32 %v490_v41 }
 0x127   : > { %v1884_v37 = vpop.eup %1883 }
 0x128   : > { %v1886_v39 = vpop.eup %1885 }
 0x129   : > { %v1888_v40 = vpop.eup %1887  ;;  %v495_v44 = vmul.f32 %v1886_v39, %v1884_v37 }
 0x12a   : > { %v494_v42 = vmul.f32 %v1888_v40, %v493_v38  ;;  %v1890_v46 = vpop.eup %1889 }
 0x12c   : > { %v496_v45 = vadd.f32 %v495_v44, %v494_v42 }
 0x12e   : > { %1891 = vtanh.f32 %v496_v45  ;;  %499 = vst [vmem:[#allocation3] sm:$0x3] %v496_v45 }
 0x138   : > { %v1892_v47 = vpop.eup %1891 }
 0x139   : > { %v498_v48 = vmul.f32 %v1892_v47, %v1890_v46 }
 0x13b   : > { %500 = vst [vmem:[#allocation2] sm:$0x3] %v498_v48  ;;  %501 = vst [vmem:[%s2276_s22] sm:$0x3] %v498_v48 }
 0x142   : > { %v504_v49 = vld [vmem:[#allocation2] sm:$0x3] }
 0x143   : > { %v505_v50 = vpack.c.bf16 %v504_v49, %v504_v49 }
 0x145   : > { %539 = vmatmul.mubr.bf16.vlgmr.msra.gmra.mrb[4].mxu0 %v505_v50  ;;  %580 = vmatmul.mubr.bf16.vlgmr.msra.gmra.mrb[4].mxu1 %v505_v50 }
 0x146   : > { %652 = vmatpush1.bf16.msra.mxu0 %v2105_v4  ;;  %693 = vmatpush1.bf16.msra.mxu1 %v2108_v5 }
 0x147   : > { %653 = vmatprep.subr.bf16.mxu0 %v2112_v6  ;;  %694 = vmatprep.subr.bf16.mxu1 %v2117_v7 }
 0x148   : > { %683 = vmatprep.mubr.bf16.mxu0 %v2061_v0  ;;  %724 = vmatprep.mubr.bf16.mxu1 %v2061_v0 }
 0x14a   : > { %654 = vmatpush1.bf16.msra.mxu0 %v2120_v8  ;;  %695 = vmatpush1.bf16.msra.mxu1 %v2124_v9 }
 0x14b   : > { %655 = vmatprep.subr.bf16.mxu0 %v2128_v10  ;;  %696 = vmatprep.subr.bf16.mxu1 %v2131_v11 }
 0x14e   : > { %656 = vmatpush1.bf16.msra.mxu0 %v2134_v12  ;;  %697 = vmatpush1.bf16.msra.mxu1 %v2137_v13 }
 0x14f   : > { %657 = vmatprep.subr.bf16.mxu0 %v2142_v14  ;;  %698 = vmatprep.subr.bf16.mxu1 %v2147_v15 }
 0x152   : > { %658 = vmatpush1.bf16.msra.mxu0 %v2150_v16  ;;  %699 = vmatpush1.bf16.msra.mxu1 %v2155_v17 }
 0x153   : > { %659 = vmatprep.subr.bf16.mxu0 %v2158_v18  ;;  %700 = vmatprep.subr.bf16.mxu1 %v2163_v19 }
 0x156   : > { %660 = vmatpush1.bf16.msra.mxu0 %v2166_v20  ;;  %701 = vmatpush1.bf16.msra.mxu1 %v2169_v21 }
 0x157   : > { %661 = vmatprep.subr.bf16.mxu0 %v2174_v22  ;;  %702 = vmatprep.subr.bf16.mxu1 %v2179_v23 }
 0x15a   : > { %662 = vmatpush1.bf16.msra.mxu0 %v2184_v24  ;;  %703 = vmatpush1.bf16.msra.mxu1 %v2187_v25 }
 0x15b   : > { %663 = vmatprep.subr.bf16.mxu0 %v2192_v26  ;;  %704 = vmatprep.subr.bf16.mxu1 %v2195_v27 }
 0x15e   : > { %664 = vmatpush1.bf16.msra.mxu0 %v2200_v28  ;;  %705 = vmatpush1.bf16.msra.mxu1 %v2203_v29 }
 0x15f   : > { %665 = vmatprep.subr.bf16.mxu0 %v2208_v30  ;;  %706 = vmatprep.subr.bf16.mxu1 %v2211_v31 }
 0x162   : > { %666 = vmatpush1.bf16.msra.mxu0 %v2216_v32  ;;  %707 = vmatpush1.bf16.msra.mxu1 %v2219_v33 }
 0x163   : > { %796 = vmatprep.subr.bf16.mxu0 %v2098_v2  ;;  %837 = vmatprep.subr.bf16.mxu1 %v2101_v3 }
 0x218   : > { %v540_v51 = vpop.f32.mrb[4].mxu0  ;;  %v581_v52 = vpop.f32.mrb[4].mxu1 }
 0x219   : > { %v542_v53 = vpop.f32.mrb[5].mxu0  ;;  %v583_v54 = vpop.f32.mrb[5].mxu1 }
 0x21a   : > { %v592_v55 = vcombine.low %v540_v51, %v542_v53  ;;  %v593_v56 = vcombine.low %v581_v52, %v583_v54  ;;  %v544_v57 = vpop.f32.mrb[6].mxu0  ;;  %v585_v58 = vpop.f32.mrb[6].mxu1  ;;  %v637_v51 = vld [vmem:[#allocation3] sm:$0x3] }
 0x21b   : > { %v545_v59 = vpop.f32.mrb[7].mxu0  ;;  %v586_v60 = vpop.f32.mrb[7].mxu1 }
 0x21c   : > { %v600_v61 = vrot.slane %v592_v55, %v2262_v43  ;;  %v607_v62 = vrot.slane %v593_v56, %v2262_v43 }
 0x21e   : > { %v608_v1 = vcombine.low %v600_v61, %v607_v62 }
 0x220   : > { %v610_v34 = vadd.f32 %v1773_v63, %v608_v1 }
 0x222   : > { %v1774_v35 = vmul.f32 -1.442695, %v610_v34  ;;  %v618_v36 = vrot.slane %v610_v34, 2  ;;  %v629_v38 = vrot.slane %v610_v34, 6  ;;  %v626_v41 = vrot.slane %v610_v34, 4 }
 0x224   : > { %1893 = vpow2.f32 %v1774_v35  ;;  %v1775_v37 = vmul.f32 -1.442695, %v618_v36  ;;  %v1776_v39 = vmul.f32 -1.442695, %v629_v38 }
 0x226   : > { %1895 = vpow2.f32 %v1775_v37 }
 0x227   : > { %1897 = vpow2.f32 %v1776_v39 }
 0x22e   : > { %v1894_v40 = vpop.eup %1893 }
 0x22f   : > { %v614_v42 = vadd.f32 1.0, %v1894_v40 }
 0x230   : > { %v1896_v44 = vpop.eup %1895 }
 0x231   : > { %1899 = vrcp.f32 %v614_v42  ;;  %v623_v45 = vadd.f32 1.0, %v1896_v44  ;;  %v1898_v46 = vpop.eup %1897 }
 0x232   : > { %1901 = vtanh.f32 %v626_v41  ;;  %v634_v50 = vadd.f32 1.0, %v1898_v46  ;;  %v1778_v41 = vld [vmem:[%s2267_s18 + $0x10] sm:$0xff] }
 0x233   : > { %1903 = vrcp.f32 %v623_v45 }
 0x234   : > { %1905 = vrcp.f32 %v634_v50 }
 0x23b   : > { %v1900_v47 = vpop.eup %1899 }
 0x23c   : > { %v1902_v48 = vpop.eup %1901 }
 0x23d   : > { %v1904_v49 = vpop.eup %1903  ;;  %v639_v53 = vmul.f32 %v1902_v48, %v1900_v47 }
 0x23e   : > { %v638_v52 = vmul.f32 %v1904_v49, %v637_v51  ;;  %v1906_v55 = vpop.eup %1905 }
 0x240   : > { %v640_v54 = vadd.f32 %v639_v53, %v638_v52 }
 0x242   : > { %1907 = vtanh.f32 %v640_v54  ;;  %643 = vst [vmem:[#allocation3] sm:$0x3] %v640_v54 }
 0x24c   : > { %v1908_v56 = vpop.eup %1907 }
 0x24d   : > { %v642_v57 = vmul.f32 %v1908_v56, %v1906_v55 }
 0x24f   : > { %644 = vst [vmem:[#allocation2] sm:$0x3] %v642_v57  ;;  %1777 = vst [vmem:[%s2276_s22 + $0x2] sm:$0x3] %v642_v57 }
 0x256   : > { %v649_v58 = vld [vmem:[#allocation2] sm:$0x3] }
 0x257   : > { %v650_v59 = vpack.c.bf16 %v649_v58, %v649_v58 }
 0x259   : > { %684 = vmatmul.mubr.bf16.vlgmr.msra.gmra.mrb[8].mxu0 %v650_v59  ;;  %725 = vmatmul.mubr.bf16.vlgmr.msra.gmra.mrb[8].mxu1 %v650_v59 }
 0x25a   : > { %797 = vmatpush1.bf16.msra.mxu0 %v2105_v4  ;;  %838 = vmatpush1.bf16.msra.mxu1 %v2108_v5 }
 0x25b   : > { %798 = vmatprep.subr.bf16.mxu0 %v2112_v6  ;;  %839 = vmatprep.subr.bf16.mxu1 %v2117_v7 }
 0x25c   : > { %828 = vmatprep.mubr.bf16.mxu0 %v2061_v0  ;;  %869 = vmatprep.mubr.bf16.mxu1 %v2061_v0 }
 0x25e   : > { %799 = vmatpush1.bf16.msra.mxu0 %v2120_v8  ;;  %840 = vmatpush1.bf16.msra.mxu1 %v2124_v9 }
 0x25f   : > { %800 = vmatprep.subr.bf16.mxu0 %v2128_v10  ;;  %841 = vmatprep.subr.bf16.mxu1 %v2131_v11 }
 0x262   : > { %801 = vmatpush1.bf16.msra.mxu0 %v2134_v12  ;;  %842 = vmatpush1.bf16.msra.mxu1 %v2137_v13 }
 0x263   : > { %802 = vmatprep.subr.bf16.mxu0 %v2142_v14  ;;  %843 = vmatprep.subr.bf16.mxu1 %v2147_v15 }
 0x266   : > { %803 = vmatpush1.bf16.msra.mxu0 %v2150_v16  ;;  %844 = vmatpush1.bf16.msra.mxu1 %v2155_v17 }
 0x267   : > { %804 = vmatprep.subr.bf16.mxu0 %v2158_v18  ;;  %845 = vmatprep.subr.bf16.mxu1 %v2163_v19 }
 0x26a   : > { %805 = vmatpush1.bf16.msra.mxu0 %v2166_v20  ;;  %846 = vmatpush1.bf16.msra.mxu1 %v2169_v21 }
 0x26b   : > { %806 = vmatprep.subr.bf16.mxu0 %v2174_v22  ;;  %847 = vmatprep.subr.bf16.mxu1 %v2179_v23 }
 0x26e   : > { %807 = vmatpush1.bf16.msra.mxu0 %v2184_v24  ;;  %848 = vmatpush1.bf16.msra.mxu1 %v2187_v25 }
 0x26f   : > { %808 = vmatprep.subr.bf16.mxu0 %v2192_v26  ;;  %849 = vmatprep.subr.bf16.mxu1 %v2195_v27 }
 0x272   : > { %809 = vmatpush1.bf16.msra.mxu0 %v2200_v28  ;;  %850 = vmatpush1.bf16.msra.mxu1 %v2203_v29 }
 0x273   : > { %810 = vmatprep.subr.bf16.mxu0 %v2208_v30  ;;  %851 = vmatprep.subr.bf16.mxu1 %v2211_v31 }
 0x276   : > { %811 = vmatpush1.bf16.msra.mxu0 %v2216_v32  ;;  %852 = vmatpush1.bf16.msra.mxu1 %v2219_v33 }
 0x277   : > { %941 = vmatprep.subr.bf16.mxu0 %v2098_v2  ;;  %982 = vmatprep.subr.bf16.mxu1 %v2101_v3 }
 0x32c   : > { %v685_v60 = vpop.f32.mrb[8].mxu0  ;;  %v726_v61 = vpop.f32.mrb[8].mxu1 }
 0x32d   : > { %v687_v62 = vpop.f32.mrb[9].mxu0  ;;  %v728_v63 = vpop.f32.mrb[9].mxu1 }
 0x32e   : > { %v737_v1 = vcombine.low %v685_v60, %v687_v62  ;;  %v738_v34 = vcombine.low %v726_v61, %v728_v63  ;;  %v689_v35 = vpop.f32.mrb[10].mxu0  ;;  %v730_v36 = vpop.f32.mrb[10].mxu1  ;;  %v782_v60 = vld [vmem:[#allocation3] sm:$0x3] }
 0x32f   : > { %v690_v37 = vpop.f32.mrb[11].mxu0  ;;  %v731_v38 = vpop.f32.mrb[11].mxu1 }
 0x330   : > { %v745_v39 = vrot.slane %v737_v1, %v2262_v43  ;;  %v752_v40 = vrot.slane %v738_v34, %v2262_v43 }
 0x332   : > { %v753_v42 = vcombine.low %v745_v39, %v752_v40 }
 0x334   : > { %v755_v44 = vadd.f32 %v1778_v41, %v753_v42 }
 0x336   : > { %v1779_v45 = vmul.f32 -1.442695, %v755_v44  ;;  %v763_v46 = vrot.slane %v755_v44, 2  ;;  %v774_v48 = vrot.slane %v755_v44, 6  ;;  %v771_v51 = vrot.slane %v755_v44, 4 }
 0x338   : > { %1909 = vpow2.f32 %v1779_v45  ;;  %v1780_v47 = vmul.f32 -1.442695, %v763_v46  ;;  %v1781_v49 = vmul.f32 -1.442695, %v774_v48 }
 0x33a   : > { %1911 = vpow2.f32 %v1780_v47 }
 0x33b   : > { %1913 = vpow2.f32 %v1781_v49 }
 0x342   : > { %v1910_v50 = vpop.eup %1909 }
 0x343   : > { %v759_v52 = vadd.f32 1.0, %v1910_v50 }
 0x344   : > { %v1912_v53 = vpop.eup %1911 }
 0x345   : > { %1915 = vrcp.f32 %v759_v52  ;;  %v768_v54 = vadd.f32 1.0, %v1912_v53  ;;  %v1914_v55 = vpop.eup %1913 }
 0x346   : > { %1917 = vtanh.f32 %v771_v51  ;;  %v779_v59 = vadd.f32 1.0, %v1914_v55  ;;  %v1783_v51 = vld [vmem:[%s2267_s18 + $0x18] sm:$0xff] }
 0x347   : > { %1919 = vrcp.f32 %v768_v54 }
 0x348   : > { %1921 = vrcp.f32 %v779_v59 }
 0x34f   : > { %v1916_v56 = vpop.eup %1915 }
 0x350   : > { %v1918_v57 = vpop.eup %1917 }
 0x351   : > { %v1920_v58 = vpop.eup %1919  ;;  %v784_v62 = vmul.f32 %v1918_v57, %v1916_v56 }
 0x352   : > { %v783_v61 = vmul.f32 %v1920_v58, %v782_v60  ;;  %v1922_v1 = vpop.eup %1921 }
 0x354   : > { %v785_v63 = vadd.f32 %v784_v62, %v783_v61 }
 0x356   : > { %1923 = vtanh.f32 %v785_v63  ;;  %788 = vst [vmem:[#allocation3] sm:$0x3] %v785_v63 }
 0x360   : > { %v1924_v34 = vpop.eup %1923 }
 0x361   : > { %v787_v35 = vmul.f32 %v1924_v34, %v1922_v1 }
 0x363   : > { %789 = vst [vmem:[#allocation2] sm:$0x3] %v787_v35  ;;  %1782 = vst [vmem:[%s2276_s22 + $0x4] sm:$0x3] %v787_v35 }
 0x36a   : > { %v794_v36 = vld [vmem:[#allocation2] sm:$0x3] }
 0x36b   : > { %v795_v37 = vpack.c.bf16 %v794_v36, %v794_v36 }
 0x36d   : > { %829 = vmatmul.mubr.bf16.vlgmr.msra.gmra.mrb[12].mxu0 %v795_v37  ;;  %870 = vmatmul.mubr.bf16.vlgmr.msra.gmra.mrb[12].mxu1 %v795_v37 }
 0x36e   : > { %942 = vmatpush1.bf16.msra.mxu0 %v2105_v4  ;;  %983 = vmatpush1.bf16.msra.mxu1 %v2108_v5 }
 0x36f   : > { %943 = vmatprep.subr.bf16.mxu0 %v2112_v6  ;;  %984 = vmatprep.subr.bf16.mxu1 %v2117_v7 }
 0x370   : > { %973 = vmatprep.mubr.bf16.mxu0 %v2061_v0  ;;  %1014 = vmatprep.mubr.bf16.mxu1 %v2061_v0 }
 0x372   : > { %944 = vmatpush1.bf16.msra.mxu0 %v2120_v8  ;;  %985 = vmatpush1.bf16.msra.mxu1 %v2124_v9 }
 0x373   : > { %945 = vmatprep.subr.bf16.mxu0 %v2128_v10  ;;  %986 = vmatprep.subr.bf16.mxu1 %v2131_v11 }
 0x376   : > { %946 = vmatpush1.bf16.msra.mxu0 %v2134_v12  ;;  %987 = vmatpush1.bf16.msra.mxu1 %v2137_v13 }
 0x377   : > { %947 = vmatprep.subr.bf16.mxu0 %v2142_v14  ;;  %988 = vmatprep.subr.bf16.mxu1 %v2147_v15 }
 0x37a   : > { %948 = vmatpush1.bf16.msra.mxu0 %v2150_v16  ;;  %989 = vmatpush1.bf16.msra.mxu1 %v2155_v17 }
 0x37b   : > { %949 = vmatprep.subr.bf16.mxu0 %v2158_v18  ;;  %990 = vmatprep.subr.bf16.mxu1 %v2163_v19 }
 0x37e   : > { %950 = vmatpush1.bf16.msra.mxu0 %v2166_v20  ;;  %991 = vmatpush1.bf16.msra.mxu1 %v2169_v21 }
 0x37f   : > { %951 = vmatprep.subr.bf16.mxu0 %v2174_v22  ;;  %992 = vmatprep.subr.bf16.mxu1 %v2179_v23 }
 0x382   : > { %952 = vmatpush1.bf16.msra.mxu0 %v2184_v24  ;;  %993 = vmatpush1.bf16.msra.mxu1 %v2187_v25 }
 0x383   : > { %953 = vmatprep.subr.bf16.mxu0 %v2192_v26  ;;  %994 = vmatprep.subr.bf16.mxu1 %v2195_v27 }
 0x386   : > { %954 = vmatpush1.bf16.msra.mxu0 %v2200_v28  ;;  %995 = vmatpush1.bf16.msra.mxu1 %v2203_v29 }
 0x387   : > { %955 = vmatprep.subr.bf16.mxu0 %v2208_v30  ;;  %996 = vmatprep.subr.bf16.mxu1 %v2211_v31 }
 0x38a   : > { %956 = vmatpush1.bf16.msra.mxu0 %v2216_v32  ;;  %997 = vmatpush1.bf16.msra.mxu1 %v2219_v33 }
 0x38b   : > { %1086 = vmatprep.subr.bf16.mxu0 %v2098_v2  ;;  %1127 = vmatprep.subr.bf16.mxu1 %v2101_v3 }
 0x440   : > { %v830_v38 = vpop.f32.mrb[12].mxu0  ;;  %v871_v39 = vpop.f32.mrb[12].mxu1 }
 0x441   : > { %v832_v40 = vpop.f32.mrb[13].mxu0  ;;  %v873_v41 = vpop.f32.mrb[13].mxu1 }
 0x442   : > { %v882_v42 = vcombine.low %v830_v38, %v832_v40  ;;  %v883_v44 = vcombine.low %v871_v39, %v873_v41  ;;  %v834_v45 = vpop.f32.mrb[14].mxu0  ;;  %v875_v46 = vpop.f32.mrb[14].mxu1  ;;  %v927_v38 = vld [vmem:[#allocation3] sm:$0x3] }
 0x443   : > { %v835_v47 = vpop.f32.mrb[15].mxu0  ;;  %v876_v48 = vpop.f32.mrb[15].mxu1 }
 0x444   : > { %v890_v49 = vrot.slane %v882_v42, %v2262_v43  ;;  %v897_v50 = vrot.slane %v883_v44, %v2262_v43 }
 0x446   : > { %v898_v52 = vcombine.low %v890_v49, %v897_v50 }
 0x448   : > { %v900_v53 = vadd.f32 %v1783_v51, %v898_v52 }
 0x44a   : > { %v1784_v54 = vmul.f32 -1.442695, %v900_v53  ;;  %v908_v55 = vrot.slane %v900_v53, 2  ;;  %v919_v57 = vrot.slane %v900_v53, 6  ;;  %v916_v60 = vrot.slane %v900_v53, 4 }
 0x44c   : > { %1925 = vpow2.f32 %v1784_v54  ;;  %v1785_v56 = vmul.f32 -1.442695, %v908_v55  ;;  %v1786_v58 = vmul.f32 -1.442695, %v919_v57 }
 0x44e   : > { %1927 = vpow2.f32 %v1785_v56 }
 0x44f   : > { %1929 = vpow2.f32 %v1786_v58 }
 0x456   : > { %v1926_v59 = vpop.eup %1925 }
 0x457   : > { %v904_v61 = vadd.f32 1.0, %v1926_v59 }
 0x458   : > { %v1928_v62 = vpop.eup %1927 }
 0x459   : > { %1931 = vrcp.f32 %v904_v61  ;;  %v913_v63 = vadd.f32 1.0, %v1928_v62  ;;  %v1930_v1 = vpop.eup %1929 }
 0x45a   : > { %1933 = vtanh.f32 %v916_v60  ;;  %v924_v37 = vadd.f32 1.0, %v1930_v1 }
 0x45b   : > { %1935 = vrcp.f32 %v913_v63 }
 0x45c   : > { %1937 = vrcp.f32 %v924_v37 }
 0x463   : > { %v1932_v34 = vpop.eup %1931 }
 0x464   : > { %v1934_v35 = vpop.eup %1933 }
 0x465   : > { %v1936_v36 = vpop.eup %1935  ;;  %v929_v40 = vmul.f32 %v1934_v35, %v1932_v34 }
 0x466   : > { %v928_v39 = vmul.f32 %v1936_v36, %v927_v38  ;;  %v1938_v42 = vpop.eup %1937 }
 0x468   : > { %v930_v41 = vadd.f32 %v929_v40, %v928_v39 }
 0x46a   : > { %1939 = vtanh.f32 %v930_v41  ;;  %933 = vst [vmem:[#allocation3] sm:$0x3] %v930_v41  ;;  %v2432_v41 = vld [vmem:[%s2095_s14] ss:$16 sps:$4 sm:$0xff]  }
 0x471   : > { %v1072_v63 = vld [vmem:[#allocation3] sm:$0x3] }
 0x474   : > { %v1940_v44 = vpop.eup %1939 }
 0x475   : > { %v932_v45 = vmul.f32 %v1940_v44, %v1938_v42  ;;  %v2436_v42 = vld [vmem:[%s2095_s14 + $0x8] ss:$16 sps:$4 sm:$0xff]   ;;  %v2440_v44 = vld [vmem:[%s2095_s14 + $0x24] ss:$16 sps:$4 sm:$0xff]  }
 0x477   : > { %934 = vst [vmem:[#allocation2] sm:$0x3] %v932_v45  ;;  %1787 = vst [vmem:[%s2276_s22 + $0x6] sm:$0x3] %v932_v45  ;;  %v2444_v45 = vld [vmem:[%s2095_s14 + $0x2c] ss:$16 sps:$4 sm:$0xff]  }
 0x47e   : > { %v939_v46 = vld [vmem:[#allocation2] sm:$0x3] }
 0x47f   : > { %v940_v47 = vpack.c.bf16 %v939_v46, %v939_v46  ;;  %v2450_v46 = vld [vmem:[%s2095_s14 + $0x20] ss:$16 sps:$4 sm:$0xff]  }
 0x481   : > { %974 = vmatmul.mubr.bf16.vlgmr.msra.gmra.mrb[16].mxu0 %v940_v47  ;;  %1015 = vmatmul.mubr.bf16.vlgmr.msra.gmra.mrb[16].mxu1 %v940_v47  ;;  %v2454_v47 = vld [vmem:[%s2095_s14 + $0x28] ss:$16 sps:$4 sm:$0xff]  }
 0x482   : > { %1087 = vmatpush1.bf16.msra.mxu0 %v2105_v4  ;;  %1128 = vmatpush1.bf16.msra.mxu1 %v2108_v5 }
 0x483   : > { %1088 = vmatprep.subr.bf16.mxu0 %v2112_v6  ;;  %1129 = vmatprep.subr.bf16.mxu1 %v2117_v7 }
 0x484   : > { %1118 = vmatprep.mubr.bf16.mxu0 %v2061_v0  ;;  %1159 = vmatprep.mubr.bf16.mxu1 %v2061_v0 }
 0x486   : > { %1089 = vmatpush1.bf16.msra.mxu0 %v2120_v8  ;;  %1130 = vmatpush1.bf16.msra.mxu1 %v2124_v9 }
 0x487   : > { %1090 = vmatprep.subr.bf16.mxu0 %v2128_v10  ;;  %1131 = vmatprep.subr.bf16.mxu1 %v2131_v11 }
 0x48a   : > { %1091 = vmatpush1.bf16.msra.mxu0 %v2134_v12  ;;  %1132 = vmatpush1.bf16.msra.mxu1 %v2137_v13 }
 0x48b   : > { %1092 = vmatprep.subr.bf16.mxu0 %v2142_v14  ;;  %1133 = vmatprep.subr.bf16.mxu1 %v2147_v15 }
 0x48e   : > { %1093 = vmatpush1.bf16.msra.mxu0 %v2150_v16  ;;  %1134 = vmatpush1.bf16.msra.mxu1 %v2155_v17  ;;  %v1788_v16 = vld [vmem:[%s2267_s18 + $0x20] sm:$0xff] }
 0x48f   : > { %1094 = vmatprep.subr.bf16.mxu0 %v2158_v18  ;;  %1135 = vmatprep.subr.bf16.mxu1 %v2163_v19 }
 0x492   : > { %1095 = vmatpush1.bf16.msra.mxu0 %v2166_v20  ;;  %1136 = vmatpush1.bf16.msra.mxu1 %v2169_v21 }
 0x493   : > { %1096 = vmatprep.subr.bf16.mxu0 %v2174_v22  ;;  %1137 = vmatprep.subr.bf16.mxu1 %v2179_v23 }
 0x496   : > { %1097 = vmatpush1.bf16.msra.mxu0 %v2184_v24  ;;  %1138 = vmatpush1.bf16.msra.mxu1 %v2187_v25 }
 0x497   : > { %1098 = vmatprep.subr.bf16.mxu0 %v2192_v26  ;;  %1139 = vmatprep.subr.bf16.mxu1 %v2195_v27 }
 0x49a   : > { %1099 = vmatpush1.bf16.msra.mxu0 %v2200_v28  ;;  %1140 = vmatpush1.bf16.msra.mxu1 %v2203_v29 }
 0x49b   : > { %1100 = vmatprep.subr.bf16.mxu0 %v2208_v30  ;;  %1141 = vmatprep.subr.bf16.mxu1 %v2211_v31 }
 0x49e   : > { %1101 = vmatpush1.bf16.msra.mxu0 %v2216_v32  ;;  %1142 = vmatpush1.bf16.msra.mxu1 %v2219_v33 }
 0x49f   : > { %1231 = vmatprep.subr.bf16.mxu0 %v2098_v2  ;;  %1272 = vmatprep.subr.bf16.mxu1 %v2101_v3 }
 0x554   : > { %v975_v4 = vpop.f32.mrb[16].mxu0  ;;  %v1016_v5 = vpop.f32.mrb[16].mxu1 }
 0x555   : > { %v977_v6 = vpop.f32.mrb[17].mxu0  ;;  %v1018_v7 = vpop.f32.mrb[17].mxu1 }
 0x556   : > { %v1027_v8 = vcombine.low %v975_v4, %v977_v6  ;;  %v1028_v9 = vcombine.low %v1016_v5, %v1018_v7  ;;  %v979_v10 = vpop.f32.mrb[18].mxu0  ;;  %v1020_v11 = vpop.f32.mrb[18].mxu1  ;;  %v2458_v4 = vld [vmem:[%s2095_s14 + $0x44] ss:$16 sps:$4 sm:$0xff]   ;;  %v2462_v5 = vld [vmem:[%s2095_s14 + $0x4c] ss:$16 sps:$4 sm:$0xff]  }
 0x557   : > { %v980_v12 = vpop.f32.mrb[19].mxu0  ;;  %v1021_v13 = vpop.f32.mrb[19].mxu1  ;;  %v2466_v6 = vld [vmem:[%s2095_s14 + $0x40] ss:$16 sps:$4 sm:$0xff]   ;;  %v2470_v7 = vld [vmem:[%s2095_s14 + $0x48] ss:$16 sps:$4 sm:$0xff]  }
 0x558   : > { %v1035_v14 = vrot.slane %v1027_v8, %v2262_v43  ;;  %v1042_v15 = vrot.slane %v1028_v9, %v2262_v43  ;;  %v2474_v8 = vld [vmem:[%s2095_s14 + $0x64] ss:$16 sps:$4 sm:$0xff]   ;;  %v2478_v9 = vld [vmem:[%s2095_s14 + $0x6c] ss:$16 sps:$4 sm:$0xff]   ;;  %v2482_v10 = vld [vmem:[%s2095_s14 + $0x60] ss:$16 sps:$4 sm:$0xff]  }
 0x55a   : > { %v1043_v48 = vcombine.low %v1035_v14, %v1042_v15 }
 0x55c   : > { %v1045_v49 = vadd.f32 %v1788_v16, %v1043_v48 }
 0x55e   : > { %v1789_v2 = vmul.f32 -1.442695, %v1045_v49  ;;  %v1053_v50 = vrot.slane %v1045_v49, 2  ;;  %v1064_v51 = vrot.slane %v1045_v49, 6  ;;  %v1061_v54 = vrot.slane %v1045_v49, 4 }
 0x560   : > { %1941 = vpow2.f32 %v1789_v2  ;;  %v1790_v3 = vmul.f32 -1.442695, %v1053_v50  ;;  %v1791_v52 = vmul.f32 -1.442695, %v1064_v51 }
 0x562   : > { %1943 = vpow2.f32 %v1790_v3 }
 0x563   : > { %1945 = vpow2.f32 %v1791_v52 }
 0x56a   : > { %v1942_v53 = vpop.eup %1941 }
 0x56b   : > { %v1049_v55 = vadd.f32 1.0, %v1942_v53 }
 0x56c   : > { %v1944_v56 = vpop.eup %1943 }
 0x56d   : > { %1947 = vrcp.f32 %v1049_v55  ;;  %v1058_v57 = vadd.f32 1.0, %v1944_v56  ;;  %v1946_v58 = vpop.eup %1945 }
 0x56e   : > { %1949 = vtanh.f32 %v1061_v54  ;;  %v1069_v62 = vadd.f32 1.0, %v1946_v58 }
 0x56f   : > { %1951 = vrcp.f32 %v1058_v57 }
 0x570   : > { %1953 = vrcp.f32 %v1069_v62 }
 0x577   : > { %v1948_v59 = vpop.eup %1947 }
 0x578   : > { %v1950_v60 = vpop.eup %1949 }
 0x579   : > { %v1952_v61 = vpop.eup %1951  ;;  %v1074_v34 = vmul.f32 %v1950_v60, %v1948_v59 }
 0x57a   : > { %v1073_v1 = vmul.f32 %v1952_v61, %v1072_v63  ;;  %v1954_v36 = vpop.eup %1953 }
 0x57c   : > { %v1075_v35 = vadd.f32 %v1074_v34, %v1073_v1  ;;  %v2530_v1 = vld [vmem:[%s2095_s14 + $0x68] ss:$16 sps:$4 sm:$0xff]   ;;  %v2534_v34 = vld [vmem:[%s2095_s14 + $0x84] ss:$16 sps:$4 sm:$0xff]  }
 0x57e   : > { %1955 = vtanh.f32 %v1075_v35  ;;  %1078 = vst [vmem:[#allocation3] sm:$0x3] %v1075_v35  ;;  %v2538_v35 = vld [vmem:[%s2095_s14 + $0x8c] ss:$16 sps:$4 sm:$0xff]  }
 0x585   : > { %v1217_v55 = vld [vmem:[#allocation3] sm:$0x3] }
 0x588   : > { %v1956_v37 = vpop.eup %1955 }
 0x589   : > { %v1077_v38 = vmul.f32 %v1956_v37, %v1954_v36  ;;  %v2542_v36 = vld [vmem:[%s2095_s14 + $0x80] ss:$16 sps:$4 sm:$0xff]   ;;  %v2546_v37 = vld [vmem:[%s2095_s14 + $0x88] ss:$16 sps:$4 sm:$0xff]  }
 0x58b   : > { %1792 = vst [vmem:[%s2276_s22 + $0x8] sm:$0x3] %v1077_v38  ;;  %1079 = vst [vmem:[#allocation2] sm:$0x3] %v1077_v38  ;;  %v2550_v38 = vld [vmem:[%s2095_s14 + $0xa4] ss:$16 sps:$4 sm:$0xff]  }
 0x592   : > { %v1084_v39 = vld [vmem:[#allocation2] sm:$0x3] }
 0x593   : > { %v1085_v40 = vpack.c.bf16 %v1084_v39, %v1084_v39  ;;  %v2554_v39 = vld [vmem:[%s2095_s14 + $0xac] ss:$16 sps:$4 sm:$0xff]  }
 0x595   : > { %1119 = vmatmul.mubr.bf16.vlgmr.msra.gmra.mrb[20].mxu0 %v1085_v40  ;;  %1160 = vmatmul.mubr.bf16.vlgmr.msra.gmra.mrb[20].mxu1 %v1085_v40  ;;  %v2558_v40 = vld [vmem:[%s2095_s14 + $0xa0] ss:$16 sps:$4 sm:$0xff]  }
 0x596   : > { %1232 = vmatpush1.bf16.msra.mxu0 %v2432_v41  ;;  %1273 = vmatpush1.bf16.msra.mxu1 %v2436_v42 }
 0x597   : > { %1233 = vmatprep.subr.bf16.mxu0 %v2440_v44  ;;  %1274 = vmatprep.subr.bf16.mxu1 %v2444_v45 }
 0x598   : > { %1263 = vmatprep.mubr.bf16.mxu0 %v2061_v0  ;;  %1304 = vmatprep.mubr.bf16.mxu1 %v2061_v0 }
 0x59a   : > { %1234 = vmatpush1.bf16.msra.mxu0 %v2450_v46  ;;  %1275 = vmatpush1.bf16.msra.mxu1 %v2454_v47 }
 0x59b   : > { %1235 = vmatprep.subr.bf16.mxu0 %v2458_v4  ;;  %1276 = vmatprep.subr.bf16.mxu1 %v2462_v5 }
 0x59e   : > { %1236 = vmatpush1.bf16.msra.mxu0 %v2466_v6  ;;  %1277 = vmatpush1.bf16.msra.mxu1 %v2470_v7 }
 0x59f   : > { %1237 = vmatprep.subr.bf16.mxu0 %v2474_v8  ;;  %1278 = vmatprep.subr.bf16.mxu1 %v2478_v9 }
 0x5a2   : > { %1238 = vmatpush1.bf16.msra.mxu0 %v2482_v10  ;;  %1279 = vmatpush1.bf16.msra.mxu1 %v2155_v17  ;;  %v2503_v17 = vld [vmem:[%s2095_s14 + $0x4] ss:$16 sps:$4 sm:$0xff]  }
 0x5a3   : > { %1239 = vmatprep.subr.bf16.mxu0 %v2158_v18  ;;  %1280 = vmatprep.subr.bf16.mxu1 %v2163_v19  ;;  %v2507_v18 = vld [vmem:[%s2095_s14 + $0xc] ss:$16 sps:$4 sm:$0xff]  }
 0x5a6   : > { %1240 = vmatpush1.bf16.msra.mxu0 %v2166_v20  ;;  %1281 = vmatpush1.bf16.msra.mxu1 %v2169_v21 }
 0x5a7   : > { %1241 = vmatprep.subr.bf16.mxu0 %v2174_v22  ;;  %1282 = vmatprep.subr.bf16.mxu1 %v2179_v23 }
 0x5aa   : > { %1242 = vmatpush1.bf16.msra.mxu0 %v2184_v24  ;;  %1283 = vmatpush1.bf16.msra.mxu1 %v2187_v25 }
 0x5ab   : > { %1243 = vmatprep.subr.bf16.mxu0 %v2192_v26  ;;  %1284 = vmatprep.subr.bf16.mxu1 %v2195_v27 }
 0x5ae   : > { %1244 = vmatpush1.bf16.msra.mxu0 %v2200_v28  ;;  %1285 = vmatpush1.bf16.msra.mxu1 %v2203_v29 }
 0x5af   : > { %1245 = vmatprep.subr.bf16.mxu0 %v2208_v30  ;;  %1286 = vmatprep.subr.bf16.mxu1 %v2211_v31  ;;  %v1793_v31 = vld [vmem:[%s2267_s18 + $0x28] sm:$0xff] }
 0x5b2   : > { %1246 = vmatpush1.bf16.msra.mxu0 %v2216_v32  ;;  %1287 = vmatpush1.bf16.msra.mxu1 %v2219_v33 }
 0x5b3   : > { %1376 = vmatprep.subr.bf16.mxu0 %v2503_v17  ;;  %1417 = vmatprep.subr.bf16.mxu1 %v2507_v18 }
 0x668   : > { %v1120_v19 = vpop.f32.mrb[20].mxu0  ;;  %v1161_v20 = vpop.f32.mrb[20].mxu1 }
 0x669   : > { %v1122_v21 = vpop.f32.mrb[21].mxu0  ;;  %v1163_v22 = vpop.f32.mrb[21].mxu1 }
 0x66a   : > { %v1172_v23 = vcombine.low %v1120_v19, %v1122_v21  ;;  %v1173_v24 = vcombine.low %v1161_v20, %v1163_v22  ;;  %v1124_v25 = vpop.f32.mrb[22].mxu0  ;;  %v1165_v26 = vpop.f32.mrb[22].mxu1  ;;  %v2562_v19 = vld [vmem:[%s2095_s14 + $0xa8] ss:$16 sps:$4 sm:$0xff]   ;;  %v2566_v20 = vld [vmem:[%s2095_s14 + $0xc4] ss:$16 sps:$4 sm:$0xff]  }
 0x66b   : > { %v1125_v27 = vpop.f32.mrb[23].mxu0  ;;  %v1166_v28 = vpop.f32.mrb[23].mxu1  ;;  %v2570_v21 = vld [vmem:[%s2095_s14 + $0xcc] ss:$16 sps:$4 sm:$0xff]   ;;  %v2574_v22 = vld [vmem:[%s2095_s14 + $0xc0] ss:$16 sps:$4 sm:$0xff]  }
 0x66c   : > { %v1180_v29 = vrot.slane %v1172_v23, %v2262_v43  ;;  %v1187_v30 = vrot.slane %v1173_v24, %v2262_v43  ;;  %v2578_v23 = vld [vmem:[%s2095_s14 + $0xc8] ss:$16 sps:$4 sm:$0xff]   ;;  %v2582_v24 = vld [vmem:[%s2095_s14 + $0xe4] ss:$16 sps:$4 sm:$0xff]   ;;  %v2586_v25 = vld [vmem:[%s2095_s14 + $0xec] ss:$16 sps:$4 sm:$0xff]  }
 0x66d   : > { %v2590_v26 = vld [vmem:[%s2095_s14 + $0xe0] ss:$16 sps:$4 sm:$0xff]   ;;  %v2594_v27 = vld [vmem:[%s2095_s14 + $0xe8] ss:$16 sps:$4 sm:$0xff]  }
 0x66e   : > { %v1188_v32 = vcombine.low %v1180_v29, %v1187_v30 }
 0x670   : > { %v1190_v33 = vadd.f32 %v1793_v31, %v1188_v32 }
 0x672   : > { %v1794_v11 = vmul.f32 -1.442695, %v1190_v33  ;;  %v1198_v12 = vrot.slane %v1190_v33, 2  ;;  %v1209_v14 = vrot.slane %v1190_v33, 6  ;;  %v1206_v48 = vrot.slane %v1190_v33, 4 }
 0x674   : > { %1957 = vpow2.f32 %v1794_v11  ;;  %v1795_v13 = vmul.f32 -1.442695, %v1198_v12  ;;  %v1796_v15 = vmul.f32 -1.442695, %v1209_v14 }
 0x676   : > { %1959 = vpow2.f32 %v1795_v13 }
 0x677   : > { %1961 = vpow2.f32 %v1796_v15 }
 0x67e   : > { %v1958_v16 = vpop.eup %1957 }
 0x67f   : > { %v1194_v49 = vadd.f32 1.0, %v1958_v16 }
 0x680   : > { %v1960_v2 = vpop.eup %1959 }
 0x681   : > { %1963 = vrcp.f32 %v1194_v49  ;;  %v1203_v50 = vadd.f32 1.0, %v1960_v2  ;;  %v1962_v3 = vpop.eup %1961 }
 0x682   : > { %1965 = vtanh.f32 %v1206_v48  ;;  %v1214_v54 = vadd.f32 1.0, %v1962_v3  ;;  %v1798_v48 = vld [vmem:[%s2267_s18 + $0x30] sm:$0xff] }
 0x683   : > { %1967 = vrcp.f32 %v1203_v50 }
 0x684   : > { %1969 = vrcp.f32 %v1214_v54 }
 0x68b   : > { %v1964_v51 = vpop.eup %1963 }
 0x68c   : > { %v1966_v52 = vpop.eup %1965 }
 0x68d   : > { %v1968_v53 = vpop.eup %1967  ;;  %v1219_v57 = vmul.f32 %v1966_v52, %v1964_v51 }
 0x68e   : > { %v1218_v56 = vmul.f32 %v1968_v53, %v1217_v55  ;;  %v1970_v59 = vpop.eup %1969 }
 0x690   : > { %v1220_v58 = vadd.f32 %v1219_v57, %v1218_v56 }
 0x692   : > { %1971 = vtanh.f32 %v1220_v58  ;;  %1223 = vst [vmem:[#allocation3] sm:$0x3] %v1220_v58 }
 0x69c   : > { %v1972_v60 = vpop.eup %1971 }
 0x69d   : > { %v1222_v61 = vmul.f32 %v1972_v60, %v1970_v59 }
 0x69f   : > { %1797 = vst [vmem:[%s2276_s22 + $0xa] sm:$0x3] %v1222_v61  ;;  %1224 = vst [vmem:[#allocation2] sm:$0x3] %v1222_v61 }
 0x6a6   : > { %v1229_v62 = vld [vmem:[#allocation2] sm:$0x3] }
 0x6a7   : > { %v1230_v63 = vpack.c.bf16 %v1229_v62, %v1229_v62  ;;  %v1362_v62 = vld [vmem:[#allocation3] sm:$0x3] }
 0x6a9   : > { %1264 = vmatmul.mubr.bf16.vlgmr.msra.gmra.mrb[24].mxu0 %v1230_v63  ;;  %1305 = vmatmul.mubr.bf16.vlgmr.msra.gmra.mrb[24].mxu1 %v1230_v63 }
 0x6aa   : > { %1377 = vmatpush1.bf16.msra.mxu0 %v2432_v41  ;;  %1418 = vmatpush1.bf16.msra.mxu1 %v2436_v42 }
 0x6ab   : > { %1378 = vmatprep.subr.bf16.mxu0 %v2440_v44  ;;  %1419 = vmatprep.subr.bf16.mxu1 %v2444_v45 }
 0x6ac   : > { %1408 = vmatprep.mubr.bf16.mxu0 %v2061_v0  ;;  %1449 = vmatprep.mubr.bf16.mxu1 %v2061_v0 }
 0x6ae   : > { %1379 = vmatpush1.bf16.msra.mxu0 %v2450_v46  ;;  %1420 = vmatpush1.bf16.msra.mxu1 %v2454_v47 }
 0x6af   : > { %1380 = vmatprep.subr.bf16.mxu0 %v2458_v4  ;;  %1421 = vmatprep.subr.bf16.mxu1 %v2462_v5 }
 0x6b2   : > { %1381 = vmatpush1.bf16.msra.mxu0 %v2466_v6  ;;  %1422 = vmatpush1.bf16.msra.mxu1 %v2470_v7 }
 0x6b3   : > { %1382 = vmatprep.subr.bf16.mxu0 %v2474_v8  ;;  %1423 = vmatprep.subr.bf16.mxu1 %v2478_v9 }
 0x6b6   : > { %1383 = vmatpush1.bf16.msra.mxu0 %v2482_v10  ;;  %1424 = vmatpush1.bf16.msra.mxu1 %v2530_v1 }
 0x6b7   : > { %1384 = vmatprep.subr.bf16.mxu0 %v2534_v34  ;;  %1425 = vmatprep.subr.bf16.mxu1 %v2538_v35 }
 0x6ba   : > { %1385 = vmatpush1.bf16.msra.mxu0 %v2542_v36  ;;  %1426 = vmatpush1.bf16.msra.mxu1 %v2546_v37 }
 0x6bb   : > { %1386 = vmatprep.subr.bf16.mxu0 %v2550_v38  ;;  %1427 = vmatprep.subr.bf16.mxu1 %v2554_v39 }
 0x6be   : > { %1387 = vmatpush1.bf16.msra.mxu0 %v2558_v40  ;;  %1428 = vmatpush1.bf16.msra.mxu1 %v2562_v19 }
 0x6bf   : > { %1388 = vmatprep.subr.bf16.mxu0 %v2566_v20  ;;  %1429 = vmatprep.subr.bf16.mxu1 %v2570_v21 }
 0x6c2   : > { %1389 = vmatpush1.bf16.msra.mxu0 %v2574_v22  ;;  %1430 = vmatpush1.bf16.msra.mxu1 %v2578_v23 }
 0x6c3   : > { %1390 = vmatprep.subr.bf16.mxu0 %v2582_v24  ;;  %1431 = vmatprep.subr.bf16.mxu1 %v2586_v25 }
 0x6c6   : > { %1391 = vmatpush1.bf16.msra.mxu0 %v2590_v26  ;;  %1432 = vmatpush1.bf16.msra.mxu1 %v2594_v27 }
 0x6c7   : > { %1521 = vmatprep.subr.bf16.mxu0 %v2503_v17  ;;  %1562 = vmatprep.subr.bf16.mxu1 %v2507_v18 }
 0x77c   : > { %v1265_v28 = vpop.f32.mrb[24].mxu0  ;;  %v1306_v29 = vpop.f32.mrb[24].mxu1 }
 0x77d   : > { %v1267_v30 = vpop.f32.mrb[25].mxu0  ;;  %v1308_v31 = vpop.f32.mrb[25].mxu1 }
 0x77e   : > { %v1317_v32 = vcombine.low %v1265_v28, %v1267_v30  ;;  %v1318_v33 = vcombine.low %v1306_v29, %v1308_v31  ;;  %v1269_v11 = vpop.f32.mrb[26].mxu0  ;;  %v1310_v12 = vpop.f32.mrb[26].mxu1 }
 0x77f   : > { %v1270_v13 = vpop.f32.mrb[27].mxu0  ;;  %v1311_v14 = vpop.f32.mrb[27].mxu1 }
 0x780   : > { %v1325_v15 = vrot.slane %v1317_v32, %v2262_v43  ;;  %v1332_v16 = vrot.slane %v1318_v33, %v2262_v43 }
 0x782   : > { %v1333_v49 = vcombine.low %v1325_v15, %v1332_v16 }
 0x784   : > { %v1335_v2 = vadd.f32 %v1798_v48, %v1333_v49 }
 0x786   : > { %v1799_v17 = vmul.f32 -1.442695, %v1335_v2  ;;  %v1343_v50 = vrot.slane %v1335_v2, 2  ;;  %v1354_v3 = vrot.slane %v1335_v2, 6  ;;  %v1351_v53 = vrot.slane %v1335_v2, 4 }
 0x788   : > { %1973 = vpow2.f32 %v1799_v17  ;;  %v1800_v18 = vmul.f32 -1.442695, %v1343_v50  ;;  %v1801_v51 = vmul.f32 -1.442695, %v1354_v3 }
 0x78a   : > { %1975 = vpow2.f32 %v1800_v18 }
 0x78b   : > { %1977 = vpow2.f32 %v1801_v51 }
 0x792   : > { %v1974_v52 = vpop.eup %1973 }
 0x793   : > { %v1339_v54 = vadd.f32 1.0, %v1974_v52 }
 0x794   : > { %v1976_v55 = vpop.eup %1975 }
 0x795   : > { %1979 = vrcp.f32 %v1339_v54  ;;  %v1348_v56 = vadd.f32 1.0, %v1976_v55  ;;  %v1978_v57 = vpop.eup %1977 }
 0x796   : > { %1981 = vtanh.f32 %v1351_v53  ;;  %v1359_v61 = vadd.f32 1.0, %v1978_v57 }
 0x797   : > { %1983 = vrcp.f32 %v1348_v56 }
 0x798   : > { %1985 = vrcp.f32 %v1359_v61 }
 0x79f   : > { %v1980_v58 = vpop.eup %1979 }
 0x7a0   : > { %v1982_v59 = vpop.eup %1981 }
 0x7a1   : > { %v1984_v60 = vpop.eup %1983  ;;  %v1364_v28 = vmul.f32 %v1982_v59, %v1980_v58  ;;  %v1808_v59 = vld [vmem:[%s2267_s18 + $0x40] sm:$0xff] }
 0x7a2   : > { %v1363_v63 = vmul.f32 %v1984_v60, %v1362_v62  ;;  %v1986_v30 = vpop.eup %1985 }
 0x7a4   : > { %v1365_v29 = vadd.f32 %v1364_v28, %v1363_v63 }
 0x7a6   : > { %1987 = vtanh.f32 %v1365_v29  ;;  %1368 = vst [vmem:[#allocation3] sm:$0x3] %v1365_v29 }
 0x7b0   : > { %v1988_v31 = vpop.eup %1987 }
 0x7b1   : > { %v1367_v32 = vmul.f32 %v1988_v31, %v1986_v30 }
 0x7b3   : > { %1802 = vst [vmem:[%s2276_s22 + $0xc] sm:$0x3] %v1367_v32  ;;  %1369 = vst [vmem:[#allocation2] sm:$0x3] %v1367_v32 }
 0x7ba   : > { %v1374_v33 = vld [vmem:[#allocation2] sm:$0x3] }
 0x7bb   : > { %v1375_v11 = vpack.c.bf16 %v1374_v33, %v1374_v33 }
 0x7bd   : > { %1409 = vmatmul.mubr.bf16.vlgmr.msra.gmra.mrb[28].mxu0 %v1375_v11  ;;  %1450 = vmatmul.mubr.bf16.vlgmr.msra.gmra.mrb[28].mxu1 %v1375_v11 }
 0x7be   : > { %1522 = vmatpush1.bf16.msra.mxu0 %v2432_v41  ;;  %1563 = vmatpush1.bf16.msra.mxu1 %v2436_v42 }
 0x7bf   : > { %1523 = vmatprep.subr.bf16.mxu0 %v2440_v44  ;;  %1564 = vmatprep.subr.bf16.mxu1 %v2444_v45 }
 0x7c0   : > { %1553 = vmatprep.mubr.bf16.mxu0 %v2061_v0  ;;  %1594 = vmatprep.mubr.bf16.mxu1 %v2061_v0 }
 0x7c2   : > { %1524 = vmatpush1.bf16.msra.mxu0 %v2450_v46  ;;  %1565 = vmatpush1.bf16.msra.mxu1 %v2454_v47 }
 0x7c3   : > { %1525 = vmatprep.subr.bf16.mxu0 %v2458_v4  ;;  %1566 = vmatprep.subr.bf16.mxu1 %v2462_v5 }
 0x7c6   : > { %1526 = vmatpush1.bf16.msra.mxu0 %v2466_v6  ;;  %1567 = vmatpush1.bf16.msra.mxu1 %v2470_v7 }
 0x7c7   : > { %1527 = vmatprep.subr.bf16.mxu0 %v2474_v8  ;;  %1568 = vmatprep.subr.bf16.mxu1 %v2478_v9  ;;  %v1803_v9 = vld [vmem:[%s2267_s18 + $0x38] sm:$0xff] }
 0x7ca   : > { %1528 = vmatpush1.bf16.msra.mxu0 %v2482_v10  ;;  %1569 = vmatpush1.bf16.msra.mxu1 %v2530_v1 }
 0x7cb   : > { %1529 = vmatprep.subr.bf16.mxu0 %v2534_v34  ;;  %1570 = vmatprep.subr.bf16.mxu1 %v2538_v35 }
 0x7ce   : > { %1530 = vmatpush1.bf16.msra.mxu0 %v2542_v36  ;;  %1571 = vmatpush1.bf16.msra.mxu1 %v2546_v37 }
 0x7cf   : > { %1531 = vmatprep.subr.bf16.mxu0 %v2550_v38  ;;  %1572 = vmatprep.subr.bf16.mxu1 %v2554_v39 }
 0x7d2   : > { %1532 = vmatpush1.bf16.msra.mxu0 %v2558_v40  ;;  %1573 = vmatpush1.bf16.msra.mxu1 %v2562_v19 }
 0x7d3   : > { %1533 = vmatprep.subr.bf16.mxu0 %v2566_v20  ;;  %1574 = vmatprep.subr.bf16.mxu1 %v2570_v21 }
 0x7d6   : > { %1534 = vmatpush1.bf16.msra.mxu0 %v2574_v22  ;;  %1575 = vmatpush1.bf16.msra.mxu1 %v2578_v23 }
 0x7d7   : > { %1535 = vmatprep.subr.bf16.mxu0 %v2582_v24  ;;  %1576 = vmatprep.subr.bf16.mxu1 %v2586_v25 }
 0x7da   : > { %1536 = vmatpush1.bf16.msra.mxu0 %v2590_v26  ;;  %1577 = vmatpush1.bf16.msra.mxu1 %v2594_v27  ;;  %v1507_v27 = vld [vmem:[#allocation3] sm:$0x3] }
 0x890   : > { %v1410_v0 = vpop.f32.mrb[28].mxu0  ;;  %v1451_v41 = vpop.f32.mrb[28].mxu1 }
 0x891   : > { %v1412_v42 = vpop.f32.mrb[29].mxu0  ;;  %v1453_v44 = vpop.f32.mrb[29].mxu1 }
 0x892   : > { %v1462_v45 = vcombine.low %v1410_v0, %v1412_v42  ;;  %v1463_v46 = vcombine.low %v1451_v41, %v1453_v44  ;;  %v1414_v47 = vpop.f32.mrb[30].mxu0  ;;  %v1455_v4 = vpop.f32.mrb[30].mxu1 }
 0x893   : > { %v1415_v5 = vpop.f32.mrb[31].mxu0  ;;  %v1456_v6 = vpop.f32.mrb[31].mxu1 }
 0x894   : > { %v1470_v7 = vrot.slane %v1462_v45, %v2262_v43  ;;  %v1477_v8 = vrot.slane %v1463_v46, %v2262_v43 }
 0x896   : > { %v1478_v10 = vcombine.low %v1470_v7, %v1477_v8 }
 0x898   : > { %v1480_v1 = vadd.f32 %v1803_v9, %v1478_v10 }
 0x89a   : > { %v1804_v34 = vmul.f32 -1.442695, %v1480_v1  ;;  %v1488_v35 = vrot.slane %v1480_v1, 2  ;;  %v1499_v37 = vrot.slane %v1480_v1, 6  ;;  %v1496_v40 = vrot.slane %v1480_v1, 4 }
 0x89c   : > { %1989 = vpow2.f32 %v1804_v34  ;;  %v1805_v36 = vmul.f32 -1.442695, %v1488_v35  ;;  %v1806_v38 = vmul.f32 -1.442695, %v1499_v37 }
 0x89e   : > { %1991 = vpow2.f32 %v1805_v36 }
 0x89f   : > { %1993 = vpow2.f32 %v1806_v38 }
 0x8a6   : > { %v1990_v39 = vpop.eup %1989 }
 0x8a7   : > { %v1484_v19 = vadd.f32 1.0, %v1990_v39 }
 0x8a8   : > { %v1992_v20 = vpop.eup %1991 }
 0x8a9   : > { %1995 = vrcp.f32 %v1484_v19  ;;  %v1493_v21 = vadd.f32 1.0, %v1992_v20  ;;  %v1994_v22 = vpop.eup %1993 }
 0x8aa   : > { %1997 = vtanh.f32 %v1496_v40  ;;  %v1504_v26 = vadd.f32 1.0, %v1994_v22 }
 0x8ab   : > { %1999 = vrcp.f32 %v1493_v21 }
 0x8ac   : > { %2001 = vrcp.f32 %v1504_v26 }
 0x8b3   : > { %v1996_v23 = vpop.eup %1995 }
 0x8b4   : > { %v1998_v24 = vpop.eup %1997 }
 0x8b5   : > { %v2000_v25 = vpop.eup %1999  ;;  %v1509_v13 = vmul.f32 %v1998_v24, %v1996_v23 }
 0x8b6   : > { %v1508_v12 = vmul.f32 %v2000_v25, %v1507_v27  ;;  %v2002_v15 = vpop.eup %2001 }
 0x8b8   : > { %v1510_v14 = vadd.f32 %v1509_v13, %v1508_v12 }
 0x8ba   : > { %2003 = vtanh.f32 %v1510_v14  ;;  %1513 = vst [vmem:[#allocation3] sm:$0x3] %v1510_v14 }
 0x8c1   : > { %v1652_v46 = vld [vmem:[#allocation3] sm:$0x3] }
 0x8c4   : > { %v2004_v16 = vpop.eup %2003 }
 0x8c5   : > { %v1512_v48 = vmul.f32 %v2004_v16, %v2002_v15 }
 0x8c7   : > { %1807 = vst [vmem:[%s2276_s22 + $0xe] sm:$0x3] %v1512_v48  ;;  %1514 = vst [vmem:[#allocation2] sm:$0x3] %v1512_v48 }
 0x8ce   : > { %v1519_v49 = vld [vmem:[#allocation2] sm:$0x3] }
 0x8cf   : > { %v1520_v2 = vpack.c.bf16 %v1519_v49, %v1519_v49 }
 0x8d1   : > { %1554 = vmatmul.mubr.bf16.vlgmr.msra.gmra.mrb[32].mxu0 %v1520_v2  ;;  %1595 = vmatmul.mubr.bf16.vlgmr.msra.gmra.mrb[32].mxu1 %v1520_v2 }
 0x9a4   : > { %v1555_v17 = vpop.f32.mrb[32].mxu0  ;;  %v1596_v50 = vpop.f32.mrb[32].mxu1 }
 0x9a5   : > { %v1557_v18 = vpop.f32.mrb[33].mxu0  ;;  %v1598_v3 = vpop.f32.mrb[33].mxu1 }
 0x9a6   : > { %v1607_v51 = vcombine.low %v1555_v17, %v1557_v18  ;;  %v1608_v52 = vcombine.low %v1596_v50, %v1598_v3  ;;  %v1559_v53 = vpop.f32.mrb[34].mxu0  ;;  %v1600_v54 = vpop.f32.mrb[34].mxu1 }
 0x9a7   : > { %v1560_v55 = vpop.f32.mrb[35].mxu0  ;;  %v1601_v56 = vpop.f32.mrb[35].mxu1 }
 0x9a8   : > { %v1615_v57 = vrot.slane %v1607_v51, %v2262_v43  ;;  %v1622_v58 = vrot.slane %v1608_v52, %v2262_v43 }
 0x9aa   : > { %v1623_v60 = vcombine.low %v1615_v57, %v1622_v58 }
 0x9ac   : > { %v1625_v61 = vadd.f32 %v1808_v59, %v1623_v60 }
 0x9ae   : > { %v1809_v62 = vmul.f32 -1.442695, %v1625_v61  ;;  %v1633_v63 = vrot.slane %v1625_v61, 2  ;;  %v1644_v29 = vrot.slane %v1625_v61, 6  ;;  %v1641_v32 = vrot.slane %v1625_v61, 4 }
 0x9b0   : > { %2005 = vpow2.f32 %v1809_v62  ;;  %v1810_v28 = vmul.f32 -1.442695, %v1633_v63  ;;  %v1811_v30 = vmul.f32 -1.442695, %v1644_v29 }
 0x9b2   : > { %2007 = vpow2.f32 %v1810_v28 }
 0x9b3   : > { %2009 = vpow2.f32 %v1811_v30 }
 0x9ba   : > { %v2006_v31 = vpop.eup %2005 }
 0x9bb   : > { %v1629_v33 = vadd.f32 1.0, %v2006_v31 }
 0x9bc   : > { %v2008_v11 = vpop.eup %2007 }
 0x9bd   : > { %2011 = vrcp.f32 %v1629_v33  ;;  %v1638_v0 = vadd.f32 1.0, %v2008_v11  ;;  %v2010_v43 = vpop.eup %2009 }
 0x9be   : > { %2013 = vtanh.f32 %v1641_v32  ;;  %v1649_v45 = vadd.f32 1.0, %v2010_v43 }
 0x9bf   : > { %2015 = vrcp.f32 %v1638_v0 }
 0x9c0   : > { %2017 = vrcp.f32 %v1649_v45 }
 0x9c7   : > { %v2012_v41 = vpop.eup %2011 }
 0x9c8   : > { %v2014_v42 = vpop.eup %2013 }
 0x9c9   : > { %v2016_v44 = vpop.eup %2015  ;;  %v1654_v4 = vmul.f32 %v2014_v42, %v2012_v41 }
 0x9ca   : > { %v1653_v47 = vmul.f32 %v2016_v44, %v1652_v46  ;;  %v2018_v6 = vpop.eup %2017 }
 0x9cc   : > { %v1655_v5 = vadd.f32 %v1654_v4, %v1653_v47 }
 0x9ce   : > { %2019 = vtanh.f32 %v1655_v5  ;;  %1658 = vst [vmem:[#allocation3] sm:$0x3] %v1655_v5 }
 0x9d8   : > { %v2020_v7 = vpop.eup %2019 }
 0x9d9   : > { %v1657_v8 = vmul.f32 %v2020_v7, %v2018_v6 }
 0x9db   : > { %1659 = vst [vmem:[#allocation2] sm:$0x3] %v1657_v8  ;;  %1812 = vst [vmem:[%s2276_s22 + $0x10] sm:$0x3] %v1657_v8 }
 0x9dc PF: > { %s12_s9 = sadd.s32 1, %s2059_s9  }
 0x9dd   : > { %p9_p4 = scmp.ge.s32.totalorder %s12_s9, 4  }
 0x9df   :  { %11 = sbr.rel (!%p9_p4) target bundleno = 1 (0x1), region = 77 }

// kernel: _lambda_.27
= control target key start
LH: loop header
LB: loop body
LE: loop exit
PB: predicated region body
PF: predicated region fallthrough
CT: control target
= control target key end

     0   :  { %s885_s12 = smov 0   ;;  %s887_s13 = smov 0   ;;  %s1007_s0 = inlined_call_operand.vmem [shape: bf16[24,128], index: 0, kind: input, shape index: {}]   ;;  %s1008_s1 = inlined_call_operand.vmem [shape: bf16[128,512], index: 1, kind: input, shape index: {}]   ;;  %s1009_s2 = inlined_call_operand.vmem [shape: f32[1,512], index: 2, kind: input, shape index: {}]   ;;  %s1010_s3 = inlined_call_operand.vmem [shape: f32[24,512], index: 3, kind: output, shape index: {}]  }
   0x1   :  { %s889_s14 = smov 0   ;;  %s891_s15 = smov 0  }
   0x2   :  { %s893_s16 = smov 0  }
   0x3 LB: > { %s28_s17 = sadd.s32 1, %s858_s15  ;;  %s705_s18 = sadd.s32 4294967295, %s862_s16   ;;  %s862_s16 = sphi %s893_s16, %s13_s16   ;;  %s858_s15 = sphi %s891_s15, %s1015_s15   ;;  %s854_s14 = sphi %s889_s14, %s1014_s14   ;;  %s850_s13 = sphi %s887_s13, %s1013_s13   ;;  %s846_s12 = sphi %s885_s12, %s1012_s12  }
   0x4   : > { %p30_p0 = scmp.ge.s32.totalorder %s28_s17, 2  ;;  %p76_p1 = scmp.ne.s32.totalorder %s850_s13, %s846_s12 }
   0x5   : > { %p77_p2 = scmp.eq.s32.totalorder %s862_s16, 0  ;;  %p134_p4 = scmp.eq.s32.totalorder %s705_s18, 1 }
   0x6   : > { %s1017_s17 = smov (%p30_p0, %s28_s17), 0  ;;  %s69_s20 = sadd.s32 1, %s850_s13 }
   0x7   : > { %p78_p3 = por %p77_p2, %p76_p1  ;;  %s65_s19 = ssub.s32 %s858_s15, %s1017_s17 }
   0x8   : > { %p67_p5 = scmp.eq.s32.totalorder %s65_s19, 0  ;;  %p920_p6 = por %p134_p4, %p76_p1 }
   0x9   : > { %p709_p7 = scmp.ge.s32.totalorder %s862_s16, 2 }
   0xa   : > { %s925_s22 = scalar_select %p67_p5, %s850_s13, %s69_s20  }
   0xb   : > { %168 = sbr.rel (%p709_p7) target bundleno = 30 (0x1e), region = 20 }
  0x12   : > { %171 = sbr.rel (!%p78_p3) target bundleno = 30 (0x1e), region = 24  ;;  %s173_s23 = sand.u32 (%p78_p3), 1, %s850_s13  }
  0x13   : > { %s738_s24 = sshll.u32 (%p78_p3), %s858_s15, 3  ;;  %s710_s25 = sshll.u32 (%p78_p3), %s173_s23, 7 }
  0x14   : > { %s933_s28 = scalar_lea.vmem (%p78_p3), %s1008_s1, %s738_s24  ;;  %s175_s29 = scalar_lea.vmem (%p78_p3), [#allocation3], %s710_s25 }
  0x15   : > { %v239_v0 = vld [vmem:[%s933_s28] sm:$0xff] (%p78_p3)  ;;  %v241_v1 = vld [vmem:[%s933_s28 + $0x10] sm:$0xff] (%p78_p3) }
  0x16   : > { %v243_v2 = vld [vmem:[%s933_s28 + $0x20] sm:$0xff] (%p78_p3)  ;;  %240 = vst [vmem:[%s175_s29] sm:$0xff] (%p78_p3), %v239_v0  ;;  %242 = vst [vmem:[%s175_s29 + $0x8] sm:$0xff] (%p78_p3), %v241_v1  ;;  %v245_v3 = vld [vmem:[%s933_s28 + $0x30] sm:$0xff] (%p78_p3) }
  0x17   : > { %244 = vst [vmem:[%s175_s29 + $0x10] sm:$0xff] (%p78_p3), %v243_v2  ;;  %v247_v4 = vld [vmem:[%s933_s28 + $0x40] sm:$0xff] (%p78_p3)  ;;  %v249_v5 = vld [vmem:[%s933_s28 + $0x50] sm:$0xff] (%p78_p3)  ;;  %246 = vst [vmem:[%s175_s29 + $0x18] sm:$0xff] (%p78_p3), %v245_v3 }
  0x18   : > { %248 = vst [vmem:[%s175_s29 + $0x20] sm:$0xff] (%p78_p3), %v247_v4  ;;  %250 = vst [vmem:[%s175_s29 + $0x28] sm:$0xff] (%p78_p3), %v249_v5  ;;  %v251_v6 = vld [vmem:[%s933_s28 + $0x60] sm:$0xff] (%p78_p3)  ;;  %v253_v7 = vld [vmem:[%s933_s28 + $0x70] sm:$0xff] (%p78_p3) }
  0x19   : > { %v255_v8 = vld [vmem:[%s933_s28 + $0x80] sm:$0xff]  ;;  %252 = vst [vmem:[%s175_s29 + $0x30] sm:$0xff] %v251_v6  ;;  %254 = vst [vmem:[%s175_s29 + $0x38] sm:$0xff] %v253_v7  ;;  %v257_v9 = vld [vmem:[%s933_s28 + $0x90] sm:$0xff] }
  0x1a   : > { %256 = vst [vmem:[%s175_s29 + $0x40] sm:$0xff] %v255_v8  ;;  %v259_v10 = vld [vmem:[%s933_s28 + $0xa0] sm:$0xff]  ;;  %v261_v11 = vld [vmem:[%s933_s28 + $0xb0] sm:$0xff]  ;;  %258 = vst [vmem:[%s175_s29 + $0x48] sm:$0xff] %v257_v9 }
  0x1b   : > { %260 = vst [vmem:[%s175_s29 + $0x50] sm:$0xff] %v259_v10  ;;  %262 = vst [vmem:[%s175_s29 + $0x58] sm:$0xff] %v261_v11  ;;  %v263_v12 = vld [vmem:[%s933_s28 + $0xc0] sm:$0xff]  ;;  %v265_v13 = vld [vmem:[%s933_s28 + $0xd0] sm:$0xff] }
  0x1c   : > { %v267_v14 = vld [vmem:[%s933_s28 + $0xe0] sm:$0xff]  ;;  %264 = vst [vmem:[%s175_s29 + $0x60] sm:$0xff] %v263_v12  ;;  %266 = vst [vmem:[%s175_s29 + $0x68] sm:$0xff] %v265_v13  ;;  %v269_v15 = vld [vmem:[%s933_s28 + $0xf0] sm:$0xff] }
  0x1d   : > { %268 = vst [vmem:[%s175_s29 + $0x70] sm:$0xff] %v267_v14  ;;  %270 = vst [vmem:[%s175_s29 + $0x78] sm:$0xff] %v269_v15 }
  0x1e PF: > { %p713_p8 = scmp.ge.s32.totalorder %s862_s16, 1  ;;  %p283_p9 = scmp.lt.s32.totalorder %s862_s16, 3 }
  0x20   : > { %p284_p10 = pnand %p713_p8, %p283_p9 }
  0x21   : > { %s290_s30 = sand.u32 (!%p284_p10), 1, %s846_s12   ;;  %v864_v16 = vmov (!%p284_p10), 0   ;;  %v822_v33 = vld [vmem:[%s1007_s0] sm:$0xff] (!%p284_p10)   ;;  %v823_v34 = vld [vmem:[%s1007_s0 + $0x8] ss:$0 sps:$4 sm:$0xff] (!%p284_p10)   ;;  %s715_s10 = sshll.u32 (!%p284_p10), %s854_s14, 1  ;;  %v542_v35 = vlaneseq (!%p284_p10) }
  0x22   : > { %287 = sbr.rel (%p284_p10) target bundleno = 295 (0x127), region = 66  ;;  %s714_s4 = sshll.u32 (!%p284_p10), %s290_s30, 7  ;;  %500 = vmatprep.mubr.bf16.mxu0 (!%p284_p10), %v864_v16  ;;  %510 = vmatprep.mubr.bf16.mxu1 (!%p284_p10), %v864_v16 }
  0x23   : > { %s956_s5 = scalar_lea.vmem (!%p284_p10), [#allocation3], %s714_s4  ;;  %p336_p11 = scmp.lt.s32.totalorder (!%p284_p10), %s715_s10, 3  ;;  %v543_v36 = vshrl.u32 (!%p284_p10), %v542_v35, 7 }
  0x24   : > { %v798_v17 = vld [vmem:[%s956_s5 + $0x4] ss:$8 sps:$4 sm:$0xff] (!%p284_p10)   ;;  %v800_v18 = vld [vmem:[%s956_s5] ss:$8 sps:$4 sm:$0xff] (!%p284_p10)   ;;  %v801_v19 = vld [vmem:[%s956_s5 + $0x14] ss:$8 sps:$4 sm:$0xff] (!%p284_p10)  }
  0x25   : > { %468 = vmatprep.subr.bf16.mxu0 (!%p284_p10), %v798_v17  ;;  %740 = vmatprep.subr.bf16.mxu1 (!%p284_p10), %v798_v17  ;;  %v803_v20 = vld [vmem:[%s956_s5 + $0x10] ss:$8 sps:$4 sm:$0xff] (!%p284_p10)   ;;  %v804_v21 = vld [vmem:[%s956_s5 + $0x24] ss:$8 sps:$4 sm:$0xff] (!%p284_p10)   ;;  %v806_v22 = vld [vmem:[%s956_s5 + $0x20] ss:$8 sps:$4 sm:$0xff] (!%p284_p10)  }
  0x26   : > { %469 = vmatpush1.bf16.msra.mxu0 (!%p284_p10), %v800_v18  ;;  %748 = vmatpush1.bf16.msra.mxu1 (!%p284_p10), %v800_v18  ;;  %v807_v23 = vld [vmem:[%s956_s5 + $0x34] ss:$8 sps:$4 sm:$0xff] (!%p284_p10)   ;;  %v809_v24 = vld [vmem:[%s956_s5 + $0x30] ss:$8 sps:$4 sm:$0xff] (!%p284_p10)   ;;  %v810_v25 = vld [vmem:[%s956_s5 + $0x44] ss:$8 sps:$4 sm:$0xff] (!%p284_p10)  }
  0x27   : > { %470 = vmatprep.subr.bf16.mxu0 (!%p284_p10), %v801_v19  ;;  %741 = vmatprep.subr.bf16.mxu1 (!%p284_p10), %v801_v19  ;;  %v812_v26 = vld [vmem:[%s956_s5 + $0x40] ss:$8 sps:$4 sm:$0xff] (!%p284_p10)   ;;  %v813_v27 = vld [vmem:[%s956_s5 + $0x54] ss:$8 sps:$4 sm:$0xff] (!%p284_p10)   ;;  %v815_v28 = vld [vmem:[%s956_s5 + $0x50] ss:$8 sps:$4 sm:$0xff] (!%p284_p10)  }
  0x28   : > { %v816_v29 = vld [vmem:[%s956_s5 + $0x64] ss:$8 sps:$4 sm:$0xff] (!%p284_p10)   ;;  %v818_v30 = vld [vmem:[%s956_s5 + $0x60] ss:$8 sps:$4 sm:$0xff] (!%p284_p10)   ;;  %v819_v31 = vld [vmem:[%s956_s5 + $0x74] ss:$8 sps:$4 sm:$0xff] (!%p284_p10)  }
  0x29   : > { %v821_v32 = vld [vmem:[%s956_s5 + $0x70] ss:$8 sps:$4 sm:$0xff]   ;;  %s1019_s10 = smov (!%p336_p11, %s715_s10), 3  ;;  %v544_v37 = vsub.s32 0, %v543_v36  ;;  %v548_v39 = vsub.s32 1, %v543_v36  ;;  %s756_s20 = smul.u32 48, %s290_s30 }
  0x2a   : > { %471 = vmatpush1.bf16.msra.mxu0 %v803_v20  ;;  %749 = vmatpush1.bf16.msra.mxu1 %v803_v20  ;;  %s338_s19 = scalar_lea.vmem %s1009_s2, %s1019_s10  ;;  %s739_s12 = sshll.u32 (%p920_p6), %s854_s14, 4 }
  0x2b   : > { %472 = vmatprep.subr.bf16.mxu0 %v804_v21  ;;  %742 = vmatprep.subr.bf16.mxu1 %v804_v21  ;;  %v540_v38 = vld [vmem:[%s338_s19] sm:$0x3]  ;;  %s323_s23 = scalar_lea.vmem [#allocation4], %s756_s20  ;;  %s576_s26 = scalar_lea.vmem (%p920_p6), %s1010_s3, %s739_s12 }
  0x2c   : > { %v545_v40 = vrot.slane %v540_v38, %v544_v37  ;;  %v549_v41 = vrot.slane %v540_v38, %v548_v39 }
  0x2e   : > { %473 = vmatpush1.bf16.msra.mxu0 %v806_v22  ;;  %750 = vmatpush1.bf16.msra.mxu1 %v806_v22 }
  0x2f   : > { %474 = vmatprep.subr.bf16.mxu0 %v807_v23  ;;  %743 = vmatprep.subr.bf16.mxu1 %v807_v23 }
  0x32   : > { %475 = vmatpush1.bf16.msra.mxu0 %v809_v24  ;;  %751 = vmatpush1.bf16.msra.mxu1 %v809_v24 }
  0x33   : > { %476 = vmatprep.subr.bf16.mxu0 %v810_v25  ;;  %744 = vmatprep.subr.bf16.mxu1 %v810_v25 }
  0x36   : > { %477 = vmatpush1.bf16.msra.mxu0 %v812_v26  ;;  %752 = vmatpush1.bf16.msra.mxu1 %v812_v26 }
  0x37   : > { %478 = vmatprep.subr.bf16.mxu0 %v813_v27  ;;  %745 = vmatprep.subr.bf16.mxu1 %v813_v27 }
  0x3a   : > { %479 = vmatpush1.bf16.msra.mxu0 %v815_v28  ;;  %753 = vmatpush1.bf16.msra.mxu1 %v815_v28 }
  0x3b   : > { %480 = vmatprep.subr.bf16.mxu0 %v816_v29  ;;  %746 = vmatprep.subr.bf16.mxu1 %v816_v29 }
  0x3e   : > { %481 = vmatpush1.bf16.msra.mxu0 %v818_v30  ;;  %754 = vmatpush1.bf16.msra.mxu1 %v818_v30 }
  0x3f   : > { %482 = vmatprep.subr.bf16.mxu0 %v819_v31  ;;  %747 = vmatprep.subr.bf16.mxu1 %v819_v31 }
  0x42   : > { %483 = vmatpush1.bf16.msra.mxu0 %v821_v32  ;;  %755 = vmatpush1.bf16.msra.mxu1 %v821_v32 }
  0x45   : > { %501 = vmatmul.mubr.bf16.vlgmr.msra.gmra.mrb[0].mxu0 %v822_v33  ;;  %511 = vmatmul.mubr.bf16.vlgmr.msra.gmra.mrb[0].mxu1 %v823_v34 }
 0x118   : > { %v502_v42 = vpop.f32.mrb[0].mxu0  ;;  %v512_v43 = vpop.f32.mrb[0].mxu1  ;;  %570 = sbr.rel (!%p920_p6) target bundleno = 295 (0x127), region = 82 }
 0x119   : > { %v552_v44 = vadd.f32 %v545_v40, %v502_v42  ;;  %v556_v45 = vadd.f32 %v545_v40, %v512_v43  ;;  %v504_v46 = vpop.f32.mrb[1].mxu0  ;;  %v514_v47 = vpop.f32.mrb[1].mxu1 }
 0x11a   : > { %v553_v48 = vadd.f32 %v549_v41, %v504_v46  ;;  %v557_v49 = vadd.f32 %v549_v41, %v514_v47  ;;  %v506_v50 = vpop.f32.mrb[2].mxu0  ;;  %v516_v51 = vpop.f32.mrb[2].mxu1 }
 0x11b   : > { %558 = vst [vmem:[%s323_s23] sm:$0xff] %v552_v44  ;;  %562 = vst [vmem:[%s323_s23 + $0x20] sm:$0xff] %v556_v45  ;;  %v554_v52 = vadd.f32 %v545_v40, %v506_v50  ;;  %v508_v53 = vpop.f32.mrb[3].mxu0  ;;  %v517_v54 = vpop.f32.mrb[3].mxu1 }
 0x11c   : > { %559 = vst [vmem:[%s323_s23 + $0x8] sm:$0xff] %v553_v48  ;;  %563 = vst [vmem:[%s323_s23 + $0x28] sm:$0xff] %v557_v49  ;;  %v555_v55 = vadd.f32 %v549_v41, %v508_v53 }
 0x11d   : > { %560 = vst [vmem:[%s323_s23 + $0x10] sm:$0xff] %v554_v52 }
 0x11e   : > { %561 = vst [vmem:[%s323_s23 + $0x18] sm:$0xff] %v555_v55 }
 0x122   : > { %v589_v56 = vld [vmem:[%s323_s23] sm:$0xff] }
 0x123   : > { %v591_v57 = vld [vmem:[%s323_s23 + $0x8] sm:$0xff]  ;;  %v597_v60 = vld [vmem:[%s323_s23 + $0x20] sm:$0xff]  ;;  %590 = vst [vmem:[%s576_s26] sm:$0xff] %v589_v56 }
 0x124   : > { %v593_v58 = vld [vmem:[%s323_s23 + $0x10] sm:$0xff]  ;;  %v599_v61 = vld [vmem:[%s323_s23 + $0x28] sm:$0xff]  ;;  %592 = vst [vmem:[%s576_s26 + $0x8] sm:$0xff] %v591_v57  ;;  %598 = vst [vmem:[%s576_s26 + $0x40] sm:$0xff] %v597_v60 }
 0x125   : > { %v595_v59 = vld [vmem:[%s323_s23 + $0x18] sm:$0xff]  ;;  %594 = vst [vmem:[%s576_s26 + $0x20] sm:$0xff] %v593_v58  ;;  %600 = vst [vmem:[%s576_s26 + $0x48] sm:$0xff] %v599_v61 }
 0x126   : > { %596 = vst [vmem:[%s576_s26 + $0x28] sm:$0xff] %v595_v59 }
 0x127 PF: > { %s13_s16 = sadd.s32 1, %s862_s16   ;;  %s1012_s12 = smov %s850_s13 }
 0x128   : > { %p10_p12 = scmp.ge.s32.totalorder %s13_s16, 4   ;;  %s1013_s13 = smov %s925_s22 }
 0x129   : > { %s1014_s14 = smov %s858_s15  ;;  %s1015_s15 = smov %s1017_s17 }
 0x12a   :  { %12 = sbr.rel (!%p10_p12) target bundleno = 3 (0x3), region = 142 }

</bundles_post_ra>
